<compile_context>
chip_gen: v7x
topology: tpu7x:2x2x1
jax: 0.10.0
libtpu: 0.0.40
codegen_flags: <defaults>
</compile_context>

<pallas_src>
import jax
import jax.numpy as jnp
from jax.experimental import pallas as pl
from jax.experimental.pallas import tpu as pltpu

DIM_H = 512
LAYER_DIMS = [
    (512, DIM_H * 3),         # 512  -> 1536
    (DIM_H * 3, DIM_H * 2),   # 1536 -> 1024
    (DIM_H * 2, DIM_H // 2),  # 1024 -> 256
    (DIM_H // 2, DIM_H // 4), # 256  -> 128
    (DIM_H // 4, 1),          # 128  -> 1
]
_OUT_PAD = 128  # lane-dense padding of the final width-1 layer


def _disc_kernel(x_ref,
                 w1_ref, b1_ref,
                 w2_ref, b2_ref,
                 w3_ref, b3_ref,
                 w4_ref, b4_ref,
                 w5_ref, b5_ref,
                 o_ref):
    """Entire MLP fused per batch tile.

    bf16 operands hit the MXU with f32 accumulation; bias-add / ReLU / sigmoid
    run in f32 on the VPU/EUP on resident VMEM tiles. Activations are recast
    to bf16 between layers so every matmul stays at full bf16 MXU throughput.
    """
    h = x_ref[...]  # bf16, fed straight into the MXU (no f32 upcast)

    # Layer 1: 512 -> 1536, ReLU (Dropout = identity in eval)
    h = jnp.maximum(
        jnp.dot(h, w1_ref[...], preferred_element_type=jnp.float32) + b1_ref[...],
        0.0).astype(jnp.bfloat16)

    # Layer 2: 1536 -> 1024, ReLU
    h = jnp.maximum(
        jnp.dot(h, w2_ref[...], preferred_element_type=jnp.float32) + b2_ref[...],
        0.0).astype(jnp.bfloat16)

    # Layer 3: 1024 -> 256, ReLU
    h = jnp.maximum(
        jnp.dot(h, w3_ref[...], preferred_element_type=jnp.float32) + b3_ref[...],
        0.0).astype(jnp.bfloat16)

    # Layer 4: 256 -> 128, ReLU
    h = jnp.maximum(
        jnp.dot(h, w4_ref[...], preferred_element_type=jnp.float32) + b4_ref[...],
        0.0).astype(jnp.bfloat16)

    # Layer 5: 128 -> 128 (zero-padded from 128 -> 1), Sigmoid.
    # Only column 0 is meaningful; padding makes the output store lane-dense.
    z = jnp.dot(h, w5_ref[...], preferred_element_type=jnp.float32) + b5_ref[...]
    o_ref[...] = jax.nn.sigmoid(z)


def discriminator_forward(x, params, *, batch_tile=128):
    """x: (B, 512) float. params: list of (W_(in,out) , b_(1,out)). Returns (B, 1) f32."""
    B, D = x.shape
    assert D == 512, f"expected input dim 512, got {D}"

    # Pad batch to a multiple of the tile so any batch size works.
    B_pad = ((B + batch_tile - 1) // batch_tile) * batch_tile
    if B_pad != B:
        x = jnp.pad(x, ((0, B_pad - B), (0, 0)))
    x = x.astype(jnp.bfloat16)

    grid = (B_pad // batch_tile,)

    # Build kernel operands: bf16 weights, f32 biases; pad the final layer to
    # 128 output lanes with zeros (extra columns produce sigmoid(0)=0.5, sliced off).
    flat_params = []
    padded_dims = []
    for li, ((din, dout), (w, b)) in enumerate(zip(LAYER_DIMS, params)):
        assert w.shape == (din, dout) and b.shape == (1, dout)
        if li == len(LAYER_DIMS) - 1:
            w = jnp.zeros((din, _OUT_PAD), w.dtype).at[:, :dout].set(w)
            b = jnp.zeros((1, _OUT_PAD), b.dtype).at[:, :dout].set(b)
            dout = _OUT_PAD
        flat_params.append(w.astype(jnp.bfloat16))
        flat_params.append(b.astype(jnp.float32))
        padded_dims.append((din, dout))

    # x tiled along batch; weights/biases fully resident (same block every step).
    in_specs = [pl.BlockSpec((batch_tile, D), lambda i: (i, 0))]
    for (din, dout) in padded_dims:
        in_specs.append(pl.BlockSpec((din, dout), lambda i: (0, 0)))
        in_specs.append(pl.BlockSpec((1, dout), lambda i: (0, 0)))

    out_spec = pl.BlockSpec((batch_tile, _OUT_PAD), lambda i: (i, 0))

    # Advisory cost estimate for XLA's scheduler.
    matmul_flops = 2 * B_pad * sum(din * dout for din, dout in padded_dims)
    weight_bytes = sum(2 * din * dout + 4 * dout for din, dout in padded_dims)
    bytes_accessed = weight_bytes + B_pad * D * 2 + B_pad * _OUT_PAD * 4
    cost = pl.CostEstimate(flops=matmul_flops,
                           transcendentals=B_pad * _OUT_PAD,
                           bytes_accessed=bytes_accessed)

    out = pl.pallas_call(
        _disc_kernel,
        out_shape=jax.ShapeDtypeStruct((B_pad, _OUT_PAD), jnp.float32),
        grid_spec=pltpu.PrefetchScalarGridSpec(
            num_scalar_prefetch=0,
            grid=grid,
            in_specs=in_specs,
            out_specs=out_spec,
        ),
        compiler_params=pltpu.CompilerParams(
            dimension_semantics=("parallel",),   # shards batch tiles across TCs on v7x
            vmem_limit_bytes=32 << 20,           # bf16 weights (~5.3 MB, 2x buffered) + tiles
        ),
        cost_estimate=cost,
    )(x, *flat_params)

    return out[:B, :1]


def init_params(key):
    """Deterministic init matching PyTorch Linear shapes (weights stored as (in, out))."""
    params = []
    for (din, dout) in LAYER_DIMS:
        key, kw, kb = jax.random.split(key, 3)
        bound = 1.0 / jnp.sqrt(din)  # PyTorch default Linear init range
        w = jax.random.uniform(kw, (din, dout), jnp.float32, -bound, bound)
        b = jax.random.uniform(kb, (1, dout), jnp.float32, -bound, bound)
        params.append((w, b))
    return params


def reference_forward(x, params):
    h = x
    for i, (w, b) in enumerate(params):
        h = h @ w + b
        if i < len(params) - 1:
            h = jnp.maximum(h, 0.0)
    return jax.nn.sigmoid(h)


if __name__ == "__main__":
    key = jax.random.PRNGKey(0)
    k_x, k_p = jax.random.split(key)

    B = 256                 # 2 grid steps at batch_tile=128 (exercises megacore sharding)
    x = jax.random.normal(k_x, (B, 512), dtype=jnp.float32)
    params = init_params(k_p)

    out = discriminator_forward(x, params, batch_tile=128)
    out = jax.block_until_ready(out)

    ref = reference_forward(x, params)  # f32 reference; kernel runs bf16 weights/activations
    assert out.shape == (B, 1)
    assert jnp.allclose(out, ref, atol=2.5e-2, rtol=0.0), "mismatch vs reference"

    print("KERNEL_OK")
</pallas_src>

<mosaic_0001>
module attributes {stable_mosaic.version = 11 : i64} {
  func.func @_disc_kernel(%arg0: i32, %arg1: memref<128x512xbf16, #tpu.memory_space<vmem>>, %arg2: memref<512x1536xbf16, #tpu.memory_space<vmem>>, %arg3: memref<1x1536xf32, #tpu.memory_space<vmem>>, %arg4: memref<1536x1024xbf16, #tpu.memory_space<vmem>>, %arg5: memref<1x1024xf32, #tpu.memory_space<vmem>>, %arg6: memref<1024x256xbf16, #tpu.memory_space<vmem>>, %arg7: memref<1x256xf32, #tpu.memory_space<vmem>>, %arg8: memref<256x128xbf16, #tpu.memory_space<vmem>>, %arg9: memref<1x128xf32, #tpu.memory_space<vmem>>, %arg10: memref<128x128xbf16, #tpu.memory_space<vmem>>, %arg11: memref<1x128xf32, #tpu.memory_space<vmem>>, %arg12: memref<128x128xf32, #tpu.memory_space<vmem>>) attributes {dimension_semantics = [#tpu.dimension_semantics<parallel>], iteration_bounds = array<i64: 2>, scalar_prefetch = 0 : i64, scratch_operands = 0 : i64, tpu.core_type = #tpu.core_type<tc>, window_params = [{transform_indices = @transform_0, window_bounds = array<i64: 128, 512>}, {pipeline_mode = #tpu.pipeline_mode<synchronous>, transform_indices = @transform_1, window_bounds = array<i64: 512, 1536>}, {pipeline_mode = #tpu.pipeline_mode<synchronous>, transform_indices = @transform_2, window_bounds = array<i64: 1, 1536>}, {pipeline_mode = #tpu.pipeline_mode<synchronous>, transform_indices = @transform_3, window_bounds = array<i64: 1536, 1024>}, {pipeline_mode = #tpu.pipeline_mode<synchronous>, transform_indices = @transform_4, window_bounds = array<i64: 1, 1024>}, {pipeline_mode = #tpu.pipeline_mode<synchronous>, transform_indices = @transform_5, window_bounds = array<i64: 1024, 256>}, {pipeline_mode = #tpu.pipeline_mode<synchronous>, transform_indices = @transform_6, window_bounds = array<i64: 1, 256>}, {pipeline_mode = #tpu.pipeline_mode<synchronous>, transform_indices = @transform_7, window_bounds = array<i64: 256, 128>}, {pipeline_mode = #tpu.pipeline_mode<synchronous>, transform_indices = @transform_8, window_bounds = array<i64: 1, 128>}, {pipeline_mode = #tpu.pipeline_mode<synchronous>, transform_indices = @transform_9, window_bounds = array<i64: 128, 128>}, {pipeline_mode = #tpu.pipeline_mode<synchronous>, transform_indices = @transform_10, window_bounds = array<i64: 1, 128>}, {transform_indices = @transform_11, window_bounds = array<i64: 128, 128>}]} {
    %c0 = arith.constant 0 : index
    %c0_0 = arith.constant 0 : index
    %0 = vector.load %arg1[%c0, %c0_0] : memref<128x512xbf16, #tpu.memory_space<vmem>>, vector<128x512xbf16>
    %c0_1 = arith.constant 0 : index
    %c0_2 = arith.constant 0 : index
    %1 = vector.load %arg2[%c0_1, %c0_2] : memref<512x1536xbf16, #tpu.memory_space<vmem>>, vector<512x1536xbf16>
    %cst = arith.constant dense<0.000000e+00> : vector<128x1536xf32>
    %2 = tpu.matmul %0, %1, %cst {dimension_numbers = #tpu.dot_dimension_numbers<[1], [0], [0], [1], [0, 0, 1, 1], [], []>} : vector<128x512xbf16>, vector<512x1536xbf16>, vector<128x1536xf32> -> vector<128x1536xf32>
    %c0_3 = arith.constant 0 : index
    %c0_4 = arith.constant 0 : index
    %3 = vector.load %arg3[%c0_3, %c0_4] : memref<1x1536xf32, #tpu.memory_space<vmem>>, vector<1x1536xf32>
    %4 = vector.broadcast %3 : vector<1x1536xf32> to vector<128x1536xf32>
    %5 = arith.addf %2, %4 : vector<128x1536xf32>
    %cst_5 = arith.constant 0.000000e+00 : f32
    %6 = vector.broadcast %cst_5 : f32 to vector<128x1536xf32>
    %7 = arith.maximumf %5, %6 : vector<128x1536xf32>
    %8 = arith.truncf %7 : vector<128x1536xf32> to vector<128x1536xbf16>
    %c0_6 = arith.constant 0 : index
    %c0_7 = arith.constant 0 : index
    %9 = vector.load %arg4[%c0_6, %c0_7] : memref<1536x1024xbf16, #tpu.memory_space<vmem>>, vector<1536x1024xbf16>
    %cst_8 = arith.constant dense<0.000000e+00> : vector<128x1024xf32>
    %10 = tpu.matmul %8, %9, %cst_8 {dimension_numbers = #tpu.dot_dimension_numbers<[1], [0], [0], [1], [0, 0, 1, 1], [], []>} : vector<128x1536xbf16>, vector<1536x1024xbf16>, vector<128x1024xf32> -> vector<128x1024xf32>
    %c0_9 = arith.constant 0 : index
    %c0_10 = arith.constant 0 : index
    %11 = vector.load %arg5[%c0_9, %c0_10] : memref<1x1024xf32, #tpu.memory_space<vmem>>, vector<1x1024xf32>
    %12 = vector.broadcast %11 : vector<1x1024xf32> to vector<128x1024xf32>
    %13 = arith.addf %10, %12 : vector<128x1024xf32>
    %cst_11 = arith.constant 0.000000e+00 : f32
    %14 = vector.broadcast %cst_11 : f32 to vector<128x1024xf32>
    %15 = arith.maximumf %13, %14 : vector<128x1024xf32>
    %16 = arith.truncf %15 : vector<128x1024xf32> to vector<128x1024xbf16>
    %c0_12 = arith.constant 0 : index
    %c0_13 = arith.constant 0 : index
    %17 = vector.load %arg6[%c0_12, %c0_13] : memref<1024x256xbf16, #tpu.memory_space<vmem>>, vector<1024x256xbf16>
    %cst_14 = arith.constant dense<0.000000e+00> : vector<128x256xf32>
    %18 = tpu.matmul %16, %17, %cst_14 {dimension_numbers = #tpu.dot_dimension_numbers<[1], [0], [0], [1], [0, 0, 1, 1], [], []>} : vector<128x1024xbf16>, vector<1024x256xbf16>, vector<128x256xf32> -> vector<128x256xf32>
    %c0_15 = arith.constant 0 : index
    %c0_16 = arith.constant 0 : index
    %19 = vector.load %arg7[%c0_15, %c0_16] : memref<1x256xf32, #tpu.memory_space<vmem>>, vector<1x256xf32>
    %20 = vector.broadcast %19 : vector<1x256xf32> to vector<128x256xf32>
    %21 = arith.addf %18, %20 : vector<128x256xf32>
    %cst_17 = arith.constant 0.000000e+00 : f32
    %22 = vector.broadcast %cst_17 : f32 to vector<128x256xf32>
    %23 = arith.maximumf %21, %22 : vector<128x256xf32>
    %24 = arith.truncf %23 : vector<128x256xf32> to vector<128x256xbf16>
    %c0_18 = arith.constant 0 : index
    %c0_19 = arith.constant 0 : index
    %25 = vector.load %arg8[%c0_18, %c0_19] : memref<256x128xbf16, #tpu.memory_space<vmem>>, vector<256x128xbf16>
    %cst_20 = arith.constant dense<0.000000e+00> : vector<128x128xf32>
    %26 = tpu.matmul %24, %25, %cst_20 {dimension_numbers = #tpu.dot_dimension_numbers<[1], [0], [0], [1], [0, 0, 1, 1], [], []>} : vector<128x256xbf16>, vector<256x128xbf16>, vector<128x128xf32> -> vector<128x128xf32>
    %c0_21 = arith.constant 0 : index
    %c0_22 = arith.constant 0 : index
    %27 = vector.load %arg9[%c0_21, %c0_22] : memref<1x128xf32, #tpu.memory_space<vmem>>, vector<1x128xf32>
    %28 = vector.broadcast %27 : vector<1x128xf32> to vector<128x128xf32>
    %29 = arith.addf %26, %28 : vector<128x128xf32>
    %cst_23 = arith.constant 0.000000e+00 : f32
    %30 = vector.broadcast %cst_23 : f32 to vector<128x128xf32>
    %31 = arith.maximumf %29, %30 : vector<128x128xf32>
    %32 = arith.truncf %31 : vector<128x128xf32> to vector<128x128xbf16>
    %c0_24 = arith.constant 0 : index
    %c0_25 = arith.constant 0 : index
    %33 = vector.load %arg10[%c0_24, %c0_25] : memref<128x128xbf16, #tpu.memory_space<vmem>>, vector<128x128xbf16>
    %cst_26 = arith.constant dense<0.000000e+00> : vector<128x128xf32>
    %34 = tpu.matmul %32, %33, %cst_26 {dimension_numbers = #tpu.dot_dimension_numbers<[1], [0], [0], [1], [0, 0, 1, 1], [], []>} : vector<128x128xbf16>, vector<128x128xbf16>, vector<128x128xf32> -> vector<128x128xf32>
    %c0_27 = arith.constant 0 : index
    %c0_28 = arith.constant 0 : index
    %35 = vector.load %arg11[%c0_27, %c0_28] : memref<1x128xf32, #tpu.memory_space<vmem>>, vector<1x128xf32>
    %36 = vector.broadcast %35 : vector<1x128xf32> to vector<128x128xf32>
    %37 = arith.addf %34, %36 : vector<128x128xf32>
    %38 = arith.negf %37 : vector<128x128xf32>
    %39 = math.exp %38 : vector<128x128xf32>
    %cst_29 = arith.constant 1.000000e+00 : f32
    %40 = vector.broadcast %cst_29 : f32 to vector<128x128xf32>
    %41 = arith.addf %40, %39 : vector<128x128xf32>
    %42 = arith.divf %40, %41 : vector<128x128xf32>
    %c0_30 = arith.constant 0 : index
    %c0_31 = arith.constant 0 : index
    %43 = vector.load %arg12[%c0_30, %c0_31] : memref<128x128xf32, #tpu.memory_space<vmem>>, vector<128x128xf32>
    tpu.vector_store %arg12[%c0_30, %c0_31], %42 {strides = array<i32>} : memref<128x128xf32, #tpu.memory_space<vmem>>, vector<128x128xf32>,
    return
  }
  func.func @transform_0(%arg0: i32) -> (i32, i32) {
    %c0_i32 = arith.constant 0 : i32
    %c0_i32_0 = arith.constant 0 : i32
    return %arg0, %c0_i32 : i32, i32
  }
  func.func @transform_1(%arg0: i32) -> (i32, i32) {
    %c0_i32 = arith.constant 0 : i32
    %c0_i32_0 = arith.constant 0 : i32
    %c0_i32_1 = arith.constant 0 : i32
    return %c0_i32, %c0_i32_0 : i32, i32
  }
  func.func @transform_2(%arg0: i32) -> (i32, i32) {
    %c0_i32 = arith.constant 0 : i32
    %c0_i32_0 = arith.constant 0 : i32
    %c0_i32_1 = arith.constant 0 : i32
    return %c0_i32, %c0_i32_0 : i32, i32
  }
  func.func @transform_3(%arg0: i32) -> (i32, i32) {
    %c0_i32 = arith.constant 0 : i32
    %c0_i32_0 = arith.constant 0 : i32
    %c0_i32_1 = arith.constant 0 : i32
    return %c0_i32, %c0_i32_0 : i32, i32
  }
  func.func @transform_4(%arg0: i32) -> (i32, i32) {
    %c0_i32 = arith.constant 0 : i32
    %c0_i32_0 = arith.constant 0 : i32
    %c0_i32_1 = arith.constant 0 : i32
    return %c0_i32, %c0_i32_0 : i32, i32
  }
  func.func @transform_5(%arg0: i32) -> (i32, i32) {
    %c0_i32 = arith.constant 0 : i32
    %c0_i32_0 = arith.constant 0 : i32
    %c0_i32_1 = arith.constant 0 : i32
    return %c0_i32, %c0_i32_0 : i32, i32
  }
  func.func @transform_6(%arg0: i32) -> (i32, i32) {
    %c0_i32 = arith.constant 0 : i32
    %c0_i32_0 = arith.constant 0 : i32
    %c0_i32_1 = arith.constant 0 : i32
    return %c0_i32, %c0_i32_0 : i32, i32
  }
  func.func @transform_7(%arg0: i32) -> (i32, i32) {
    %c0_i32 = arith.constant 0 : i32
    %c0_i32_0 = arith.constant 0 : i32
    %c0_i32_1 = arith.constant 0 : i32
    return %c0_i32, %c0_i32_0 : i32, i32
  }
  func.func @transform_8(%arg0: i32) -> (i32, i32) {
    %c0_i32 = arith.constant 0 : i32
    %c0_i32_0 = arith.constant 0 : i32
    %c0_i32_1 = arith.constant 0 : i32
    return %c0_i32, %c0_i32_0 : i32, i32
  }
  func.func @transform_9(%arg0: i32) -> (i32, i32) {
    %c0_i32 = arith.constant 0 : i32
    %c0_i32_0 = arith.constant 0 : i32
    %c0_i32_1 = arith.constant 0 : i32
    return %c0_i32, %c0_i32_0 : i32, i32
  }
  func.func @transform_10(%arg0: i32) -> (i32, i32) {
    %c0_i32 = arith.constant 0 : i32
    %c0_i32_0 = arith.constant 0 : i32
    %c0_i32_1 = arith.constant 0 : i32
    return %c0_i32, %c0_i32_0 : i32, i32
  }
  func.func @transform_11(%arg0: i32) -> (i32, i32) {
    %c0_i32 = arith.constant 0 : i32
    %c0_i32_0 = arith.constant 0 : i32
    return %arg0, %c0_i32 : i32, i32
  }
}

</mosaic_0001>

<bundles_post_ra>
// kernel: tpu_custom_call.1
= control target key start
LH: loop header
LB: loop body
LE: loop exit
PB: predicated region body
PF: predicated region fallthrough
CT: control target
= control target key end

     0   :  { %s20909_s0 = inlined_call_operand.hbm [shape: bf16[256,512], index: 0, kind: input, shape index: {}]   ;;  %s20910_s1 = inlined_call_operand.hbm [shape: bf16[512,1536], index: 1, kind: input, shape index: {}]   ;;  %s20911_s2 = inlined_call_operand.hbm [shape: f32[1,1536], index: 2, kind: input, shape index: {}]   ;;  %s20912_s3 = inlined_call_operand.hbm [shape: bf16[1536,1024], index: 3, kind: input, shape index: {}]   ;;  %s20913_s4 = inlined_call_operand.hbm [shape: f32[1,1024], index: 4, kind: input, shape index: {}]   ;;  %s20914_s5 = inlined_call_operand.hbm [shape: bf16[1024,256], index: 5, kind: input, shape index: {}]   ;;  %s20915_s6 = inlined_call_operand.hbm [shape: f32[1,256], index: 6, kind: input, shape index: {}]   ;;  %s20916_s7 = inlined_call_operand.hbm [shape: bf16[256,128], index: 7, kind: input, shape index: {}]   ;;  %s20917_s8 = inlined_call_operand.hbm [shape: f32[1,128], index: 8, kind: input, shape index: {}]   ;;  %s20918_s9 = inlined_call_operand.hbm [shape: bf16[128,128], index: 9, kind: input, shape index: {}]   ;;  %s20919_s10 = inlined_call_operand.hbm [shape: f32[1,128], index: 10, kind: input, shape index: {}]   ;;  %s20920_s11 = inlined_call_operand.hbm [shape: f32[256,128], index: 11, kind: output, shape index: {}]  }
   0x1   :  { %21110 = sst [smem:[#allocation121_spill]] %s20909_s0 }
   0x2   :  { %21111 = sst [smem:[#allocation122_spill]] %s20910_s1 }
   0x3   :  { %21112 = sst [smem:[#allocation123_spill]] %s20920_s11 }
   0x4   :  { %16 = vsyncpa [#allocation3], 0 }
   0x5   :  { %18 = vsyncpa [#allocation3 + $0x1], 0 }
   0x6   :  { %19 = vsyncpa [#allocation6], 0 }
   0x7   :  { %20 = vsyncpa [#allocation9], 0 }
   0x8   :  { %21 = vsyncpa [#allocation12], 0 }
   0x9   :  { %22 = vsyncpa [#allocation15], 0 }
   0xa   :  { %23 = vsyncpa [#allocation18], 0 }
   0xb   :  { %24 = vsyncpa [#allocation4], 0 }
   0xc   :  { %26 = vsyncpa [#allocation4 + $0x1], 0  ;;  %s18714_s17 = smov 0   ;;  %s18716_s18 = smov 0  }
   0xd   :  { %s18718_s19 = smov 0   ;;  %s18720_s20 = smov 0  }
   0xe LB: > { %s18630_s21 = smov [#allocation5]   ;;  %s18735_s23 = sadd.s32 4294967295, %s18628_s20   ;;  %s18628_s20 = sphi %s18720_s20, %s21445_s20   ;;  %s18624_s19 = sphi %s18718_s19, %s21444_s19   ;;  %s18620_s18 = sphi %s18716_s18, %s21443_s18   ;;  %s18616_s17 = sphi %s18714_s17, %s21442_s17  }
   0xf   : > { %s311_s22 = sshll.u32 %s18630_s21, 4  ;;  %p14301_p0 = scmp.ge.s32.totalorder %s18628_s20, 1  ;;  %s18740_s22 = int_to_ptr.vmem [resolvable:$true] %s311_s22 }
  0x10   : > { %p20924_p1 = scmp.eq.s32.totalorder %s18735_s23, 0  ;;  %p299_p2 = scmp.lt.s32.totalorder %s18628_s20, 3 }
  0x11   : > { %s18631_s25 = smov [#allocation8]   ;;  %s18632_s28 = smov [#allocation11]  }
  0x12   : > { %p18742_p3 = pnand %p14301_p0, %p299_p2  ;;  %s335_s26 = sshll.u32 %s18631_s25, 4  ;;  %s18755_s26 = int_to_ptr.vmem [resolvable:$true] %s335_s26 }
  0x13   : > { %s18757_s29 = sshll.u32 %s18632_s28, 4  ;;  %s21116_s1 = sld [smem:[#allocation122_spill]]  ;;  %s360_s29 = int_to_ptr.vmem [resolvable:$true] %s18757_s29 }
  0x14   : > { %s21113_s24 = scalar_select %p18742_p3, 1, 0 }
  0x15   : > { %p17128_p5 = pneg %p18742_p3 }
  0x16   : > { %21114 = sst [smem:[#allocation28_spill]] %s21113_s24 }
  0x17   : > { %p18751_p6 = pnand %p17128_p5, %p20924_p1 }
  0x19   : > { %s18232_s13 = scalar_lea.hbm %s21116_s1, 49152  ;;  %p18767_p8 = pneg %p18751_p6 }
  0x1a   : > { %p18233_p7 = scmp.ne.s32.totalorder %s21116_s1, %s18232_s13  ;;  %p18239_p11 = scmp.lt.u32.totalorder %s18232_s13, %s21116_s1 }
  0x1c   : > { %p18235_p9 = pnand %p18767_p8, %p18233_p7 }
  0x1e   : > { %p18236_p10 = pneg %p18235_p9 }
  0x20   : > { %p18241_p12 = pnand %p18239_p11, %p18236_p10 }
  0x22   : > { %18244 = shalt.err (!%p18241_p12)
}
  0x23   : > { %s18245_s28 = scalar_lea.vmem %s18740_s22, 49152  ;;  %p18253_p5 = scmp.lt.s32.totalorder %s18740_s22, %s18740_s22 }
  0x24   : > { %p18246_p13 = scmp.ne.s32.totalorder %s18740_s22, %s18245_s28  ;;  %p18254_p4 = scmp.lt.s32.totalorder %s18245_s28, %s18245_s28 }
  0x26   : > { %p18248_p0 = pnand %p18246_p13, %p18767_p8  ;;  %p18255_p7 = por %p18254_p4, %p18253_p5 }
  0x28   : > { %p18249_p2 = pneg %p18248_p0 }
  0x2a   : > { %p18256_p9 = pnand %p18255_p7, %p18249_p2 }
  0x2c   : > { %18259 = shalt.err (!%p18256_p9)
}
  0x2d   : > { %s18633_s30 = smov 768   ;;  %s18634_s12 = smov 48  }
  0x2e   : > { %17131 = dma.hbm_to_vmem [thread:$0]  (!%p18751_p6), %s21116_s1, 49152, %s18740_s22, [#allocation6], %s18633_s30, %s18633_s30, %s18634_s12  }
  0x2f   : > { %s18260_s25 = scalar_lea.hbm %s20912_s3, 98304 }
  0x30   : > { %p18261_p4 = scmp.ne.s32.totalorder %s20912_s3, %s18260_s25  ;;  %p18267_p12 = scmp.lt.u32.totalorder %s18260_s25, %s20912_s3 }
  0x32   : > { %p18263_p10 = pnand %p18261_p4, %p18767_p8 }
  0x34   : > { %p18264_p11 = pneg %p18263_p10 }
  0x36   : > { %p18269_p13 = pnand %p18267_p12, %p18264_p11 }
  0x38   : > { %18272 = shalt.err (!%p18269_p13)
}
  0x39   : > { %s18273_s22 = scalar_lea.vmem %s18755_s26, 98304  ;;  %p18281_p7 = scmp.lt.s32.totalorder %s18755_s26, %s18755_s26 }
  0x3a   : > { %p18274_p0 = scmp.ne.s32.totalorder %s18755_s26, %s18273_s22  ;;  %p18282_p9 = scmp.lt.s32.totalorder %s18273_s22, %s18273_s22 }
  0x3c   : > { %p18276_p2 = pnand %p18274_p0, %p18767_p8  ;;  %p18283_p4 = por %p18282_p9, %p18281_p7 }
  0x3e   : > { %p18277_p5 = pneg %p18276_p2 }
  0x40   : > { %p18284_p10 = pnand %p18283_p4, %p18277_p5 }
  0x42   : > { %18287 = shalt.err (!%p18284_p10)
}
  0x43   : > { %s18635_s11 = smov 512   ;;  %s18636_s0 = smov 32  }
  0x44   : > { %17137 = dma.hbm_to_vmem [thread:$0]  (!%p18751_p6), %s20912_s3, 98304, %s18755_s26, [#allocation9], %s18635_s11, %s18635_s11, %s18636_s0  }
  0x45   : > { %s18288_s14 = scalar_lea.hbm %s20914_s5, 16384 }
  0x46   : > { %p18289_p11 = scmp.ne.s32.totalorder %s20914_s5, %s18288_s14  ;;  %p18295_p0 = scmp.lt.u32.totalorder %s18288_s14, %s20914_s5 }
  0x48   : > { %p18291_p12 = pnand %p18289_p11, %p18767_p8 }
  0x4a   : > { %p18292_p13 = pneg %p18291_p12 }
  0x4c   : > { %p18297_p2 = pnand %p18295_p0, %p18292_p13 }
  0x4e   : > { %18300 = shalt.err (!%p18297_p2)
}
  0x4f   : > { %s18301_s22 = scalar_lea.vmem %s360_s29, 16384  ;;  %p18309_p4 = scmp.lt.s32.totalorder %s360_s29, %s360_s29 }
  0x50   : > { %p18302_p5 = scmp.ne.s32.totalorder %s360_s29, %s18301_s22  ;;  %p18310_p10 = scmp.lt.s32.totalorder %s18301_s22, %s18301_s22 }
  0x52   : > { %p18304_p7 = pnand %p18302_p5, %p18767_p8  ;;  %p18311_p1 = por %p18310_p10, %p18309_p4 }
  0x54   : > { %p18305_p9 = pneg %p18304_p7 }
  0x56   : > { %p18312_p3 = pnand %p18311_p1, %p18305_p9 }
  0x58   : > { %18315 = shalt.err (!%p18312_p3)
}
  0x59   : > { %s18637_s26 = smov 128   ;;  %s18638_s11 = smov 8  }
  0x5a   : > { %17143 = dma.hbm_to_vmem [thread:$0]  (!%p18751_p6), %s20914_s5, 16384, %s360_s29, [#allocation12], %s18637_s26, %s18637_s26, %s18638_s11  }
  0x5b   : > { %s18639_s30 = smov [#allocation14]   ;;  %s18316_s15 = scalar_lea.hbm %s20916_s7, 2048 }
  0x5c   : > { %s383_s12 = sshll.u32 %s18639_s30, 4  ;;  %p18317_p1 = scmp.ne.s32.totalorder %s20916_s7, %s18316_s15  ;;  %s384_s12 = int_to_ptr.vmem [resolvable:$true] %s383_s12 }
  0x5d   : > { %p18323_p12 = scmp.lt.u32.totalorder %s18316_s15, %s20916_s7 }
  0x5e   : > { %p18319_p3 = pnand %p18317_p1, %p18767_p8 }
  0x60   : > { %p18320_p11 = pneg %p18319_p3 }
  0x62   : > { %p18325_p13 = pnand %p18323_p12, %p18320_p11 }
  0x64   : > { %18328 = shalt.err (!%p18325_p13)
}
  0x65   : > { %s18329_s29 = scalar_lea.vmem %s384_s12, 2048  ;;  %p18337_p7 = scmp.lt.s32.totalorder %s384_s12, %s384_s12 }
  0x66   : > { %p18330_p0 = scmp.ne.s32.totalorder %s384_s12, %s18329_s29  ;;  %p18338_p9 = scmp.lt.s32.totalorder %s18329_s29, %s18329_s29 }
  0x68   : > { %p18332_p2 = pnand %p18330_p0, %p18767_p8  ;;  %p18339_p4 = por %p18338_p9, %p18337_p7 }
  0x6a   : > { %p18333_p5 = pneg %p18332_p2 }
  0x6c   : > { %p18340_p10 = pnand %p18339_p4, %p18333_p5 }
  0x6e   : > { %18343 = shalt.err (!%p18340_p10)
}
  0x6f   : > { %s18640_s26 = smov 64   ;;  %s18641_s11 = smov 4  }
  0x70   : > { %17149 = dma.hbm_to_vmem [thread:$0]  (!%p18751_p6), %s20916_s7, 2048, %s384_s12, [#allocation15], %s18640_s26, %s18640_s26, %s18641_s11  }
  0x71   : > { %s18642_s30 = smov [#allocation17]   ;;  %s18643_s14 = smov [#allocation7]  }
  0x72   : > { %s407_s13 = sshll.u32 %s18642_s30, 4  ;;  %s325_s15 = sshll.u32 %s18643_s14, 4  ;;  %s408_s13 = int_to_ptr.vmem [resolvable:$true] %s407_s13  ;;  %s18848_s15 = int_to_ptr.vmem [resolvable:$true] %s325_s15 }
  0x73   : > { %s18344_s28 = scalar_lea.hbm %s20918_s9, 1024 }
  0x74   : > { %p18345_p1 = scmp.ne.s32.totalorder %s20918_s9, %s18344_s28  ;;  %p18351_p12 = scmp.lt.u32.totalorder %s18344_s28, %s20918_s9 }
  0x76   : > { %p18347_p3 = pnand %p18345_p1, %p18767_p8 }
  0x78   : > { %p18348_p11 = pneg %p18347_p3 }
  0x7a   : > { %p18353_p13 = pnand %p18351_p12, %p18348_p11 }
  0x7c   : > { %18356 = shalt.err (!%p18353_p13)
}
  0x7d   : > { %s18357_s24 = scalar_lea.vmem %s408_s13, 1024  ;;  %p18365_p7 = scmp.lt.s32.totalorder %s408_s13, %s408_s13 }
  0x7e   : > { %p18358_p0 = scmp.ne.s32.totalorder %s408_s13, %s18357_s24  ;;  %p18366_p9 = scmp.lt.s32.totalorder %s18357_s24, %s18357_s24 }
  0x80   : > { %p18360_p2 = pnand %p18358_p0, %p18767_p8  ;;  %p18367_p4 = por %p18366_p9, %p18365_p7 }
  0x82   : > { %p18361_p5 = pneg %p18360_p2 }
  0x84   : > { %p18368_p10 = pnand %p18367_p4, %p18361_p5 }
  0x86   : > { %18371 = shalt.err (!%p18368_p10)
}
  0x87   : > { %17155 = dma.hbm_to_vmem [thread:$0]  (!%p18751_p6), %s20918_s9, 1024, %s408_s13, [#allocation18], %s18640_s26, %s18640_s26, %s18641_s11  }
  0x88   : > { %s18372_s28 = scalar_lea.hbm %s20911_s2, 192 }
  0x89   : > { %p18373_p1 = scmp.ne.s32.totalorder %s20911_s2, %s18372_s28  ;;  %p18379_p12 = scmp.lt.u32.totalorder %s18372_s28, %s20911_s2 }
  0x8b   : > { %p18375_p3 = pnand %p18373_p1, %p18767_p8 }
  0x8d   : > { %p18376_p11 = pneg %p18375_p3 }
  0x8f   : > { %p18381_p13 = pnand %p18379_p12, %p18376_p11 }
  0x91   : > { %18384 = shalt.err (!%p18381_p13)
}
  0x92   : > { %s18385_s26 = scalar_lea.vmem %s18848_s15, 192  ;;  %p18393_p7 = scmp.lt.s32.totalorder %s18848_s15, %s18848_s15 }
  0x93   : > { %p18386_p0 = scmp.ne.s32.totalorder %s18848_s15, %s18385_s26  ;;  %p18394_p9 = scmp.lt.s32.totalorder %s18385_s26, %s18385_s26 }
  0x95   : > { %p18388_p2 = pnand %p18386_p0, %p18767_p8  ;;  %p18395_p4 = por %p18394_p9, %p18393_p7 }
  0x97   : > { %p18389_p5 = pneg %p18388_p2 }
  0x99   : > { %p18396_p10 = pnand %p18395_p4, %p18389_p5 }
  0x9b   : > { %18399 = shalt.err (!%p18396_p10)
}
  0x9c   : > { %17134 = dma.hbm_to_vmem [thread:$0]  (!%p18751_p6), %s20911_s2, 192, %s18848_s15, [#allocation6]  }
  0x9d   : > { %s18644_s24 = smov [#allocation10]   ;;  %s18645_s14 = smov [#allocation13]  }
  0x9e   : > { %s349_s30 = sshll.u32 %s18644_s24, 4  ;;  %s373_s21 = sshll.u32 %s18645_s14, 4  ;;  %s350_s30 = int_to_ptr.vmem [resolvable:$true] %s349_s30  ;;  %s18891_s21 = int_to_ptr.vmem [resolvable:$true] %s373_s21 }
  0x9f   : > { %s18400_s22 = scalar_lea.hbm %s20913_s4, 128 }
  0xa0   : > { %p18401_p1 = scmp.ne.s32.totalorder %s20913_s4, %s18400_s22  ;;  %p18407_p12 = scmp.lt.u32.totalorder %s18400_s22, %s20913_s4 }
  0xa2   : > { %p18403_p3 = pnand %p18401_p1, %p18767_p8 }
  0xa4   : > { %p18404_p11 = pneg %p18403_p3 }
  0xa6   : > { %p18409_p13 = pnand %p18407_p12, %p18404_p11 }
  0xa8   : > { %18412 = shalt.err (!%p18409_p13)
}
  0xa9   : > { %s18413_s26 = scalar_lea.vmem %s350_s30, 128  ;;  %p18421_p7 = scmp.lt.s32.totalorder %s350_s30, %s350_s30 }
  0xaa   : > { %p18414_p0 = scmp.ne.s32.totalorder %s350_s30, %s18413_s26  ;;  %p18422_p9 = scmp.lt.s32.totalorder %s18413_s26, %s18413_s26 }
  0xac   : > { %p18416_p2 = pnand %p18414_p0, %p18767_p8  ;;  %p18423_p4 = por %p18422_p9, %p18421_p7 }
  0xae   : > { %p18417_p5 = pneg %p18416_p2 }
  0xb0   : > { %p18424_p10 = pnand %p18423_p4, %p18417_p5 }
  0xb2   : > { %18427 = shalt.err (!%p18424_p10)
}
  0xb3   : > { %17140 = dma.hbm_to_vmem [thread:$0]  (!%p18751_p6), %s20913_s4, 128, %s350_s30, [#allocation9]  }
  0xb4   : > { %s18428_s25 = scalar_lea.hbm %s20915_s6, 32 }
  0xb5   : > { %p18429_p1 = scmp.ne.s32.totalorder %s20915_s6, %s18428_s25  ;;  %p18435_p12 = scmp.lt.u32.totalorder %s18428_s25, %s20915_s6 }
  0xb7   : > { %p18431_p3 = pnand %p18429_p1, %p18767_p8 }
  0xb9   : > { %p18432_p11 = pneg %p18431_p3 }
  0xbb   : > { %p18437_p13 = pnand %p18435_p12, %p18432_p11 }
  0xbd   : > { %18440 = shalt.err (!%p18437_p13)
}
  0xbe   : > { %s18441_s30 = scalar_lea.vmem %s18891_s21, 32  ;;  %p18449_p7 = scmp.lt.s32.totalorder %s18891_s21, %s18891_s21 }
  0xbf   : > { %p18442_p0 = scmp.ne.s32.totalorder %s18891_s21, %s18441_s30  ;;  %p18450_p9 = scmp.lt.s32.totalorder %s18441_s30, %s18441_s30 }
  0xc1   : > { %p18444_p2 = pnand %p18442_p0, %p18767_p8  ;;  %p18451_p4 = por %p18450_p9, %p18449_p7 }
  0xc3   : > { %p18445_p5 = pneg %p18444_p2 }
  0xc5   : > { %p18452_p10 = pnand %p18451_p4, %p18445_p5 }
  0xc7   : > { %18455 = shalt.err (!%p18452_p10)
}
  0xc8   : > { %17146 = dma.hbm_to_vmem [thread:$0]  (!%p18751_p6), %s20915_s6, 32, %s18891_s21, [#allocation12]  }
  0xc9   : > { %s18646_s26 = smov [#allocation16]   ;;  %s18647_s13 = smov [#allocation19]  }
  0xca   : > { %s397_s11 = sshll.u32 %s18646_s26, 4  ;;  %s421_s24 = sshll.u32 %s18647_s13, 4  ;;  %s398_s11 = int_to_ptr.vmem [resolvable:$true] %s397_s11  ;;  %s18934_s24 = int_to_ptr.vmem [resolvable:$true] %s421_s24 }
  0xcb   : > { %s18456_s28 = scalar_lea.hbm %s20917_s8, 16 }
  0xcc   : > { %p18457_p1 = scmp.ne.s32.totalorder %s20917_s8, %s18456_s28  ;;  %p18463_p12 = scmp.lt.u32.totalorder %s18456_s28, %s20917_s8 }
  0xce   : > { %p18459_p3 = pnand %p18457_p1, %p18767_p8 }
  0xd0   : > { %p18460_p11 = pneg %p18459_p3 }
  0xd2   : > { %p18465_p13 = pnand %p18463_p12, %p18460_p11 }
  0xd4   : > { %18468 = shalt.err (!%p18465_p13)
}
  0xd5   : > { %s18469_s30 = scalar_lea.vmem %s398_s11, 16  ;;  %s18476_s12 = scalar_lea.vmem %s398_s11, 32 }
  0xd6   : > { %p18470_p0 = scmp.ne.s32.totalorder %s398_s11, %s18469_s30  ;;  %p18477_p7 = scmp.lt.s32.totalorder %s398_s11, %s398_s11 }
  0xd7   : > { %p18478_p9 = scmp.lt.s32.totalorder %s18476_s12, %s18469_s30 }
  0xd8   : > { %p18472_p2 = pnand %p18470_p0, %p18767_p8 }
  0xd9   : > { %p18479_p4 = por %p18478_p9, %p18477_p7 }
  0xda   : > { %p18473_p5 = pneg %p18472_p2 }
  0xdc   : > { %p18480_p10 = pnand %p18479_p4, %p18473_p5 }
  0xde   : > { %18483 = shalt.err (!%p18480_p10)
}
  0xdf   : > { %17152 = dma.hbm_to_vmem [thread:$0]  (!%p18751_p6), %s20917_s8, 16, %s398_s11, [#allocation15]  }
  0xe0   : > { %s18484_s25 = scalar_lea.hbm %s20919_s10, 16 }
  0xe1   : > { %p18485_p1 = scmp.ne.s32.totalorder %s20919_s10, %s18484_s25  ;;  %p18491_p12 = scmp.lt.u32.totalorder %s18484_s25, %s20919_s10 }
  0xe3   : > { %p18487_p3 = pnand %p18485_p1, %p18767_p8 }
  0xe5   : > { %p18488_p11 = pneg %p18487_p3 }
  0xe7   : > { %p18493_p13 = pnand %p18491_p12, %p18488_p11 }
  0xe9   : > { %18496 = shalt.err (!%p18493_p13)
}
  0xea   : > { %s18497_s11 = scalar_lea.vmem %s18934_s24, 16  ;;  %s18504_s21 = scalar_lea.vmem %s18934_s24, 32 }
  0xeb   : > { %p18498_p0 = scmp.ne.s32.totalorder %s18934_s24, %s18497_s11  ;;  %p18505_p7 = scmp.lt.s32.totalorder %s18934_s24, %s18934_s24 }
  0xec   : > { %p18506_p9 = scmp.lt.s32.totalorder %s18504_s21, %s18497_s11 }
  0xed   : > { %p18500_p2 = pnand %p18498_p0, %p18767_p8 }
  0xee   : > { %p18507_p4 = por %p18506_p9, %p18505_p7 }
  0xef   : > { %p18501_p5 = pneg %p18500_p2 }
  0xf1   : > { %p18508_p10 = pnand %p18507_p4, %p18501_p5 }
  0xf3   : > { %18511 = shalt.err (!%p18508_p10)
}
  0xf4   : > { %17158 = dma.hbm_to_vmem [thread:$0]  (!%p18751_p6), %s20919_s10, 16, %s18934_s24, [#allocation18]  }
  0xf5   : > { %s14300_s27 = sadd.s32 4294967294, %s18628_s20   ;;  %s18980_s16 = sadd.s32 1, %s18628_s20  }
  0xf6   : > { %s36_s15 = ssub.s32 %s18628_s20, %s18980_s16  ;;  %s39_s26 = sadd.s32 1, %s18624_s19 }
  0xf7   : > { %p37_p8 = scmp.eq.s32.totalorder %s36_s15, 0  ;;  %p46_p1 = scmp.ne.s32.totalorder %s18624_s19, %s18620_s18 }
  0xf8   : > { %p47_p3 = scmp.eq.s32.totalorder %s18628_s20, 0  ;;  %p52_p11 = scmp.ne.s32.totalorder %s18620_s18, %s18616_s17 }
  0xf9   : > { %s18991_s13 = scalar_select %p37_p8, %s18624_s19, %s39_s26  }
  0xfa   : > { %p18993_p12 = por %p47_p3, %p46_p1  ;;  %p21119_p13 = scmp.eq.s32.totalorder %s18735_s23, 0 }
  0xfb   : > { %p286_p0 = scmp.eq.s32.totalorder %s18735_s23, 1  ;;  %p292_p2 = scmp.eq.s32.totalorder %s14300_s27, 1 }
  0xfc   : > { %p18999_p6 = por %p21119_p13, %p52_p11  ;;  %p17177_p5 = scmp.lt.s32.totalorder %s18628_s20, 2 }
  0xfd   : > { %s432_s25 = sand.u32 1, %s18624_s19   ;;  %p19006_p7 = por %p286_p0, %p46_p1 }
  0xfe   : > { %p19010_p9 = por %p292_p2, %p52_p11  ;;  %s14313_s29 = sshll.u32 %s432_s25, 8 }
  0xff   : > { %s21121_s28 = scalar_select %p19006_p7, 1, 0 }
 0x100   : > { %s21122_s22 = scalar_select %p19010_p9, 1, 0 }
 0x101   : > { %s15690_s0 = sshll.u32 %s18628_s20, 12  ;;  %s21123_s30 = sld [smem:[#allocation121_spill]] }
 0x102   : > { %s436_s27 = scalar_lea.vmem [#allocation2], %s14313_s29  ;;  %p19024_p4 = pnand %p17177_p5, %p18993_p12 }
 0x103   : > { %s444_s15 = sshll.u32 %s436_s27, 4  ;;  %s19028_s1 = scalar_lea.sflag [#allocation3], %s432_s25  ;;  %s19020_s15 = int_to_ptr.vmem [resolvable:$true] %s444_s15 }
 0x104   : > { %p18514_p8 = pneg %p19024_p4 }
 0x107   : > { %s19018_s12 = scalar_lea.hbm %s21123_s30, %s15690_s0  ;;  %s18517_s14 = scalar_lea.hbm %s21123_s30, 8192 }
 0x108   : > { %s18512_s11 = scalar_lea.hbm %s19018_s12, 4096  ;;  %p18518_p11 = scmp.lt.u32.totalorder %s19018_s12, %s21123_s30 }
 0x109   : > { %p18513_p10 = scmp.ne.s32.totalorder %s19018_s12, %s18512_s11  ;;  %p18519_p12 = scmp.lt.u32.totalorder %s18517_s14, %s18512_s11 }
 0x10a   : > { %p18521_p0 = scmp.lt.u32.totalorder %s18512_s11, %s19018_s12 }
 0x10b   : > { %p18515_p1 = pnand %p18514_p8, %p18513_p10  ;;  %p18520_p13 = por %p18519_p12, %p18518_p11 }
 0x10d   : > { %p18516_p3 = pneg %p18515_p1  ;;  %p18522_p2 = por %p18521_p0, %p18520_p13 }
 0x10f   : > { %p18523_p5 = pnand %p18522_p2, %p18516_p3 }
 0x111   : > { %18526 = shalt.err (!%p18523_p5)
}
 0x112   : > { %s18527_s25 = scalar_lea.vmem %s19020_s15, 4096  ;;  %s18648_s29 = smov [#allocation2]  }
 0x113   : > { %p18528_p10 = scmp.ne.s32.totalorder %s19020_s15, %s18527_s25  ;;  %s18532_s0 = sshll.u32 %s18648_s29, 4  ;;  %s18533_s0 = int_to_ptr.vmem [resolvable:$false] %s18532_s0 }
 0x114   : > { %s18534_s21 = scalar_lea.vmem %s18533_s0, 8192  ;;  %p18535_p7 = scmp.lt.s32.totalorder %s19020_s15, %s18533_s0 }
 0x115   : > { %p18530_p1 = pnand %p18528_p10, %p18514_p8  ;;  %p18536_p11 = scmp.lt.s32.totalorder %s18534_s21, %s18527_s25 }
 0x117   : > { %p18531_p9 = pneg %p18530_p1  ;;  %p18537_p12 = por %p18536_p11, %p18535_p7 }
 0x119   : > { %p18538_p13 = pnand %p18537_p12, %p18531_p9 }
 0x11b   : > { %18541 = shalt.err (!%p18538_p13)
}
 0x11c   : > { %s18649_s11 = smov 256   ;;  %s18650_s14 = smov 16  }
 0x11d   : > { %17162 = dma.hbm_to_vmem [thread:$0]  (!%p19024_p4), %s19018_s12, 4096, %s19020_s15, %s19028_s1, %s18649_s11, %s18649_s11, %s18650_s14  }
 0x11e   : > { %s21125_s27 = sld [smem:[#allocation28_spill]] }
 0x124   : > { %p21126_p8 = scmp.ne.s32.totalorder %s21125_s27, 0 }
 0x126   : > { %456 = sbr.rel (%p21126_p8) target bundleno = 2534 (0x9e6), region = 64 }
 0x12d   : > { %s19059_s29 = sand.u32 1, %s18620_s18  }
 0x12e   : > { %s14318_s25 = sshll.u32 %s19059_s29, 8  ;;  %s459_s0 = scalar_lea.sflag [#allocation3], %s19059_s29 }
 0x12f   : > { %s19063_s21 = scalar_lea.vmem [#allocation2], %s14318_s25 }
 0x130   : > { %18587 = dma.done.wait (%p18999_p6), %s459_s0, 4096  }
 0x131   : > { %18589 = vsyncadd (%p18999_p6), %s459_s0, 4294963200  ;;  %p21127_p7 = scmp.eq.s32.totalorder %s18735_s23, 0 }
 0x133   : > { %18591 = dma.done.wait (%p21127_p7), [#allocation6], 49344   ;;  %p21128_p9 = pmov %p21127_p7 }
 0x134   : > { %p21129_p4 = pmov %p21127_p7 }
 0x135   : > { %18593 = vsyncadd (%p21128_p9), [#allocation6], 4294917952 }
 0x136   : > { %18595 = dma.done.wait (%p21129_p4), [#allocation9], 98432   ;;  %p21130_p3 = pmov %p21129_p4 }
 0x138   : > { %18597 = vsyncadd (%p21130_p3), [#allocation9], 4294868864  ;;  %p21131_p0 = pmov %p21130_p3 }
 0x13a   : > { %18599 = dma.done.wait (%p21131_p0), [#allocation12], 16416   ;;  %p21132_p2 = pmov %p21131_p0 }
 0x13b   : > { %p21133_p6 = pmov %p21131_p0 }
 0x13c   : > { %18601 = vsyncadd (%p21132_p2), [#allocation12], 4294950880 }
 0x13d   : > { %18603 = dma.done.wait (%p21133_p6), [#allocation15], 2064   ;;  %p21134_p5 = pmov %p21131_p0 }
 0x13e   : > { %p21135_p10 = pmov %p21131_p0 }
 0x13f   : > { %18605 = vsyncadd (%p21134_p5), [#allocation15], 4294965232 }
 0x140   : > { %18607 = dma.done.wait (%p21135_p10), [#allocation18], 1040   ;;  %p21136_p1 = pmov %p21131_p0 }
 0x141   : > { %v17243_v0 = vld [vmem:[#allocation5 + $0x4] ss:$48 sps:$4 sm:$0xff]   ;;  %v17247_v2 = vld [vmem:[#allocation5] ss:$48 sps:$4 sm:$0xff]   ;;  %v17341_v50 = vld [vmem:[%s19063_s21 + $0xc] ss:$16 sps:$4 sm:$0xff]  }
 0x142   : > { %18609 = vsyncadd (%p21136_p1), [#allocation18], 4294966256  ;;  %v17245_v1 = vld [vmem:[#allocation5 + $0x604] ss:$48 sps:$4 sm:$0xff]   ;;  %3104 = vmatprep.subr.bf16.mxu1 %v17243_v0  ;;  %v17248_v3 = vld [vmem:[#allocation5 + $0x600] ss:$48 sps:$4 sm:$0xff]   ;;  %3249 = vmatprep.mubr.bf16.mxu0 %v17341_v50 }
 0x143   : > { %3217 = vmatprep.subr.bf16.mxu0 %v17245_v1  ;;  %v17249_v4 = vld [vmem:[#allocation5 + $0x64] ss:$48 sps:$4 sm:$0xff]   ;;  %3105 = vmatpush1.bf16.msra.mxu1 %v17247_v2  ;;  %v17253_v6 = vld [vmem:[#allocation5 + $0x60] ss:$48 sps:$4 sm:$0xff]   ;;  %v17347_v2 = vld [vmem:[#allocation5 + $0xc] ss:$48 sps:$4 sm:$0xff]  }
 0x144   : > { %3218 = vmatpush1.bf16.msra.mxu0 %v17248_v3  ;;  %v17251_v5 = vld [vmem:[#allocation5 + $0x664] ss:$48 sps:$4 sm:$0xff]   ;;  %3106 = vmatprep.subr.bf16.mxu1 %v17249_v4  ;;  %v17254_v7 = vld [vmem:[#allocation5 + $0x660] ss:$48 sps:$4 sm:$0xff]   ;;  %s14329_s1 = sshll.u32 %s19059_s29, 7  ;;  %s15691_s12 = sshll.u32 %s18735_s23, 11 }
 0x145   : > { %3219 = vmatprep.subr.bf16.mxu0 %v17251_v5  ;;  %v17255_v8 = vld [vmem:[#allocation5 + $0xc4] ss:$48 sps:$4 sm:$0xff]   ;;  %v17259_v10 = vld [vmem:[#allocation5 + $0xc0] ss:$48 sps:$4 sm:$0xff]   ;;  %v17344_v5 = vld [vmem:[%s19063_s21 + $0x8] ss:$16 sps:$4 sm:$0xff]  }
 0x146   : > { %v17257_v9 = vld [vmem:[#allocation5 + $0x6c4] ss:$48 sps:$4 sm:$0xff]   ;;  %v17260_v11 = vld [vmem:[#allocation5 + $0x6c0] ss:$48 sps:$4 sm:$0xff]   ;;  %s20832_s24 = scalar_lea.vmem [#allocation20], %s14329_s1  ;;  %s21438_s14 = sld [smem:[#allocation123_spill]] }
 0x147   : > { %3107 = vmatpush1.bf16.msra.mxu1 %v17253_v6  ;;  %v17261_v12 = vld [vmem:[#allocation5 + $0x124] ss:$48 sps:$4 sm:$0xff]   ;;  %v17265_v14 = vld [vmem:[#allocation5 + $0x120] ss:$48 sps:$4 sm:$0xff]   ;;  %v17345_v6 = vld [vmem:[#allocation5 + $0x8] ss:$48 sps:$4 sm:$0xff]  }
 0x148   : > { %3220 = vmatpush1.bf16.msra.mxu0 %v17254_v7  ;;  %3108 = vmatprep.subr.bf16.mxu1 %v17255_v8  ;;  %v17263_v13 = vld [vmem:[#allocation5 + $0x724] ss:$48 sps:$4 sm:$0xff]   ;;  %v17266_v15 = vld [vmem:[#allocation5 + $0x720] ss:$48 sps:$4 sm:$0xff]   ;;  %v17353_v8 = vld [vmem:[#allocation5 + $0x6c] ss:$48 sps:$4 sm:$0xff]  }
 0x149   : > { %3221 = vmatprep.subr.bf16.mxu0 %v17257_v9  ;;  %v17267_v16 = vld [vmem:[#allocation5 + $0x184] ss:$48 sps:$4 sm:$0xff]   ;;  %v17271_v18 = vld [vmem:[#allocation5 + $0x180] ss:$48 sps:$4 sm:$0xff]   ;;  %s14132_s15 = sshll.u32 %s20832_s24, 4  ;;  %s14119_s23 = scalar_lea.sflag [#allocation4], %s19059_s29  ;;  %s20862_s15 = int_to_ptr.vmem [resolvable:$true] %s14132_s15 }
 0x14a   : > { %v17269_v17 = vld [vmem:[#allocation5 + $0x784] ss:$48 sps:$4 sm:$0xff]   ;;  %v17272_v19 = vld [vmem:[#allocation5 + $0x780] ss:$48 sps:$4 sm:$0xff]   ;;  %s18542_s25 = scalar_lea.vmem %s20862_s15, 2048  ;;  %p21439_p12 = scmp.ne.s32.totalorder %s21121_s28, 0 }
 0x14b   : > { %3109 = vmatpush1.bf16.msra.mxu1 %v17259_v10  ;;  %v17273_v20 = vld [vmem:[#allocation5 + $0x1e4] ss:$48 sps:$4 sm:$0xff]   ;;  %v17277_v22 = vld [vmem:[#allocation5 + $0x1e0] ss:$48 sps:$4 sm:$0xff]   ;;  %p18543_p11 = scmp.ne.s32.totalorder %s20862_s15, %s18542_s25  ;;  %s18651_s0 = smov [#allocation20]  }
 0x14c   : > { %3222 = vmatpush1.bf16.msra.mxu0 %v17260_v11  ;;  %3110 = vmatprep.subr.bf16.mxu1 %v17261_v12  ;;  %v17275_v21 = vld [vmem:[#allocation5 + $0x7e4] ss:$48 sps:$4 sm:$0xff]   ;;  %v17278_v23 = vld [vmem:[#allocation5 + $0x7e0] ss:$48 sps:$4 sm:$0xff]   ;;  %v17359_v11 = vld [vmem:[%s19063_s21 + $0x2c] ss:$16 sps:$4 sm:$0xff]   ;;  %s20860_s27 = scalar_lea.hbm %s21438_s14, %s15691_s12 }
 0x14d   : > { %3223 = vmatprep.subr.bf16.mxu0 %v17263_v13  ;;  %v17279_v24 = vld [vmem:[#allocation5 + $0x244] ss:$48 sps:$4 sm:$0xff]   ;;  %v17283_v26 = vld [vmem:[#allocation5 + $0x240] ss:$48 sps:$4 sm:$0xff]   ;;  %v17351_v12 = vld [vmem:[#allocation5 + $0x68] ss:$48 sps:$4 sm:$0xff]   ;;  %p18544_p13 = pnand %p18543_p11, %p21439_p12 }
 0x14e   : > { %v17281_v25 = vld [vmem:[#allocation5 + $0x844] ss:$48 sps:$4 sm:$0xff]   ;;  %v17284_v27 = vld [vmem:[#allocation5 + $0x840] ss:$48 sps:$4 sm:$0xff]  }
 0x14f   : > { %3111 = vmatpush1.bf16.msra.mxu1 %v17265_v14  ;;  %v17285_v28 = vld [vmem:[#allocation5 + $0x2a4] ss:$48 sps:$4 sm:$0xff]   ;;  %v17289_v30 = vld [vmem:[#allocation5 + $0x2a0] ss:$48 sps:$4 sm:$0xff]   ;;  %v17365_v14 = vld [vmem:[#allocation5 + $0xcc] ss:$48 sps:$4 sm:$0xff]   ;;  %p18545_p8 = pneg %p18544_p13 }
 0x150   : > { %3224 = vmatpush1.bf16.msra.mxu0 %v17266_v15  ;;  %3112 = vmatprep.subr.bf16.mxu1 %v17267_v16  ;;  %v17287_v29 = vld [vmem:[#allocation5 + $0x8a4] ss:$48 sps:$4 sm:$0xff]   ;;  %v17290_v31 = vld [vmem:[#allocation5 + $0x8a0] ss:$48 sps:$4 sm:$0xff]  }
 0x151   : > { %3225 = vmatprep.subr.bf16.mxu0 %v17269_v17  ;;  %v17291_v32 = vld [vmem:[#allocation5 + $0x304] ss:$48 sps:$4 sm:$0xff]   ;;  %v17295_v34 = vld [vmem:[#allocation5 + $0x300] ss:$48 sps:$4 sm:$0xff]   ;;  %v17362_v17 = vld [vmem:[%s19063_s21 + $0x28] ss:$16 sps:$4 sm:$0xff]  }
 0x152   : > { %v17293_v33 = vld [vmem:[#allocation5 + $0x904] ss:$48 sps:$4 sm:$0xff]   ;;  %v17296_v35 = vld [vmem:[#allocation5 + $0x900] ss:$48 sps:$4 sm:$0xff]  }
 0x153   : > { %3113 = vmatpush1.bf16.msra.mxu1 %v17271_v18  ;;  %v17297_v36 = vld [vmem:[#allocation5 + $0x364] ss:$48 sps:$4 sm:$0xff]   ;;  %v17301_v38 = vld [vmem:[#allocation5 + $0x360] ss:$48 sps:$4 sm:$0xff]   ;;  %v17363_v18 = vld [vmem:[#allocation5 + $0xc8] ss:$48 sps:$4 sm:$0xff]  }
 0x154   : > { %3226 = vmatpush1.bf16.msra.mxu0 %v17272_v19  ;;  %3114 = vmatprep.subr.bf16.mxu1 %v17273_v20  ;;  %v17299_v37 = vld [vmem:[#allocation5 + $0x964] ss:$48 sps:$4 sm:$0xff]   ;;  %v17302_v39 = vld [vmem:[#allocation5 + $0x960] ss:$48 sps:$4 sm:$0xff]   ;;  %v17371_v20 = vld [vmem:[#allocation5 + $0x12c] ss:$48 sps:$4 sm:$0xff]  }
 0x155   : > { %3227 = vmatprep.subr.bf16.mxu0 %v17275_v21  ;;  %v17303_v40 = vld [vmem:[#allocation5 + $0x3c4] ss:$48 sps:$4 sm:$0xff]   ;;  %v17307_v42 = vld [vmem:[#allocation5 + $0x3c0] ss:$48 sps:$4 sm:$0xff]  }
 0x156   : > { %v17305_v41 = vld [vmem:[#allocation5 + $0x9c4] ss:$48 sps:$4 sm:$0xff]   ;;  %v17308_v43 = vld [vmem:[#allocation5 + $0x9c0] ss:$48 sps:$4 sm:$0xff]  }
 0x157   : > { %3115 = vmatpush1.bf16.msra.mxu1 %v17277_v22  ;;  %v17309_v44 = vld [vmem:[#allocation5 + $0x424] ss:$48 sps:$4 sm:$0xff]   ;;  %v17313_v46 = vld [vmem:[#allocation5 + $0x420] ss:$48 sps:$4 sm:$0xff]  }
 0x158   : > { %3228 = vmatpush1.bf16.msra.mxu0 %v17278_v23  ;;  %3116 = vmatprep.subr.bf16.mxu1 %v17279_v24  ;;  %v17311_v45 = vld [vmem:[#allocation5 + $0xa24] ss:$48 sps:$4 sm:$0xff]   ;;  %v17314_v47 = vld [vmem:[#allocation5 + $0xa20] ss:$48 sps:$4 sm:$0xff]   ;;  %v17377_v23 = vld [vmem:[%s19063_s21 + $0x4c] ss:$16 sps:$4 sm:$0xff]  }
 0x159   : > { %3229 = vmatprep.subr.bf16.mxu0 %v17281_v25  ;;  %v19090_v48 = vld [vmem:[%s19063_s21 + $0x4] ss:$16 sps:$4 sm:$0xff]   ;;  %v17319_v52 = vld [vmem:[#allocation5 + $0x480] ss:$48 sps:$4 sm:$0xff]   ;;  %v17369_v24 = vld [vmem:[#allocation5 + $0x128] ss:$48 sps:$4 sm:$0xff]  }
 0x15a   : > { %v17315_v49 = vld [vmem:[#allocation5 + $0x484] ss:$48 sps:$4 sm:$0xff]   ;;  %3136 = vmatprep.mubr.bf16.mxu1 %v19090_v48  ;;  %v17320_v53 = vld [vmem:[#allocation5 + $0xa80] ss:$48 sps:$4 sm:$0xff]  }
 0x15b   : > { %3117 = vmatpush1.bf16.msra.mxu1 %v17283_v26  ;;  %v17317_v51 = vld [vmem:[#allocation5 + $0xa84] ss:$48 sps:$4 sm:$0xff]   ;;  %v17325_v56 = vld [vmem:[#allocation5 + $0x4e0] ss:$48 sps:$4 sm:$0xff]   ;;  %v17383_v26 = vld [vmem:[#allocation5 + $0x18c] ss:$48 sps:$4 sm:$0xff]  }
 0x15c   : > { %3230 = vmatpush1.bf16.msra.mxu0 %v17284_v27  ;;  %3118 = vmatprep.subr.bf16.mxu1 %v17285_v28  ;;  %v17321_v54 = vld [vmem:[#allocation5 + $0x4e4] ss:$48 sps:$4 sm:$0xff]   ;;  %v17326_v57 = vld [vmem:[#allocation5 + $0xae0] ss:$48 sps:$4 sm:$0xff]  }
 0x15d   : > { %3231 = vmatprep.subr.bf16.mxu0 %v17287_v29  ;;  %v17323_v55 = vld [vmem:[#allocation5 + $0xae4] ss:$48 sps:$4 sm:$0xff]   ;;  %v17331_v60 = vld [vmem:[#allocation5 + $0x540] ss:$48 sps:$4 sm:$0xff]   ;;  %v17380_v29 = vld [vmem:[%s19063_s21 + $0x48] ss:$16 sps:$4 sm:$0xff]  }
 0x15e   : > { %v17327_v58 = vld [vmem:[#allocation5 + $0x544] ss:$48 sps:$4 sm:$0xff]   ;;  %v17332_v61 = vld [vmem:[#allocation5 + $0xb40] ss:$48 sps:$4 sm:$0xff]  }
 0x15f   : > { %3119 = vmatpush1.bf16.msra.mxu1 %v17289_v30  ;;  %v17329_v59 = vld [vmem:[#allocation5 + $0xb44] ss:$48 sps:$4 sm:$0xff]   ;;  %v17337_v0 = vld [vmem:[#allocation5 + $0x5a0] ss:$48 sps:$4 sm:$0xff]   ;;  %v17381_v30 = vld [vmem:[#allocation5 + $0x188] ss:$48 sps:$4 sm:$0xff]  }
 0x160   : > { %3232 = vmatpush1.bf16.msra.mxu0 %v17290_v31  ;;  %3120 = vmatprep.subr.bf16.mxu1 %v17291_v32  ;;  %v17333_v62 = vld [vmem:[#allocation5 + $0x5a4] ss:$48 sps:$4 sm:$0xff]   ;;  %v17338_v1 = vld [vmem:[#allocation5 + $0xba0] ss:$48 sps:$4 sm:$0xff]   ;;  %v17389_v32 = vld [vmem:[#allocation5 + $0x1ec] ss:$48 sps:$4 sm:$0xff]  }
 0x161   : > { %3233 = vmatprep.subr.bf16.mxu0 %v17293_v33  ;;  %v17335_v63 = vld [vmem:[#allocation5 + $0xba4] ss:$48 sps:$4 sm:$0xff]   ;;  %v19095_v4 = vld [vmem:[%s19063_s21] ss:$16 sps:$4 sm:$0xff]  }
 0x162   : > { %v17350_v3 = vld [vmem:[#allocation5 + $0x14] ss:$48 sps:$4 sm:$0xff]   ;;  %v17348_v7 = vld [vmem:[#allocation5 + $0x10] ss:$48 sps:$4 sm:$0xff]  }
 0x163   : > { %3121 = vmatpush1.bf16.msra.mxu1 %v17295_v34  ;;  %v17356_v9 = vld [vmem:[#allocation5 + $0x74] ss:$48 sps:$4 sm:$0xff]   ;;  %v17354_v13 = vld [vmem:[#allocation5 + $0x70] ss:$48 sps:$4 sm:$0xff]  }
 0x164   : > { %3234 = vmatpush1.bf16.msra.mxu0 %v17296_v35  ;;  %3122 = vmatprep.subr.bf16.mxu1 %v17297_v36  ;;  %v19099_v10 = vld [vmem:[%s19063_s21 + $0x24] ss:$16 sps:$4 sm:$0xff]   ;;  %v19105_v16 = vld [vmem:[%s19063_s21 + $0x20] ss:$16 sps:$4 sm:$0xff]   ;;  %v17395_v35 = vld [vmem:[%s19063_s21 + $0x6c] ss:$16 sps:$4 sm:$0xff]  }
 0x165   : > { %3235 = vmatprep.subr.bf16.mxu0 %v17299_v37  ;;  %v17368_v15 = vld [vmem:[#allocation5 + $0xd4] ss:$48 sps:$4 sm:$0xff]   ;;  %v17366_v19 = vld [vmem:[#allocation5 + $0xd0] ss:$48 sps:$4 sm:$0xff]   ;;  %v17387_v36 = vld [vmem:[#allocation5 + $0x1e8] ss:$48 sps:$4 sm:$0xff]  }
 0x166   : > { %v17374_v21 = vld [vmem:[#allocation5 + $0x134] ss:$48 sps:$4 sm:$0xff]   ;;  %v17372_v25 = vld [vmem:[#allocation5 + $0x130] ss:$48 sps:$4 sm:$0xff]  }
 0x167   : > { %3123 = vmatpush1.bf16.msra.mxu1 %v17301_v38  ;;  %v19109_v22 = vld [vmem:[%s19063_s21 + $0x44] ss:$16 sps:$4 sm:$0xff]   ;;  %v19115_v28 = vld [vmem:[%s19063_s21 + $0x40] ss:$16 sps:$4 sm:$0xff]   ;;  %v17401_v38 = vld [vmem:[#allocation5 + $0x24c] ss:$48 sps:$4 sm:$0xff]  }
 0x168   : > { %3236 = vmatpush1.bf16.msra.mxu0 %v17302_v39  ;;  %3124 = vmatprep.subr.bf16.mxu1 %v17303_v40  ;;  %v17386_v27 = vld [vmem:[#allocation5 + $0x194] ss:$48 sps:$4 sm:$0xff]   ;;  %v17384_v31 = vld [vmem:[#allocation5 + $0x190] ss:$48 sps:$4 sm:$0xff]  }
 0x169   : > { %3237 = vmatprep.subr.bf16.mxu0 %v17305_v41  ;;  %v17392_v33 = vld [vmem:[#allocation5 + $0x1f4] ss:$48 sps:$4 sm:$0xff]   ;;  %v17390_v37 = vld [vmem:[#allocation5 + $0x1f0] ss:$48 sps:$4 sm:$0xff]   ;;  %v17398_v41 = vld [vmem:[%s19063_s21 + $0x68] ss:$16 sps:$4 sm:$0xff]  }
 0x16a   : > { %v19119_v34 = vld [vmem:[%s19063_s21 + $0x64] ss:$16 sps:$4 sm:$0xff]   ;;  %v19125_v40 = vld [vmem:[%s19063_s21 + $0x60] ss:$16 sps:$4 sm:$0xff]  }
 0x16b   : > { %3125 = vmatpush1.bf16.msra.mxu1 %v17307_v42  ;;  %v17404_v39 = vld [vmem:[#allocation5 + $0x254] ss:$48 sps:$4 sm:$0xff]   ;;  %v17399_v42 = vld [vmem:[#allocation5 + $0x248] ss:$48 sps:$4 sm:$0xff]   ;;  %v17408_v50 = vld [vmem:[#allocation5 + $0x2b0] ss:$48 sps:$4 sm:$0xff]  }
 0x16c   : > { %3238 = vmatpush1.bf16.msra.mxu0 %v17308_v43  ;;  %3126 = vmatprep.subr.bf16.mxu1 %v17309_v44  ;;  %v17402_v43 = vld [vmem:[#allocation5 + $0x250] ss:$48 sps:$4 sm:$0xff]   ;;  %v17407_v44 = vld [vmem:[#allocation5 + $0x2ac] ss:$48 sps:$4 sm:$0xff]  }
 0x16d   : > { %3239 = vmatprep.subr.bf16.mxu0 %v17311_v45  ;;  %v17410_v45 = vld [vmem:[#allocation5 + $0x2b4] ss:$48 sps:$4 sm:$0xff]  }
 0x16f   : > { %3127 = vmatpush1.bf16.msra.mxu1 %v17313_v46  ;;  %v19129_v46 = vld [vmem:[%s19063_s21 + $0x84] ss:$16 sps:$4 sm:$0xff]  }
 0x170   : > { %3240 = vmatpush1.bf16.msra.mxu0 %v17314_v47  ;;  %3128 = vmatprep.subr.bf16.mxu1 %v17315_v49  ;;  %v17413_v47 = vld [vmem:[%s19063_s21 + $0x8c] ss:$16 sps:$4 sm:$0xff]   ;;  %v17405_v49 = vld [vmem:[#allocation5 + $0x2a8] ss:$48 sps:$4 sm:$0xff]  }
 0x171   : > { %3241 = vmatprep.subr.bf16.mxu0 %v17317_v51  ;;  %v17419_v51 = vld [vmem:[#allocation5 + $0x30c] ss:$48 sps:$4 sm:$0xff]  }
 0x173   : > { %3129 = vmatpush1.bf16.msra.mxu1 %v17319_v52  ;;  %v17422_v52 = vld [vmem:[#allocation5 + $0x314] ss:$48 sps:$4 sm:$0xff]  }
 0x174   : > { %3242 = vmatpush1.bf16.msra.mxu0 %v17320_v53  ;;  %3130 = vmatprep.subr.bf16.mxu1 %v17321_v54  ;;  %v19135_v53 = vld [vmem:[%s19063_s21 + $0x80] ss:$16 sps:$4 sm:$0xff]   ;;  %v17416_v54 = vld [vmem:[%s19063_s21 + $0x88] ss:$16 sps:$4 sm:$0xff]  }
 0x175   : > { %3243 = vmatprep.subr.bf16.mxu0 %v17323_v55  ;;  %v17417_v55 = vld [vmem:[#allocation5 + $0x308] ss:$48 sps:$4 sm:$0xff]  }
 0x177   : > { %3131 = vmatpush1.bf16.msra.mxu1 %v17325_v56  ;;  %v17420_v56 = vld [vmem:[#allocation5 + $0x310] ss:$48 sps:$4 sm:$0xff]  }
 0x178   : > { %3244 = vmatpush1.bf16.msra.mxu0 %v17326_v57  ;;  %3132 = vmatprep.subr.bf16.mxu1 %v17327_v58  ;;  %v17425_v57 = vld [vmem:[#allocation5 + $0x36c] ss:$48 sps:$4 sm:$0xff]   ;;  %v17428_v58 = vld [vmem:[#allocation5 + $0x374] ss:$48 sps:$4 sm:$0xff]  }
 0x179   : > { %3245 = vmatprep.subr.bf16.mxu0 %v17329_v59  ;;  %v19139_v59 = vld [vmem:[%s19063_s21 + $0xa4] ss:$16 sps:$4 sm:$0xff]  }
 0x17b   : > { %3133 = vmatpush1.bf16.msra.mxu1 %v17331_v60  ;;  %v17431_v60 = vld [vmem:[%s19063_s21 + $0xac] ss:$16 sps:$4 sm:$0xff]  }
 0x17c   : > { %3246 = vmatpush1.bf16.msra.mxu0 %v17332_v61  ;;  %3134 = vmatprep.subr.bf16.mxu1 %v17333_v62  ;;  %v17423_v61 = vld [vmem:[#allocation5 + $0x368] ss:$48 sps:$4 sm:$0xff]   ;;  %v17426_v62 = vld [vmem:[#allocation5 + $0x370] ss:$48 sps:$4 sm:$0xff]  }
 0x17d   : > { %3247 = vmatprep.subr.bf16.mxu0 %v17335_v63  ;;  %v17437_v63 = vld [vmem:[#allocation5 + $0x3cc] ss:$48 sps:$4 sm:$0xff]  }
 0x17f   : > { %3135 = vmatpush1.bf16.msra.mxu1 %v17337_v0  ;;  %v17440_v0 = vld [vmem:[#allocation5 + $0x3d4] ss:$48 sps:$4 sm:$0xff]  }
 0x180   : > { %3248 = vmatpush1.bf16.msra.mxu0 %v17338_v1  ;;  %3330 = vmatprep.subr.bf16.mxu1 %v17347_v2  ;;  %v19145_v1 = vld [vmem:[%s19063_s21 + $0xa0] ss:$16 sps:$4 sm:$0xff]   ;;  %v17434_v2 = vld [vmem:[%s19063_s21 + $0xa8] ss:$16 sps:$4 sm:$0xff]  }
 0x181   : > { %3556 = vmatprep.subr.bf16.mxu0 %v17350_v3  ;;  %v17435_v3 = vld [vmem:[#allocation5 + $0x3c8] ss:$48 sps:$4 sm:$0xff]  }
 0x182   : > { %3137 = vmatmul.mubr.bf16.vlgmr.msra.gmra.mrb[0].mxu1 %v19095_v4 }
 0x183   : > { %3250 = vmatmul.mubr.bf16.vlgmr.msra.gmra.mrb[0].mxu0 %v17344_v5  ;;  %3331 = vmatpush1.bf16.msra.mxu1 %v17345_v6  ;;  %v17438_v5 = vld [vmem:[#allocation5 + $0x3d0] ss:$48 sps:$4 sm:$0xff]   ;;  %v17443_v6 = vld [vmem:[#allocation5 + $0x42c] ss:$48 sps:$4 sm:$0xff]  }
 0x184   : > { %3557 = vmatpush1.bf16.msra.mxu0 %v17348_v7  ;;  %3332 = vmatprep.subr.bf16.mxu1 %v17353_v8  ;;  %v17446_v7 = vld [vmem:[#allocation5 + $0x434] ss:$48 sps:$4 sm:$0xff]  }
 0x185   : > { %3558 = vmatprep.subr.bf16.mxu0 %v17356_v9  ;;  %3146 = vmatprep.mubr.bf16.mxu1 %v19099_v10  ;;  %v19149_v8 = vld [vmem:[%s19063_s21 + $0xc4] ss:$16 sps:$4 sm:$0xff]   ;;  %v17449_v9 = vld [vmem:[%s19063_s21 + $0xcc] ss:$16 sps:$4 sm:$0xff]  }
 0x186   : > { %3259 = vmatprep.mubr.bf16.mxu0 %v17359_v11  ;;  %v17441_v11 = vld [vmem:[#allocation5 + $0x428] ss:$48 sps:$4 sm:$0xff]  }
 0x187   : > { %3333 = vmatpush1.bf16.msra.mxu1 %v17351_v12  ;;  %v17444_v12 = vld [vmem:[#allocation5 + $0x430] ss:$48 sps:$4 sm:$0xff]  }
 0x188   : > { %3559 = vmatpush1.bf16.msra.mxu0 %v17354_v13  ;;  %3334 = vmatprep.subr.bf16.mxu1 %v17365_v14  ;;  %v17455_v13 = vld [vmem:[#allocation5 + $0x48c] ss:$48 sps:$4 sm:$0xff]   ;;  %v17458_v14 = vld [vmem:[#allocation5 + $0x494] ss:$48 sps:$4 sm:$0xff]  }
 0x189   : > { %3560 = vmatprep.subr.bf16.mxu0 %v17368_v15  ;;  %v19155_v15 = vld [vmem:[%s19063_s21 + $0xc0] ss:$16 sps:$4 sm:$0xff]  }
 0x18a   : > { %3147 = vmatmul.mubr.bf16.gmra.mrb[4].mxu1 %v19105_v16 }
 0x18b   : > { %3260 = vmatmul.mubr.bf16.gmra.mrb[4].mxu0 %v17362_v17  ;;  %3335 = vmatpush1.bf16.msra.mxu1 %v17363_v18  ;;  %v17452_v17 = vld [vmem:[%s19063_s21 + $0xc8] ss:$16 sps:$4 sm:$0xff]  }
 0x18c   : > { %3561 = vmatpush1.bf16.msra.mxu0 %v17366_v19  ;;  %3336 = vmatprep.subr.bf16.mxu1 %v17371_v20  ;;  %v17453_v18 = vld [vmem:[#allocation5 + $0x488] ss:$48 sps:$4 sm:$0xff]   ;;  %v17456_v19 = vld [vmem:[#allocation5 + $0x490] ss:$48 sps:$4 sm:$0xff]   ;;  %v17461_v20 = vld [vmem:[#allocation5 + $0x4ec] ss:$48 sps:$4 sm:$0xff]  }
 0x18d   : > { %3562 = vmatprep.subr.bf16.mxu0 %v17374_v21  ;;  %3156 = vmatprep.mubr.bf16.mxu1 %v19109_v22  ;;  %v17464_v21 = vld [vmem:[#allocation5 + $0x4f4] ss:$48 sps:$4 sm:$0xff]  }
 0x18e   : > { %3269 = vmatprep.mubr.bf16.mxu0 %v17377_v23  ;;  %v19159_v23 = vld [vmem:[%s19063_s21 + $0xe4] ss:$16 sps:$4 sm:$0xff]  }
 0x18f   : > { %3337 = vmatpush1.bf16.msra.mxu1 %v17369_v24  ;;  %v17467_v24 = vld [vmem:[%s19063_s21 + $0xec] ss:$16 sps:$4 sm:$0xff]  }
 0x190   : > { %3563 = vmatpush1.bf16.msra.mxu0 %v17372_v25  ;;  %3338 = vmatprep.subr.bf16.mxu1 %v17383_v26  ;;  %v17459_v25 = vld [vmem:[#allocation5 + $0x4e8] ss:$48 sps:$4 sm:$0xff]   ;;  %v17462_v26 = vld [vmem:[#allocation5 + $0x4f0] ss:$48 sps:$4 sm:$0xff]  }
 0x191   : > { %3564 = vmatprep.subr.bf16.mxu0 %v17386_v27  ;;  %v17473_v27 = vld [vmem:[#allocation5 + $0x54c] ss:$48 sps:$4 sm:$0xff]  }
 0x192   : > { %3157 = vmatmul.mubr.bf16.gmra.mrb[8].mxu1 %v19115_v28 }
 0x193   : > { %3270 = vmatmul.mubr.bf16.gmra.mrb[8].mxu0 %v17380_v29  ;;  %3339 = vmatpush1.bf16.msra.mxu1 %v17381_v30  ;;  %v17476_v29 = vld [vmem:[#allocation5 + $0x554] ss:$48 sps:$4 sm:$0xff]   ;;  %v19165_v30 = vld [vmem:[%s19063_s21 + $0xe0] ss:$16 sps:$4 sm:$0xff]  }
 0x194   : > { %3565 = vmatpush1.bf16.msra.mxu0 %v17384_v31  ;;  %3340 = vmatprep.subr.bf16.mxu1 %v17389_v32  ;;  %v17470_v31 = vld [vmem:[%s19063_s21 + $0xe8] ss:$16 sps:$4 sm:$0xff]  }
 0x195   : > { %3566 = vmatprep.subr.bf16.mxu0 %v17392_v33  ;;  %3166 = vmatprep.mubr.bf16.mxu1 %v19119_v34  ;;  %v17471_v32 = vld [vmem:[#allocation5 + $0x548] ss:$48 sps:$4 sm:$0xff]   ;;  %v17474_v33 = vld [vmem:[#allocation5 + $0x550] ss:$48 sps:$4 sm:$0xff]  }
 0x196   : > { %3279 = vmatprep.mubr.bf16.mxu0 %v17395_v35  ;;  %v17479_v35 = vld [vmem:[#allocation5 + $0x5ac] ss:$48 sps:$4 sm:$0xff]  }
 0x197   : > { %3341 = vmatpush1.bf16.msra.mxu1 %v17387_v36  ;;  %v17482_v36 = vld [vmem:[#allocation5 + $0x5b4] ss:$48 sps:$4 sm:$0xff]  }
 0x198   : > { %3567 = vmatpush1.bf16.msra.mxu0 %v17390_v37  ;;  %3342 = vmatprep.subr.bf16.mxu1 %v17401_v38  ;;  %v17477_v37 = vld [vmem:[#allocation5 + $0x5a8] ss:$48 sps:$4 sm:$0xff]   ;;  %v17480_v38 = vld [vmem:[#allocation5 + $0x5b0] ss:$48 sps:$4 sm:$0xff]  }
 0x199   : > { %3568 = vmatprep.subr.bf16.mxu0 %v17404_v39  ;;  %v17485_v39 = vld [vmem:[#allocation5 + $0x60c] ss:$48 sps:$4 sm:$0xff]  }
 0x19a   : > { %3167 = vmatmul.mubr.bf16.gmra.mrb[12].mxu1 %v19125_v40 }
 0x19b   : > { %3280 = vmatmul.mubr.bf16.gmra.mrb[12].mxu0 %v17398_v41  ;;  %3343 = vmatpush1.bf16.msra.mxu1 %v17399_v42  ;;  %v17488_v41 = vld [vmem:[#allocation5 + $0x614] ss:$48 sps:$4 sm:$0xff]   ;;  %v17483_v42 = vld [vmem:[#allocation5 + $0x608] ss:$48 sps:$4 sm:$0xff]  }
 0x19c   : > { %3569 = vmatpush1.bf16.msra.mxu0 %v17402_v43  ;;  %3344 = vmatprep.subr.bf16.mxu1 %v17407_v44  ;;  %v17486_v43 = vld [vmem:[#allocation5 + $0x610] ss:$48 sps:$4 sm:$0xff]   ;;  %v17491_v44 = vld [vmem:[#allocation5 + $0x66c] ss:$48 sps:$4 sm:$0xff]  }
 0x19d   : > { %3570 = vmatprep.subr.bf16.mxu0 %v17410_v45  ;;  %3176 = vmatprep.mubr.bf16.mxu1 %v19129_v46  ;;  %v17494_v45 = vld [vmem:[#allocation5 + $0x674] ss:$48 sps:$4 sm:$0xff]  }
 0x19e   : > { %3289 = vmatprep.mubr.bf16.mxu0 %v17413_v47  ;;  %v17489_v47 = vld [vmem:[#allocation5 + $0x668] ss:$48 sps:$4 sm:$0xff]  }
 0x19f   : > { %3345 = vmatpush1.bf16.msra.mxu1 %v17405_v49  ;;  %v17492_v49 = vld [vmem:[#allocation5 + $0x670] ss:$48 sps:$4 sm:$0xff]  }
 0x1a0   : > { %3571 = vmatpush1.bf16.msra.mxu0 %v17408_v50  ;;  %3346 = vmatprep.subr.bf16.mxu1 %v17419_v51  ;;  %v17497_v50 = vld [vmem:[#allocation5 + $0x6cc] ss:$48 sps:$4 sm:$0xff]   ;;  %v17495_v51 = vld [vmem:[#allocation5 + $0x6c8] ss:$48 sps:$4 sm:$0xff]  }
 0x1a1   : > { %3572 = vmatprep.subr.bf16.mxu0 %v17422_v52  ;;  %v17498_v52 = vld [vmem:[#allocation5 + $0x6d0] ss:$48 sps:$4 sm:$0xff]  }
 0x1a2   : > { %3177 = vmatmul.mubr.bf16.gmra.mrb[16].mxu1 %v19135_v53 }
 0x1a3   : > { %3290 = vmatmul.mubr.bf16.gmra.mrb[16].mxu0 %v17416_v54  ;;  %3347 = vmatpush1.bf16.msra.mxu1 %v17417_v55  ;;  %v17503_v54 = vld [vmem:[#allocation5 + $0x72c] ss:$48 sps:$4 sm:$0xff]   ;;  %v17501_v55 = vld [vmem:[#allocation5 + $0x728] ss:$48 sps:$4 sm:$0xff]  }
 0x1a4   : > { %3573 = vmatpush1.bf16.msra.mxu0 %v17420_v56  ;;  %3348 = vmatprep.subr.bf16.mxu1 %v17425_v57  ;;  %v17504_v56 = vld [vmem:[#allocation5 + $0x730] ss:$48 sps:$4 sm:$0xff]   ;;  %v17509_v57 = vld [vmem:[#allocation5 + $0x78c] ss:$48 sps:$4 sm:$0xff]  }
 0x1a5   : > { %3574 = vmatprep.subr.bf16.mxu0 %v17428_v58  ;;  %3186 = vmatprep.mubr.bf16.mxu1 %v19139_v59  ;;  %v17507_v58 = vld [vmem:[#allocation5 + $0x788] ss:$48 sps:$4 sm:$0xff]  }
 0x1a6   : > { %3299 = vmatprep.mubr.bf16.mxu0 %v17431_v60  ;;  %v17510_v60 = vld [vmem:[#allocation5 + $0x790] ss:$48 sps:$4 sm:$0xff]  }
 0x1a7   : > { %3349 = vmatpush1.bf16.msra.mxu1 %v17423_v61  ;;  %v17515_v61 = vld [vmem:[#allocation5 + $0x7ec] ss:$48 sps:$4 sm:$0xff]  }
 0x1a8   : > { %3575 = vmatpush1.bf16.msra.mxu0 %v17426_v62  ;;  %3350 = vmatprep.subr.bf16.mxu1 %v17437_v63  ;;  %v17513_v62 = vld [vmem:[#allocation5 + $0x7e8] ss:$48 sps:$4 sm:$0xff]   ;;  %v17516_v63 = vld [vmem:[#allocation5 + $0x7f0] ss:$48 sps:$4 sm:$0xff]  }
 0x1a9   : > { %3576 = vmatprep.subr.bf16.mxu0 %v17440_v0  ;;  %v17521_v0 = vld [vmem:[#allocation5 + $0x84c] ss:$48 sps:$4 sm:$0xff]  }
 0x1aa   : > { %3187 = vmatmul.mubr.bf16.gmra.mrb[20].mxu1 %v19145_v1 }
 0x1ab   : > { %3300 = vmatmul.mubr.bf16.gmra.mrb[20].mxu0 %v17434_v2  ;;  %3351 = vmatpush1.bf16.msra.mxu1 %v17435_v3  ;;  %v17519_v2 = vld [vmem:[#allocation5 + $0x848] ss:$48 sps:$4 sm:$0xff]   ;;  %v17522_v3 = vld [vmem:[#allocation5 + $0x850] ss:$48 sps:$4 sm:$0xff]  }
 0x1ac   : > { %3577 = vmatpush1.bf16.msra.mxu0 %v17438_v5  ;;  %3352 = vmatprep.subr.bf16.mxu1 %v17443_v6  ;;  %v17527_v5 = vld [vmem:[#allocation5 + $0x8ac] ss:$48 sps:$4 sm:$0xff]   ;;  %v17525_v6 = vld [vmem:[#allocation5 + $0x8a8] ss:$48 sps:$4 sm:$0xff]  }
 0x1ad   : > { %3578 = vmatprep.subr.bf16.mxu0 %v17446_v7  ;;  %3196 = vmatprep.mubr.bf16.mxu1 %v19149_v8  ;;  %v17528_v7 = vld [vmem:[#allocation5 + $0x8b0] ss:$48 sps:$4 sm:$0xff]  }
 0x1ae   : > { %3309 = vmatprep.mubr.bf16.mxu0 %v17449_v9  ;;  %v17533_v9 = vld [vmem:[#allocation5 + $0x90c] ss:$48 sps:$4 sm:$0xff]  }
 0x1af   : > { %3353 = vmatpush1.bf16.msra.mxu1 %v17441_v11  ;;  %v17531_v11 = vld [vmem:[#allocation5 + $0x908] ss:$48 sps:$4 sm:$0xff]  }
 0x1b0   : > { %3579 = vmatpush1.bf16.msra.mxu0 %v17444_v12  ;;  %3354 = vmatprep.subr.bf16.mxu1 %v17455_v13  ;;  %v17534_v12 = vld [vmem:[#allocation5 + $0x910] ss:$48 sps:$4 sm:$0xff]   ;;  %v17539_v13 = vld [vmem:[#allocation5 + $0x96c] ss:$48 sps:$4 sm:$0xff]  }
 0x1b1   : > { %3580 = vmatprep.subr.bf16.mxu0 %v17458_v14  ;;  %v17537_v14 = vld [vmem:[#allocation5 + $0x968] ss:$48 sps:$4 sm:$0xff]  }
 0x1b2   : > { %3197 = vmatmul.mubr.bf16.gmra.mrb[24].mxu1 %v19155_v15 }
 0x1b3   : > { %3310 = vmatmul.mubr.bf16.gmra.mrb[24].mxu0 %v17452_v17  ;;  %3355 = vmatpush1.bf16.msra.mxu1 %v17453_v18  ;;  %v17540_v17 = vld [vmem:[#allocation5 + $0x970] ss:$48 sps:$4 sm:$0xff]   ;;  %v17545_v18 = vld [vmem:[#allocation5 + $0x9cc] ss:$48 sps:$4 sm:$0xff]  }
 0x1b4   : > { %3581 = vmatpush1.bf16.msra.mxu0 %v17456_v19  ;;  %3356 = vmatprep.subr.bf16.mxu1 %v17461_v20  ;;  %v17543_v19 = vld [vmem:[#allocation5 + $0x9c8] ss:$48 sps:$4 sm:$0xff]   ;;  %v17546_v20 = vld [vmem:[#allocation5 + $0x9d0] ss:$48 sps:$4 sm:$0xff]  }
 0x1b5   : > { %3582 = vmatprep.subr.bf16.mxu0 %v17464_v21  ;;  %3206 = vmatprep.mubr.bf16.mxu1 %v19159_v23  ;;  %v17551_v21 = vld [vmem:[#allocation5 + $0xa2c] ss:$48 sps:$4 sm:$0xff]  }
 0x1b6   : > { %3319 = vmatprep.mubr.bf16.mxu0 %v17467_v24  ;;  %v17549_v24 = vld [vmem:[#allocation5 + $0xa28] ss:$48 sps:$4 sm:$0xff]  }
 0x1b7   : > { %3357 = vmatpush1.bf16.msra.mxu1 %v17459_v25  ;;  %v17552_v25 = vld [vmem:[#allocation5 + $0xa30] ss:$48 sps:$4 sm:$0xff]  }
 0x1b8   : > { %3583 = vmatpush1.bf16.msra.mxu0 %v17462_v26  ;;  %3358 = vmatprep.subr.bf16.mxu1 %v17473_v27  ;;  %v17557_v26 = vld [vmem:[#allocation5 + $0xa8c] ss:$48 sps:$4 sm:$0xff]   ;;  %v17555_v27 = vld [vmem:[#allocation5 + $0xa88] ss:$48 sps:$4 sm:$0xff]  }
 0x1b9   : > { %3584 = vmatprep.subr.bf16.mxu0 %v17476_v29  ;;  %v17558_v29 = vld [vmem:[#allocation5 + $0xa90] ss:$48 sps:$4 sm:$0xff]  }
 0x1ba   : > { %3207 = vmatmul.mubr.bf16.gmra.mrb[28].mxu1 %v19165_v30 }
 0x1bb   : > { %3320 = vmatmul.mubr.bf16.gmra.mrb[28].mxu0 %v17470_v31  ;;  %3359 = vmatpush1.bf16.msra.mxu1 %v17471_v32  ;;  %v17563_v31 = vld [vmem:[#allocation5 + $0xaec] ss:$48 sps:$4 sm:$0xff]   ;;  %v17561_v32 = vld [vmem:[#allocation5 + $0xae8] ss:$48 sps:$4 sm:$0xff]  }
 0x1bc   : > { %3585 = vmatpush1.bf16.msra.mxu0 %v17474_v33  ;;  %3360 = vmatprep.subr.bf16.mxu1 %v17479_v35  ;;  %v17564_v33 = vld [vmem:[#allocation5 + $0xaf0] ss:$48 sps:$4 sm:$0xff]   ;;  %v17569_v35 = vld [vmem:[#allocation5 + $0xb4c] ss:$48 sps:$4 sm:$0xff]  }
 0x1bd   : > { %3586 = vmatprep.subr.bf16.mxu0 %v17482_v36  ;;  %3362 = vmatprep.mubr.bf16.mxu1 %v19090_v48  ;;  %v17567_v36 = vld [vmem:[#allocation5 + $0xb48] ss:$48 sps:$4 sm:$0xff]  }
 0x1be   : > { %3588 = vmatprep.mubr.bf16.mxu0 %v19090_v48  ;;  %v17500_v48 = vld [vmem:[#allocation5 + $0x6d4] ss:$48 sps:$4 sm:$0xff]  }
 0x1bf   : > { %3361 = vmatpush1.bf16.msra.mxu1 %v17477_v37  ;;  %v17570_v37 = vld [vmem:[#allocation5 + $0xb50] ss:$48 sps:$4 sm:$0xff]  }
 0x1c0   : > { %3587 = vmatpush1.bf16.msra.mxu0 %v17480_v38  ;;  %3443 = vmatprep.subr.bf16.mxu1 %v17485_v39  ;;  %v17575_v38 = vld [vmem:[#allocation5 + $0xbac] ss:$48 sps:$4 sm:$0xff]   ;;  %v17573_v39 = vld [vmem:[#allocation5 + $0xba8] ss:$48 sps:$4 sm:$0xff]  }
 0x1c1   : > { %3669 = vmatprep.subr.bf16.mxu0 %v17488_v41  ;;  %v17576_v41 = vld [vmem:[#allocation5 + $0xbb0] ss:$48 sps:$4 sm:$0xff]  }
 0x1c2   : > { %3363 = vmatmul.mubr.bf16.vlgmr.msra.gmra.mrb[32].mxu1 %v19095_v4 }
 0x1c3   : > { %3589 = vmatmul.mubr.bf16.vlgmr.msra.gmra.mrb[32].mxu0 %v19095_v4  ;;  %3444 = vmatpush1.bf16.msra.mxu1 %v17483_v42  ;;  %v17506_v4 = vld [vmem:[#allocation5 + $0x734] ss:$48 sps:$4 sm:$0xff]   ;;  %v17581_v42 = vld [vmem:[#allocation5 + $0x1c] ss:$48 sps:$4 sm:$0xff]  }
 0x1c4   : > { %3670 = vmatpush1.bf16.msra.mxu0 %v17486_v43  ;;  %3445 = vmatprep.subr.bf16.mxu1 %v17491_v44  ;;  %v18147_v43 = vld [vmem:[%s19063_s21 + $0xc] ss:$16 sps:$4 sm:$0xff]   ;;  %v17579_v44 = vld [vmem:[#allocation5 + $0x18] ss:$48 sps:$4 sm:$0xff]  }
 0x1c5   : > { %3671 = vmatprep.subr.bf16.mxu0 %v17494_v45  ;;  %3372 = vmatprep.mubr.bf16.mxu1 %v19099_v10  ;;  %v17582_v45 = vld [vmem:[#allocation5 + $0x20] ss:$48 sps:$4 sm:$0xff]  }
 0x1c6   : > { %3598 = vmatprep.mubr.bf16.mxu0 %v19099_v10  ;;  %v17512_v10 = vld [vmem:[#allocation5 + $0x794] ss:$48 sps:$4 sm:$0xff]  }
 0x1c7   : > { %3446 = vmatpush1.bf16.msra.mxu1 %v17489_v47  ;;  %v17587_v47 = vld [vmem:[#allocation5 + $0x7c] ss:$48 sps:$4 sm:$0xff]  }
 0x1c8   : > { %3672 = vmatpush1.bf16.msra.mxu0 %v17492_v49  ;;  %3447 = vmatprep.subr.bf16.mxu1 %v17497_v50  ;;  %v18148_v49 = vld [vmem:[%s19063_s21 + $0x8] ss:$16 sps:$4 sm:$0xff]  }
 0x1c9   : > { %3673 = vmatprep.subr.bf16.mxu0 %v17500_v48  ;;  %v17585_v50 = vld [vmem:[#allocation5 + $0x78] ss:$48 sps:$4 sm:$0xff]   ;;  %v17588_v48 = vld [vmem:[#allocation5 + $0x80] ss:$48 sps:$4 sm:$0xff]  }
 0x1ca   : > { %3373 = vmatmul.mubr.bf16.gmra.mrb[36].mxu1 %v19105_v16 }
 0x1cb   : > { %3599 = vmatmul.mubr.bf16.gmra.mrb[36].mxu0 %v19105_v16  ;;  %3448 = vmatpush1.bf16.msra.mxu1 %v17495_v51  ;;  %v17518_v16 = vld [vmem:[#allocation5 + $0x7f4] ss:$48 sps:$4 sm:$0xff]   ;;  %v17593_v51 = vld [vmem:[#allocation5 + $0xdc] ss:$48 sps:$4 sm:$0xff]  }
 0x1cc   : > { %3674 = vmatpush1.bf16.msra.mxu0 %v17498_v52  ;;  %3449 = vmatprep.subr.bf16.mxu1 %v17503_v54  ;;  %v17596_v52 = vld [vmem:[#allocation5 + $0xe4] ss:$48 sps:$4 sm:$0xff]   ;;  %v18149_v54 = vld [vmem:[%s19063_s21 + $0x2c] ss:$16 sps:$4 sm:$0xff]  }
 0x1cd   : > { %3675 = vmatprep.subr.bf16.mxu0 %v17506_v4  ;;  %3382 = vmatprep.mubr.bf16.mxu1 %v19109_v22  ;;  %v17591_v4 = vld [vmem:[#allocation5 + $0xd8] ss:$48 sps:$4 sm:$0xff]  }
 0x1ce   : > { %3608 = vmatprep.mubr.bf16.mxu0 %v19109_v22  ;;  %v17524_v22 = vld [vmem:[#allocation5 + $0x854] ss:$48 sps:$4 sm:$0xff]  }
 0x1cf   : > { %3450 = vmatpush1.bf16.msra.mxu1 %v17501_v55  ;;  %v17594_v55 = vld [vmem:[#allocation5 + $0xe0] ss:$48 sps:$4 sm:$0xff]  }
 0x1d0   : > { %3676 = vmatpush1.bf16.msra.mxu0 %v17504_v56  ;;  %3451 = vmatprep.subr.bf16.mxu1 %v17509_v57  ;;  %v17599_v56 = vld [vmem:[#allocation5 + $0x13c] ss:$48 sps:$4 sm:$0xff]   ;;  %v17602_v57 = vld [vmem:[#allocation5 + $0x144] ss:$48 sps:$4 sm:$0xff]  }
 0x1d1   : > { %3677 = vmatprep.subr.bf16.mxu0 %v17512_v10  ;;  %v18150_v10 = vld [vmem:[%s19063_s21 + $0x28] ss:$16 sps:$4 sm:$0xff]  }
 0x1d2   : > { %3383 = vmatmul.mubr.bf16.gmra.mrb[40].mxu1 %v19115_v28 }
 0x1d3   : > { %3609 = vmatmul.mubr.bf16.gmra.mrb[40].mxu0 %v19115_v28  ;;  %3452 = vmatpush1.bf16.msra.mxu1 %v17507_v58  ;;  %v17530_v28 = vld [vmem:[#allocation5 + $0x8b4] ss:$48 sps:$4 sm:$0xff]   ;;  %v17597_v58 = vld [vmem:[#allocation5 + $0x138] ss:$48 sps:$4 sm:$0xff]  }
 0x1d4   : > { %3678 = vmatpush1.bf16.msra.mxu0 %v17510_v60  ;;  %3453 = vmatprep.subr.bf16.mxu1 %v17515_v61  ;;  %v17600_v60 = vld [vmem:[#allocation5 + $0x140] ss:$48 sps:$4 sm:$0xff]   ;;  %v17605_v61 = vld [vmem:[#allocation5 + $0x19c] ss:$48 sps:$4 sm:$0xff]  }
 0x1d5   : > { %3679 = vmatprep.subr.bf16.mxu0 %v17518_v16  ;;  %3392 = vmatprep.mubr.bf16.mxu1 %v19119_v34  ;;  %v17608_v16 = vld [vmem:[#allocation5 + $0x1a4] ss:$48 sps:$4 sm:$0xff]  }
 0x1d6   : > { %3618 = vmatprep.mubr.bf16.mxu0 %v19119_v34  ;;  %v17536_v34 = vld [vmem:[#allocation5 + $0x914] ss:$48 sps:$4 sm:$0xff]  }
 0x1d7   : > { %3454 = vmatpush1.bf16.msra.mxu1 %v17513_v62  ;;  %v18151_v62 = vld [vmem:[%s19063_s21 + $0x4c] ss:$16 sps:$4 sm:$0xff]  }
 0x1d8   : > { %3680 = vmatpush1.bf16.msra.mxu0 %v17516_v63  ;;  %3455 = vmatprep.subr.bf16.mxu1 %v17521_v0  ;;  %v17603_v63 = vld [vmem:[#allocation5 + $0x198] ss:$48 sps:$4 sm:$0xff]   ;;  %v17606_v0 = vld [vmem:[#allocation5 + $0x1a0] ss:$48 sps:$4 sm:$0xff]  }
 0x1d9   : > { %3681 = vmatprep.subr.bf16.mxu0 %v17524_v22  ;;  %v17611_v22 = vld [vmem:[#allocation5 + $0x1fc] ss:$48 sps:$4 sm:$0xff]  }
 0x1da   : > { %3393 = vmatmul.mubr.bf16.gmra.mrb[44].mxu1 %v19125_v40 }
 0x1db   : > { %3619 = vmatmul.mubr.bf16.gmra.mrb[44].mxu0 %v19125_v40  ;;  %3456 = vmatpush1.bf16.msra.mxu1 %v17519_v2  ;;  %v17542_v40 = vld [vmem:[#allocation5 + $0x974] ss:$48 sps:$4 sm:$0xff]  }
 0x1dc   : > { %3682 = vmatpush1.bf16.msra.mxu0 %v17522_v3  ;;  %3457 = vmatprep.subr.bf16.mxu1 %v17527_v5  ;;  %v17614_v2 = vld [vmem:[#allocation5 + $0x204] ss:$48 sps:$4 sm:$0xff]   ;;  %v18152_v3 = vld [vmem:[%s19063_s21 + $0x48] ss:$16 sps:$4 sm:$0xff]  }
 0x1dd   : > { %3683 = vmatprep.subr.bf16.mxu0 %v17530_v28  ;;  %3402 = vmatprep.mubr.bf16.mxu1 %v19129_v46  ;;  %v17609_v5 = vld [vmem:[#allocation5 + $0x1f8] ss:$48 sps:$4 sm:$0xff]   ;;  %v17612_v28 = vld [vmem:[#allocation5 + $0x200] ss:$48 sps:$4 sm:$0xff]  }
 0x1de   : > { %3628 = vmatprep.mubr.bf16.mxu0 %v19129_v46  ;;  %v17548_v46 = vld [vmem:[#allocation5 + $0x9d4] ss:$48 sps:$4 sm:$0xff]  }
 0x1df   : > { %3458 = vmatpush1.bf16.msra.mxu1 %v17525_v6  ;;  %v17617_v6 = vld [vmem:[#allocation5 + $0x25c] ss:$48 sps:$4 sm:$0xff]  }
 0x1e0   : > { %3684 = vmatpush1.bf16.msra.mxu0 %v17528_v7  ;;  %3459 = vmatprep.subr.bf16.mxu1 %v17533_v9  ;;  %v17620_v7 = vld [vmem:[#allocation5 + $0x264] ss:$48 sps:$4 sm:$0xff]   ;;  %v18153_v9 = vld [vmem:[%s19063_s21 + $0x6c] ss:$16 sps:$4 sm:$0xff]  }
 0x1e1   : > { %3685 = vmatprep.subr.bf16.mxu0 %v17536_v34  ;;  %v17615_v34 = vld [vmem:[#allocation5 + $0x258] ss:$48 sps:$4 sm:$0xff]  }
 0x1e2   : > { %3403 = vmatmul.mubr.bf16.gmra.mrb[48].mxu1 %v19135_v53 }
 0x1e3   : > { %3629 = vmatmul.mubr.bf16.gmra.mrb[48].mxu0 %v19135_v53  ;;  %3460 = vmatpush1.bf16.msra.mxu1 %v17531_v11  ;;  %v17554_v53 = vld [vmem:[#allocation5 + $0xa34] ss:$48 sps:$4 sm:$0xff]   ;;  %v17618_v11 = vld [vmem:[#allocation5 + $0x260] ss:$48 sps:$4 sm:$0xff]  }
 0x1e4   : > { %3686 = vmatpush1.bf16.msra.mxu0 %v17534_v12  ;;  %3461 = vmatprep.subr.bf16.mxu1 %v17539_v13  ;;  %v17623_v12 = vld [vmem:[#allocation5 + $0x2bc] ss:$48 sps:$4 sm:$0xff]   ;;  %v17626_v13 = vld [vmem:[#allocation5 + $0x2c4] ss:$48 sps:$4 sm:$0xff]  }
 0x1e5   : > { %3687 = vmatprep.subr.bf16.mxu0 %v17542_v40  ;;  %3412 = vmatprep.mubr.bf16.mxu1 %v19139_v59  ;;  %v18154_v40 = vld [vmem:[%s19063_s21 + $0x68] ss:$16 sps:$4 sm:$0xff]  }
 0x1e6   : > { %3638 = vmatprep.mubr.bf16.mxu0 %v19139_v59  ;;  %v17560_v59 = vld [vmem:[#allocation5 + $0xa94] ss:$48 sps:$4 sm:$0xff]  }
 0x1e7   : > { %3462 = vmatpush1.bf16.msra.mxu1 %v17537_v14  ;;  %v17621_v14 = vld [vmem:[#allocation5 + $0x2b8] ss:$48 sps:$4 sm:$0xff]  }
 0x1e8   : > { %3688 = vmatpush1.bf16.msra.mxu0 %v17540_v17  ;;  %3463 = vmatprep.subr.bf16.mxu1 %v17545_v18  ;;  %v17624_v17 = vld [vmem:[#allocation5 + $0x2c0] ss:$48 sps:$4 sm:$0xff]   ;;  %v17629_v18 = vld [vmem:[#allocation5 + $0x31c] ss:$48 sps:$4 sm:$0xff]  }
 0x1e9   : > { %3689 = vmatprep.subr.bf16.mxu0 %v17548_v46  ;;  %v17632_v46 = vld [vmem:[#allocation5 + $0x324] ss:$48 sps:$4 sm:$0xff]  }
 0x1ea   : > { %3413 = vmatmul.mubr.bf16.gmra.mrb[52].mxu1 %v19145_v1 }
 0x1eb   : > { %3639 = vmatmul.mubr.bf16.gmra.mrb[52].mxu0 %v19145_v1  ;;  %3464 = vmatpush1.bf16.msra.mxu1 %v17543_v19  ;;  %v17566_v1 = vld [vmem:[#allocation5 + $0xaf4] ss:$48 sps:$4 sm:$0xff]   ;;  %v18155_v19 = vld [vmem:[%s19063_s21 + $0x8c] ss:$16 sps:$4 sm:$0xff]  }
 0x1ec   : > { %3690 = vmatpush1.bf16.msra.mxu0 %v17546_v20  ;;  %3465 = vmatprep.subr.bf16.mxu1 %v17551_v21  ;;  %v17627_v20 = vld [vmem:[#allocation5 + $0x318] ss:$48 sps:$4 sm:$0xff]   ;;  %v17630_v21 = vld [vmem:[#allocation5 + $0x320] ss:$48 sps:$4 sm:$0xff]  }
 0x1ed   : > { %3691 = vmatprep.subr.bf16.mxu0 %v17554_v53  ;;  %3422 = vmatprep.mubr.bf16.mxu1 %v19149_v8  ;;  %v17635_v53 = vld [vmem:[#allocation5 + $0x37c] ss:$48 sps:$4 sm:$0xff]  }
 0x1ee   : > { %3648 = vmatprep.mubr.bf16.mxu0 %v19149_v8  ;;  %v17572_v8 = vld [vmem:[#allocation5 + $0xb54] ss:$48 sps:$4 sm:$0xff]  }
 0x1ef   : > { %3466 = vmatpush1.bf16.msra.mxu1 %v17549_v24  ;;  %v17638_v24 = vld [vmem:[#allocation5 + $0x384] ss:$48 sps:$4 sm:$0xff]  }
 0x1f0   : > { %3692 = vmatpush1.bf16.msra.mxu0 %v17552_v25  ;;  %3467 = vmatprep.subr.bf16.mxu1 %v17557_v26  ;;  %v18156_v25 = vld [vmem:[%s19063_s21 + $0x88] ss:$16 sps:$4 sm:$0xff]  }
 0x1f1   : > { %3693 = vmatprep.subr.bf16.mxu0 %v17560_v59  ;;  %v17633_v26 = vld [vmem:[#allocation5 + $0x378] ss:$48 sps:$4 sm:$0xff]   ;;  %v17636_v59 = vld [vmem:[#allocation5 + $0x380] ss:$48 sps:$4 sm:$0xff]  }
 0x1f2   : > { %3423 = vmatmul.mubr.bf16.gmra.mrb[56].mxu1 %v19155_v15 }
 0x1f3   : > { %3649 = vmatmul.mubr.bf16.gmra.mrb[56].mxu0 %v19155_v15  ;;  %3468 = vmatpush1.bf16.msra.mxu1 %v17555_v27  ;;  %v17578_v15 = vld [vmem:[#allocation5 + $0xbb4] ss:$48 sps:$4 sm:$0xff]   ;;  %v17641_v27 = vld [vmem:[#allocation5 + $0x3dc] ss:$48 sps:$4 sm:$0xff]  }
 0x1f4   : > { %3694 = vmatpush1.bf16.msra.mxu0 %v17558_v29  ;;  %3469 = vmatprep.subr.bf16.mxu1 %v17563_v31  ;;  %v17644_v29 = vld [vmem:[#allocation5 + $0x3e4] ss:$48 sps:$4 sm:$0xff]   ;;  %v18157_v31 = vld [vmem:[%s19063_s21 + $0xac] ss:$16 sps:$4 sm:$0xff]  }
 0x1f5   : > { %3695 = vmatprep.subr.bf16.mxu0 %v17566_v1  ;;  %3432 = vmatprep.mubr.bf16.mxu1 %v19159_v23  ;;  %v17639_v1 = vld [vmem:[#allocation5 + $0x3d8] ss:$48 sps:$4 sm:$0xff]  }
 0x1f6   : > { %3658 = vmatprep.mubr.bf16.mxu0 %v19159_v23  ;;  %v17584_v23 = vld [vmem:[#allocation5 + $0x24] ss:$48 sps:$4 sm:$0xff]  }
 0x1f7   : > { %3470 = vmatpush1.bf16.msra.mxu1 %v17561_v32  ;;  %v17642_v32 = vld [vmem:[#allocation5 + $0x3e0] ss:$48 sps:$4 sm:$0xff]  }
 0x1f8   : > { %3696 = vmatpush1.bf16.msra.mxu0 %v17564_v33  ;;  %3471 = vmatprep.subr.bf16.mxu1 %v17569_v35  ;;  %v17647_v33 = vld [vmem:[#allocation5 + $0x43c] ss:$48 sps:$4 sm:$0xff]   ;;  %v17650_v35 = vld [vmem:[#allocation5 + $0x444] ss:$48 sps:$4 sm:$0xff]  }
 0x1f9   : > { %3697 = vmatprep.subr.bf16.mxu0 %v17572_v8  ;;  %v18158_v8 = vld [vmem:[%s19063_s21 + $0xa8] ss:$16 sps:$4 sm:$0xff]  }
 0x1fa   : > { %3433 = vmatmul.mubr.bf16.gmra.mrb[60].mxu1 %v19165_v30 }
 0x1fb   : > { %3659 = vmatmul.mubr.bf16.gmra.mrb[60].mxu0 %v19165_v30  ;;  %3472 = vmatpush1.bf16.msra.mxu1 %v17567_v36  ;;  %v17590_v30 = vld [vmem:[#allocation5 + $0x84] ss:$48 sps:$4 sm:$0xff]   ;;  %v17645_v36 = vld [vmem:[#allocation5 + $0x438] ss:$48 sps:$4 sm:$0xff]  }
 0x1fc   : > { %3698 = vmatpush1.bf16.msra.mxu0 %v17570_v37  ;;  %3473 = vmatprep.subr.bf16.mxu1 %v17575_v38  ;;  %v17648_v37 = vld [vmem:[#allocation5 + $0x440] ss:$48 sps:$4 sm:$0xff]   ;;  %v17653_v38 = vld [vmem:[#allocation5 + $0x49c] ss:$48 sps:$4 sm:$0xff]  }
 0x1fd   : > { %3699 = vmatprep.subr.bf16.mxu0 %v17578_v15  ;;  %3475 = vmatprep.mubr.bf16.mxu1 %v18147_v43  ;;  %v17656_v15 = vld [vmem:[#allocation5 + $0x4a4] ss:$48 sps:$4 sm:$0xff]  }
 0x1fe   : > { %3701 = vmatprep.mubr.bf16.mxu0 %v18147_v43  ;;  %v17662_v43 = vld [vmem:[#allocation5 + $0x504] ss:$48 sps:$4 sm:$0xff]  }
 0x1ff   : > { %3474 = vmatpush1.bf16.msra.mxu1 %v17573_v39  ;;  %v18159_v39 = vld [vmem:[%s19063_s21 + $0xcc] ss:$16 sps:$4 sm:$0xff]  }
 0x200   : > { %3700 = vmatpush1.bf16.msra.mxu0 %v17576_v41  ;;  %3782 = vmatprep.subr.bf16.mxu1 %v17581_v42  ;;  %v17651_v41 = vld [vmem:[#allocation5 + $0x498] ss:$48 sps:$4 sm:$0xff]   ;;  %v17654_v42 = vld [vmem:[#allocation5 + $0x4a0] ss:$48 sps:$4 sm:$0xff]  }
 0x201   : > { %4008 = vmatprep.subr.bf16.mxu0 %v17584_v23  ;;  %v17659_v23 = vld [vmem:[#allocation5 + $0x4fc] ss:$48 sps:$4 sm:$0xff]  }
 0x202   : > { %3476 = vmatmul.mubr.bf16.vlgmr.msra.gmra.mrb[32].mxu1 %v18148_v49 }
 0x203   : > { %3702 = vmatmul.mubr.bf16.vlgmr.msra.gmra.mrb[32].mxu0 %v18148_v49  ;;  %3783 = vmatpush1.bf16.msra.mxu1 %v17579_v44  ;;  %v18160_v44 = vld [vmem:[%s19063_s21 + $0xc8] ss:$16 sps:$4 sm:$0xff]   ;;  %v17668_v49 = vld [vmem:[#allocation5 + $0x564] ss:$48 sps:$4 sm:$0xff]  }
 0x204   : > { %4009 = vmatpush1.bf16.msra.mxu0 %v17582_v45  ;;  %3784 = vmatprep.subr.bf16.mxu1 %v17587_v47  ;;  %v17657_v45 = vld [vmem:[#allocation5 + $0x4f8] ss:$48 sps:$4 sm:$0xff]   ;;  %v17660_v47 = vld [vmem:[#allocation5 + $0x500] ss:$48 sps:$4 sm:$0xff]  }
 0x205   : > { %4010 = vmatprep.subr.bf16.mxu0 %v17590_v30  ;;  %3485 = vmatprep.mubr.bf16.mxu1 %v18149_v54  ;;  %v17665_v30 = vld [vmem:[#allocation5 + $0x55c] ss:$48 sps:$4 sm:$0xff]  }
 0x206   : > { %3711 = vmatprep.mubr.bf16.mxu0 %v18149_v54  ;;  %v17674_v54 = vld [vmem:[#allocation5 + $0x5c4] ss:$48 sps:$4 sm:$0xff]  }
 0x207   : > { %3785 = vmatpush1.bf16.msra.mxu1 %v17585_v50  ;;  %v18161_v50 = vld [vmem:[%s19063_s21 + $0xec] ss:$16 sps:$4 sm:$0xff]  }
 0x208   : > { %4011 = vmatpush1.bf16.msra.mxu0 %v17588_v48  ;;  %3786 = vmatprep.subr.bf16.mxu1 %v17593_v51  ;;  %v17663_v48 = vld [vmem:[#allocation5 + $0x558] ss:$48 sps:$4 sm:$0xff]   ;;  %v17666_v51 = vld [vmem:[#allocation5 + $0x560] ss:$48 sps:$4 sm:$0xff]  }
 0x209   : > { %4012 = vmatprep.subr.bf16.mxu0 %v17596_v52  ;;  %v17671_v52 = vld [vmem:[#allocation5 + $0x5bc] ss:$48 sps:$4 sm:$0xff]  }
 0x20a   : > { %3486 = vmatmul.mubr.bf16.gmra.mrb[36].mxu1 %v18150_v10 }
 0x20b   : > { %3712 = vmatmul.mubr.bf16.gmra.mrb[36].mxu0 %v18150_v10  ;;  %3787 = vmatpush1.bf16.msra.mxu1 %v17591_v4  ;;  %v18162_v4 = vld [vmem:[%s19063_s21 + $0xe8] ss:$16 sps:$4 sm:$0xff]   ;;  %v17680_v10 = vld [vmem:[#allocation5 + $0x624] ss:$48 sps:$4 sm:$0xff]  }
 0x20c   : > { %4013 = vmatpush1.bf16.msra.mxu0 %v17594_v55  ;;  %3788 = vmatprep.subr.bf16.mxu1 %v17599_v56  ;;  %v17669_v55 = vld [vmem:[#allocation5 + $0x5b8] ss:$48 sps:$4 sm:$0xff]   ;;  %v17672_v56 = vld [vmem:[#allocation5 + $0x5c0] ss:$48 sps:$4 sm:$0xff]  }
 0x20d   : > { %4014 = vmatprep.subr.bf16.mxu0 %v17602_v57  ;;  %3495 = vmatprep.mubr.bf16.mxu1 %v18151_v62  ;;  %v17677_v57 = vld [vmem:[#allocation5 + $0x61c] ss:$48 sps:$4 sm:$0xff]  }
 0x20e   : > { %3721 = vmatprep.mubr.bf16.mxu0 %v18151_v62  ;;  %v17686_v62 = vld [vmem:[#allocation5 + $0x684] ss:$48 sps:$4 sm:$0xff]  }
 0x20f   : > { %3789 = vmatpush1.bf16.msra.mxu1 %v17597_v58  ;;  %v18163_v58 = vld [vmem:[%s19063_s21 + $0x4] ss:$16 sps:$4 sm:$0xff]  }
 0x210   : > { %4015 = vmatpush1.bf16.msra.mxu0 %v17600_v60  ;;  %3790 = vmatprep.subr.bf16.mxu1 %v17605_v61  ;;  %v17675_v60 = vld [vmem:[#allocation5 + $0x618] ss:$48 sps:$4 sm:$0xff]   ;;  %v17678_v61 = vld [vmem:[#allocation5 + $0x620] ss:$48 sps:$4 sm:$0xff]  }
 0x211   : > { %4016 = vmatprep.subr.bf16.mxu0 %v17608_v16  ;;  %v17683_v16 = vld [vmem:[#allocation5 + $0x67c] ss:$48 sps:$4 sm:$0xff]  }
 0x212   : > { %3496 = vmatmul.mubr.bf16.gmra.mrb[40].mxu1 %v18152_v3 }
 0x213   : > { %3722 = vmatmul.mubr.bf16.gmra.mrb[40].mxu0 %v18152_v3  ;;  %3791 = vmatpush1.bf16.msra.mxu1 %v17603_v63  ;;  %v18164_v63 = vld [vmem:[%s19063_s21] ss:$16 sps:$4 sm:$0xff]   ;;  %v17692_v3 = vld [vmem:[#allocation5 + $0x6e4] ss:$48 sps:$4 sm:$0xff]  }
 0x214   : > { %4017 = vmatpush1.bf16.msra.mxu0 %v17606_v0  ;;  %3792 = vmatprep.subr.bf16.mxu1 %v17611_v22  ;;  %v17681_v0 = vld [vmem:[#allocation5 + $0x678] ss:$48 sps:$4 sm:$0xff]   ;;  %v17684_v22 = vld [vmem:[#allocation5 + $0x680] ss:$48 sps:$4 sm:$0xff]  }
 0x215   : > { %4018 = vmatprep.subr.bf16.mxu0 %v17614_v2  ;;  %3505 = vmatprep.mubr.bf16.mxu1 %v18153_v9  ;;  %v17689_v2 = vld [vmem:[#allocation5 + $0x6dc] ss:$48 sps:$4 sm:$0xff]  }
 0x216   : > { %3731 = vmatprep.mubr.bf16.mxu0 %v18153_v9  ;;  %v17695_v9 = vld [vmem:[#allocation5 + $0x73c] ss:$48 sps:$4 sm:$0xff]  }
 0x217   : > { %3793 = vmatpush1.bf16.msra.mxu1 %v17609_v5  ;;  %v18165_v5 = vld [vmem:[%s19063_s21 + $0x24] ss:$16 sps:$4 sm:$0xff]  }
 0x218   : > { %4019 = vmatpush1.bf16.msra.mxu0 %v17612_v28  ;;  %3794 = vmatprep.subr.bf16.mxu1 %v17617_v6  ;;  %v964_v28 = vlaneseq  ;;  %v17687_v6 = vld [vmem:[#allocation5 + $0x6d8] ss:$48 sps:$4 sm:$0xff]  }
 0x219   : > { %4020 = vmatprep.subr.bf16.mxu0 %v17620_v7  ;;  %v17690_v7 = vld [vmem:[#allocation5 + $0x6e0] ss:$48 sps:$4 sm:$0xff]  }
 0x21a   : > { %3506 = vmatmul.mubr.bf16.gmra.mrb[44].mxu1 %v18154_v40 }
 0x21b   : > { %3732 = vmatmul.mubr.bf16.gmra.mrb[44].mxu0 %v18154_v40  ;;  %3795 = vmatpush1.bf16.msra.mxu1 %v17615_v34  ;;  %v17698_v34 = vld [vmem:[#allocation5 + $0x744] ss:$48 sps:$4 sm:$0xff]   ;;  %v17696_v40 = vld [vmem:[#allocation5 + $0x740] ss:$48 sps:$4 sm:$0xff]  }
 0x21c   : > { %4021 = vmatpush1.bf16.msra.mxu0 %v17618_v11  ;;  %3796 = vmatprep.subr.bf16.mxu1 %v17623_v12  ;;  %v18166_v11 = vld [vmem:[%s19063_s21 + $0x20] ss:$16 sps:$4 sm:$0xff]   ;;  %v19221_v12 = vshrl.u32 %v964_v28, 7 }
 0x21d   : > { %4022 = vmatprep.subr.bf16.mxu0 %v17626_v13  ;;  %3515 = vmatprep.mubr.bf16.mxu1 %v18155_v19  ;;  %v17693_v13 = vld [vmem:[#allocation5 + $0x738] ss:$48 sps:$4 sm:$0xff]  }
 0x21e   : > { %3741 = vmatprep.mubr.bf16.mxu0 %v18155_v19  ;;  %21137 = vst [vmem:[#allocation29_spill] sm:$0xff] %v19221_v12  ;;  %v19225_v19 = vsub.s32 0, %v19221_v12 }
 0x21f   : > { %3797 = vmatpush1.bf16.msra.mxu1 %v17621_v14  ;;  %v17701_v14 = vld [vmem:[#allocation5 + $0x79c] ss:$48 sps:$4 sm:$0xff]  }
 0x220   : > { %4023 = vmatpush1.bf16.msra.mxu0 %v17624_v17  ;;  %3798 = vmatprep.subr.bf16.mxu1 %v17629_v18  ;;  %v17704_v17 = vld [vmem:[#allocation5 + $0x7a4] ss:$48 sps:$4 sm:$0xff]   ;;  %21138 = vst [vmem:[#allocation30_spill] sm:$0xff] %v19225_v19 }
 0x221   : > { %4024 = vmatprep.subr.bf16.mxu0 %v17632_v46  ;;  %v18167_v18 = vld [vmem:[%s19063_s21 + $0x44] ss:$16 sps:$4 sm:$0xff]   ;;  %v17699_v46 = vld [vmem:[#allocation5 + $0x798] ss:$48 sps:$4 sm:$0xff]  }
 0x222   : > { %3516 = vmatmul.mubr.bf16.gmra.mrb[48].mxu1 %v18156_v25 }
 0x223   : > { %3742 = vmatmul.mubr.bf16.gmra.mrb[48].mxu0 %v18156_v25  ;;  %3799 = vmatpush1.bf16.msra.mxu1 %v17627_v20  ;;  %v17702_v20 = vld [vmem:[#allocation5 + $0x7a0] ss:$48 sps:$4 sm:$0xff]   ;;  %v17710_v25 = vld [vmem:[#allocation5 + $0x804] ss:$48 sps:$4 sm:$0xff]  }
 0x224   : > { %4025 = vmatpush1.bf16.msra.mxu0 %v17630_v21  ;;  %3800 = vmatprep.subr.bf16.mxu1 %v17635_v53  ;;  %v960_v21 = vld [vmem:[#allocation7] sm:$0xff]  ;;  %v19228_v53 = vsub.s32 1, %v19221_v12 }
 0x225   : > { %4026 = vmatprep.subr.bf16.mxu0 %v17638_v24  ;;  %3525 = vmatprep.mubr.bf16.mxu1 %v18157_v31  ;;  %v17707_v24 = vld [vmem:[#allocation5 + $0x7fc] ss:$48 sps:$4 sm:$0xff]  }
 0x226   : > { %3751 = vmatprep.mubr.bf16.mxu0 %v18157_v31  ;;  %21139 = vst [vmem:[#allocation31_spill] sm:$0xff] %v19228_v53  ;;  %v17708_v31 = vld [vmem:[#allocation5 + $0x800] ss:$48 sps:$4 sm:$0xff]  }
 0x227   : > { %3801 = vmatpush1.bf16.msra.mxu1 %v17633_v26  ;;  %v18168_v26 = vld [vmem:[%s19063_s21 + $0x40] ss:$16 sps:$4 sm:$0xff]  }
 0x228   : > { %4027 = vmatpush1.bf16.msra.mxu0 %v17636_v59  ;;  %3802 = vmatprep.subr.bf16.mxu1 %v17641_v27  ;;  %v19232_v59 = vrot.slane %v960_v21, %v19225_v19  ;;  %v19235_v27 = vrot.slane %v960_v21, %v19228_v53  ;;  %v17729_v21 = vld [vmem:[#allocation5 + $0x978] ss:$48 sps:$4 sm:$0xff]  }
 0x229   : > { %4028 = vmatprep.subr.bf16.mxu0 %v17644_v29  ;;  %v17705_v29 = vld [vmem:[#allocation5 + $0x7f8] ss:$48 sps:$4 sm:$0xff]  }
 0x22a   : > { %3526 = vmatmul.mubr.bf16.gmra.mrb[52].mxu1 %v18158_v8 }
 0x22b   : > { %3752 = vmatmul.mubr.bf16.gmra.mrb[52].mxu0 %v18158_v8  ;;  %3803 = vmatpush1.bf16.msra.mxu1 %v17639_v1  ;;  %v17713_v1 = vld [vmem:[#allocation5 + $0x85c] ss:$48 sps:$4 sm:$0xff]   ;;  %v18169_v8 = vld [vmem:[%s19063_s21 + $0x64] ss:$16 sps:$4 sm:$0xff]  }
 0x22c   : > { %4029 = vmatpush1.bf16.msra.mxu0 %v17642_v32  ;;  %3804 = vmatprep.subr.bf16.mxu1 %v17647_v33  ;;  %v17716_v32 = vld [vmem:[#allocation5 + $0x864] ss:$48 sps:$4 sm:$0xff]  }
 0x22d   : > { %4030 = vmatprep.subr.bf16.mxu0 %v17650_v35  ;;  %3535 = vmatprep.mubr.bf16.mxu1 %v18159_v39 }
 0x22e   : > { %3761 = vmatprep.mubr.bf16.mxu0 %v18159_v39 }
 0x22f   : > { %3805 = vmatpush1.bf16.msra.mxu1 %v17645_v36  ;;  %v17711_v36 = vld [vmem:[#allocation5 + $0x858] ss:$48 sps:$4 sm:$0xff]  }
 0x230   : > { %4031 = vmatpush1.bf16.msra.mxu0 %v17648_v37  ;;  %3806 = vmatprep.subr.bf16.mxu1 %v17653_v38  ;;  %v17714_v37 = vld [vmem:[#allocation5 + $0x860] ss:$48 sps:$4 sm:$0xff]  }
 0x231   : > { %4032 = vmatprep.subr.bf16.mxu0 %v17656_v15 }
 0x232   : > { %3536 = vmatmul.mubr.bf16.gmra.mrb[56].mxu1 %v18160_v44 }
 0x233   : > { %3762 = vmatmul.mubr.bf16.gmra.mrb[56].mxu0 %v18160_v44  ;;  %3807 = vmatpush1.bf16.msra.mxu1 %v17651_v41  ;;  %v17719_v41 = vld [vmem:[#allocation5 + $0x8bc] ss:$48 sps:$4 sm:$0xff]  }
 0x234   : > { %4033 = vmatpush1.bf16.msra.mxu0 %v17654_v42  ;;  %3808 = vmatprep.subr.bf16.mxu1 %v17659_v23 }
 0x235   : > { %4034 = vmatprep.subr.bf16.mxu0 %v17662_v43  ;;  %3545 = vmatprep.mubr.bf16.mxu1 %v18161_v50 }
 0x236   : > { %3771 = vmatprep.mubr.bf16.mxu0 %v18161_v50 }
 0x237   : > { %3809 = vmatpush1.bf16.msra.mxu1 %v17657_v45 }
 0x238   : > { %4035 = vmatpush1.bf16.msra.mxu0 %v17660_v47  ;;  %3810 = vmatprep.subr.bf16.mxu1 %v17665_v30 }
 0x239   : > { %4036 = vmatprep.subr.bf16.mxu0 %v17668_v49  ;;  %v17722_v49 = vld [vmem:[#allocation5 + $0x8c4] ss:$48 sps:$4 sm:$0xff]  }
 0x23a   : > { %3546 = vmatmul.mubr.bf16.gmra.mrb[60].mxu1 %v18162_v4 }
 0x23b   : > { %3772 = vmatmul.mubr.bf16.gmra.mrb[60].mxu0 %v18162_v4  ;;  %3811 = vmatpush1.bf16.msra.mxu1 %v17663_v48  ;;  %v18170_v4 = vld [vmem:[%s19063_s21 + $0x60] ss:$16 sps:$4 sm:$0xff]  }
 0x23c   : > { %4037 = vmatpush1.bf16.msra.mxu0 %v17666_v51  ;;  %3812 = vmatprep.subr.bf16.mxu1 %v17671_v52  ;;  %v17717_v51 = vld [vmem:[#allocation5 + $0x8b8] ss:$48 sps:$4 sm:$0xff]   ;;  %v17720_v52 = vld [vmem:[#allocation5 + $0x8c0] ss:$48 sps:$4 sm:$0xff]  }
 0x23d   : > { %4038 = vmatprep.subr.bf16.mxu0 %v17674_v54  ;;  %3814 = vmatprep.mubr.bf16.mxu1 %v18163_v58 }
 0x23e   : > { %4040 = vmatprep.mubr.bf16.mxu0 %v18163_v58  ;;  %v17728_v58 = vld [vmem:[#allocation5 + $0x924] ss:$48 sps:$4 sm:$0xff]  }
 0x23f   : > { %3813 = vmatpush1.bf16.msra.mxu1 %v17669_v55  ;;  %v17725_v55 = vld [vmem:[#allocation5 + $0x91c] ss:$48 sps:$4 sm:$0xff]  }
 0x240   : > { %4039 = vmatpush1.bf16.msra.mxu0 %v17672_v56  ;;  %3895 = vmatprep.subr.bf16.mxu1 %v17677_v57 }
 0x241   : > { %4121 = vmatprep.subr.bf16.mxu0 %v17680_v10 }
 0x242   : > { %3815 = vmatmul.mubr.bf16.vlgmr.msra.gmra.mrb[64].mxu1 %v18164_v63 }
 0x243   : > { %4041 = vmatmul.mubr.bf16.vlgmr.msra.gmra.mrb[64].mxu0 %v18164_v63  ;;  %3896 = vmatpush1.bf16.msra.mxu1 %v17675_v60  ;;  %v18171_v63 = vld [vmem:[%s19063_s21 + $0x84] ss:$16 sps:$4 sm:$0xff]  }
 0x244   : > { %4122 = vmatpush1.bf16.msra.mxu0 %v17678_v61  ;;  %3897 = vmatprep.subr.bf16.mxu1 %v17683_v16 }
 0x245   : > { %4123 = vmatprep.subr.bf16.mxu0 %v17686_v62  ;;  %3824 = vmatprep.mubr.bf16.mxu1 %v18165_v5 }
 0x246   : > { %4050 = vmatprep.mubr.bf16.mxu0 %v18165_v5 }
 0x247   : > { %3898 = vmatpush1.bf16.msra.mxu1 %v17681_v0  ;;  %v17723_v0 = vld [vmem:[#allocation5 + $0x918] ss:$48 sps:$4 sm:$0xff]  }
 0x248   : > { %4124 = vmatpush1.bf16.msra.mxu0 %v17684_v22  ;;  %3899 = vmatprep.subr.bf16.mxu1 %v17689_v2  ;;  %v17726_v22 = vld [vmem:[#allocation5 + $0x920] ss:$48 sps:$4 sm:$0xff]  }
 0x249   : > { %4125 = vmatprep.subr.bf16.mxu0 %v17692_v3 }
 0x24a   : > { %3825 = vmatmul.mubr.bf16.gmra.mrb[68].mxu1 %v18166_v11 }
 0x24b   : > { %4051 = vmatmul.mubr.bf16.gmra.mrb[68].mxu0 %v18166_v11  ;;  %3900 = vmatpush1.bf16.msra.mxu1 %v17687_v6  ;;  %v17731_v6 = vld [vmem:[#allocation5 + $0x97c] ss:$48 sps:$4 sm:$0xff]  }
 0x24c   : > { %4126 = vmatpush1.bf16.msra.mxu0 %v17690_v7  ;;  %3901 = vmatprep.subr.bf16.mxu1 %v17695_v9 }
 0x24d   : > { %4127 = vmatprep.subr.bf16.mxu0 %v17698_v34  ;;  %3834 = vmatprep.mubr.bf16.mxu1 %v18167_v18 }
 0x24e   : > { %4060 = vmatprep.mubr.bf16.mxu0 %v18167_v18  ;;  %v17734_v18 = vld [vmem:[#allocation5 + $0x984] ss:$48 sps:$4 sm:$0xff]  }
 0x24f   : > { %3902 = vmatpush1.bf16.msra.mxu1 %v17693_v13 }
 0x250   : > { %4128 = vmatpush1.bf16.msra.mxu0 %v17696_v40  ;;  %3903 = vmatprep.subr.bf16.mxu1 %v17701_v14 }
 0x251   : > { %4129 = vmatprep.subr.bf16.mxu0 %v17704_v17 }
 0x252   : > { %3835 = vmatmul.mubr.bf16.gmra.mrb[72].mxu1 %v18168_v26 }
 0x253   : > { %4061 = vmatmul.mubr.bf16.gmra.mrb[72].mxu0 %v18168_v26  ;;  %3904 = vmatpush1.bf16.msra.mxu1 %v17699_v46  ;;  %v18172_v26 = vld [vmem:[%s19063_s21 + $0x80] ss:$16 sps:$4 sm:$0xff]  }
 0x254   : > { %4130 = vmatpush1.bf16.msra.mxu0 %v17702_v20  ;;  %3905 = vmatprep.subr.bf16.mxu1 %v17707_v24  ;;  %v17732_v24 = vld [vmem:[#allocation5 + $0x980] ss:$48 sps:$4 sm:$0xff]  }
 0x255   : > { %4131 = vmatprep.subr.bf16.mxu0 %v17710_v25  ;;  %v3138_v33 = vpop.f32.mrb[0].mxu1  ;;  %3844 = vmatprep.mubr.bf16.mxu1 %v18169_v8 }
 0x256   : > { %v3251_v35 = vpop.f32.mrb[0].mxu0  ;;  %4070 = vmatprep.mubr.bf16.mxu0 %v18169_v8  ;;  %v3139_v38 = vadd.f32 %v3138_v33, %v19232_v59  ;;  %v3140_v15 = vpop.f32.mrb[1].mxu1  ;;  %v17740_v33 = vld [vmem:[#allocation5 + $0x9e4] ss:$48 sps:$4 sm:$0xff]  }
 0x257   : > { %v3253_v39 = vpop.f32.mrb[1].mxu0  ;;  %v3141_v42 = vadd.f32 %v3140_v15, %v19235_v27  ;;  %v3142_v23 = vpop.f32.mrb[2].mxu1  ;;  %3906 = vmatpush1.bf16.msra.mxu1 %v17705_v29  ;;  %v17737_v29 = vld [vmem:[#allocation5 + $0x9dc] ss:$48 sps:$4 sm:$0xff]   ;;  %v17735_v15 = vld [vmem:[#allocation5 + $0x9d8] ss:$48 sps:$4 sm:$0xff]  }
 0x258   : > { %4132 = vmatpush1.bf16.msra.mxu0 %v17708_v31  ;;  %v3255_v43 = vpop.f32.mrb[2].mxu0  ;;  %v3143_v44 = vadd.f32 %v3142_v23, %v19232_v59  ;;  %v3252_v45 = vadd.f32 %v3251_v35, %v3139_v38  ;;  %v3144_v47 = vpop.f32.mrb[3].mxu1  ;;  %3907 = vmatprep.subr.bf16.mxu1 %v17713_v1  ;;  %v18173_v38 = vld [vmem:[%s19063_s21 + $0xa4] ss:$16 sps:$4 sm:$0xff]  }
 0x259   : > { %v3257_v30 = vpop.f32.mrb[3].mxu0  ;;  %4133 = vmatprep.subr.bf16.mxu0 %v17716_v32  ;;  %v3145_v50 = vadd.f32 %v3144_v47, %v19235_v27  ;;  %v3254_v48 = vadd.f32 %v3253_v39, %v3141_v42  ;;  %v17738_v39 = vld [vmem:[#allocation5 + $0x9e0] ss:$48 sps:$4 sm:$0xff]  }
 0x25a   : > { %v3256_v54 = vadd.f32 %v3255_v43, %v3143_v44  ;;  %3845 = vmatmul.mubr.bf16.gmra.mrb[76].mxu1 %v18170_v4  ;;  %v4460_v57 = vmax.f32 %v3252_v45, 0.0  ;;  %v17743_v44 = vld [vmem:[#allocation5 + $0xa3c] ss:$48 sps:$4 sm:$0xff]  }
 0x25b   : > { %4071 = vmatmul.mubr.bf16.gmra.mrb[76].mxu0 %v18170_v4  ;;  %v3258_v56 = vadd.f32 %v3257_v30, %v3145_v50  ;;  %3908 = vmatpush1.bf16.msra.mxu1 %v17711_v36  ;;  %v4461_v60 = vmax.f32 %v3254_v48, 0.0 }
 0x25c   : > { %4134 = vmatpush1.bf16.msra.mxu0 %v17714_v37  ;;  %v4472_v10 = vmax.f32 %v3256_v54, 0.0  ;;  %3909 = vmatprep.subr.bf16.mxu1 %v17719_v41  ;;  %v17746_v54 = vld [vmem:[#allocation5 + $0xa44] ss:$48 sps:$4 sm:$0xff]  }
 0x25d   : > { %4135 = vmatprep.subr.bf16.mxu0 %v17722_v49  ;;  %v4473_v61 = vmax.f32 %v3258_v56, 0.0  ;;  %v3148_v16 = vpop.f32.mrb[4].mxu1  ;;  %3854 = vmatprep.mubr.bf16.mxu1 %v18171_v63  ;;  %v17741_v56 = vld [vmem:[#allocation5 + $0xa38] ss:$48 sps:$4 sm:$0xff]  }
 0x25e   : > { %v3261_v62 = vpop.f32.mrb[4].mxu0  ;;  %4080 = vmatprep.mubr.bf16.mxu0 %v18171_v63  ;;  %v19244_v2 = vpack.c.bf16 %v4472_v10, %v4460_v57  ;;  %v3149_v3 = vadd.f32 %v3148_v16, %v19232_v59  ;;  %v3150_v5 = vpop.f32.mrb[5].mxu1  ;;  %v17744_v57 = vld [vmem:[#allocation5 + $0xa40] ss:$48 sps:$4 sm:$0xff]   ;;  %v17752_v63 = vld [vmem:[#allocation5 + $0xaa4] ss:$48 sps:$4 sm:$0xff]  }
 0x25f   : > { %v3263_v28 = vpop.f32.mrb[5].mxu0  ;;  %v19247_v7 = vpack.c.bf16 %v4473_v61, %v4461_v60  ;;  %v3151_v9 = vadd.f32 %v3150_v5, %v19235_v27  ;;  %v3152_v34 = vpop.f32.mrb[6].mxu1  ;;  %3910 = vmatpush1.bf16.msra.mxu1 %v17717_v51  ;;  %v17749_v60 = vld [vmem:[#allocation5 + $0xa9c] ss:$48 sps:$4 sm:$0xff]  }
 0x260   : > { %21140 = vst [vmem:[#allocation32_spill] sm:$0xff] %v19244_v2  ;;  %4136 = vmatpush1.bf16.msra.mxu0 %v17720_v52  ;;  %v3265_v11 = vpop.f32.mrb[6].mxu0  ;;  %v3153_v13 = vadd.f32 %v3152_v34, %v19232_v59  ;;  %v3262_v40 = vadd.f32 %v3261_v62, %v3149_v3  ;;  %v3154_v14 = vpop.f32.mrb[7].mxu1  ;;  %3911 = vmatprep.subr.bf16.mxu1 %v17725_v55 }
 0x261   : > { %21141 = vst [vmem:[#allocation33_spill] sm:$0xff] %v19247_v7  ;;  %v3267_v17 = vpop.f32.mrb[7].mxu0  ;;  %4137 = vmatprep.subr.bf16.mxu0 %v17728_v58  ;;  %v3155_v46 = vadd.f32 %v3154_v14, %v19235_v27  ;;  %v3264_v20 = vadd.f32 %v3263_v28, %v3151_v9  ;;  %v18174_v58 = vld [vmem:[%s19063_s21 + $0xa0] ss:$16 sps:$4 sm:$0xff]   ;;  %v18175_v28 = vld [vmem:[%s19063_s21 + $0xc4] ss:$16 sps:$4 sm:$0xff]  }
 0x262   : > { %v3266_v25 = vadd.f32 %v3265_v11, %v3153_v13  ;;  %3855 = vmatmul.mubr.bf16.gmra.mrb[80].mxu1 %v18172_v26  ;;  %v4484_v1 = vmax.f32 %v3262_v40, 0.0  ;;  %v17750_v9 = vld [vmem:[#allocation5 + $0xaa0] ss:$48 sps:$4 sm:$0xff]   ;;  %v17755_v14 = vld [vmem:[#allocation5 + $0xafc] ss:$48 sps:$4 sm:$0xff]  }
 0x263   : > { %4081 = vmatmul.mubr.bf16.gmra.mrb[80].mxu0 %v18172_v26  ;;  %v3268_v31 = vadd.f32 %v3267_v17, %v3155_v46  ;;  %3912 = vmatpush1.bf16.msra.mxu1 %v17723_v0  ;;  %v4485_v35 = vmax.f32 %v3264_v20, 0.0 }
 0x264   : > { %4138 = vmatpush1.bf16.msra.mxu0 %v17726_v22  ;;  %v4496_v32 = vmax.f32 %v3266_v25, 0.0  ;;  %3913 = vmatprep.subr.bf16.mxu1 %v17731_v6  ;;  %v17747_v6 = vld [vmem:[#allocation5 + $0xa98] ss:$48 sps:$4 sm:$0xff]  }
 0x265   : > { %4139 = vmatprep.subr.bf16.mxu0 %v17734_v18  ;;  %v4497_v8 = vmax.f32 %v3268_v31, 0.0  ;;  %v3158_v36 = vpop.f32.mrb[8].mxu1  ;;  %3864 = vmatprep.mubr.bf16.mxu1 %v18173_v38 }
 0x266   : > { %v3271_v37 = vpop.f32.mrb[8].mxu0  ;;  %4090 = vmatprep.mubr.bf16.mxu0 %v18173_v38  ;;  %v19254_v41 = vpack.c.bf16 %v4496_v32, %v4484_v1  ;;  %v3159_v42 = vadd.f32 %v3158_v36, %v19232_v59  ;;  %v3160_v23 = vpop.f32.mrb[9].mxu1  ;;  %v17753_v32 = vld [vmem:[#allocation5 + $0xaf8] ss:$48 sps:$4 sm:$0xff]   ;;  %v17761_v36 = vld [vmem:[#allocation5 + $0xb5c] ss:$48 sps:$4 sm:$0xff]  }
 0x267   : > { %v3273_v43 = vpop.f32.mrb[9].mxu0  ;;  %v19257_v45 = vpack.c.bf16 %v4497_v8, %v4485_v35  ;;  %v3161_v47 = vadd.f32 %v3160_v23, %v19235_v27  ;;  %v3162_v30 = vpop.f32.mrb[10].mxu1  ;;  %3914 = vmatpush1.bf16.msra.mxu1 %v17729_v21  ;;  %v18176_v8 = vld [vmem:[%s19063_s21 + $0xc0] ss:$16 sps:$4 sm:$0xff]  }
 0x268   : > { %21142 = vst [vmem:[#allocation34_spill] sm:$0xff] %v19254_v41  ;;  %4140 = vmatpush1.bf16.msra.mxu0 %v17732_v24  ;;  %v3275_v49 = vpop.f32.mrb[10].mxu0  ;;  %v3163_v50 = vadd.f32 %v3162_v30, %v19232_v59  ;;  %v3272_v48 = vadd.f32 %v3271_v37, %v3159_v42  ;;  %v3164_v51 = vpop.f32.mrb[11].mxu1  ;;  %3915 = vmatprep.subr.bf16.mxu1 %v17737_v29  ;;  %v17758_v29 = vld [vmem:[#allocation5 + $0xb04] ss:$48 sps:$4 sm:$0xff]  }
 0x269   : > { %21143 = vst [vmem:[#allocation35_spill] sm:$0xff] %v19257_v45  ;;  %v3277_v52 = vpop.f32.mrb[11].mxu0  ;;  %4141 = vmatprep.subr.bf16.mxu0 %v17740_v33  ;;  %v3165_v4 = vadd.f32 %v3164_v51, %v19235_v27  ;;  %v3274_v55 = vadd.f32 %v3273_v43, %v3161_v47  ;;  %v17756_v33 = vld [vmem:[#allocation5 + $0xb00] ss:$48 sps:$4 sm:$0xff]   ;;  %v18177_v47 = vld [vmem:[%s19063_s21 + $0xe4] ss:$16 sps:$4 sm:$0xff]  }
 0x26a   : > { %v3276_v10 = vadd.f32 %v3275_v49, %v3163_v50  ;;  %3865 = vmatmul.mubr.bf16.gmra.mrb[84].mxu1 %v18174_v58  ;;  %v4508_v16 = vmax.f32 %v3272_v48, 0.0  ;;  %v17759_v30 = vld [vmem:[#allocation5 + $0xb58] ss:$48 sps:$4 sm:$0xff]   ;;  %v17762_v49 = vld [vmem:[#allocation5 + $0xb60] ss:$48 sps:$4 sm:$0xff]  }
 0x26b   : > { %4091 = vmatmul.mubr.bf16.gmra.mrb[84].mxu0 %v18174_v58  ;;  %v3278_v61 = vadd.f32 %v3277_v52, %v3165_v4  ;;  %3916 = vmatpush1.bf16.msra.mxu1 %v17735_v15  ;;  %v4509_v0 = vmax.f32 %v3274_v55, 0.0 }
 0x26c   : > { %4142 = vmatpush1.bf16.msra.mxu0 %v17738_v39  ;;  %v4520_v62 = vmax.f32 %v3276_v10, 0.0  ;;  %3917 = vmatprep.subr.bf16.mxu1 %v17743_v44  ;;  %v17764_v39 = vld [vmem:[#allocation5 + $0xb64] ss:$48 sps:$4 sm:$0xff]  }
 0x26d   : > { %4143 = vmatprep.subr.bf16.mxu0 %v17746_v54  ;;  %v4521_v22 = vmax.f32 %v3278_v61, 0.0  ;;  %v3168_v3 = vpop.f32.mrb[12].mxu1  ;;  %3874 = vmatprep.mubr.bf16.mxu1 %v18175_v28  ;;  %v17767_v54 = vld [vmem:[#allocation5 + $0xbbc] ss:$48 sps:$4 sm:$0xff]  }
 0x26e   : > { %v3281_v5 = vpop.f32.mrb[12].mxu0  ;;  %4100 = vmatprep.mubr.bf16.mxu0 %v18175_v28  ;;  %v19264_v34 = vpack.c.bf16 %v4520_v62, %v4508_v16  ;;  %v3169_v11 = vadd.f32 %v3168_v3, %v19232_v59  ;;  %v3170_v13 = vpop.f32.mrb[13].mxu1  ;;  %v17770_v16 = vld [vmem:[#allocation5 + $0xbc4] ss:$48 sps:$4 sm:$0xff]   ;;  %v4748_v62 = vld [vmem:[#allocation8] sm:$0xff] }
 0x26f   : > { %v3283_v40 = vpop.f32.mrb[13].mxu0  ;;  %v19267_v17 = vpack.c.bf16 %v4521_v22, %v4509_v0  ;;  %v3171_v18 = vadd.f32 %v3170_v13, %v19235_v27  ;;  %v3172_v46 = vpop.f32.mrb[14].mxu1  ;;  %3918 = vmatpush1.bf16.msra.mxu1 %v17741_v56  ;;  %v17765_v22 = vld [vmem:[#allocation5 + $0xbb8] ss:$48 sps:$4 sm:$0xff]   ;;  %v4752_v3 = vld [vmem:[#allocation8 + $0x20] sm:$0xff] }
 0x270   : > { %21144 = vst [vmem:[#allocation36_spill] sm:$0xff] %v19264_v34  ;;  %4144 = vmatpush1.bf16.msra.mxu0 %v17744_v57  ;;  %v3285_v20 = vpop.f32.mrb[14].mxu0  ;;  %v3173_v21 = vadd.f32 %v3172_v46, %v19232_v59  ;;  %v3282_v24 = vadd.f32 %v3281_v5, %v3169_v11  ;;  %v3174_v25 = vpop.f32.mrb[15].mxu1  ;;  %3919 = vmatprep.subr.bf16.mxu1 %v17749_v60  ;;  %v18178_v28 = vld [vmem:[%s19063_s21 + $0xe0] ss:$16 sps:$4 sm:$0xff]  }
 0x271   : > { %21145 = vst [vmem:[#allocation37_spill] sm:$0xff] %v19267_v17  ;;  %v3287_v26 = vpop.f32.mrb[15].mxu0  ;;  %4145 = vmatprep.subr.bf16.mxu0 %v17752_v63  ;;  %v3175_v31 = vadd.f32 %v3174_v25, %v19235_v27  ;;  %v3284_v1 = vadd.f32 %v3283_v40, %v3171_v18  ;;  %v17773_v40 = vld [vmem:[#allocation5 + $0x2c] ss:$48 sps:$4 sm:$0xff]  }
 0x272   : > { %v3286_v35 = vadd.f32 %v3285_v20, %v3173_v21  ;;  %3875 = vmatmul.mubr.bf16.gmra.mrb[88].mxu1 %v18176_v8  ;;  %v4532_v38 = vmax.f32 %v3282_v24, 0.0  ;;  %v19283_v18 = vld [vmem:[#allocation8 + $0x40] sm:$0xff] }
 0x273   : > { %4101 = vmatmul.mubr.bf16.gmra.mrb[88].mxu0 %v18176_v8  ;;  %v3288_v37 = vadd.f32 %v3287_v26, %v3175_v31  ;;  %3920 = vmatpush1.bf16.msra.mxu1 %v17747_v6  ;;  %v4533_v42 = vmax.f32 %v3284_v1, 0.0  ;;  %v17768_v6 = vld [vmem:[#allocation5 + $0xbc0] ss:$48 sps:$4 sm:$0xff]   ;;  %v18179_v25 = vld [vmem:[%s19063_s21 + $0xc] ss:$16 sps:$4 sm:$0xff]  }
 0x274   : > { %4146 = vmatpush1.bf16.msra.mxu0 %v17750_v9  ;;  %v4544_v15 = vmax.f32 %v3286_v35, 0.0  ;;  %3921 = vmatprep.subr.bf16.mxu1 %v17755_v14  ;;  %v14747_v14 = vcombine.high %v4748_v62, %v4752_v3  ;;  %v4760_v26 = vld [vmem:[#allocation8 + $0x60] sm:$0xff] }
 0x275   : > { %4147 = vmatprep.subr.bf16.mxu0 %v17758_v29  ;;  %v4545_v23 = vmax.f32 %v3288_v37, 0.0  ;;  %v3178_v43 = vpop.f32.mrb[16].mxu1  ;;  %3884 = vmatprep.mubr.bf16.mxu1 %v18177_v47 }
 0x276   : > { %v3291_v44 = vpop.f32.mrb[16].mxu0  ;;  %4110 = vmatprep.mubr.bf16.mxu0 %v18177_v47  ;;  %v19274_v50 = vpack.c.bf16 %v4544_v15, %v4532_v38  ;;  %v3179_v48 = vadd.f32 %v3178_v43, %v19232_v59  ;;  %v3180_v51 = vpop.f32.mrb[17].mxu1  ;;  %v14746_v38 = vcombine.low %v4748_v62, %v4752_v3  ;;  %v17776_v43 = vld [vmem:[#allocation5 + $0x8c] ss:$48 sps:$4 sm:$0xff]  }
 0x277   : > { %v3293_v52 = vpop.f32.mrb[17].mxu0  ;;  %v19277_v4 = vpack.c.bf16 %v4545_v23, %v4533_v42  ;;  %v3181_v55 = vadd.f32 %v3180_v51, %v19235_v27  ;;  %v3182_v56 = vpop.f32.mrb[18].mxu1  ;;  %3922 = vmatpush1.bf16.msra.mxu1 %v17753_v32  ;;  %v4764_v47 = vld [vmem:[#allocation8 + $0x80] sm:$0xff] }
 0x278   : > { %21146 = vst [vmem:[#allocation38_spill] sm:$0xff] %v19274_v50  ;;  %4148 = vmatpush1.bf16.msra.mxu0 %v17756_v33  ;;  %v3295_v57 = vpop.f32.mrb[18].mxu0  ;;  %v3183_v10 = vadd.f32 %v3182_v56, %v19232_v59  ;;  %v3292_v58 = vadd.f32 %v3291_v44, %v3179_v48  ;;  %v3184_v60 = vpop.f32.mrb[19].mxu1  ;;  %3923 = vmatprep.subr.bf16.mxu1 %v17761_v36  ;;  %v17771_v33 = vld [vmem:[#allocation5 + $0x28] ss:$48 sps:$4 sm:$0xff]   ;;  %v4768_v51 = vld [vmem:[#allocation8 + $0xa0] sm:$0xff] }
 0x279   : > { %21147 = vst [vmem:[#allocation39_spill] sm:$0xff] %v19277_v4  ;;  %v3297_v61 = vpop.f32.mrb[19].mxu0  ;;  %4149 = vmatprep.subr.bf16.mxu0 %v17764_v39  ;;  %v3185_v63 = vadd.f32 %v3184_v60, %v19235_v27  ;;  %v3294_v0 = vadd.f32 %v3293_v52, %v3181_v55  ;;  %v14755_v44 = vcombine.high %v19283_v18, %v4760_v26  ;;  %v17774_v48 = vld [vmem:[#allocation5 + $0x88] ss:$48 sps:$4 sm:$0xff]   ;;  %v18181_v3 = vld [vmem:[%s19063_s21 + $0x2c] ss:$16 sps:$4 sm:$0xff]  }
 0x27a   : > { %v3296_v5 = vadd.f32 %v3295_v57, %v3183_v10  ;;  %3885 = vmatmul.mubr.bf16.gmra.mrb[92].mxu1 %v18178_v28  ;;  %v4556_v11 = vmax.f32 %v3292_v58, 0.0  ;;  %v14754_v56 = vcombine.low %v19283_v18, %v4760_v26  ;;  %v17779_v58 = vld [vmem:[#allocation5 + $0xec] ss:$48 sps:$4 sm:$0xff]   ;;  %v14763_v60 = vcombine.high %v4764_v47, %v4768_v51 }
 0x27b   : > { %4111 = vmatmul.mubr.bf16.gmra.mrb[92].mxu0 %v18178_v28  ;;  %v3298_v9 = vadd.f32 %v3297_v61, %v3185_v63  ;;  %3924 = vmatpush1.bf16.msra.mxu1 %v17759_v30  ;;  %v4557_v46 = vmax.f32 %v3294_v0, 0.0  ;;  %v19297_v61 = vld [vmem:[#allocation8 + $0xc0] sm:$0xff] }
 0x27c   : > { %4150 = vmatpush1.bf16.msra.mxu0 %v17762_v49  ;;  %v4568_v13 = vmax.f32 %v3296_v5, 0.0  ;;  %3925 = vmatprep.subr.bf16.mxu1 %v17767_v54  ;;  %v18180_v54 = vld [vmem:[%s19063_s21 + $0x8] ss:$16 sps:$4 sm:$0xff]   ;;  %v17782_v26 = vld [vmem:[#allocation5 + $0x14c] ss:$48 sps:$4 sm:$0xff]  }
 0x27d   : > { %4151 = vmatprep.subr.bf16.mxu0 %v17770_v16  ;;  %v4569_v20 = vmax.f32 %v3298_v9, 0.0  ;;  %v3188_v21 = vpop.f32.mrb[20].mxu1  ;;  %3927 = vmatprep.mubr.bf16.mxu1 %v18179_v25  ;;  %v19299_v16 = vld [vmem:[#allocation8 + $0xe0] sm:$0xff]  ;;  %v17777_v5 = vld [vmem:[#allocation5 + $0xe8] ss:$48 sps:$4 sm:$0xff]  }
 0x27e   : > { %v3301_v24 = vpop.f32.mrb[20].mxu0  ;;  %4153 = vmatprep.mubr.bf16.mxu0 %v18179_v25  ;;  %v19286_v29 = vpack.c.bf16 %v4568_v13, %v4556_v11  ;;  %v3189_v31 = vadd.f32 %v3188_v21, %v19232_v59  ;;  %v3190_v1 = vpop.f32.mrb[21].mxu1 }
 0x27f   : > { %v3303_v32 = vpop.f32.mrb[21].mxu0  ;;  %v19289_v35 = vpack.c.bf16 %v4569_v20, %v4557_v46  ;;  %v3191_v8 = vadd.f32 %v3190_v1, %v19235_v27  ;;  %v3192_v36 = vpop.f32.mrb[22].mxu1  ;;  %3926 = vmatpush1.bf16.msra.mxu1 %v17765_v22  ;;  %v14762_v46 = vcombine.low %v4764_v47, %v4768_v51  ;;  %v4780_v1 = vld [vmem:[#allocation8 + $0x100] sm:$0xff] }
 0x280   : > { %21148 = vst [vmem:[#allocation40_spill] sm:$0xff] %v19286_v29  ;;  %4152 = vmatpush1.bf16.msra.mxu0 %v17768_v6  ;;  %v3305_v37 = vpop.f32.mrb[22].mxu0  ;;  %v3193_v15 = vadd.f32 %v3192_v36, %v19232_v59  ;;  %v3302_v39 = vadd.f32 %v3301_v24, %v3189_v31  ;;  %v3194_v42 = vpop.f32.mrb[23].mxu1  ;;  %4234 = vmatprep.subr.bf16.mxu1 %v17773_v40  ;;  %v4784_v36 = vld [vmem:[#allocation8 + $0x120] sm:$0xff] }
 0x281   : > { %21149 = vst [vmem:[#allocation41_spill] sm:$0xff] %v19289_v35  ;;  %v3307_v23 = vpop.f32.mrb[23].mxu0  ;;  %9398 = vmatprep.subr.bf16.mxu0 %v14747_v14  ;;  %v3195_v30 = vadd.f32 %v3194_v42, %v19235_v27  ;;  %v3304_v49 = vadd.f32 %v3303_v32, %v3191_v8  ;;  %v14771_v31 = vcombine.high %v19297_v61, %v19299_v16  ;;  %v17780_v8 = vld [vmem:[#allocation5 + $0x148] ss:$48 sps:$4 sm:$0xff]   ;;  %v4788_v47 = vld [vmem:[#allocation8 + $0x140] sm:$0xff] }
 0x282   : > { %v3306_v52 = vadd.f32 %v3305_v37, %v3193_v15  ;;  %3928 = vmatmul.mubr.bf16.vlgmr.msra.gmra.mrb[64].mxu1 %v18180_v54  ;;  %v4580_v57 = vmax.f32 %v3302_v39, 0.0  ;;  %v14770_v39 = vcombine.low %v19297_v61, %v19299_v16 }
 0x283   : > { %4154 = vmatmul.mubr.bf16.vlgmr.msra.gmra.mrb[64].mxu0 %v18180_v54  ;;  %v3308_v55 = vadd.f32 %v3307_v23, %v3195_v30  ;;  %4235 = vmatpush1.bf16.msra.mxu1 %v17771_v33  ;;  %v4581_v62 = vmax.f32 %v3304_v49, 0.0  ;;  %v4792_v30 = vld [vmem:[#allocation8 + $0x160] sm:$0xff] }
 0x284   : > { %9399 = vmatpush1.bf16.msra.mxu0 %v14746_v38  ;;  %v4592_v10 = vmax.f32 %v3306_v52, 0.0  ;;  %4236 = vmatprep.subr.bf16.mxu1 %v17776_v43  ;;  %v18182_v38 = vld [vmem:[%s19063_s21 + $0x28] ss:$16 sps:$4 sm:$0xff]   ;;  %v17785_v43 = vld [vmem:[#allocation5 + $0x1ac] ss:$48 sps:$4 sm:$0xff]  }
 0x285   : > { %9400 = vmatprep.subr.bf16.mxu0 %v14755_v44  ;;  %v4593_v63 = vmax.f32 %v3308_v55, 0.0  ;;  %v3198_v0 = vpop.f32.mrb[24].mxu1  ;;  %3937 = vmatprep.mubr.bf16.mxu1 %v18181_v3  ;;  %v14779_v44 = vcombine.high %v4780_v1, %v4784_v36  ;;  %v18183_v54 = vld [vmem:[%s19063_s21 + $0x4c] ss:$16 sps:$4 sm:$0xff]   ;;  %v17783_v55 = vld [vmem:[#allocation5 + $0x1a8] ss:$48 sps:$4 sm:$0xff]  }
 0x286   : > { %v3311_v22 = vpop.f32.mrb[24].mxu0  ;;  %4163 = vmatprep.mubr.bf16.mxu0 %v18181_v3  ;;  %v19302_v28 = vpack.c.bf16 %v4592_v10, %v4580_v57  ;;  %v3199_v6 = vadd.f32 %v3198_v0, %v19232_v59  ;;  %v3200_v9 = vpop.f32.mrb[25].mxu1 }
 0x287   : > { %v3313_v11 = vpop.f32.mrb[25].mxu0  ;;  %v19305_v13 = vpack.c.bf16 %v4593_v63, %v4581_v62  ;;  %v3201_v40 = vadd.f32 %v3200_v9, %v19235_v27  ;;  %v3202_v14 = vpop.f32.mrb[26].mxu1  ;;  %4237 = vmatpush1.bf16.msra.mxu1 %v17774_v48  ;;  %v14778_v63 = vcombine.low %v4780_v1, %v4784_v36  ;;  %v14787_v9 = vcombine.high %v4788_v47, %v4792_v30  ;;  %v17789_v36 = vld [vmem:[#allocation5 + $0x268] ss:$48 sps:$4 sm:$0xff]  }
 0x288   : > { %21150 = vst [vmem:[#allocation42_spill] sm:$0xff] %v19302_v28  ;;  %9401 = vmatpush1.bf16.msra.mxu0 %v14754_v56  ;;  %v3315_v18 = vpop.f32.mrb[26].mxu0  ;;  %v3203_v20 = vadd.f32 %v3202_v14, %v19232_v59  ;;  %v3312_v21 = vadd.f32 %v3311_v22, %v3199_v6  ;;  %v3204_v24 = vpop.f32.mrb[27].mxu1  ;;  %4238 = vmatprep.subr.bf16.mxu1 %v17779_v58  ;;  %v17788_v6 = vld [vmem:[#allocation5 + $0x20c] ss:$48 sps:$4 sm:$0xff]  }
 0x289   : > { %21151 = vst [vmem:[#allocation43_spill] sm:$0xff] %v19305_v13  ;;  %v3317_v25 = vpop.f32.mrb[27].mxu0  ;;  %9402 = vmatprep.subr.bf16.mxu0 %v14763_v60  ;;  %v3205_v32 = vadd.f32 %v3204_v24, %v19235_v27  ;;  %v3314_v33 = vadd.f32 %v3313_v11, %v3201_v40  ;;  %v4796_v11 = vld [vmem:[#allocation8 + $0x180] sm:$0xff] }
 0x28a   : > { %v3316_v37 = vadd.f32 %v3315_v18, %v3203_v20  ;;  %3938 = vmatmul.mubr.bf16.gmra.mrb[68].mxu1 %v18182_v38  ;;  %v4604_v42 = vmax.f32 %v3312_v21, 0.0  ;;  %v17786_v18 = vld [vmem:[#allocation5 + $0x208] ss:$48 sps:$4 sm:$0xff]  }
 0x28b   : > { %4164 = vmatmul.mubr.bf16.gmra.mrb[68].mxu0 %v18182_v38  ;;  %v3318_v15 = vadd.f32 %v3317_v25, %v3205_v32  ;;  %4239 = vmatpush1.bf16.msra.mxu1 %v17777_v5  ;;  %v4605_v49 = vmax.f32 %v3314_v33, 0.0  ;;  %v18184_v21 = vld [vmem:[%s19063_s21 + $0x48] ss:$16 sps:$4 sm:$0xff]   ;;  %v4804_v32 = vld [vmem:[#allocation8 + $0x1c0] sm:$0xff] }
 0x28c   : > { %9403 = vmatpush1.bf16.msra.mxu0 %v14762_v46  ;;  %v4616_v23 = vmax.f32 %v3316_v37, 0.0  ;;  %4240 = vmatprep.subr.bf16.mxu1 %v17782_v26  ;;  %v4800_v46 = vld [vmem:[#allocation8 + $0x1a0] sm:$0xff] }
 0x28d   : > { %9404 = vmatprep.subr.bf16.mxu0 %v14771_v31  ;;  %v4617_v48 = vmax.f32 %v3318_v15, 0.0  ;;  %v3208_v51 = vpop.f32.mrb[28].mxu1  ;;  %3947 = vmatprep.mubr.bf16.mxu1 %v18183_v54  ;;  %v17791_v31 = vld [vmem:[#allocation5 + $0x26c] ss:$48 sps:$4 sm:$0xff]   ;;  %v14795_v1 = vcombine.high %v4796_v11, %v4800_v46 }
 0x28e   : > { %v3321_v52 = vpop.f32.mrb[28].mxu0  ;;  %4173 = vmatprep.mubr.bf16.mxu0 %v18183_v54  ;;  %v19316_v56 = vpack.c.bf16 %v4616_v23, %v4604_v42  ;;  %v3209_v57 = vadd.f32 %v3208_v51, %v19232_v59  ;;  %v3210_v10 = vpop.f32.mrb[29].mxu1  ;;  %v4808_v37 = vld [vmem:[#allocation8 + $0x1e0] sm:$0xff] }
 0x28f   : > { %v3323_v58 = vpop.f32.mrb[29].mxu0  ;;  %v19319_v60 = vpack.c.bf16 %v4617_v48, %v4605_v49  ;;  %v3211_v61 = vadd.f32 %v3210_v10, %v19235_v27  ;;  %v3212_v16 = vpop.f32.mrb[30].mxu1  ;;  %4241 = vmatpush1.bf16.msra.mxu1 %v17780_v8  ;;  %v18185_v8 = vld [vmem:[%s19063_s21 + $0x6c] ss:$16 sps:$4 sm:$0xff]   ;;  %v14803_v23 = vcombine.high %v4804_v32, %v4808_v37  ;;  %v14802_v49 = vcombine.low %v4804_v32, %v4808_v37 }
 0x290   : > { %21152 = vst [vmem:[#allocation44_spill] sm:$0xff] %v19316_v56  ;;  %9405 = vmatpush1.bf16.msra.mxu0 %v14770_v39  ;;  %v3325_v62 = vpop.f32.mrb[30].mxu0  ;;  %v3213_v0 = vadd.f32 %v3212_v16, %v19232_v59  ;;  %v3322_v22 = vadd.f32 %v3321_v52, %v3209_v57  ;;  %v3214_v3 = vpop.f32.mrb[31].mxu1  ;;  %4242 = vmatprep.subr.bf16.mxu1 %v17785_v43  ;;  %v17794_v42 = vld [vmem:[#allocation5 + $0x2cc] ss:$48 sps:$4 sm:$0xff]  }
 0x291   : > { %21153 = vst [vmem:[#allocation45_spill] sm:$0xff] %v19319_v60  ;;  %v3327_v5 = vpop.f32.mrb[31].mxu0  ;;  %9406 = vmatprep.subr.bf16.mxu0 %v14779_v44  ;;  %v3215_v40 = vadd.f32 %v3214_v3, %v19235_v27  ;;  %v3324_v14 = vadd.f32 %v3323_v58, %v3211_v61  ;;  %v14786_v59 = vcombine.low %v4788_v47, %v4792_v30  ;;  %v4812_v43 = vld [vmem:[#allocation8 + $0x200] sm:$0xff]  ;;  %v17792_v44 = vld [vmem:[#allocation5 + $0x2c8] ss:$48 sps:$4 sm:$0xff]  }
 0x292   : > { %v3326_v20 = vadd.f32 %v3325_v62, %v3213_v0  ;;  %3948 = vmatmul.mubr.bf16.gmra.mrb[72].mxu1 %v18184_v21  ;;  %v4628_v25 = vmax.f32 %v3322_v22, 0.0  ;;  %v14794_v39 = vcombine.low %v4796_v11, %v4800_v46  ;;  %v4816_v47 = vld [vmem:[#allocation8 + $0x220] sm:$0xff]  ;;  %v18186_v30 = vld [vmem:[%s19063_s21 + $0x68] ss:$16 sps:$4 sm:$0xff]  }
 0x293   : > { %4174 = vmatmul.mubr.bf16.gmra.mrb[72].mxu0 %v18184_v21  ;;  %v3328_v24 = vadd.f32 %v3327_v5, %v3215_v40  ;;  %4243 = vmatpush1.bf16.msra.mxu1 %v17783_v55  ;;  %v4629_v27 = vmax.f32 %v3324_v14, 0.0  ;;  %v17797_v48 = vld [vmem:[#allocation5 + $0x32c] ss:$48 sps:$4 sm:$0xff]   ;;  %v14811_v51 = vcombine.high %v4812_v43, %v4816_v47  ;;  %v17795_v55 = vld [vmem:[#allocation5 + $0x328] ss:$48 sps:$4 sm:$0xff]   ;;  %v14810_v10 = vcombine.low %v4812_v43, %v4816_v47 }
 0x294   : > { %9407 = vmatpush1.bf16.msra.mxu0 %v14778_v63  ;;  %v4640_v26 = vmax.f32 %v3326_v20, 0.0  ;;  %4244 = vmatprep.subr.bf16.mxu1 %v17788_v6  ;;  %v4820_v52 = vld [vmem:[#allocation8 + $0x240] sm:$0xff]  ;;  %v17798_v62 = vld [vmem:[#allocation5 + $0x388] ss:$48 sps:$4 sm:$0xff]  }
 0x295   : > { %9408 = vmatprep.subr.bf16.mxu0 %v14787_v9  ;;  %v4641_v33 = vmax.f32 %v3328_v24, 0.0  ;;  %3957 = vmatprep.mubr.bf16.mxu1 %v18185_v8  ;;  %v18187_v54 = vld [vmem:[%s19063_s21 + $0x8c] ss:$16 sps:$4 sm:$0xff]   ;;  %v18188_v0 = vld [vmem:[%s19063_s21 + $0x88] ss:$16 sps:$4 sm:$0xff]  }
 0x296   : > { %4183 = vmatprep.mubr.bf16.mxu0 %v18185_v8  ;;  %v19326_v38 = vpack.c.bf16 %v4640_v26, %v4628_v25  ;;  %v4824_v57 = vld [vmem:[#allocation8 + $0x260] sm:$0xff]  ;;  %v17801_v11 = vld [vmem:[#allocation5 + $0x3e8] ss:$48 sps:$4 sm:$0xff]  }
 0x297   : > { %v19328_v15 = vpack.c.bf16 %v4641_v33, %v4629_v27  ;;  %4245 = vmatpush1.bf16.msra.mxu1 %v17786_v18  ;;  %v17800_v58 = vld [vmem:[#allocation5 + $0x38c] ss:$48 sps:$4 sm:$0xff]   ;;  %v14819_v61 = vcombine.high %v4820_v52, %v4824_v57  ;;  %v14818_v22 = vcombine.low %v4820_v52, %v4824_v57  ;;  %v17804_v21 = vld [vmem:[#allocation5 + $0x448] ss:$48 sps:$4 sm:$0xff]  }
 0x298   : > { %21154 = vst [vmem:[#allocation46_spill] sm:$0xff] %v19326_v38  ;;  %9409 = vmatpush1.bf16.msra.mxu0 %v14786_v59  ;;  %4246 = vmatprep.subr.bf16.mxu1 %v17791_v31  ;;  %v4828_v16 = vld [vmem:[#allocation8 + $0x280] sm:$0xff]  ;;  %v18190_v59 = vld [vmem:[%s19063_s21 + $0xa8] ss:$16 sps:$4 sm:$0xff]  }
 0x299   : > { %21155 = vst [vmem:[#allocation47_spill] sm:$0xff] %v19328_v15  ;;  %9410 = vmatprep.subr.bf16.mxu0 %v14795_v1  ;;  %v4832_v63 = vld [vmem:[#allocation8 + $0x2a0] sm:$0xff]  ;;  %v17807_v27 = vld [vmem:[#allocation5 + $0x4a8] ss:$48 sps:$4 sm:$0xff]  }
 0x29a   : > { %3958 = vmatmul.mubr.bf16.gmra.mrb[76].mxu1 %v18186_v30  ;;  %v17803_v3 = vld [vmem:[#allocation5 + $0x3ec] ss:$48 sps:$4 sm:$0xff]   ;;  %v14827_v5 = vcombine.high %v4828_v16, %v4832_v63  ;;  %v14826_v14 = vcombine.low %v4828_v16, %v4832_v63  ;;  %v18192_v43 = vld [vmem:[%s19063_s21 + $0xc8] ss:$16 sps:$4 sm:$0xff]  }
 0x29b   : > { %4184 = vmatmul.mubr.bf16.gmra.mrb[76].mxu0 %v18186_v30  ;;  %4247 = vmatpush1.bf16.msra.mxu1 %v17789_v36  ;;  %v4836_v6 = vld [vmem:[#allocation8 + $0x2c0] sm:$0xff]  ;;  %v17816_v16 = vld [vmem:[#allocation5 + $0x5c8] ss:$48 sps:$4 sm:$0xff]  }
 0x29c   : > { %9411 = vmatpush1.bf16.msra.mxu0 %v14794_v39  ;;  %4248 = vmatprep.subr.bf16.mxu1 %v17794_v42  ;;  %v18189_v9 = vld [vmem:[%s19063_s21 + $0xac] ss:$16 sps:$4 sm:$0xff]   ;;  %v17810_v42 = vld [vmem:[#allocation5 + $0x508] ss:$48 sps:$4 sm:$0xff]  }
 0x29d   : > { %9412 = vmatprep.subr.bf16.mxu0 %v14803_v23  ;;  %3967 = vmatprep.mubr.bf16.mxu1 %v18187_v54  ;;  %v4840_v40 = vld [vmem:[#allocation8 + $0x2e0] sm:$0xff] }
 0x29e   : > { %4193 = vmatprep.mubr.bf16.mxu0 %v18187_v54  ;;  %v17806_v18 = vld [vmem:[#allocation5 + $0x44c] ss:$48 sps:$4 sm:$0xff]   ;;  %v14835_v46 = vcombine.high %v4836_v6, %v4840_v40  ;;  %v14834_v25 = vcombine.low %v4836_v6, %v4840_v40  ;;  %v17819_v6 = vld [vmem:[#allocation5 + $0x628] ss:$48 sps:$4 sm:$0xff]  }
 0x29f   : > { %4249 = vmatpush1.bf16.msra.mxu1 %v17792_v44  ;;  %v4844_v20 = vld [vmem:[#allocation8 + $0x300] sm:$0xff] }
 0x2a0   : > { %9413 = vmatpush1.bf16.msra.mxu0 %v14802_v49  ;;  %4250 = vmatprep.subr.bf16.mxu1 %v17797_v48  ;;  %v4848_v24 = vld [vmem:[#allocation8 + $0x320] sm:$0xff] }
 0x2a1   : > { %9414 = vmatprep.subr.bf16.mxu0 %v14811_v51  ;;  %v17809_v26 = vld [vmem:[#allocation5 + $0x4ac] ss:$48 sps:$4 sm:$0xff]   ;;  %v14843_v31 = vcombine.high %v4844_v20, %v4848_v24  ;;  %v14842_v8 = vcombine.low %v4844_v20, %v4848_v24  ;;  %v17813_v51 = vld [vmem:[#allocation5 + $0x568] ss:$48 sps:$4 sm:$0xff]  }
 0x2a2   : > { %3968 = vmatmul.mubr.bf16.gmra.mrb[80].mxu1 %v18188_v0  ;;  %v4852_v1 = vld [vmem:[#allocation8 + $0x340] sm:$0xff]  ;;  %v17822_v20 = vld [vmem:[#allocation5 + $0x688] ss:$48 sps:$4 sm:$0xff]  }
 0x2a3   : > { %4194 = vmatmul.mubr.bf16.gmra.mrb[80].mxu0 %v18188_v0  ;;  %4251 = vmatpush1.bf16.msra.mxu1 %v17795_v55  ;;  %v18191_v32 = vld [vmem:[%s19063_s21 + $0xcc] ss:$16 sps:$4 sm:$0xff]  }
 0x2a4   : > { %9415 = vmatpush1.bf16.msra.mxu0 %v14810_v10  ;;  %4252 = vmatprep.subr.bf16.mxu1 %v17800_v58  ;;  %v4856_v33 = vld [vmem:[#allocation8 + $0x360] sm:$0xff] }
 0x2a5   : > { %9416 = vmatprep.subr.bf16.mxu0 %v14819_v61  ;;  %3977 = vmatprep.mubr.bf16.mxu1 %v18189_v9  ;;  %v17812_v36 = vld [vmem:[#allocation5 + $0x50c] ss:$48 sps:$4 sm:$0xff]   ;;  %v14851_v37 = vcombine.high %v4852_v1, %v4856_v33  ;;  %v14850_v44 = vcombine.low %v4852_v1, %v4856_v33  ;;  %v18194_v61 = vld [vmem:[%s19063_s21 + $0xe8] ss:$16 sps:$4 sm:$0xff]  }
 0x2a6   : > { %4203 = vmatprep.mubr.bf16.mxu0 %v18189_v9  ;;  %v4860_v39 = vld [vmem:[#allocation8 + $0x380] sm:$0xff]  ;;  %v17825_v1 = vld [vmem:[#allocation5 + $0x6e8] ss:$48 sps:$4 sm:$0xff]  }
 0x2a7   : > { %4253 = vmatpush1.bf16.msra.mxu1 %v17798_v62  ;;  %v4864_v23 = vld [vmem:[#allocation8 + $0x3a0] sm:$0xff] }
 0x2a8   : > { %9417 = vmatpush1.bf16.msra.mxu0 %v14818_v22  ;;  %4254 = vmatprep.subr.bf16.mxu1 %v17803_v3  ;;  %v17815_v47 = vld [vmem:[#allocation5 + $0x56c] ss:$48 sps:$4 sm:$0xff]   ;;  %v14859_v30 = vcombine.high %v4860_v39, %v4864_v23  ;;  %v14858_v54 = vcombine.low %v4860_v39, %v4864_v23  ;;  %v18195_v22 = vld [vmem:[%s19063_s21 + $0x4] ss:$16 sps:$4 sm:$0xff]   ;;  %v17828_v39 = vld [vmem:[#allocation5 + $0x748] ss:$48 sps:$4 sm:$0xff]  }
 0x2a9   : > { %9418 = vmatprep.subr.bf16.mxu0 %v14827_v5  ;;  %v4868_v49 = vld [vmem:[#allocation8 + $0x3c0] sm:$0xff] }
 0x2aa   : > { %3978 = vmatmul.mubr.bf16.gmra.mrb[84].mxu1 %v18190_v59  ;;  %v18193_v48 = vld [vmem:[%s19063_s21 + $0xec] ss:$16 sps:$4 sm:$0xff]  }
 0x2ab   : > { %4204 = vmatmul.mubr.bf16.gmra.mrb[84].mxu0 %v18190_v59  ;;  %4255 = vmatpush1.bf16.msra.mxu1 %v17801_v11  ;;  %v4872_v52 = vld [vmem:[#allocation8 + $0x3e0] sm:$0xff]  ;;  %v18197_v59 = vld [vmem:[%s19063_s21 + $0x24] ss:$16 sps:$4 sm:$0xff]  }
 0x2ac   : > { %9419 = vmatpush1.bf16.msra.mxu0 %v14826_v14  ;;  %4256 = vmatprep.subr.bf16.mxu1 %v17806_v18  ;;  %v17818_v55 = vld [vmem:[#allocation5 + $0x5cc] ss:$48 sps:$4 sm:$0xff]   ;;  %v14867_v10 = vcombine.high %v4868_v49, %v4872_v52  ;;  %v14866_v62 = vcombine.low %v4868_v49, %v4872_v52  ;;  %v18196_v14 = vld [vmem:[%s19063_s21] ss:$16 sps:$4 sm:$0xff]   ;;  %v19354_v52 = vsub.s32 3, %v19221_v12 }
 0x2ad   : > { %9420 = vmatprep.subr.bf16.mxu0 %v14835_v46  ;;  %3987 = vmatprep.mubr.bf16.mxu1 %v18191_v32  ;;  %v4876_v57 = vld [vmem:[#allocation8 + $0x400] sm:$0xff] }
 0x2ae   : > { %4213 = vmatprep.mubr.bf16.mxu0 %v18191_v32  ;;  %v4880_v58 = vld [vmem:[#allocation8 + $0x420] sm:$0xff]  ;;  %21157 = vst [vmem:[#allocation49_spill] sm:$0xff] %v19354_v52 }
 0x2af   : > { %4257 = vmatpush1.bf16.msra.mxu1 %v17804_v21  ;;  %v17821_v63 = vld [vmem:[#allocation5 + $0x62c] ss:$48 sps:$4 sm:$0xff]   ;;  %v14875_v0 = vcombine.high %v4876_v57, %v4880_v58  ;;  %v14874_v9 = vcombine.low %v4876_v57, %v4880_v58  ;;  %v18200_v58 = vld [vmem:[%s19063_s21 + $0x40] ss:$16 sps:$4 sm:$0xff]  }
 0x2b0   : > { %9421 = vmatpush1.bf16.msra.mxu0 %v14834_v25  ;;  %4258 = vmatprep.subr.bf16.mxu1 %v17809_v26  ;;  %v4884_v3 = vld [vmem:[#allocation8 + $0x440] sm:$0xff] }
 0x2b1   : > { %9422 = vmatprep.subr.bf16.mxu0 %v14843_v31  ;;  %v4888_v5 = vld [vmem:[#allocation8 + $0x460] sm:$0xff] }
 0x2b2   : > { %3988 = vmatmul.mubr.bf16.gmra.mrb[88].mxu1 %v18192_v43  ;;  %v17824_v11 = vld [vmem:[#allocation5 + $0x68c] ss:$48 sps:$4 sm:$0xff]   ;;  %v14883_v40 = vcombine.high %v4884_v3, %v4888_v5  ;;  %v14882_v21 = vcombine.low %v4884_v3, %v4888_v5  ;;  %v17834_v5 = vld [vmem:[#allocation5 + $0x808] ss:$48 sps:$4 sm:$0xff]  }
 0x2b3   : > { %4214 = vmatmul.mubr.bf16.gmra.mrb[88].mxu0 %v18192_v43  ;;  %4259 = vmatpush1.bf16.msra.mxu1 %v17807_v27  ;;  %v4892_v18 = vld [vmem:[#allocation8 + $0x480] sm:$0xff]  ;;  %v18199_v43 = vld [vmem:[%s19063_s21 + $0x44] ss:$16 sps:$4 sm:$0xff]  }
 0x2b4   : > { %9423 = vmatpush1.bf16.msra.mxu0 %v14842_v8  ;;  %4260 = vmatprep.subr.bf16.mxu1 %v17812_v36  ;;  %v4896_v46 = vld [vmem:[#allocation8 + $0x4a0] sm:$0xff] }
 0x2b5   : > { %9424 = vmatprep.subr.bf16.mxu0 %v14851_v37  ;;  %3997 = vmatprep.mubr.bf16.mxu1 %v18193_v48  ;;  %v17827_v24 = vld [vmem:[#allocation5 + $0x6ec] ss:$48 sps:$4 sm:$0xff]   ;;  %v14891_v25 = vcombine.high %v4892_v18, %v4896_v46  ;;  %v14890_v32 = vcombine.low %v4892_v18, %v4896_v46  ;;  %v18198_v8 = vld [vmem:[%s19063_s21 + $0x20] ss:$16 sps:$4 sm:$0xff]  }
 0x2b6   : > { %4223 = vmatprep.mubr.bf16.mxu0 %v18193_v48  ;;  %v4900_v26 = vld [vmem:[#allocation8 + $0x4c0] sm:$0xff] }
 0x2b7   : > { %4261 = vmatpush1.bf16.msra.mxu1 %v17810_v42  ;;  %v4904_v31 = vld [vmem:[#allocation8 + $0x4e0] sm:$0xff] }
 0x2b8   : > { %9425 = vmatpush1.bf16.msra.mxu0 %v14850_v44  ;;  %4262 = vmatprep.subr.bf16.mxu1 %v17815_v47  ;;  %v17830_v27 = vld [vmem:[#allocation5 + $0x74c] ss:$48 sps:$4 sm:$0xff]   ;;  %v14899_v33 = vcombine.high %v4900_v26, %v4904_v31  ;;  %v14898_v42 = vcombine.low %v4900_v26, %v4904_v31  ;;  %v19350_v47 = vsub.s32 2, %v19221_v12 }
 0x2b9   : > { %9426 = vmatprep.subr.bf16.mxu0 %v14859_v30  ;;  %v4908_v36 = vld [vmem:[#allocation8 + $0x500] sm:$0xff]  ;;  %v20928_v30 = vsub.s32 4, %v19221_v12 }
 0x2ba   : > { %3998 = vmatmul.mubr.bf16.gmra.mrb[92].mxu1 %v18194_v61  ;;  %v4912_v37 = vld [vmem:[#allocation8 + $0x520] sm:$0xff]  ;;  %21156 = vst [vmem:[#allocation48_spill] sm:$0xff] %v19350_v47 }
 0x2bb   : > { %4224 = vmatmul.mubr.bf16.gmra.mrb[92].mxu0 %v18194_v61  ;;  %4263 = vmatpush1.bf16.msra.mxu1 %v17813_v51  ;;  %v17833_v23 = vld [vmem:[#allocation5 + $0x7ac] ss:$48 sps:$4 sm:$0xff]   ;;  %v14907_v44 = vcombine.high %v4908_v36, %v4912_v37  ;;  %v17831_v51 = vld [vmem:[#allocation5 + $0x7a8] ss:$48 sps:$4 sm:$0xff]   ;;  %v18201_v61 = vld [vmem:[#allocation7] sm:$0xff] }
 0x2bc   : > { %9427 = vmatpush1.bf16.msra.mxu0 %v14858_v54  ;;  %9430 = vmatprep.mubr.bf16.mxu0 %v19247_v7  ;;  %v4916_v49 = vld [vmem:[#allocation8 + $0x540] sm:$0xff]  ;;  %v20927_v54 = vsub.s32 5, %v19221_v12 }
 0x2bd   : > { %4264 = vmatprep.subr.bf16.mxu1 %v17818_v55  ;;  %9428 = vmatprep.subr.bf16.mxu0 %v14867_v10  ;;  %v4920_v48 = vld [vmem:[#allocation8 + $0x560] sm:$0xff]  ;;  %v14906_v55 = vcombine.low %v4908_v36, %v4912_v37 }
 0x2be   : > { %4266 = vmatprep.mubr.bf16.mxu1 %v18195_v22  ;;  %v17836_v57 = vld [vmem:[#allocation5 + $0x80c] ss:$48 sps:$4 sm:$0xff]   ;;  %v14915_v10 = vcombine.high %v4916_v49, %v4920_v48  ;;  %v19368_v22 = vrot.slane %v18201_v61, %v19354_v52  ;;  %v19372_v3 = vrot.slane %v18201_v61, %v20927_v54 }
 0x2bf   : > { %4265 = vmatpush1.bf16.msra.mxu1 %v17816_v16  ;;  %v19360_v16 = vrot.slane %v18201_v61, %v19350_v47 }
 0x2c0   : > { %9429 = vmatpush1.bf16.msra.mxu0 %v14866_v62  ;;  %4347 = vmatprep.subr.bf16.mxu1 %v17821_v63  ;;  %v19364_v62 = vrot.slane %v18201_v61, %v20928_v30  ;;  %v4924_v63 = vld [vmem:[#allocation8 + $0x580] sm:$0xff] }
 0x2c1   : > { %9511 = vmatprep.subr.bf16.mxu0 %v14875_v0  ;;  %v4928_v0 = vld [vmem:[#allocation8 + $0x5a0] sm:$0xff] }
 0x2c2   : > { %4267 = vmatmul.mubr.bf16.vlgmr.msra.gmra.mrb[96].mxu1 %v18196_v14  ;;  %v18202_v14 = vld [vmem:[%s19063_s21 + $0x64] ss:$16 sps:$4 sm:$0xff]   ;;  %v14923_v18 = vcombine.high %v4924_v63, %v4928_v0  ;;  %v17866_v30 = vld [vmem:[#allocation5 + $0xbcc] ss:$48 sps:$4 sm:$0xff]  }
 0x2c3   : > { %9431 = vmatmul.mubr.bf16.vlgmr.msra.gmra.mrb[96].mxu0 %v19244_v2  ;;  %4348 = vmatpush1.bf16.msra.mxu1 %v17819_v6  ;;  %v14914_v6 = vcombine.low %v4916_v49, %v4920_v48 }
 0x2c4   : > { %9440 = vmatprep.mubr.bf16.mxu0 %v19257_v45  ;;  %9512 = vmatpush1.bf16.msra.mxu0 %v14874_v9  ;;  %v17839_v9 = vld [vmem:[#allocation5 + $0x86c] ss:$48 sps:$4 sm:$0xff]  }
 0x2c5   : > { %4349 = vmatprep.subr.bf16.mxu1 %v17824_v11  ;;  %9513 = vmatprep.subr.bf16.mxu0 %v14883_v40 }
 0x2c6   : > { %4276 = vmatprep.mubr.bf16.mxu1 %v18197_v59  ;;  %v19377_v59 = vld [vmem:[#allocation8 + $0x5c0] sm:$0xff] }
 0x2c7   : > { %4350 = vmatpush1.bf16.msra.mxu1 %v17822_v20 }
 0x2c8   : > { %9514 = vmatpush1.bf16.msra.mxu0 %v14882_v21  ;;  %4351 = vmatprep.subr.bf16.mxu1 %v17827_v24 }
 0x2c9   : > { %9515 = vmatprep.subr.bf16.mxu0 %v14891_v25  ;;  %v19379_v25 = vld [vmem:[#allocation8 + $0x5e0] sm:$0xff] }
 0x2ca   : > { %4277 = vmatmul.mubr.bf16.gmra.mrb[100].mxu1 %v18198_v8 }
 0x2cb   : > { %9441 = vmatmul.mubr.bf16.gmra.mrb[100].mxu0 %v19254_v41  ;;  %4352 = vmatpush1.bf16.msra.mxu1 %v17825_v1 }
 0x2cc   : > { %9450 = vmatprep.mubr.bf16.mxu0 %v19267_v17  ;;  %9516 = vmatpush1.bf16.msra.mxu0 %v14890_v32 }
 0x2cd   : > { %4353 = vmatprep.subr.bf16.mxu1 %v17830_v27  ;;  %9517 = vmatprep.subr.bf16.mxu0 %v14899_v33  ;;  %v17837_v27 = vld [vmem:[#allocation5 + $0x868] ss:$48 sps:$4 sm:$0xff]  }
 0x2ce   : > { %4286 = vmatprep.mubr.bf16.mxu1 %v18199_v43 }
 0x2cf   : > { %4354 = vmatpush1.bf16.msra.mxu1 %v17828_v39  ;;  %v14922_v39 = vcombine.low %v4924_v63, %v4928_v0 }
 0x2d0   : > { %9518 = vmatpush1.bf16.msra.mxu0 %v14898_v42  ;;  %4355 = vmatprep.subr.bf16.mxu1 %v17833_v23  ;;  %v17842_v42 = vld [vmem:[#allocation5 + $0x8cc] ss:$48 sps:$4 sm:$0xff]  }
 0x2d1   : > { %9519 = vmatprep.subr.bf16.mxu0 %v14907_v44  ;;  %v14931_v44 = vcombine.high %v19377_v59, %v19379_v25 }
 0x2d2   : > { %4287 = vmatmul.mubr.bf16.gmra.mrb[104].mxu1 %v18200_v58  ;;  %v19393_v58 = vld [vmem:[#allocation8 + $0x620] sm:$0xff] }
 0x2d3   : > { %9451 = vmatmul.mubr.bf16.gmra.mrb[104].mxu0 %v19264_v34  ;;  %4356 = vmatpush1.bf16.msra.mxu1 %v17831_v51 }
 0x2d4   : > { %9460 = vmatprep.mubr.bf16.mxu0 %v19277_v4  ;;  %9520 = vmatpush1.bf16.msra.mxu0 %v14906_v55 }
 0x2d5   : > { %4357 = vmatprep.subr.bf16.mxu1 %v17836_v57  ;;  %v3477_v11 = vpop.f32.mrb[32].mxu1  ;;  %9521 = vmatprep.subr.bf16.mxu0 %v14915_v10  ;;  %v18203_v57 = vld [vmem:[%s19063_s21 + $0x60] ss:$16 sps:$4 sm:$0xff]  }
 0x2d6   : > { %v3703_v40 = vpop.f32.mrb[32].mxu0  ;;  %4296 = vmatprep.mubr.bf16.mxu1 %v18202_v14  ;;  %v15868_v46 = vadd.f32 %v3477_v11, %v19360_v16  ;;  %v3479_v21 = vpop.f32.mrb[33].mxu1  ;;  %v19391_v10 = vld [vmem:[#allocation8 + $0x600] sm:$0xff] }
 0x2d7   : > { %v15900_v20 = vadd.f32 %v3703_v40, %v19364_v62  ;;  %v3705_v24 = vpop.f32.mrb[33].mxu0  ;;  %v15869_v26 = vadd.f32 %v3479_v21, %v19368_v22  ;;  %v3481_v1 = vpop.f32.mrb[34].mxu1  ;;  %4358 = vmatpush1.bf16.msra.mxu1 %v17834_v5  ;;  %v14930_v40 = vcombine.low %v19377_v59, %v19379_v25  ;;  %v17845_v14 = vld [vmem:[#allocation5 + $0x92c] ss:$48 sps:$4 sm:$0xff]  }
 0x2d8   : > { %v15901_v31 = vadd.f32 %v3705_v24, %v19372_v3  ;;  %v3707_v32 = vpop.f32.mrb[34].mxu0  ;;  %v15870_v33 = vadd.f32 %v3481_v1, %v19360_v16  ;;  %9522 = vmatpush1.bf16.msra.mxu0 %v14914_v6  ;;  %v3483_v36 = vpop.f32.mrb[35].mxu1  ;;  %4359 = vmatprep.subr.bf16.mxu1 %v17839_v9  ;;  %v4462_v49 = vmax.f32 %v15868_v46, 0.0  ;;  %v17840_v6 = vld [vmem:[#allocation5 + $0x8c8] ss:$48 sps:$4 sm:$0xff]   ;;  %v19411_v59 = vld [vmem:[#allocation8 + $0x640] sm:$0xff] }
 0x2d9   : > { %v15902_v8 = vadd.f32 %v3707_v32, %v19364_v62  ;;  %v3709_v37 = vpop.f32.mrb[35].mxu0  ;;  %v15871_v23 = vadd.f32 %v3483_v36, %v19368_v22  ;;  %9523 = vmatprep.subr.bf16.mxu0 %v14923_v18  ;;  %v4464_v48 = vmax.f32 %v15900_v20, 0.0  ;;  %v4463_v61 = vmax.f32 %v15869_v26, 0.0  ;;  %v18204_v24 = vld [vmem:[%s19063_s21 + $0x84] ss:$16 sps:$4 sm:$0xff]   ;;  %v19413_v25 = vld [vmem:[#allocation8 + $0x660] sm:$0xff] }
 0x2da   : > { %v15903_v43 = vadd.f32 %v3709_v37, %v19372_v3  ;;  %v4474_v51 = vmax.f32 %v15870_v33, 0.0  ;;  %4297 = vmatmul.mubr.bf16.gmra.mrb[108].mxu1 %v18203_v57  ;;  %v4465_v63 = vmax.f32 %v15901_v31, 0.0  ;;  %v14939_v26 = vcombine.high %v19391_v10, %v19393_v58 }
 0x2db   : > { %v4476_v55 = vmax.f32 %v15902_v8, 0.0  ;;  %9461 = vmatmul.mubr.bf16.gmra.mrb[108].mxu0 %v19274_v50  ;;  %v4475_v0 = vmax.f32 %v15871_v23, 0.0  ;;  %4360 = vmatpush1.bf16.msra.mxu1 %v17837_v27  ;;  %v14947_v57 = vcombine.high %v19411_v59, %v19413_v25 }
 0x2dc   : > { %v4477_v5 = vmax.f32 %v15903_v43, 0.0  ;;  %9470 = vmatprep.mubr.bf16.mxu0 %v19289_v35  ;;  %v19396_v9 = vpack.c.bf16 %v4474_v51, %v4462_v49  ;;  %9524 = vmatpush1.bf16.msra.mxu0 %v14922_v39  ;;  %v17843_v39 = vld [vmem:[#allocation5 + $0x928] ss:$48 sps:$4 sm:$0xff]   ;;  %v14938_v49 = vcombine.low %v19391_v10, %v19393_v58  ;;  %v19429_v10 = vld [vmem:[#allocation8 + $0x6a0] sm:$0xff] }
 0x2dd   : > { %v19398_v11 = vpack.c.bf16 %v4476_v55, %v4464_v48  ;;  %4361 = vmatprep.subr.bf16.mxu1 %v17842_v42  ;;  %v19402_v18 = vpack.c.bf16 %v4475_v0, %v4463_v61  ;;  %v3487_v20 = vpop.f32.mrb[36].mxu1  ;;  %9525 = vmatprep.subr.bf16.mxu0 %v14931_v44  ;;  %v17848_v48 = vld [vmem:[#allocation5 + $0x98c] ss:$48 sps:$4 sm:$0xff]  }
 0x2de   : > { %21158 = vst [vmem:[#allocation50_spill] sm:$0xff] %v19396_v9  ;;  %v19404_v46 = vpack.c.bf16 %v4477_v5, %v4465_v63  ;;  %v3713_v21 = vpop.f32.mrb[36].mxu0  ;;  %4306 = vmatprep.mubr.bf16.mxu1 %v18204_v24  ;;  %v15872_v31 = vadd.f32 %v3487_v20, %v19360_v16  ;;  %v3489_v32 = vpop.f32.mrb[37].mxu1  ;;  %v17846_v24 = vld [vmem:[#allocation5 + $0x988] ss:$48 sps:$4 sm:$0xff]  }
 0x2df   : > { %21159 = vst [vmem:[#allocation51_spill] sm:$0xff] %v19398_v11  ;;  %21160 = vst [vmem:[#allocation52_spill] sm:$0xff] %v19402_v18  ;;  %v15904_v1 = vadd.f32 %v3713_v21, %v19364_v62  ;;  %v3715_v27 = vpop.f32.mrb[37].mxu0  ;;  %v15873_v33 = vadd.f32 %v3489_v32, %v19368_v22  ;;  %v3491_v36 = vpop.f32.mrb[38].mxu1  ;;  %4362 = vmatpush1.bf16.msra.mxu1 %v17840_v6  ;;  %v18205_v6 = vld [vmem:[%s19063_s21 + $0x80] ss:$16 sps:$4 sm:$0xff]  }
 0x2e0   : > { %21161 = vst [vmem:[#allocation53_spill] sm:$0xff] %v19404_v46  ;;  %v15905_v8 = vadd.f32 %v3715_v27, %v19372_v3  ;;  %v3717_v37 = vpop.f32.mrb[38].mxu0  ;;  %v15874_v42 = vadd.f32 %v3491_v36, %v19360_v16  ;;  %9526 = vmatpush1.bf16.msra.mxu0 %v14930_v40  ;;  %v3493_v43 = vpop.f32.mrb[39].mxu1  ;;  %4363 = vmatprep.subr.bf16.mxu1 %v17845_v14  ;;  %v4486_v61 = vmax.f32 %v15872_v31, 0.0  ;;  %v19427_v40 = vld [vmem:[#allocation8 + $0x680] sm:$0xff] }
 0x2e1   : > { %v15906_v23 = vadd.f32 %v3717_v37, %v19364_v62  ;;  %v3719_v44 = vpop.f32.mrb[39].mxu0  ;;  %v15875_v51 = vadd.f32 %v3493_v43, %v19368_v22  ;;  %9527 = vmatprep.subr.bf16.mxu0 %v14939_v26  ;;  %v4488_v63 = vmax.f32 %v15904_v1, 0.0  ;;  %v4487_v58 = vmax.f32 %v15873_v33, 0.0  ;;  %v17851_v32 = vld [vmem:[#allocation5 + $0x9ec] ss:$48 sps:$4 sm:$0xff]  }
 0x2e2   : > { %v15907_v55 = vadd.f32 %v3719_v44, %v19372_v3  ;;  %v4498_v0 = vmax.f32 %v15874_v42, 0.0  ;;  %4307 = vmatmul.mubr.bf16.gmra.mrb[112].mxu1 %v18205_v6  ;;  %v4489_v14 = vmax.f32 %v15905_v8, 0.0  ;;  %v14946_v1 = vcombine.low %v19411_v59, %v19413_v25  ;;  %v18206_v37 = vld [vmem:[%s19063_s21 + $0xa4] ss:$16 sps:$4 sm:$0xff]   ;;  %v19447_v59 = vld [vmem:[#allocation8 + $0x6c0] sm:$0xff] }
 0x2e3   : > { %v4500_v5 = vmax.f32 %v15906_v23, 0.0  ;;  %9471 = vmatmul.mubr.bf16.gmra.mrb[112].mxu0 %v19286_v29  ;;  %v4499_v20 = vmax.f32 %v15875_v51, 0.0  ;;  %4364 = vmatpush1.bf16.msra.mxu1 %v17843_v39  ;;  %v14955_v39 = vcombine.high %v19427_v40, %v19429_v10  ;;  %v19449_v25 = vld [vmem:[#allocation8 + $0x6e0] sm:$0xff]  ;;  %v14954_v6 = vcombine.low %v19427_v40, %v19429_v10 }
 0x2e4   : > { %v4501_v21 = vmax.f32 %v15907_v55, 0.0  ;;  %9480 = vmatprep.mubr.bf16.mxu0 %v19305_v13  ;;  %v19432_v26 = vpack.c.bf16 %v4498_v0, %v4486_v61  ;;  %9528 = vmatpush1.bf16.msra.mxu0 %v14938_v49  ;;  %v19465_v40 = vld [vmem:[#allocation8 + $0x720] sm:$0xff] }
 0x2e5   : > { %v19434_v31 = vpack.c.bf16 %v4500_v5, %v4488_v63  ;;  %4365 = vmatprep.subr.bf16.mxu1 %v17848_v48  ;;  %v19438_v27 = vpack.c.bf16 %v4499_v20, %v4487_v58  ;;  %v3497_v8 = vpop.f32.mrb[40].mxu1  ;;  %9529 = vmatprep.subr.bf16.mxu0 %v14947_v57  ;;  %v17849_v57 = vld [vmem:[#allocation5 + $0x9e8] ss:$48 sps:$4 sm:$0xff]   ;;  %v17854_v58 = vld [vmem:[#allocation5 + $0xa4c] ss:$48 sps:$4 sm:$0xff]  }
 0x2e6   : > { %21162 = vst [vmem:[#allocation54_spill] sm:$0xff] %v19432_v26  ;;  %v19440_v33 = vpack.c.bf16 %v4501_v21, %v4489_v14  ;;  %v3723_v36 = vpop.f32.mrb[40].mxu0  ;;  %4316 = vmatprep.mubr.bf16.mxu1 %v18206_v37  ;;  %v15876_v42 = vadd.f32 %v3497_v8, %v19360_v16  ;;  %v3499_v43 = vpop.f32.mrb[41].mxu1  ;;  %v14963_v21 = vcombine.high %v19447_v59, %v19449_v25 }
 0x2e7   : > { %21163 = vst [vmem:[#allocation55_spill] sm:$0xff] %v19434_v31  ;;  %21164 = vst [vmem:[#allocation56_spill] sm:$0xff] %v19438_v27  ;;  %v15908_v23 = vadd.f32 %v3723_v36, %v19364_v62  ;;  %v3725_v44 = vpop.f32.mrb[41].mxu0  ;;  %v15877_v49 = vadd.f32 %v3499_v43, %v19368_v22  ;;  %v3501_v51 = vpop.f32.mrb[42].mxu1  ;;  %4366 = vmatpush1.bf16.msra.mxu1 %v17846_v24 }
 0x2e8   : > { %21165 = vst [vmem:[#allocation57_spill] sm:$0xff] %v19440_v33  ;;  %v15909_v48 = vadd.f32 %v3725_v44, %v19372_v3  ;;  %v3727_v55 = vpop.f32.mrb[42].mxu0  ;;  %v15878_v61 = vadd.f32 %v3501_v51, %v19360_v16  ;;  %9530 = vmatpush1.bf16.msra.mxu0 %v14946_v1  ;;  %v3503_v0 = vpop.f32.mrb[43].mxu1  ;;  %4367 = vmatprep.subr.bf16.mxu1 %v17851_v32  ;;  %v4510_v24 = vmax.f32 %v15876_v42, 0.0  ;;  %v18207_v1 = vld [vmem:[%s19063_s21 + $0xa0] ss:$16 sps:$4 sm:$0xff]  }
 0x2e9   : > { %v15910_v63 = vadd.f32 %v3727_v55, %v19364_v62  ;;  %v3729_v5 = vpop.f32.mrb[43].mxu0  ;;  %v15879_v14 = vadd.f32 %v3503_v0, %v19368_v22  ;;  %9531 = vmatprep.subr.bf16.mxu0 %v14955_v39  ;;  %v4512_v8 = vmax.f32 %v15908_v23, 0.0  ;;  %v19463_v32 = vld [vmem:[#allocation8 + $0x700] sm:$0xff]  ;;  %v4511_v10 = vmax.f32 %v15877_v49, 0.0  ;;  %v17852_v42 = vld [vmem:[#allocation5 + $0xa48] ss:$48 sps:$4 sm:$0xff]  }
 0x2ea   : > { %v15911_v20 = vadd.f32 %v3729_v5, %v19372_v3  ;;  %v4522_v36 = vmax.f32 %v15878_v61, 0.0  ;;  %4317 = vmatmul.mubr.bf16.gmra.mrb[116].mxu1 %v18207_v1  ;;  %v4513_v43 = vmax.f32 %v15909_v48, 0.0  ;;  %v14962_v55 = vcombine.low %v19447_v59, %v19449_v25  ;;  %v17857_v61 = vld [vmem:[#allocation5 + $0xaac] ss:$48 sps:$4 sm:$0xff]  }
 0x2eb   : > { %v4524_v37 = vmax.f32 %v15910_v63, 0.0  ;;  %9481 = vmatmul.mubr.bf16.gmra.mrb[116].mxu0 %v19302_v28  ;;  %v4523_v44 = vmax.f32 %v15879_v14, 0.0  ;;  %4368 = vmatpush1.bf16.msra.mxu1 %v17849_v57  ;;  %v18208_v57 = vld [vmem:[%s19063_s21 + $0xc4] ss:$16 sps:$4 sm:$0xff]   ;;  %v14971_v5 = vcombine.high %v19463_v32, %v19465_v40  ;;  %v19483_v59 = vld [vmem:[#allocation8 + $0x740] sm:$0xff] }
 0x2ec   : > { %v4525_v39 = vmax.f32 %v15911_v20, 0.0  ;;  %9490 = vmatprep.mubr.bf16.mxu0 %v19319_v60  ;;  %v19468_v23 = vpack.c.bf16 %v4522_v36, %v4510_v24  ;;  %9532 = vmatpush1.bf16.msra.mxu0 %v14954_v6  ;;  %v19485_v25 = vld [vmem:[#allocation8 + $0x760] sm:$0xff] }
 0x2ed   : > { %v19470_v51 = vpack.c.bf16 %v4524_v37, %v4512_v8  ;;  %4369 = vmatprep.subr.bf16.mxu1 %v17854_v58  ;;  %v19474_v63 = vpack.c.bf16 %v4523_v44, %v4511_v10  ;;  %v3507_v48 = vpop.f32.mrb[44].mxu1  ;;  %9533 = vmatprep.subr.bf16.mxu0 %v14963_v21  ;;  %v17855_v37 = vld [vmem:[#allocation5 + $0xaa8] ss:$48 sps:$4 sm:$0xff]  }
 0x2ee   : > { %21166 = vst [vmem:[#allocation58_spill] sm:$0xff] %v19468_v23  ;;  %v19476_v49 = vpack.c.bf16 %v4525_v39, %v4513_v43  ;;  %v3733_v0 = vpop.f32.mrb[44].mxu0  ;;  %4326 = vmatprep.mubr.bf16.mxu1 %v18208_v57  ;;  %v15880_v14 = vadd.f32 %v3507_v48, %v19360_v16  ;;  %v3509_v58 = vpop.f32.mrb[45].mxu1  ;;  %v14970_v39 = vcombine.low %v19463_v32, %v19465_v40  ;;  %v17860_v48 = vld [vmem:[#allocation5 + $0xb0c] ss:$48 sps:$4 sm:$0xff]  }
 0x2ef   : > { %21167 = vst [vmem:[#allocation59_spill] sm:$0xff] %v19470_v51  ;;  %21168 = vst [vmem:[#allocation60_spill] sm:$0xff] %v19474_v63  ;;  %v15912_v6 = vadd.f32 %v3733_v0, %v19364_v62  ;;  %v3735_v20 = vpop.f32.mrb[45].mxu0  ;;  %v15881_v24 = vadd.f32 %v3509_v58, %v19368_v22  ;;  %v3511_v21 = vpop.f32.mrb[46].mxu1  ;;  %4370 = vmatpush1.bf16.msra.mxu1 %v17852_v42  ;;  %v14979_v42 = vcombine.high %v19483_v59, %v19485_v25  ;;  %v19501_v32 = vld [vmem:[#allocation8 + $0x7a0] sm:$0xff] }
 0x2f0   : > { %21169 = vst [vmem:[#allocation61_spill] sm:$0xff] %v19476_v49  ;;  %v15913_v8 = vadd.f32 %v3735_v20, %v19372_v3  ;;  %v3737_v36 = vpop.f32.mrb[46].mxu0  ;;  %v15882_v1 = vadd.f32 %v3511_v21, %v19360_v16  ;;  %9534 = vmatpush1.bf16.msra.mxu0 %v14962_v55  ;;  %v3513_v43 = vpop.f32.mrb[47].mxu1  ;;  %4371 = vmatprep.subr.bf16.mxu1 %v17857_v61  ;;  %v4534_v58 = vmax.f32 %v15880_v14, 0.0  ;;  %v18209_v55 = vld [vmem:[%s19063_s21 + $0xc0] ss:$16 sps:$4 sm:$0xff]  }
 0x2f1   : > { %v15914_v10 = vadd.f32 %v3737_v36, %v19364_v62  ;;  %v3739_v44 = vpop.f32.mrb[47].mxu0  ;;  %v15883_v0 = vadd.f32 %v3513_v43, %v19368_v22  ;;  %9535 = vmatprep.subr.bf16.mxu0 %v14971_v5  ;;  %v4536_v20 = vmax.f32 %v15912_v6, 0.0  ;;  %v19499_v61 = vld [vmem:[#allocation8 + $0x780] sm:$0xff]  ;;  %v4535_v40 = vmax.f32 %v15881_v24, 0.0  ;;  %v17858_v14 = vld [vmem:[#allocation5 + $0xb08] ss:$48 sps:$4 sm:$0xff]  }
 0x2f2   : > { %v15915_v57 = vadd.f32 %v3739_v44, %v19372_v3  ;;  %v4546_v21 = vmax.f32 %v15882_v1, 0.0  ;;  %4327 = vmatmul.mubr.bf16.gmra.mrb[120].mxu1 %v18209_v55  ;;  %v4537_v43 = vmax.f32 %v15913_v8, 0.0  ;;  %v17863_v44 = vld [vmem:[#allocation5 + $0xb6c] ss:$48 sps:$4 sm:$0xff]  }
 0x2f3   : > { %v4548_v36 = vmax.f32 %v15914_v10, 0.0  ;;  %9491 = vmatmul.mubr.bf16.gmra.mrb[120].mxu0 %v19316_v56  ;;  %v4547_v54 = vmax.f32 %v15883_v0, 0.0  ;;  %4372 = vmatpush1.bf16.msra.mxu1 %v17855_v37  ;;  %v14978_v10 = vcombine.low %v19483_v59, %v19485_v25  ;;  %v18210_v37 = vld [vmem:[%s19063_s21 + $0xe4] ss:$16 sps:$4 sm:$0xff]   ;;  %v19519_v59 = vld [vmem:[#allocation8 + $0x7c0] sm:$0xff] }
 0x2f4   : > { %v4549_v5 = vmax.f32 %v15915_v57, 0.0  ;;  %9500 = vmatprep.mubr.bf16.mxu0 %v19328_v15  ;;  %v19504_v6 = vpack.c.bf16 %v4546_v21, %v4534_v58  ;;  %9536 = vmatpush1.bf16.msra.mxu0 %v14970_v39  ;;  %v14987_v57 = vcombine.high %v19499_v61, %v19501_v32 }
 0x2f5   : > { %v19506_v1 = vpack.c.bf16 %v4548_v36, %v4536_v20  ;;  %4373 = vmatprep.subr.bf16.mxu1 %v17860_v48  ;;  %v19510_v55 = vpack.c.bf16 %v4547_v54, %v4535_v40  ;;  %v3517_v8 = vpop.f32.mrb[48].mxu1  ;;  %9537 = vmatprep.subr.bf16.mxu0 %v14979_v42  ;;  %v19521_v54 = vld [vmem:[#allocation8 + $0x7e0] sm:$0xff]  ;;  %v17861_v40 = vld [vmem:[#allocation5 + $0xb68] ss:$48 sps:$4 sm:$0xff]  }
 0x2f6   : > { %21170 = vst [vmem:[#allocation62_spill] sm:$0xff] %v19504_v6  ;;  %v19512_v24 = vpack.c.bf16 %v4549_v5, %v4537_v43  ;;  %v3743_v0 = vpop.f32.mrb[48].mxu0  ;;  %4336 = vmatprep.mubr.bf16.mxu1 %v18210_v37  ;;  %v15884_v58 = vadd.f32 %v3517_v8, %v19360_v16  ;;  %v3519_v48 = vpop.f32.mrb[49].mxu1  ;;  %v14986_v37 = vcombine.low %v19499_v61, %v19501_v32  ;;  %v18211_v32 = vld [vmem:[%s19063_s21 + $0xe0] ss:$16 sps:$4 sm:$0xff]  }
 0x2f7   : > { %21171 = vst [vmem:[#allocation63_spill] sm:$0xff] %v19506_v1  ;;  %21172 = vst [vmem:[#allocation64_spill] sm:$0xff] %v19510_v55  ;;  %v15916_v39 = vadd.f32 %v3743_v0, %v19364_v62  ;;  %v3745_v20 = vpop.f32.mrb[49].mxu0  ;;  %v15885_v25 = vadd.f32 %v3519_v48, %v19368_v22  ;;  %v3521_v42 = vpop.f32.mrb[50].mxu1  ;;  %4374 = vmatpush1.bf16.msra.mxu1 %v17858_v14  ;;  %v14994_v14 = vcombine.low %v19519_v59, %v19521_v54 }
 0x2f8   : > { %21173 = vst [vmem:[#allocation65_spill] sm:$0xff] %v19512_v24  ;;  %v15917_v21 = vadd.f32 %v3745_v20, %v19372_v3  ;;  %v3747_v36 = vpop.f32.mrb[50].mxu0  ;;  %v15886_v43 = vadd.f32 %v3521_v42, %v19360_v16  ;;  %9538 = vmatpush1.bf16.msra.mxu0 %v14978_v10  ;;  %v3523_v8 = vpop.f32.mrb[51].mxu1  ;;  %4375 = vmatprep.subr.bf16.mxu1 %v17863_v44  ;;  %v19535_v10 = vld [vmem:[#allocation8 + $0x8] sm:$0xff]  ;;  %v4558_v44 = vmax.f32 %v15884_v58, 0.0 }
 0x2f9   : > { %v15918_v5 = vadd.f32 %v3747_v36, %v19364_v62  ;;  %v3749_v0 = vpop.f32.mrb[51].mxu0  ;;  %v15887_v48 = vadd.f32 %v3523_v8, %v19368_v22  ;;  %9539 = vmatprep.subr.bf16.mxu0 %v14987_v57  ;;  %v14995_v42 = vcombine.high %v19519_v59, %v19521_v54  ;;  %v19537_v36 = vld [vmem:[#allocation8 + $0x28] sm:$0xff]  ;;  %v4560_v52 = vmax.f32 %v15916_v39, 0.0  ;;  %v19541_v8 = vld [vmem:[#allocation8 + $0x800] sm:$0xff] }
 0x2fa   : > { %v15919_v20 = vadd.f32 %v3749_v0, %v19372_v3  ;;  %v4570_v47 = vmax.f32 %v15886_v43, 0.0  ;;  %4337 = vmatmul.mubr.bf16.gmra.mrb[124].mxu1 %v18211_v32  ;;  %v19543_v57 = vld [vmem:[#allocation8 + $0x820] sm:$0xff]  ;;  %v4559_v0 = vmax.f32 %v15885_v25, 0.0  ;;  %v4561_v15 = vmax.f32 %v15917_v21, 0.0  ;;  %v17864_v58 = vld [vmem:[#allocation5 + $0xbc8] ss:$48 sps:$4 sm:$0xff]  }
 0x2fb   : > { %v4572_v61 = vmax.f32 %v15918_v5, 0.0  ;;  %9501 = vmatmul.mubr.bf16.gmra.mrb[124].mxu0 %v19326_v38  ;;  %v4571_v56 = vmax.f32 %v15887_v48, 0.0  ;;  %4376 = vmatpush1.bf16.msra.mxu1 %v17861_v40  ;;  %v14749_v43 = vcombine.high %v19535_v10, %v19537_v36  ;;  %v19552_v5 = vld [vmem:[#allocation8 + $0x840] sm:$0xff]  ;;  %v19567_v32 = vld [vmem:[#allocation8 + $0x48] sm:$0xff] }
 0x2fc   : > { %v4573_v59 = vmax.f32 %v15919_v20, 0.0  ;;  %9543 = vmatprep.mubr.bf16.mxu0 %v19402_v18  ;;  %v19546_v39 = vpack.c.bf16 %v4570_v47, %v4558_v44  ;;  %9540 = vmatpush1.bf16.msra.mxu0 %v14986_v37  ;;  %v19554_v25 = vld [vmem:[#allocation8 + $0x860] sm:$0xff] }
 0x2fd   : > { %v19548_v54 = vpack.c.bf16 %v4572_v61, %v4560_v52  ;;  %4377 = vmatprep.subr.bf16.mxu1 %v17866_v30  ;;  %v19556_v21 = vpack.c.bf16 %v4571_v56, %v4559_v0  ;;  %v3527_v40 = vpop.f32.mrb[52].mxu1  ;;  %9541 = vmatprep.subr.bf16.mxu0 %v14995_v42  ;;  %v18212_v47 = vld [vmem:[%s19063_s21 + $0xc] ss:$16 sps:$4 sm:$0xff]   ;;  %v15003_v52 = vcombine.high %v19541_v8, %v19543_v57 }
 0x2fe   : > { %21174 = vst [vmem:[#allocation66_spill] sm:$0xff] %v19546_v39  ;;  %v19558_v48 = vpack.c.bf16 %v4573_v59, %v4561_v15  ;;  %v3753_v20 = vpop.f32.mrb[52].mxu0  ;;  %4379 = vmatprep.mubr.bf16.mxu1 %v18212_v47  ;;  %v15888_v30 = vadd.f32 %v3527_v40, %v19360_v16  ;;  %v3529_v44 = vpop.f32.mrb[53].mxu1  ;;  %v15002_v56 = vcombine.low %v19541_v8, %v19543_v57  ;;  %v19569_v15 = vld [vmem:[#allocation8 + $0x68] sm:$0xff] }
 0x2ff   : > { %21175 = vst [vmem:[#allocation67_spill] sm:$0xff] %v19548_v54  ;;  %21176 = vst [vmem:[#allocation68_spill] sm:$0xff] %v19556_v21  ;;  %v15920_v37 = vadd.f32 %v3753_v20, %v19364_v62  ;;  %v3755_v61 = vpop.f32.mrb[53].mxu0  ;;  %v15889_v42 = vadd.f32 %v3529_v44, %v19368_v22  ;;  %v3531_v59 = vpop.f32.mrb[54].mxu1  ;;  %4378 = vmatpush1.bf16.msra.mxu1 %v17864_v58  ;;  %v14748_v40 = vcombine.low %v19535_v10, %v19537_v36 }
 0x300   : > { %21177 = vst [vmem:[#allocation69_spill] sm:$0xff] %v19558_v48  ;;  %v15921_v0 = vadd.f32 %v3755_v61, %v19372_v3  ;;  %v3757_v47 = vpop.f32.mrb[54].mxu0  ;;  %v15011_v20 = vcombine.high %v19552_v5, %v19554_v25  ;;  %v15890_v18 = vadd.f32 %v3531_v59, %v19360_v16  ;;  %9542 = vmatpush1.bf16.msra.mxu0 %v14994_v14  ;;  %v3533_v57 = vpop.f32.mrb[55].mxu1  ;;  %v19587_v59 = vld [vmem:[#allocation8 + $0x88] sm:$0xff] }
 0x301   : > { %v15922_v8 = vadd.f32 %v3757_v47, %v19364_v62  ;;  %v3759_v38 = vpop.f32.mrb[55].mxu0  ;;  %10076 = vmatprep.subr.bf16.mxu1 %v14749_v43  ;;  %v15010_v44 = vcombine.low %v19552_v5, %v19554_v25  ;;  %v15891_v58 = vadd.f32 %v3533_v57, %v19368_v22  ;;  %9624 = vmatprep.subr.bf16.mxu0 %v15003_v52  ;;  %v19589_v14 = vld [vmem:[#allocation8 + $0xa8] sm:$0xff]  ;;  %v4582_v47 = vmax.f32 %v15888_v30, 0.0  ;;  %v19592_v25 = vld [vmem:[#allocation8 + $0x880] sm:$0xff] }
 0x302   : > { %v15923_v61 = vadd.f32 %v3759_v38, %v19372_v3  ;;  %v14756_v10 = vcombine.low %v19567_v32, %v19569_v15  ;;  %v14757_v36 = vcombine.high %v19567_v32, %v19569_v15  ;;  %v4584_v43 = vmax.f32 %v15920_v37, 0.0  ;;  %v18213_v5 = vld [vmem:[%s19063_s21 + $0x8] ss:$16 sps:$4 sm:$0xff]   ;;  %v19594_v38 = vld [vmem:[#allocation8 + $0x8a0] sm:$0xff] }
 0x303   : > { %v4594_v60 = vmax.f32 %v15890_v18, 0.0  ;;  %v4596_v28 = vmax.f32 %v15922_v8, 0.0  ;;  %4380 = vmatmul.mubr.bf16.vlgmr.msra.gmra.mrb[96].mxu1 %v18213_v5  ;;  %v4583_v52 = vmax.f32 %v15889_v42, 0.0  ;;  %v4585_v57 = vmax.f32 %v15921_v0, 0.0  ;;  %9544 = vmatmul.mubr.bf16.vlgmr.msra.gmra.mrb[96].mxu0 %v19396_v9  ;;  %v19604_v30 = vld [vmem:[#allocation8 + $0x8c0] sm:$0xff] }
 0x304   : > { %v4595_v13 = vmax.f32 %v15891_v58, 0.0  ;;  %v4597_v54 = vmax.f32 %v15923_v61, 0.0  ;;  %10077 = vmatpush1.bf16.msra.mxu1 %v14748_v40  ;;  %9553 = vmatprep.mubr.bf16.mxu0 %v19438_v27  ;;  %v14765_v18 = vcombine.high %v19587_v59, %v19589_v14  ;;  %v19606_v37 = vld [vmem:[#allocation8 + $0x8e0] sm:$0xff] }
 0x305   : > { %v19597_v32 = vpack.c.bf16 %v4594_v60, %v4582_v47  ;;  %v19599_v15 = vpack.c.bf16 %v4596_v28, %v4584_v43  ;;  %9625 = vmatpush1.bf16.msra.mxu0 %v15002_v56  ;;  %v3537_v40 = vpop.f32.mrb[56].mxu1  ;;  %10078 = vmatprep.subr.bf16.mxu1 %v14757_v36  ;;  %v15019_v28 = vcombine.high %v19592_v25, %v19594_v38  ;;  %v18214_v47 = vld [vmem:[%s19063_s21 + $0x2c] ss:$16 sps:$4 sm:$0xff]   ;;  %v19621_v43 = vld [vmem:[#allocation8 + $0xe8] sm:$0xff] }
 0x306   : > { %v19608_v42 = vpack.c.bf16 %v4595_v13, %v4583_v52  ;;  %v19610_v0 = vpack.c.bf16 %v4597_v54, %v4585_v57  ;;  %v3763_v60 = vpop.f32.mrb[56].mxu0  ;;  %9626 = vmatprep.subr.bf16.mxu0 %v15011_v20  ;;  %v15892_v56 = vadd.f32 %v3537_v40, %v19360_v16  ;;  %v3539_v58 = vpop.f32.mrb[57].mxu1  ;;  %4389 = vmatprep.mubr.bf16.mxu1 %v18214_v47  ;;  %v19619_v54 = vld [vmem:[#allocation8 + $0xc8] sm:$0xff] }
 0x307   : > { %21178 = vst [vmem:[#allocation70_spill] sm:$0xff] %v19597_v32  ;;  %21179 = vst [vmem:[#allocation71_spill] sm:$0xff] %v19599_v15  ;;  %v15924_v8 = vadd.f32 %v3763_v60, %v19364_v62  ;;  %v3765_v61 = vpop.f32.mrb[57].mxu0  ;;  %v15018_v13 = vcombine.low %v19592_v25, %v19594_v38  ;;  %v15893_v20 = vadd.f32 %v3539_v58, %v19368_v22  ;;  %v3541_v5 = vpop.f32.mrb[58].mxu1 }
 0x308   : > { %21180 = vst [vmem:[#allocation72_spill] sm:$0xff] %v19608_v42  ;;  %21181 = vst [vmem:[#allocation73_spill] sm:$0xff] %v19610_v0  ;;  %v15925_v36 = vadd.f32 %v3765_v61, %v19372_v3  ;;  %v3767_v52 = vpop.f32.mrb[58].mxu0  ;;  %10079 = vmatpush1.bf16.msra.mxu1 %v14756_v10  ;;  %v14764_v57 = vcombine.low %v19587_v59, %v19589_v14  ;;  %v15027_v40 = vcombine.high %v19604_v30, %v19606_v37  ;;  %v3543_v38 = vpop.f32.mrb[59].mxu1 }
 0x309   : > { %v15894_v60 = vadd.f32 %v3541_v5, %v19360_v16  ;;  %v15926_v25 = vadd.f32 %v3767_v52, %v19364_v62  ;;  %9627 = vmatpush1.bf16.msra.mxu0 %v15010_v44  ;;  %v3769_v47 = vpop.f32.mrb[59].mxu0  ;;  %10080 = vmatprep.subr.bf16.mxu1 %v14765_v18  ;;  %v15026_v58 = vcombine.low %v19604_v30, %v19606_v37  ;;  %v19639_v5 = vld [vmem:[#allocation8 + $0x108] sm:$0xff]  ;;  %v4606_v52 = vmax.f32 %v15892_v56, 0.0  ;;  %v19644_v37 = vld [vmem:[#allocation8 + $0x900] sm:$0xff] }
 0x30a   : > { %v15895_v10 = vadd.f32 %v3543_v38, %v19368_v22  ;;  %v15927_v61 = vadd.f32 %v3769_v47, %v19372_v3  ;;  %9628 = vmatprep.subr.bf16.mxu0 %v15019_v28  ;;  %v14772_v59 = vcombine.low %v19619_v54, %v19621_v43  ;;  %v14773_v14 = vcombine.high %v19619_v54, %v19621_v43  ;;  %v19641_v44 = vld [vmem:[#allocation8 + $0x128] sm:$0xff]  ;;  %v19646_v38 = vld [vmem:[#allocation8 + $0x920] sm:$0xff] }
 0x30b   : > { %v4608_v18 = vmax.f32 %v15924_v8, 0.0  ;;  %v4618_v27 = vmax.f32 %v15894_v60, 0.0  ;;  %v4620_v9 = vmax.f32 %v15926_v25, 0.0  ;;  %v18215_v30 = vld [vmem:[%s19063_s21 + $0x28] ss:$16 sps:$4 sm:$0xff]   ;;  %v4607_v28 = vmax.f32 %v15893_v20, 0.0  ;;  %9554 = vmatmul.mubr.bf16.gmra.mrb[100].mxu0 %v19432_v26 }
 0x30c   : > { %4390 = vmatmul.mubr.bf16.gmra.mrb[100].mxu1 %v18215_v30  ;;  %v4609_v47 = vmax.f32 %v15925_v36, 0.0  ;;  %v4619_v15 = vmax.f32 %v15895_v10, 0.0  ;;  %v4621_v0 = vmax.f32 %v15927_v61, 0.0  ;;  %9563 = vmatprep.mubr.bf16.mxu0 %v19474_v63  ;;  %v14781_v56 = vcombine.high %v19639_v5, %v19641_v44  ;;  %v19656_v8 = vld [vmem:[#allocation8 + $0x940] sm:$0xff]  ;;  %v4797_v63 = vld [vmem:[#allocation8 + $0x188] sm:$0xff] }
 0x30d   : > { %10081 = vmatpush1.bf16.msra.mxu1 %v14764_v57  ;;  %v19649_v54 = vpack.c.bf16 %v4618_v27, %v4606_v52  ;;  %v19651_v43 = vpack.c.bf16 %v4620_v9, %v4608_v18  ;;  %9629 = vmatpush1.bf16.msra.mxu0 %v15018_v13  ;;  %v19658_v20 = vld [vmem:[#allocation8 + $0x960] sm:$0xff]  ;;  %v3547_v57 = vpop.f32.mrb[60].mxu1  ;;  %v15035_v9 = vcombine.high %v19644_v37, %v19646_v38  ;;  %v4793_v18 = vld [vmem:[#allocation8 + $0x168] sm:$0xff] }
 0x30e   : > { %v19660_v36 = vpack.c.bf16 %v4619_v15, %v4607_v28  ;;  %v19662_v60 = vpack.c.bf16 %v4621_v0, %v4609_v47  ;;  %v3773_v27 = vpop.f32.mrb[60].mxu0  ;;  %9630 = vmatprep.subr.bf16.mxu0 %v15027_v40  ;;  %10082 = vmatprep.subr.bf16.mxu1 %v14773_v14  ;;  %v15896_v13 = vadd.f32 %v3547_v57, %v19360_v16  ;;  %v3549_v10 = vpop.f32.mrb[61].mxu1  ;;  %v18216_v52 = vld [vmem:[%s19063_s21 + $0x4c] ss:$16 sps:$4 sm:$0xff]   ;;  %v4789_v0 = vld [vmem:[#allocation8 + $0x148] sm:$0xff] }
 0x30f   : > { %21182 = vst [vmem:[#allocation74_spill] sm:$0xff] %v19649_v54  ;;  %21183 = vst [vmem:[#allocation75_spill] sm:$0xff] %v19651_v43  ;;  %v15928_v25 = vadd.f32 %v3773_v27, %v19364_v62  ;;  %v3775_v61 = vpop.f32.mrb[61].mxu0  ;;  %4399 = vmatprep.mubr.bf16.mxu1 %v18216_v52  ;;  %v15034_v15 = vcombine.low %v19644_v37, %v19646_v38  ;;  %v15897_v30 = vadd.f32 %v3549_v10, %v19368_v22  ;;  %v3551_v14 = vpop.f32.mrb[62].mxu1  ;;  %v4801_v26 = vld [vmem:[#allocation8 + $0x1a8] sm:$0xff]  ;;  %v5052_v43 = vld [vmem:[#allocation8 + $0x980] sm:$0xff] }
 0x310   : > { %21184 = vst [vmem:[#allocation76_spill] sm:$0xff] %v19660_v36  ;;  %21185 = vst [vmem:[#allocation77_spill] sm:$0xff] %v19662_v60  ;;  %v15929_v40 = vadd.f32 %v3775_v61, %v19372_v3  ;;  %v3777_v28 = vpop.f32.mrb[62].mxu0  ;;  %v14780_v47 = vcombine.low %v19639_v5, %v19641_v44  ;;  %v15042_v57 = vcombine.low %v19656_v8, %v19658_v20  ;;  %v3553_v37 = vpop.f32.mrb[63].mxu1 }
 0x311   : > { %10083 = vmatpush1.bf16.msra.mxu1 %v14772_v59  ;;  %v15898_v27 = vadd.f32 %v3551_v14, %v19360_v16  ;;  %v15930_v52 = vadd.f32 %v3777_v28, %v19364_v62  ;;  %9631 = vmatpush1.bf16.msra.mxu0 %v15026_v58  ;;  %v3779_v38 = vpop.f32.mrb[63].mxu0  ;;  %v15043_v10 = vcombine.high %v19656_v8, %v19658_v20  ;;  %v4630_v16 = vmax.f32 %v15896_v13, 0.0  ;;  %v18217_v28 = vld [vmem:[%s19063_s21 + $0x48] ss:$16 sps:$4 sm:$0xff]  }
 0x312   : > { %10084 = vmatprep.subr.bf16.mxu1 %v14781_v56  ;;  %v15899_v59 = vadd.f32 %v3553_v37, %v19368_v22  ;;  %v15931_v61 = vadd.f32 %v3779_v38, %v19372_v3  ;;  %9632 = vmatprep.subr.bf16.mxu0 %v15035_v9  ;;  %v14788_v5 = vcombine.low %v4789_v0, %v4793_v18  ;;  %v4632_v14 = vmax.f32 %v15928_v25, 0.0  ;;  %v5056_v56 = vld [vmem:[#allocation8 + $0x9a0] sm:$0xff]  ;;  %v4817_v38 = vld [vmem:[#allocation8 + $0x228] sm:$0xff] }
 0x313   : > { %v14789_v44 = vcombine.high %v4789_v0, %v4793_v18  ;;  %v4642_v62 = vmax.f32 %v15898_v27, 0.0  ;;  %v4644_v58 = vmax.f32 %v15930_v52, 0.0  ;;  %v4631_v60 = vmax.f32 %v15897_v30, 0.0  ;;  %9564 = vmatmul.mubr.bf16.gmra.mrb[104].mxu0 %v19468_v23  ;;  %v5060_v18 = vld [vmem:[#allocation8 + $0x9c0] sm:$0xff]  ;;  %v4809_v27 = vld [vmem:[#allocation8 + $0x1e8] sm:$0xff] }
 0x314   : > { %4400 = vmatmul.mubr.bf16.gmra.mrb[104].mxu1 %v18217_v28  ;;  %v4633_v29 = vmax.f32 %v15929_v40, 0.0  ;;  %v4643_v8 = vmax.f32 %v15899_v59, 0.0  ;;  %v4645_v22 = vmax.f32 %v15931_v61, 0.0  ;;  %9573 = vmatprep.mubr.bf16.mxu0 %v19510_v55  ;;  %v14797_v9 = vcombine.high %v4797_v63, %v4801_v26  ;;  %v18218_v30 = vld [vmem:[%s19063_s21 + $0x6c] ss:$16 sps:$4 sm:$0xff]  }
 0x315   : > { %10085 = vmatpush1.bf16.msra.mxu1 %v14780_v47  ;;  %v19685_v3 = vpack.c.bf16 %v4642_v62, %v4630_v16  ;;  %v19687_v20 = vpack.c.bf16 %v4644_v58, %v4632_v14  ;;  %9633 = vmatpush1.bf16.msra.mxu0 %v15034_v15  ;;  %v15051_v0 = vcombine.high %v5052_v43, %v5056_v56  ;;  %v5064_v40 = vld [vmem:[#allocation8 + $0x9e0] sm:$0xff]  ;;  %v4805_v47 = vld [vmem:[#allocation8 + $0x1c8] sm:$0xff] }
 0x316   : > { %v19690_v13 = vpack.c.bf16 %v4643_v8, %v4631_v60  ;;  %v19692_v25 = vpack.c.bf16 %v4645_v22, %v4633_v29  ;;  %9634 = vmatprep.subr.bf16.mxu0 %v15043_v10  ;;  %10086 = vmatprep.subr.bf16.mxu1 %v14789_v44  ;;  %v14796_v52 = vcombine.low %v4797_v63, %v4801_v26  ;;  %v4813_v29 = vld [vmem:[#allocation8 + $0x208] sm:$0xff]  ;;  %v5068_v59 = vld [vmem:[#allocation8 + $0xa00] sm:$0xff] }
 0x317   : > { %21186 = vst [vmem:[#allocation78_spill] sm:$0xff] %v19685_v3  ;;  %21187 = vst [vmem:[#allocation79_spill] sm:$0xff] %v19687_v20  ;;  %4409 = vmatprep.mubr.bf16.mxu1 %v18218_v30  ;;  %v15050_v37 = vcombine.low %v5052_v43, %v5056_v56  ;;  %v15059_v60 = vcombine.high %v5060_v18, %v5064_v40  ;;  %v14805_v15 = vcombine.high %v4805_v47, %v4809_v27  ;;  %v18219_v10 = vld [vmem:[%s19063_s21 + $0x68] ss:$16 sps:$4 sm:$0xff]   ;;  %v5072_v61 = vld [vmem:[#allocation8 + $0xa20] sm:$0xff] }
 0x318   : > { %21188 = vst [vmem:[#allocation80_spill] sm:$0xff] %v19690_v13  ;;  %21189 = vst [vmem:[#allocation81_spill] sm:$0xff] %v19692_v25  ;;  %v14804_v44 = vcombine.low %v4805_v47, %v4809_v27  ;;  %v15058_v26 = vcombine.low %v5060_v18, %v5064_v40  ;;  %v14813_v63 = vcombine.high %v4813_v29, %v4817_v38  ;;  %v5080_v16 = vld [vmem:[#allocation8 + $0xa60] sm:$0xff]  ;;  %v4821_v14 = vld [vmem:[#allocation8 + $0x248] sm:$0xff] }
 0x319   : > { %10087 = vmatpush1.bf16.msra.mxu1 %v14788_v5  ;;  %9635 = vmatpush1.bf16.msra.mxu0 %v15042_v57  ;;  %v15067_v43 = vcombine.high %v5068_v59, %v5072_v61  ;;  %v5076_v57 = vld [vmem:[#allocation8 + $0xa40] sm:$0xff]  ;;  %v4825_v62 = vld [vmem:[#allocation8 + $0x268] sm:$0xff]  ;;  %v14812_v58 = vcombine.low %v4813_v29, %v4817_v38  ;;  %v15066_v28 = vcombine.low %v5068_v59, %v5072_v61 }
 0x31a   : > { %10088 = vmatprep.subr.bf16.mxu1 %v14797_v9  ;;  %9636 = vmatprep.subr.bf16.mxu0 %v15051_v0  ;;  %v18220_v5 = vld [vmem:[%s19063_s21 + $0x8c] ss:$16 sps:$4 sm:$0xff]   ;;  %v15075_v56 = vcombine.high %v5076_v57, %v5080_v16  ;;  %v14821_v8 = vcombine.high %v4821_v14, %v4825_v62  ;;  %v4829_v22 = vld [vmem:[#allocation8 + $0x288] sm:$0xff]  ;;  %v14820_v40 = vcombine.low %v4821_v14, %v4825_v62 }
 0x31b   : > { %9574 = vmatmul.mubr.bf16.gmra.mrb[108].mxu0 %v19504_v6  ;;  %v4833_v9 = vld [vmem:[#allocation8 + $0x2a8] sm:$0xff]  ;;  %v5084_v18 = vld [vmem:[#allocation8 + $0xa80] sm:$0xff]  ;;  %v15074_v47 = vcombine.low %v5076_v57, %v5080_v16 }
 0x31c   : > { %4410 = vmatmul.mubr.bf16.gmra.mrb[108].mxu1 %v18219_v10  ;;  %9583 = vmatprep.mubr.bf16.mxu0 %v19556_v21  ;;  %v18221_v0 = vld [vmem:[%s19063_s21 + $0x88] ss:$16 sps:$4 sm:$0xff]   ;;  %v5088_v30 = vld [vmem:[#allocation8 + $0xaa0] sm:$0xff]  ;;  %v14829_v27 = vcombine.high %v4829_v22, %v4833_v9  ;;  %v14828_v10 = vcombine.low %v4829_v22, %v4833_v9 }
 0x31d   : > { %10089 = vmatpush1.bf16.msra.mxu1 %v14796_v52  ;;  %9637 = vmatpush1.bf16.msra.mxu0 %v15050_v37  ;;  %v15083_v52 = vcombine.high %v5084_v18, %v5088_v30  ;;  %v5092_v37 = vld [vmem:[#allocation8 + $0xac0] sm:$0xff]  ;;  %v4837_v29 = vld [vmem:[#allocation8 + $0x2c8] sm:$0xff]  ;;  %v15082_v59 = vcombine.low %v5084_v18, %v5088_v30 }
 0x31e   : > { %9638 = vmatprep.subr.bf16.mxu0 %v15059_v60  ;;  %10090 = vmatprep.subr.bf16.mxu1 %v14805_v15  ;;  %v18222_v60 = vld [vmem:[%s19063_s21 + $0xac] ss:$16 sps:$4 sm:$0xff]   ;;  %v4841_v38 = vld [vmem:[#allocation8 + $0x2e8] sm:$0xff] }
 0x31f   : > { %4419 = vmatprep.mubr.bf16.mxu1 %v18220_v5  ;;  %v5096_v15 = vld [vmem:[#allocation8 + $0xae0] sm:$0xff]  ;;  %v14836_v16 = vcombine.low %v4837_v29, %v4841_v38  ;;  %v4853_v22 = vld [vmem:[#allocation8 + $0x348] sm:$0xff] }
 0x320   : > { %v15091_v61 = vcombine.high %v5092_v37, %v5096_v15  ;;  %v5100_v57 = vld [vmem:[#allocation8 + $0xb00] sm:$0xff]  ;;  %v15090_v14 = vcombine.low %v5092_v37, %v5096_v15  ;;  %v4857_v9 = vld [vmem:[#allocation8 + $0x368] sm:$0xff] }
 0x321   : > { %10091 = vmatpush1.bf16.msra.mxu1 %v14804_v44  ;;  %9639 = vmatpush1.bf16.msra.mxu0 %v15058_v26  ;;  %v14837_v44 = vcombine.high %v4837_v29, %v4841_v38  ;;  %v4845_v26 = vld [vmem:[#allocation8 + $0x308] sm:$0xff]  ;;  %v5104_v5 = vld [vmem:[#allocation8 + $0xb20] sm:$0xff]  ;;  %v14852_v15 = vcombine.low %v4853_v22, %v4857_v9 }
 0x322   : > { %10092 = vmatprep.subr.bf16.mxu1 %v14813_v63  ;;  %9640 = vmatprep.subr.bf16.mxu0 %v15067_v43  ;;  %v4849_v63 = vld [vmem:[#allocation8 + $0x328] sm:$0xff]  ;;  %v15098_v18 = vcombine.low %v5100_v57, %v5104_v5  ;;  %v5116_v37 = vld [vmem:[#allocation8 + $0xb80] sm:$0xff] }
 0x323   : > { %9584 = vmatmul.mubr.bf16.gmra.mrb[112].mxu0 %v19546_v39  ;;  %v18223_v43 = vld [vmem:[%s19063_s21 + $0xa8] ss:$16 sps:$4 sm:$0xff]   ;;  %v14845_v62 = vcombine.high %v4845_v26, %v4849_v63 }
 0x324   : > { %4420 = vmatmul.mubr.bf16.gmra.mrb[112].mxu1 %v18221_v0  ;;  %9593 = vmatprep.mubr.bf16.mxu0 %v19608_v42  ;;  %v14844_v0 = vcombine.low %v4845_v26, %v4849_v63  ;;  %v4869_v63 = vld [vmem:[#allocation8 + $0x3c8] sm:$0xff] }
 0x325   : > { %10093 = vmatpush1.bf16.msra.mxu1 %v14812_v58  ;;  %9641 = vmatpush1.bf16.msra.mxu0 %v15066_v28  ;;  %v15099_v58 = vcombine.high %v5100_v57, %v5104_v5  ;;  %v5108_v28 = vld [vmem:[#allocation8 + $0xb40] sm:$0xff] }
 0x326   : > { %9642 = vmatprep.subr.bf16.mxu0 %v15075_v56  ;;  %10094 = vmatprep.subr.bf16.mxu1 %v14821_v8  ;;  %v18224_v56 = vld [vmem:[%s19063_s21 + $0xcc] ss:$16 sps:$4 sm:$0xff]  }
 0x327   : > { %4429 = vmatprep.mubr.bf16.mxu1 %v18222_v60  ;;  %v5112_v8 = vld [vmem:[#allocation8 + $0xb60] sm:$0xff] }
 0x328   : > { %v15107_v30 = vcombine.high %v5108_v28, %v5112_v8  ;;  %v5120_v60 = vld [vmem:[#allocation8 + $0xba0] sm:$0xff]  ;;  %v15106_v29 = vcombine.low %v5108_v28, %v5112_v8 }
 0x329   : > { %10095 = vmatpush1.bf16.msra.mxu1 %v14820_v40  ;;  %9643 = vmatpush1.bf16.msra.mxu0 %v15074_v47  ;;  %v14853_v40 = vcombine.high %v4853_v22, %v4857_v9  ;;  %v4861_v47 = vld [vmem:[#allocation8 + $0x388] sm:$0xff]  ;;  %v15114_v57 = vcombine.low %v5116_v37, %v5120_v60  ;;  %v5132_v28 = vld [vmem:[#allocation8 + $0xc00] sm:$0xff] }
 0x32a   : > { %10096 = vmatprep.subr.bf16.mxu1 %v14829_v27  ;;  %9644 = vmatprep.subr.bf16.mxu0 %v15083_v52  ;;  %v4865_v27 = vld [vmem:[#allocation8 + $0x3a8] sm:$0xff] }
 0x32b   : > { %9594 = vmatmul.mubr.bf16.gmra.mrb[116].mxu0 %v19597_v32  ;;  %v18225_v52 = vld [vmem:[%s19063_s21 + $0xc8] ss:$16 sps:$4 sm:$0xff]   ;;  %v14861_v38 = vcombine.high %v4861_v47, %v4865_v27  ;;  %v14860_v26 = vcombine.low %v4861_v47, %v4865_v27 }
 0x32c   : > { %4430 = vmatmul.mubr.bf16.gmra.mrb[116].mxu1 %v18223_v43  ;;  %9603 = vmatprep.mubr.bf16.mxu0 %v19660_v36  ;;  %v4873_v43 = vld [vmem:[#allocation8 + $0x3e8] sm:$0xff] }
 0x32d   : > { %10097 = vmatpush1.bf16.msra.mxu1 %v14828_v10  ;;  %9645 = vmatpush1.bf16.msra.mxu0 %v15082_v59  ;;  %v15115_v10 = vcombine.high %v5116_v37, %v5120_v60  ;;  %v18226_v59 = vld [vmem:[%s19063_s21 + $0xec] ss:$16 sps:$4 sm:$0xff]   ;;  %v14868_v8 = vcombine.low %v4869_v63, %v4873_v43  ;;  %v4889_v47 = vld [vmem:[#allocation8 + $0x468] sm:$0xff] }
 0x32e   : > { %9646 = vmatprep.subr.bf16.mxu0 %v15091_v61  ;;  %10098 = vmatprep.subr.bf16.mxu1 %v14837_v44  ;;  %v5124_v61 = vld [vmem:[#allocation8 + $0xbc0] sm:$0xff] }
 0x32f   : > { %4439 = vmatprep.mubr.bf16.mxu1 %v18224_v56  ;;  %v5128_v44 = vld [vmem:[#allocation8 + $0xbe0] sm:$0xff] }
 0x330   : > { %v15123_v5 = vcombine.high %v5124_v61, %v5128_v44  ;;  %v5136_v56 = vld [vmem:[#allocation8 + $0xc20] sm:$0xff]  ;;  %v15122_v22 = vcombine.low %v5124_v61, %v5128_v44 }
 0x331   : > { %10099 = vmatpush1.bf16.msra.mxu1 %v14836_v16  ;;  %9647 = vmatpush1.bf16.msra.mxu0 %v15090_v14  ;;  %v4877_v16 = vld [vmem:[#allocation8 + $0x408] sm:$0xff]  ;;  %v15130_v27 = vcombine.low %v5132_v28, %v5136_v56 }
 0x332   : > { %10100 = vmatprep.subr.bf16.mxu1 %v14845_v62  ;;  %9648 = vmatprep.subr.bf16.mxu0 %v15099_v58  ;;  %v4881_v14 = vld [vmem:[#allocation8 + $0x428] sm:$0xff]  ;;  %v14869_v58 = vcombine.high %v4869_v63, %v4873_v43  ;;  %v5156_v63 = vld [vmem:[#allocation8 + $0xcc0] sm:$0xff] }
 0x333   : > { %9604 = vmatmul.mubr.bf16.gmra.mrb[120].mxu0 %v19649_v54  ;;  %v18227_v62 = vld [vmem:[%s19063_s21 + $0xe8] ss:$16 sps:$4 sm:$0xff]   ;;  %v14877_v9 = vcombine.high %v4877_v16, %v4881_v14  ;;  %v5160_v43 = vld [vmem:[#allocation8 + $0xce0] sm:$0xff]  ;;  %s18546_s21 = sshll.u32 %s18651_s0, 4  ;;  %s18547_s21 = int_to_ptr.vmem [resolvable:$false] %s18546_s21 }
 0x334   : > { %4440 = vmatmul.mubr.bf16.gmra.mrb[120].mxu1 %v18225_v52  ;;  %9613 = vmatprep.mubr.bf16.mxu0 %v19690_v13  ;;  %v14876_v52 = vcombine.low %v4877_v16, %v4881_v14  ;;  %s18548_s1 = scalar_lea.vmem %s18547_s21, 4096  ;;  %p18549_p7 = scmp.lt.s32.totalorder %s20862_s15, %s18547_s21 }
 0x335   : > { %10101 = vmatpush1.bf16.msra.mxu1 %v14844_v0  ;;  %9649 = vmatpush1.bf16.msra.mxu0 %v15098_v18  ;;  %v15131_v0 = vcombine.high %v5132_v28, %v5136_v56  ;;  %v5140_v18 = vld [vmem:[#allocation8 + $0xc40] sm:$0xff]  ;;  %p18550_p9 = scmp.lt.s32.totalorder %s18548_s1, %s18542_s25 }
 0x336   : > { %9650 = vmatprep.subr.bf16.mxu0 %v15107_v30  ;;  %10102 = vmatprep.subr.bf16.mxu1 %v14853_v40  ;;  %v5144_v30 = vld [vmem:[#allocation8 + $0xc60] sm:$0xff]  ;;  %v4885_v40 = vld [vmem:[#allocation8 + $0x448] sm:$0xff] }
 0x337   : > { %4449 = vmatprep.mubr.bf16.mxu1 %v18226_v59  ;;  %v15139_v37 = vcombine.high %v5140_v18, %v5144_v30  ;;  %v14885_v60 = vcombine.high %v4885_v40, %v4889_v47  ;;  %v15138_v59 = vcombine.low %v5140_v18, %v5144_v30  ;;  %v14884_v61 = vcombine.low %v4885_v40, %v4889_v47  ;;  %v5164_v28 = vld [vmem:[#allocation8 + $0xd00] sm:$0xff]  ;;  %p18551_p4 = por %p18550_p9, %p18549_p7 }
 0x338   : > { %v5168_v56 = vld [vmem:[#allocation8 + $0xd20] sm:$0xff]  ;;  %v20963_v40 = vsub.s32 6, %v19221_v12 }
 0x339   : > { %10103 = vmatpush1.bf16.msra.mxu1 %v14852_v15  ;;  %9651 = vmatpush1.bf16.msra.mxu0 %v15106_v29  ;;  %v5148_v15 = vld [vmem:[#allocation8 + $0xc80] sm:$0xff]  ;;  %v15163_v18 = vcombine.high %v5164_v28, %v5168_v56  ;;  %p18552_p3 = pnand %p18551_p4, %p18545_p8 }
 0x33a   : > { %10104 = vmatprep.subr.bf16.mxu1 %v14861_v38  ;;  %9652 = vmatprep.subr.bf16.mxu0 %v15115_v10  ;;  %v5152_v29 = vld [vmem:[#allocation8 + $0xca0] sm:$0xff]  ;;  %v4893_v38 = vld [vmem:[#allocation8 + $0x488] sm:$0xff] }
 0x33b   : > { %9614 = vmatmul.mubr.bf16.gmra.mrb[124].mxu0 %v19685_v3  ;;  %v4897_v10 = vld [vmem:[#allocation8 + $0x4a8] sm:$0xff]  ;;  %v15147_v44 = vcombine.high %v5148_v15, %v5152_v29  ;;  %v15146_v16 = vcombine.low %v5148_v15, %v5152_v29  ;;  %v5172_v47 = vld [vmem:[#allocation8 + $0xd40] sm:$0xff]  ;;  %v15162_v29 = vcombine.low %v5164_v28, %v5168_v56 }
 0x33c   : > { %4450 = vmatmul.mubr.bf16.gmra.mrb[124].mxu1 %v18227_v62  ;;  %9656 = vmatprep.mubr.bf16.mxu0 %v19404_v46  ;;  %v14892_v14 = vcombine.low %v4893_v38, %v4897_v10  ;;  %v15155_v62 = vcombine.high %v5156_v63, %v5160_v43  ;;  %v4921_v15 = vld [vmem:[#allocation8 + $0x568] sm:$0xff] }
 0x33d   : > { %10105 = vmatpush1.bf16.msra.mxu1 %v14860_v26  ;;  %9653 = vmatpush1.bf16.msra.mxu0 %v15114_v57  ;;  %v14893_v26 = vcombine.high %v4893_v38, %v4897_v10  ;;  %v4901_v57 = vld [vmem:[#allocation8 + $0x4c8] sm:$0xff] }
 0x33e   : > { %10108 = vmatprep.mubr.bf16.mxu1 %v19247_v7  ;;  %9654 = vmatprep.subr.bf16.mxu0 %v15123_v5  ;;  %v4905_v5 = vld [vmem:[#allocation8 + $0x4e8] sm:$0xff]  ;;  %v19878_v7 = vld [vmem:[#allocation8 + $0xf00] sm:$0xff] }
 0x33f   : > { %10106 = vmatprep.subr.bf16.mxu1 %v14869_v58  ;;  %v14901_v58 = vcombine.high %v4901_v57, %v4905_v5 }
 0x341   : > { %10107 = vmatpush1.bf16.msra.mxu1 %v14868_v8  ;;  %9655 = vmatpush1.bf16.msra.mxu0 %v15122_v22  ;;  %v4909_v8 = vld [vmem:[#allocation8 + $0x508] sm:$0xff] }
 0x342   : > { %10189 = vmatprep.subr.bf16.mxu1 %v14877_v9  ;;  %9737 = vmatprep.subr.bf16.mxu0 %v15131_v0  ;;  %v4913_v22 = vld [vmem:[#allocation8 + $0x528] sm:$0xff]  ;;  %v15154_v9 = vcombine.low %v5156_v63, %v5160_v43  ;;  %v14900_v0 = vcombine.low %v4901_v57, %v4905_v5  ;;  %v19733_v63 = vld [vmem:[#allocation8 + $0xd80] sm:$0xff] }
 0x343   : > { %v14909_v30 = vcombine.high %v4909_v8, %v4913_v22  ;;  %v14908_v38 = vcombine.low %v4909_v8, %v4913_v22  ;;  %v19735_v43 = vld [vmem:[#allocation8 + $0xda0] sm:$0xff] }
 0x344   : > { %10109 = vmatmul.mubr.bf16.vlgmr.msra.gmra.mrb[128].mxu1 %v19244_v2  ;;  %9657 = vmatmul.mubr.bf16.vlgmr.msra.gmra.mrb[96].mxu0 %v19398_v11  ;;  %v15179_v8 = vcombine.high %v19733_v63, %v19735_v43  ;;  %v19749_v22 = vld [vmem:[#allocation8 + $0xdc0] sm:$0xff] }
 0x345   : > { %10118 = vmatprep.mubr.bf16.mxu1 %v19257_v45  ;;  %9666 = vmatprep.mubr.bf16.mxu0 %v19440_v33 }
 0x346   : > { %9738 = vmatpush1.bf16.msra.mxu0 %v15130_v27  ;;  %10190 = vmatpush1.bf16.msra.mxu1 %v14876_v52  ;;  %v5176_v27 = vld [vmem:[#allocation8 + $0xd60] sm:$0xff]  ;;  %v961_v52 = vld [vmem:[#allocation7 + $0x8] sm:$0xf] }
 0x347   : > { %9739 = vmatprep.subr.bf16.mxu0 %v15139_v37  ;;  %10191 = vmatprep.subr.bf16.mxu1 %v14885_v60  ;;  %v20962_v37 = vsub.s32 7, %v19221_v12  ;;  %v4917_v60 = vld [vmem:[#allocation8 + $0x548] sm:$0xff]  ;;  %v15171_v10 = vcombine.high %v5172_v47, %v5176_v27  ;;  %v19744_v5 = vrot.slane %v961_v52, %v19228_v53 }
 0x348   : > { %v14916_v56 = vcombine.low %v4917_v60, %v4921_v15 }
 0x34a   : > { %9740 = vmatpush1.bf16.msra.mxu0 %v15138_v59  ;;  %10192 = vmatpush1.bf16.msra.mxu1 %v14884_v61  ;;  %v18228_v59 = vld [vmem:[#allocation7] sm:$0xff] }
 0x34b   : > { %9741 = vmatprep.subr.bf16.mxu0 %v15147_v44  ;;  %10193 = vmatprep.subr.bf16.mxu1 %v14893_v26  ;;  %v19728_v61 = vrot.slane %v18228_v59, %v20963_v40  ;;  %v19731_v44 = vrot.slane %v961_v52, %v19225_v19  ;;  %v14917_v26 = vcombine.high %v4917_v60, %v4921_v15 }
 0x34c   : > { %10119 = vmatmul.mubr.bf16.gmra.mrb[132].mxu1 %v19254_v41  ;;  %9667 = vmatmul.mubr.bf16.gmra.mrb[100].mxu0 %v19434_v31  ;;  %v19741_v57 = vrot.slane %v18228_v59, %v20962_v37  ;;  %v15178_v59 = vcombine.low %v19733_v63, %v19735_v43 }
 0x34d   : > { %10128 = vmatprep.mubr.bf16.mxu1 %v19267_v17  ;;  %9676 = vmatprep.mubr.bf16.mxu0 %v19476_v49  ;;  %v19832_v17 = vld [vmem:[#allocation8 + $0x688] sm:$0xff] }
 0x34e   : > { %9742 = vmatpush1.bf16.msra.mxu0 %v15146_v16  ;;  %10194 = vmatpush1.bf16.msra.mxu1 %v14892_v14  ;;  %v4925_v16 = vld [vmem:[#allocation8 + $0x588] sm:$0xff] }
 0x34f   : > { %9743 = vmatprep.subr.bf16.mxu0 %v15155_v62  ;;  %10195 = vmatprep.subr.bf16.mxu1 %v14901_v58  ;;  %v4929_v14 = vld [vmem:[#allocation8 + $0x5a8] sm:$0xff]  ;;  %v15170_v62 = vcombine.low %v5172_v47, %v5176_v27 }
 0x350   : > { %v14925_v47 = vcombine.high %v4925_v16, %v4929_v14  ;;  %v19755_v27 = vld [vmem:[#allocation8 + $0x5c8] sm:$0xff] }
 0x352   : > { %9744 = vmatpush1.bf16.msra.mxu0 %v15154_v9  ;;  %10196 = vmatpush1.bf16.msra.mxu1 %v14900_v0  ;;  %v19751_v9 = vld [vmem:[#allocation8 + $0xde0] sm:$0xff] }
 0x353   : > { %9745 = vmatprep.subr.bf16.mxu0 %v15163_v18  ;;  %10197 = vmatprep.subr.bf16.mxu1 %v14909_v30  ;;  %v15186_v12 = vcombine.low %v19749_v22, %v19751_v9 }
 0x354   : > { %10129 = vmatmul.mubr.bf16.gmra.mrb[136].mxu1 %v19264_v34  ;;  %9677 = vmatmul.mubr.bf16.gmra.mrb[104].mxu0 %v19470_v51  ;;  %v19828_v34 = vld [vmem:[#allocation8 + $0xea0] sm:$0xff]  ;;  %v19936_v51 = vld [vmem:[#allocation8 + $0x788] sm:$0xff] }
 0x355   : > { %10138 = vmatprep.mubr.bf16.mxu1 %v19277_v4  ;;  %9686 = vmatprep.mubr.bf16.mxu0 %v19512_v24  ;;  %v3929_v58 = vpop.f32.mrb[64].mxu1  ;;  %v19826_v4 = vld [vmem:[#allocation8 + $0xe80] sm:$0xff] }
 0x356   : > { %9746 = vmatpush1.bf16.msra.mxu0 %v15162_v29  ;;  %10198 = vmatpush1.bf16.msra.mxu1 %v14908_v38  ;;  %v4155_v28 = vpop.f32.mrb[64].mxu0  ;;  %v15932_v0 = vadd.f32 %v3929_v58, %v19728_v61  ;;  %v3931_v30 = vpop.f32.mrb[65].mxu1  ;;  %v19757_v29 = vld [vmem:[#allocation8 + $0x5e8] sm:$0xff]  ;;  %v14924_v58 = vcombine.low %v4925_v16, %v4929_v14  ;;  %v19932_v24 = vld [vmem:[#allocation8 + $0xfa0] sm:$0xff] }
 0x357   : > { %9747 = vmatprep.subr.bf16.mxu0 %v15171_v10  ;;  %v15964_v18 = vadd.f32 %v4155_v28, %v19731_v44  ;;  %v4157_v52 = vpop.f32.mrb[65].mxu0  ;;  %10199 = vmatprep.subr.bf16.mxu1 %v14917_v26  ;;  %v15933_v60 = vadd.f32 %v3931_v30, %v19741_v57  ;;  %v3933_v38 = vpop.f32.mrb[66].mxu1  ;;  %v15187_v30 = vcombine.high %v19749_v22, %v19751_v9 }
 0x358   : > { %v15965_v15 = vadd.f32 %v4157_v52, %v19744_v5  ;;  %v4159_v10 = vpop.f32.mrb[66].mxu0  ;;  %v15934_v28 = vadd.f32 %v3933_v38, %v19728_v61  ;;  %v3935_v26 = vpop.f32.mrb[67].mxu1  ;;  %v14933_v63 = vcombine.high %v19755_v27, %v19757_v29  ;;  %v4466_v43 = vmax.f32 %v15932_v0, 0.0  ;;  %v19774_v38 = vld [vmem:[#allocation8 + $0xe00] sm:$0xff] }
 0x359   : > { %v15966_v37 = vadd.f32 %v4159_v10, %v19731_v44  ;;  %v4161_v40 = vpop.f32.mrb[67].mxu0  ;;  %v15935_v52 = vadd.f32 %v3935_v26, %v19741_v57  ;;  %v4468_v16 = vmax.f32 %v15964_v18, 0.0  ;;  %v19776_v10 = vld [vmem:[#allocation8 + $0xe20] sm:$0xff]  ;;  %v14932_v18 = vcombine.low %v19755_v27, %v19757_v29 }
 0x35a   : > { %9748 = vmatpush1.bf16.msra.mxu0 %v15170_v62  ;;  %10200 = vmatpush1.bf16.msra.mxu1 %v14916_v56  ;;  %v15967_v53 = vadd.f32 %v4161_v40, %v19744_v5  ;;  %v4478_v14 = vmax.f32 %v15934_v28, 0.0  ;;  %v4467_v56 = vmax.f32 %v15933_v60, 0.0  ;;  %v4469_v22 = vmax.f32 %v15965_v15, 0.0  ;;  %v19780_v40 = vld [vmem:[#allocation8 + $0x608] sm:$0xff] }
 0x35b   : > { %9749 = vmatprep.subr.bf16.mxu0 %v15179_v8  ;;  %v4480_v62 = vmax.f32 %v15966_v37, 0.0  ;;  %10201 = vmatprep.subr.bf16.mxu1 %v14925_v47  ;;  %v4479_v9 = vmax.f32 %v15935_v52, 0.0  ;;  %v19782_v8 = vld [vmem:[#allocation8 + $0x628] sm:$0xff]  ;;  %v15195_v28 = vcombine.high %v19774_v38, %v19776_v10  ;;  %v19797_v52 = vld [vmem:[#allocation8 + $0xe40] sm:$0xff] }
 0x35c   : > { %10139 = vmatmul.mubr.bf16.gmra.mrb[140].mxu1 %v19274_v50  ;;  %v4481_v26 = vmax.f32 %v15967_v53, 0.0  ;;  %9687 = vmatmul.mubr.bf16.gmra.mrb[108].mxu0 %v19506_v1  ;;  %v19784_v37 = vpack.c.bf16 %v4478_v14, %v4466_v43  ;;  %v19799_v43 = vld [vmem:[#allocation8 + $0xe60] sm:$0xff]  ;;  %v19805_v14 = vld [vmem:[#allocation8 + $0x648] sm:$0xff] }
 0x35d   : > { %10148 = vmatprep.mubr.bf16.mxu1 %v19289_v35  ;;  %v19786_v0 = vpack.c.bf16 %v4480_v62, %v4468_v16  ;;  %9696 = vmatprep.mubr.bf16.mxu0 %v19558_v48  ;;  %v19791_v47 = vpack.c.bf16 %v4479_v9, %v4467_v56  ;;  %v3939_v60 = vpop.f32.mrb[68].mxu1  ;;  %v19930_v1 = vld [vmem:[#allocation8 + $0xf80] sm:$0xff] }
 0x35e   : > { %21190 = vst [vmem:[#allocation82_spill] sm:$0xff] %v19784_v37  ;;  %9750 = vmatpush1.bf16.msra.mxu0 %v15178_v59  ;;  %v19793_v53 = vpack.c.bf16 %v4481_v26, %v4469_v22  ;;  %10202 = vmatpush1.bf16.msra.mxu1 %v14924_v58  ;;  %v4165_v15 = vpop.f32.mrb[68].mxu0  ;;  %v15936_v59 = vadd.f32 %v3939_v60, %v19728_v61  ;;  %v3941_v27 = vpop.f32.mrb[69].mxu1 }
 0x35f   : > { %21191 = vst [vmem:[#allocation83_spill] sm:$0xff] %v19786_v0  ;;  %21192 = vst [vmem:[#allocation84_spill] sm:$0xff] %v19791_v47  ;;  %9751 = vmatprep.subr.bf16.mxu0 %v15187_v30  ;;  %v15968_v16 = vadd.f32 %v4165_v15, %v19731_v44  ;;  %v4167_v29 = vpop.f32.mrb[69].mxu0  ;;  %10203 = vmatprep.subr.bf16.mxu1 %v14933_v63  ;;  %v14941_v58 = vcombine.high %v19780_v40, %v19782_v8  ;;  %v19807_v30 = vld [vmem:[#allocation8 + $0x668] sm:$0xff]  ;;  %v3943_v22 = vpop.f32.mrb[70].mxu1 }
 0x360   : > { %21193 = vst [vmem:[#allocation85_spill] sm:$0xff] %v19793_v53  ;;  %v15937_v62 = vadd.f32 %v3941_v27, %v19741_v57  ;;  %v15969_v56 = vadd.f32 %v4167_v29, %v19744_v5  ;;  %v4169_v9 = vpop.f32.mrb[70].mxu0  ;;  %v15194_v26 = vcombine.low %v19774_v38, %v19776_v10  ;;  %v14940_v60 = vcombine.low %v19780_v40, %v19782_v8  ;;  %v3945_v19 = vpop.f32.mrb[71].mxu1 }
 0x361   : > { %v15938_v63 = vadd.f32 %v3943_v22, %v19728_v61  ;;  %v15970_v15 = vadd.f32 %v4169_v9, %v19731_v44  ;;  %v4171_v35 = vpop.f32.mrb[71].mxu0  ;;  %v15202_v27 = vcombine.low %v19797_v52, %v19799_v43  ;;  %v15203_v29 = vcombine.high %v19797_v52, %v19799_v43  ;;  %v21194_v9 = vld [vmem:[#allocation40_spill] sm:$0xff] }
 0x362   : > { %9752 = vmatpush1.bf16.msra.mxu0 %v15186_v12  ;;  %10204 = vmatpush1.bf16.msra.mxu1 %v14932_v18  ;;  %v15939_v50 = vadd.f32 %v3945_v19, %v19741_v57  ;;  %v15971_v38 = vadd.f32 %v4171_v35, %v19744_v5  ;;  %v14949_v10 = vcombine.high %v19805_v14, %v19807_v30  ;;  %v4490_v40 = vmax.f32 %v15936_v59, 0.0  ;;  %v21195_v35 = vld [vmem:[#allocation67_spill] sm:$0xff]  ;;  %v19834_v59 = vld [vmem:[#allocation8 + $0x6a8] sm:$0xff] }
 0x363   : > { %9753 = vmatprep.subr.bf16.mxu0 %v15195_v28  ;;  %v4492_v8 = vmax.f32 %v15968_v16, 0.0  ;;  %v4502_v12 = vmax.f32 %v15938_v63, 0.0  ;;  %v4504_v22 = vmax.f32 %v15970_v15, 0.0  ;;  %10205 = vmatprep.subr.bf16.mxu1 %v14941_v58  ;;  %v4491_v18 = vmax.f32 %v15937_v62, 0.0  ;;  %v21196_v28 = vld [vmem:[#allocation43_spill] sm:$0xff]  ;;  %v21199_v58 = vld [vmem:[#allocation73_spill] sm:$0xff] }
 0x364   : > { %10149 = vmatmul.mubr.bf16.gmra.mrb[144].mxu1 %v21194_v9  ;;  %v4493_v52 = vmax.f32 %v15969_v56, 0.0  ;;  %v4503_v19 = vmax.f32 %v15939_v50, 0.0  ;;  %v4505_v43 = vmax.f32 %v15971_v38, 0.0  ;;  %9697 = vmatmul.mubr.bf16.gmra.mrb[112].mxu0 %v21195_v35  ;;  %v14948_v62 = vcombine.low %v19805_v14, %v19807_v30  ;;  %v19884_v35 = vld [vmem:[#allocation8 + $0x708] sm:$0xff] }
 0x365   : > { %10158 = vmatprep.mubr.bf16.mxu1 %v21196_v28  ;;  %v19836_v16 = vpack.c.bf16 %v4502_v12, %v4490_v40  ;;  %v19838_v63 = vpack.c.bf16 %v4504_v22, %v4492_v8  ;;  %9706 = vmatprep.mubr.bf16.mxu0 %v21199_v58  ;;  %v3949_v15 = vpop.f32.mrb[72].mxu1  ;;  %v15211_v40 = vcombine.high %v19826_v4, %v19828_v34  ;;  %v19849_v12 = vld [vmem:[#allocation8 + $0xec0] sm:$0xff] }
 0x366   : > { %9754 = vmatpush1.bf16.msra.mxu0 %v15194_v26  ;;  %v19843_v50 = vpack.c.bf16 %v4503_v19, %v4491_v18  ;;  %v19845_v56 = vpack.c.bf16 %v4505_v43, %v4493_v52  ;;  %10206 = vmatpush1.bf16.msra.mxu1 %v14940_v60  ;;  %v4175_v38 = vpop.f32.mrb[72].mxu0  ;;  %v19851_v8 = vld [vmem:[#allocation8 + $0xee0] sm:$0xff]  ;;  %v15940_v26 = vadd.f32 %v3949_v15, %v19728_v61  ;;  %v3951_v14 = vpop.f32.mrb[73].mxu1  ;;  %v19857_v18 = vld [vmem:[#allocation8 + $0x6c8] sm:$0xff] }
 0x367   : > { %21197 = vst [vmem:[#allocation86_spill] sm:$0xff] %v19836_v16  ;;  %21198 = vst [vmem:[#allocation87_spill] sm:$0xff] %v19838_v63  ;;  %9755 = vmatprep.subr.bf16.mxu0 %v15203_v29  ;;  %v15972_v22 = vadd.f32 %v4175_v38, %v19731_v44  ;;  %v4177_v30 = vpop.f32.mrb[73].mxu0  ;;  %10207 = vmatprep.subr.bf16.mxu1 %v14949_v10  ;;  %v14957_v60 = vcombine.high %v19832_v17, %v19834_v59  ;;  %v19859_v29 = vld [vmem:[#allocation8 + $0x6e8] sm:$0xff]  ;;  %v3953_v43 = vpop.f32.mrb[74].mxu1  ;;  %v19880_v58 = vld [vmem:[#allocation8 + $0xf20] sm:$0xff] }
 0x368   : > { %21200 = vst [vmem:[#allocation88_spill] sm:$0xff] %v19843_v50  ;;  %21201 = vst [vmem:[#allocation89_spill] sm:$0xff] %v19845_v56  ;;  %v15941_v52 = vadd.f32 %v3951_v14, %v19741_v57  ;;  %v15973_v19 = vadd.f32 %v4177_v30, %v19744_v5  ;;  %v4179_v28 = vpop.f32.mrb[74].mxu0  ;;  %v15210_v15 = vcombine.low %v19826_v4, %v19828_v34  ;;  %v3955_v41 = vpop.f32.mrb[75].mxu1  ;;  %v4514_v4 = vmax.f32 %v15940_v26, 0.0  ;;  %v19886_v26 = vld [vmem:[#allocation8 + $0x728] sm:$0xff] }
 0x369   : > { %v14956_v38 = vcombine.low %v19832_v17, %v19834_v59  ;;  %v15942_v10 = vadd.f32 %v3953_v43, %v19728_v61  ;;  %v15974_v9 = vadd.f32 %v4179_v28, %v19731_v44  ;;  %v4181_v45 = vpop.f32.mrb[75].mxu0  ;;  %v15218_v14 = vcombine.low %v19849_v12, %v19851_v8  ;;  %v21202_v43 = vld [vmem:[#allocation42_spill] sm:$0xff] }
 0x36a   : > { %9756 = vmatpush1.bf16.msra.mxu0 %v15202_v27  ;;  %v15219_v30 = vcombine.high %v19849_v12, %v19851_v8  ;;  %10208 = vmatpush1.bf16.msra.mxu1 %v14948_v62  ;;  %v15943_v2 = vadd.f32 %v3955_v41, %v19741_v57  ;;  %v15975_v34 = vadd.f32 %v4181_v45, %v19744_v5  ;;  %v4516_v28 = vmax.f32 %v15972_v22, 0.0  ;;  %v21203_v45 = vld [vmem:[#allocation71_spill] sm:$0xff] }
 0x36b   : > { %9757 = vmatprep.subr.bf16.mxu0 %v15211_v40  ;;  %v14965_v17 = vcombine.high %v19857_v18, %v19859_v29  ;;  %v4526_v27 = vmax.f32 %v15942_v10, 0.0  ;;  %v4528_v59 = vmax.f32 %v15974_v9, 0.0  ;;  %10209 = vmatprep.subr.bf16.mxu1 %v14957_v60  ;;  %v4515_v62 = vmax.f32 %v15941_v52, 0.0  ;;  %v21204_v40 = vld [vmem:[#allocation45_spill] sm:$0xff] }
 0x36c   : > { %10159 = vmatmul.mubr.bf16.gmra.mrb[148].mxu1 %v21202_v43  ;;  %v4517_v12 = vmax.f32 %v15973_v19, 0.0  ;;  %v4527_v41 = vmax.f32 %v15943_v2, 0.0  ;;  %v4529_v8 = vmax.f32 %v15975_v34, 0.0  ;;  %9707 = vmatmul.mubr.bf16.gmra.mrb[116].mxu0 %v21203_v45  ;;  %v21206_v60 = vld [vmem:[#allocation77_spill] sm:$0xff]  ;;  %v14964_v52 = vcombine.low %v19857_v18, %v19859_v29 }
 0x36d   : > { %10168 = vmatprep.mubr.bf16.mxu1 %v21204_v40  ;;  %v19888_v9 = vpack.c.bf16 %v4526_v27, %v4514_v4  ;;  %v19890_v22 = vpack.c.bf16 %v4528_v59, %v4516_v28  ;;  %9716 = vmatprep.mubr.bf16.mxu0 %v21206_v60  ;;  %v3959_v10 = vpop.f32.mrb[76].mxu1  ;;  %v15227_v4 = vcombine.high %v19878_v7, %v19880_v58  ;;  %v19901_v27 = vld [vmem:[#allocation8 + $0xf40] sm:$0xff] }
 0x36e   : > { %9758 = vmatpush1.bf16.msra.mxu0 %v15210_v15  ;;  %v19895_v2 = vpack.c.bf16 %v4527_v41, %v4515_v62  ;;  %v19897_v19 = vpack.c.bf16 %v4529_v8, %v4517_v12  ;;  %10210 = vmatpush1.bf16.msra.mxu1 %v14956_v38  ;;  %v4185_v34 = vpop.f32.mrb[76].mxu0  ;;  %v19903_v28 = vld [vmem:[#allocation8 + $0xf60] sm:$0xff]  ;;  %v15944_v15 = vadd.f32 %v3959_v10, %v19728_v61  ;;  %v3961_v18 = vpop.f32.mrb[77].mxu1  ;;  %v19909_v62 = vld [vmem:[#allocation8 + $0x748] sm:$0xff] }
 0x36f   : > { %21205 = vst [vmem:[#allocation90_spill] sm:$0xff] %v19890_v22  ;;  %9759 = vmatprep.subr.bf16.mxu0 %v15219_v30  ;;  %v15976_v59 = vadd.f32 %v4185_v34, %v19731_v44  ;;  %v4187_v29 = vpop.f32.mrb[77].mxu0  ;;  %10211 = vmatprep.subr.bf16.mxu1 %v14965_v17  ;;  %v14973_v38 = vcombine.high %v19884_v35, %v19886_v26  ;;  %v19911_v30 = vld [vmem:[#allocation8 + $0x768] sm:$0xff]  ;;  %v3963_v8 = vpop.f32.mrb[78].mxu1  ;;  %v21219_v22 = vld [vmem:[#allocation50_spill] sm:$0xff] }
 0x370   : > { %21207 = vst [vmem:[#allocation91_spill] sm:$0xff] %v19895_v2  ;;  %21208 = vst [vmem:[#allocation92_spill] sm:$0xff] %v19897_v19  ;;  %v15945_v12 = vadd.f32 %v3961_v18, %v19741_v57  ;;  %v15977_v41 = vadd.f32 %v4187_v29, %v19744_v5  ;;  %v4189_v40 = vpop.f32.mrb[78].mxu0  ;;  %v15226_v10 = vcombine.low %v19878_v7, %v19880_v58  ;;  %v3965_v60 = vpop.f32.mrb[79].mxu1  ;;  %v4538_v58 = vmax.f32 %v15944_v15, 0.0  ;;  %v19938_v15 = vld [vmem:[#allocation8 + $0x7a8] sm:$0xff] }
 0x371   : > { %v14972_v34 = vcombine.low %v19884_v35, %v19886_v26  ;;  %v15946_v17 = vadd.f32 %v3963_v8, %v19728_v61  ;;  %v15978_v43 = vadd.f32 %v4189_v40, %v19731_v44  ;;  %v4191_v45 = vpop.f32.mrb[79].mxu0  ;;  %v15234_v18 = vcombine.low %v19901_v27, %v19903_v28  ;;  %v21209_v8 = vld [vmem:[#allocation44_spill] sm:$0xff] }
 0x372   : > { %9760 = vmatpush1.bf16.msra.mxu0 %v15218_v14  ;;  %v15235_v29 = vcombine.high %v19901_v27, %v19903_v28  ;;  %10212 = vmatpush1.bf16.msra.mxu1 %v14964_v52  ;;  %v15947_v48 = vadd.f32 %v3965_v60, %v19741_v57  ;;  %v15979_v7 = vadd.f32 %v4191_v45, %v19744_v5  ;;  %v4540_v40 = vmax.f32 %v15976_v59, 0.0  ;;  %v21210_v45 = vld [vmem:[#allocation75_spill] sm:$0xff] }
 0x373   : > { %9761 = vmatprep.subr.bf16.mxu0 %v15227_v4  ;;  %v14981_v35 = vcombine.high %v19909_v62, %v19911_v30  ;;  %v4550_v14 = vmax.f32 %v15946_v17, 0.0  ;;  %v4552_v26 = vmax.f32 %v15978_v43, 0.0  ;;  %10213 = vmatprep.subr.bf16.mxu1 %v14973_v38  ;;  %v4539_v52 = vmax.f32 %v15945_v12, 0.0  ;;  %v21211_v4 = vld [vmem:[#allocation47_spill] sm:$0xff] }
 0x374   : > { %10169 = vmatmul.mubr.bf16.gmra.mrb[152].mxu1 %v21209_v8  ;;  %v4541_v27 = vmax.f32 %v15977_v41, 0.0  ;;  %v4551_v60 = vmax.f32 %v15947_v48, 0.0  ;;  %v4553_v28 = vmax.f32 %v15979_v7, 0.0  ;;  %9717 = vmatmul.mubr.bf16.gmra.mrb[120].mxu0 %v21210_v45  ;;  %v14980_v38 = vcombine.low %v19909_v62, %v19911_v30 }
 0x375   : > { %10178 = vmatprep.mubr.bf16.mxu1 %v21211_v4  ;;  %v19940_v43 = vpack.c.bf16 %v4550_v14, %v4538_v58  ;;  %v19942_v59 = vpack.c.bf16 %v4552_v26, %v4540_v40  ;;  %9726 = vmatprep.mubr.bf16.mxu0 %v19692_v25  ;;  %v3969_v41 = vpop.f32.mrb[80].mxu1  ;;  %v15243_v7 = vcombine.high %v19930_v1, %v19932_v24  ;;  %v19953_v58 = vld [vmem:[#allocation8 + $0xfc0] sm:$0xff]  ;;  %v19961_v26 = vld [vmem:[#allocation8 + $0x7c8] sm:$0xff] }
 0x376   : > { %9762 = vmatpush1.bf16.msra.mxu0 %v15226_v10  ;;  %v19947_v48 = vpack.c.bf16 %v4551_v60, %v4539_v52  ;;  %v19949_v12 = vpack.c.bf16 %v4553_v28, %v4541_v27  ;;  %10214 = vmatpush1.bf16.msra.mxu1 %v14972_v34  ;;  %v4195_v17 = vpop.f32.mrb[80].mxu0  ;;  %v19955_v40 = vld [vmem:[#allocation8 + $0xfe0] sm:$0xff]  ;;  %v15948_v10 = vadd.f32 %v3969_v41, %v19728_v61  ;;  %v3971_v62 = vpop.f32.mrb[81].mxu1 }
 0x377   : > { %21212 = vst [vmem:[#allocation93_spill] sm:$0xff] %v19942_v59  ;;  %9763 = vmatprep.subr.bf16.mxu0 %v15235_v29  ;;  %v15980_v14 = vadd.f32 %v4195_v17, %v19731_v44  ;;  %v4197_v30 = vpop.f32.mrb[81].mxu0  ;;  %10215 = vmatprep.subr.bf16.mxu1 %v14981_v35  ;;  %v14989_v34 = vcombine.high %v19936_v51, %v19938_v15  ;;  %v19963_v29 = vld [vmem:[#allocation8 + $0x7e8] sm:$0xff]  ;;  %v3973_v60 = vpop.f32.mrb[82].mxu1  ;;  %v19982_v59 = vld [vmem:[#allocation8 + $0x1000] sm:$0xff] }
 0x378   : > { %21213 = vst [vmem:[#allocation94_spill] sm:$0xff] %v19949_v12  ;;  %v15949_v52 = vadd.f32 %v3971_v62, %v19741_v57  ;;  %v15981_v27 = vadd.f32 %v4197_v30, %v19744_v5  ;;  %v4199_v28 = vpop.f32.mrb[82].mxu0  ;;  %v15242_v41 = vcombine.low %v19930_v1, %v19932_v24  ;;  %v14988_v17 = vcombine.low %v19936_v51, %v19938_v15  ;;  %v3975_v8 = vpop.f32.mrb[83].mxu1  ;;  %v19984_v12 = vld [vmem:[#allocation8 + $0x1020] sm:$0xff] }
 0x379   : > { %v15950_v35 = vadd.f32 %v3973_v60, %v19728_v61  ;;  %v15982_v4 = vadd.f32 %v4199_v28, %v19731_v44  ;;  %v4201_v25 = vpop.f32.mrb[83].mxu0  ;;  %v15250_v62 = vcombine.low %v19953_v58, %v19955_v40  ;;  %v15251_v30 = vcombine.high %v19953_v58, %v19955_v40  ;;  %v21214_v28 = vld [vmem:[#allocation46_spill] sm:$0xff] }
 0x37a   : > { %9764 = vmatpush1.bf16.msra.mxu0 %v15234_v18  ;;  %10216 = vmatpush1.bf16.msra.mxu1 %v14980_v38  ;;  %v15951_v45 = vadd.f32 %v3975_v8, %v19741_v57  ;;  %v15983_v1 = vadd.f32 %v4201_v25, %v19744_v5  ;;  %v14997_v51 = vcombine.high %v19961_v26, %v19963_v29  ;;  %v4562_v24 = vmax.f32 %v15948_v10, 0.0  ;;  %v21215_v25 = vld [vmem:[#allocation52_spill] sm:$0xff] }
 0x37b   : > { %9765 = vmatprep.subr.bf16.mxu0 %v15243_v7  ;;  %v4564_v15 = vmax.f32 %v15980_v14, 0.0  ;;  %v4574_v18 = vmax.f32 %v15950_v35, 0.0  ;;  %v4576_v60 = vmax.f32 %v15982_v4, 0.0  ;;  %10217 = vmatprep.subr.bf16.mxu1 %v14989_v34  ;;  %v4563_v38 = vmax.f32 %v15949_v52, 0.0  ;;  %v19988_v7 = vld [vmem:[#allocation8 + $0x808] sm:$0xff] }
 0x37c   : > { %10179 = vmatmul.mubr.bf16.gmra.mrb[156].mxu1 %v21214_v28  ;;  %v4565_v58 = vmax.f32 %v15981_v27, 0.0  ;;  %v4575_v8 = vmax.f32 %v15951_v45, 0.0  ;;  %v4577_v40 = vmax.f32 %v15983_v1, 0.0  ;;  %9727 = vmatmul.mubr.bf16.gmra.mrb[124].mxu0 %v19687_v20  ;;  %v19990_v10 = vld [vmem:[#allocation8 + $0x828] sm:$0xff]  ;;  %v14996_v34 = vcombine.low %v19961_v26, %v19963_v29 }
 0x37d   : > { %10221 = vmatprep.mubr.bf16.mxu1 %v21215_v25  ;;  %v19992_v4 = vpack.c.bf16 %v4574_v18, %v4562_v24  ;;  %v19994_v14 = vpack.c.bf16 %v4576_v60, %v4564_v15  ;;  %9769 = vmatprep.mubr.bf16.mxu0 %v19791_v47  ;;  %v3979_v27 = vpop.f32.mrb[84].mxu1  ;;  %v15259_v1 = vcombine.high %v19982_v59, %v19984_v12  ;;  %v20005_v24 = vld [vmem:[#allocation8 + $0x1040] sm:$0xff]  ;;  %v20013_v60 = vld [vmem:[#allocation8 + $0x848] sm:$0xff] }
 0x37e   : > { %9766 = vmatpush1.bf16.msra.mxu0 %v15242_v41  ;;  %v19999_v45 = vpack.c.bf16 %v4575_v8, %v4563_v38  ;;  %v20001_v52 = vpack.c.bf16 %v4577_v40, %v4565_v58  ;;  %10218 = vmatpush1.bf16.msra.mxu1 %v14988_v17  ;;  %v4205_v35 = vpop.f32.mrb[84].mxu0  ;;  %v20007_v15 = vld [vmem:[#allocation8 + $0x1060] sm:$0xff]  ;;  %v15952_v41 = vadd.f32 %v3979_v27, %v19728_v61  ;;  %v3981_v26 = vpop.f32.mrb[85].mxu1 }
 0x37f   : > { %21216 = vst [vmem:[#allocation95_spill] sm:$0xff] %v19994_v14  ;;  %9767 = vmatprep.subr.bf16.mxu0 %v15251_v30  ;;  %v15984_v18 = vadd.f32 %v4205_v35, %v19731_v44  ;;  %v4207_v29 = vpop.f32.mrb[85].mxu0  ;;  %10219 = vmatprep.subr.bf16.mxu1 %v14997_v51  ;;  %v15005_v17 = vcombine.high %v19988_v7, %v19990_v10  ;;  %v20015_v30 = vld [vmem:[#allocation8 + $0x868] sm:$0xff]  ;;  %v3983_v8 = vpop.f32.mrb[86].mxu1 }
 0x380   : > { %21217 = vst [vmem:[#allocation96_spill] sm:$0xff] %v20001_v52  ;;  %v15953_v38 = vadd.f32 %v3981_v26, %v19741_v57  ;;  %v15985_v58 = vadd.f32 %v4207_v29, %v19744_v5  ;;  %v4209_v40 = vpop.f32.mrb[86].mxu0  ;;  %v15258_v27 = vcombine.low %v19982_v59, %v19984_v12  ;;  %v15954_v35 = vadd.f32 %v3983_v8, %v19728_v61  ;;  %v3985_v25 = vpop.f32.mrb[87].mxu1 }
 0x381   : > { %v15986_v51 = vadd.f32 %v4209_v40, %v19731_v44  ;;  %v4211_v28 = vpop.f32.mrb[87].mxu0  ;;  %v15004_v47 = vcombine.low %v19988_v7, %v19990_v10  ;;  %v15267_v26 = vcombine.high %v20005_v24, %v20007_v15  ;;  %v15955_v29 = vadd.f32 %v3985_v25, %v19741_v57  ;;  %v20034_v25 = vld [vmem:[#allocation8 + $0x10a0] sm:$0xff] }
 0x382   : > { %9768 = vmatpush1.bf16.msra.mxu0 %v15250_v62  ;;  %10220 = vmatpush1.bf16.msra.mxu1 %v14996_v34  ;;  %v15987_v20 = vadd.f32 %v4211_v28, %v19744_v5  ;;  %v15013_v59 = vcombine.high %v20013_v60, %v20015_v30  ;;  %v4586_v12 = vmax.f32 %v15952_v41, 0.0  ;;  %v4588_v8 = vmax.f32 %v15984_v18, 0.0  ;;  %v20032_v34 = vld [vmem:[#allocation8 + $0x1080] sm:$0xff]  ;;  %v20044_v18 = vld [vmem:[#allocation8 + $0x888] sm:$0xff] }
 0x383   : > { %9850 = vmatprep.subr.bf16.mxu0 %v15259_v1  ;;  %v4598_v62 = vmax.f32 %v15954_v35, 0.0  ;;  %v4600_v40 = vmax.f32 %v15986_v51, 0.0  ;;  %10302 = vmatprep.subr.bf16.mxu1 %v15005_v17  ;;  %v4587_v14 = vmax.f32 %v15953_v38, 0.0  ;;  %v4589_v52 = vmax.f32 %v15985_v58, 0.0  ;;  %v21221_v58 = vld [vmem:[#allocation56_spill] sm:$0xff] }
 0x384   : > { %v4599_v7 = vmax.f32 %v15955_v29, 0.0  ;;  %v4601_v10 = vmax.f32 %v15987_v20, 0.0  ;;  %v15266_v41 = vcombine.low %v20005_v24, %v20007_v15  ;;  %v20046_v20 = vld [vmem:[#allocation8 + $0x8a8] sm:$0xff]  ;;  %v15012_v29 = vcombine.low %v20013_v60, %v20015_v30 }
 0x385   : > { %9770 = vmatmul.mubr.bf16.vlgmr.msra.gmra.mrb[96].mxu0 %v19784_v37  ;;  %v20036_v28 = vpack.c.bf16 %v4598_v62, %v4586_v12  ;;  %v20038_v1 = vpack.c.bf16 %v4600_v40, %v4588_v8  ;;  %10222 = vmatmul.mubr.bf16.vlgmr.msra.gmra.mrb[128].mxu1 %v21219_v22  ;;  %v3989_v35 = vpop.f32.mrb[88].mxu1  ;;  %v20055_v12 = vld [vmem:[#allocation8 + $0x10c0] sm:$0xff]  ;;  %v20063_v62 = vld [vmem:[#allocation8 + $0x8c8] sm:$0xff]  ;;  %v15274_v22 = vcombine.low %v20032_v34, %v20034_v25 }
 0x386   : > { %9779 = vmatprep.mubr.bf16.mxu0 %v19843_v50  ;;  %v20048_v17 = vpack.c.bf16 %v4599_v7, %v4587_v14  ;;  %v20050_v38 = vpack.c.bf16 %v4601_v10, %v4589_v52  ;;  %9851 = vmatpush1.bf16.msra.mxu0 %v15258_v27  ;;  %v4215_v51 = vpop.f32.mrb[88].mxu0  ;;  %v15956_v24 = vadd.f32 %v3989_v35, %v19728_v61  ;;  %v3991_v8 = vpop.f32.mrb[89].mxu1  ;;  %v20061_v27 = vld [vmem:[#allocation8 + $0x10e0] sm:$0xff]  ;;  %v20065_v40 = vld [vmem:[#allocation8 + $0x8e8] sm:$0xff] }
 0x387   : > { %21218 = vst [vmem:[#allocation97_spill] sm:$0xff] %v20038_v1  ;;  %10231 = vmatprep.mubr.bf16.mxu1 %v21221_v58  ;;  %10303 = vmatpush1.bf16.msra.mxu1 %v15004_v47  ;;  %v15988_v15 = vadd.f32 %v4215_v51, %v19731_v44  ;;  %v4217_v14 = vpop.f32.mrb[89].mxu0  ;;  %v15275_v52 = vcombine.high %v20032_v34, %v20034_v25  ;;  %v3993_v30 = vpop.f32.mrb[90].mxu1 }
 0x388   : > { %21220 = vst [vmem:[#allocation98_spill] sm:$0xff] %v20050_v38  ;;  %9852 = vmatprep.subr.bf16.mxu0 %v15267_v26  ;;  %v15957_v60 = vadd.f32 %v3991_v8, %v19741_v57  ;;  %v15989_v47 = vadd.f32 %v4217_v14, %v19744_v5  ;;  %10304 = vmatprep.subr.bf16.mxu1 %v15013_v59  ;;  %v4219_v7 = vpop.f32.mrb[90].mxu0  ;;  %v3995_v51 = vpop.f32.mrb[91].mxu1 }
 0x389   : > { %v15021_v10 = vcombine.high %v20044_v18, %v20046_v20  ;;  %v15958_v26 = vadd.f32 %v3993_v30, %v19728_v61  ;;  %v15990_v35 = vadd.f32 %v4219_v7, %v19731_v44  ;;  %v4221_v58 = vpop.f32.mrb[91].mxu0  ;;  %v15020_v8 = vcombine.low %v20044_v18, %v20046_v20  ;;  %v20084_v20 = vld [vmem:[#allocation8 + $0x1100] sm:$0xff] }
 0x38a   : > { %9853 = vmatpush1.bf16.msra.mxu0 %v15266_v41  ;;  %v15959_v59 = vadd.f32 %v3995_v51, %v19741_v57  ;;  %v15991_v14 = vadd.f32 %v4221_v58, %v19744_v5  ;;  %v15283_v50 = vcombine.high %v20055_v12, %v20061_v27  ;;  %v15029_v30 = vcombine.high %v20063_v62, %v20065_v40  ;;  %v20086_v58 = vld [vmem:[#allocation8 + $0x1120] sm:$0xff] }
 0x38b   : > { %v4610_v7 = vmax.f32 %v15956_v24, 0.0  ;;  %v4612_v37 = vmax.f32 %v15988_v15, 0.0  ;;  %v4622_v1 = vmax.f32 %v15958_v26, 0.0  ;;  %v4624_v38 = vmax.f32 %v15990_v35, 0.0  ;;  %10305 = vmatpush1.bf16.msra.mxu1 %v15012_v29  ;;  %9854 = vmatprep.subr.bf16.mxu0 %v15275_v52  ;;  %v21223_v24 = vld [vmem:[#allocation54_spill] sm:$0xff]  ;;  %v5037_v15 = vld [vmem:[#allocation8 + $0x908] sm:$0xff] }
 0x38c   : > { %v4611_v34 = vmax.f32 %v15957_v60, 0.0  ;;  %v4613_v25 = vmax.f32 %v15989_v47, 0.0  ;;  %v4623_v18 = vmax.f32 %v15959_v59, 0.0  ;;  %v4625_v41 = vmax.f32 %v15991_v14, 0.0  ;;  %10306 = vmatprep.subr.bf16.mxu1 %v15021_v10  ;;  %v5041_v52 = vld [vmem:[#allocation8 + $0x928] sm:$0xff]  ;;  %v5304_v14 = vld [vmem:[#allocation8 + $0x1160] sm:$0xff] }
 0x38d   : > { %9780 = vmatmul.mubr.bf16.gmra.mrb[100].mxu0 %v19836_v16  ;;  %v20088_v51 = vpack.c.bf16 %v4622_v1, %v4610_v7  ;;  %v20090_v49 = vpack.c.bf16 %v4624_v38, %v4612_v37  ;;  %10232 = vmatmul.mubr.bf16.gmra.mrb[132].mxu1 %v21223_v24  ;;  %v15282_v29 = vcombine.low %v20055_v12, %v20061_v27  ;;  %v21225_v10 = vld [vmem:[#allocation60_spill] sm:$0xff]  ;;  %v3999_v1 = vpop.f32.mrb[92].mxu1 }
 0x38e   : > { %9789 = vmatprep.mubr.bf16.mxu0 %v19895_v2  ;;  %v20096_v60 = vpack.c.bf16 %v4623_v18, %v4611_v34  ;;  %v20098_v47 = vpack.c.bf16 %v4625_v41, %v4613_v25  ;;  %9855 = vmatpush1.bf16.msra.mxu0 %v15274_v22  ;;  %v4225_v26 = vpop.f32.mrb[92].mxu0  ;;  %v15028_v37 = vcombine.low %v20063_v62, %v20065_v40  ;;  %v20103_v38 = vld [vmem:[#allocation8 + $0x1140] sm:$0xff]  ;;  %v4001_v27 = vpop.f32.mrb[93].mxu1  ;;  %v5045_v7 = vld [vmem:[#allocation8 + $0x948] sm:$0xff] }
 0x38f   : > { %21222 = vst [vmem:[#allocation99_spill] sm:$0xff] %v20090_v49  ;;  %10241 = vmatprep.mubr.bf16.mxu1 %v21225_v10  ;;  %10307 = vmatpush1.bf16.msra.mxu1 %v15020_v8  ;;  %v15960_v35 = vadd.f32 %v3999_v1, %v19728_v61  ;;  %v15992_v12 = vadd.f32 %v4225_v26, %v19731_v44  ;;  %v4227_v59 = vpop.f32.mrb[93].mxu0  ;;  %v5049_v34 = vld [vmem:[#allocation8 + $0x968] sm:$0xff]  ;;  %v4003_v40 = vpop.f32.mrb[94].mxu1 }
 0x390   : > { %21224 = vst [vmem:[#allocation100_spill] sm:$0xff] %v20098_v47  ;;  %9856 = vmatprep.subr.bf16.mxu0 %v15283_v50  ;;  %v15291_v22 = vcombine.high %v20084_v20, %v20086_v58  ;;  %v15961_v25 = vadd.f32 %v4001_v27, %v19741_v57  ;;  %v15993_v62 = vadd.f32 %v4227_v59, %v19744_v5  ;;  %v4229_v8 = vpop.f32.mrb[94].mxu0  ;;  %v4005_v26 = vpop.f32.mrb[95].mxu1 }
 0x391   : > { %10308 = vmatprep.subr.bf16.mxu1 %v15029_v30  ;;  %v15037_v18 = vcombine.high %v5037_v15, %v5041_v52  ;;  %v15962_v41 = vadd.f32 %v4003_v40, %v19728_v61  ;;  %v15994_v1 = vadd.f32 %v4229_v8, %v19731_v44  ;;  %v4231_v50 = vpop.f32.mrb[95].mxu0  ;;  %v15290_v10 = vcombine.low %v20084_v20, %v20086_v58  ;;  %v5308_v20 = vld [vmem:[#allocation8 + $0x1180] sm:$0xff] }
 0x392   : > { %v15036_v24 = vcombine.low %v5037_v15, %v5041_v52  ;;  %9857 = vmatpush1.bf16.msra.mxu0 %v15282_v29  ;;  %v15963_v2 = vadd.f32 %v4005_v26, %v19741_v57  ;;  %v15995_v27 = vadd.f32 %v4231_v50, %v19744_v5  ;;  %v15299_v30 = vcombine.high %v20103_v38, %v5304_v14  ;;  %v5312_v57 = vld [vmem:[#allocation8 + $0x11a0] sm:$0xff]  ;;  %v5053_v29 = vld [vmem:[#allocation8 + $0x988] sm:$0xff] }
 0x393   : > { %v15045_v59 = vcombine.high %v5045_v7, %v5049_v34  ;;  %v4634_v16 = vmax.f32 %v15960_v35, 0.0  ;;  %v4636_v49 = vmax.f32 %v15992_v12, 0.0  ;;  %v4646_v47 = vmax.f32 %v15962_v41, 0.0  ;;  %10309 = vmatpush1.bf16.msra.mxu1 %v15028_v37  ;;  %9858 = vmatprep.subr.bf16.mxu0 %v15291_v22  ;;  %v5057_v15 = vld [vmem:[#allocation8 + $0x9a8] sm:$0xff]  ;;  %v5316_v35 = vld [vmem:[#allocation8 + $0x11c0] sm:$0xff] }
 0x394   : > { %v4648_v61 = vmax.f32 %v15994_v1, 0.0  ;;  %v4635_v44 = vmax.f32 %v15961_v25, 0.0  ;;  %v4637_v40 = vmax.f32 %v15993_v62, 0.0  ;;  %v4647_v8 = vmax.f32 %v15963_v2, 0.0  ;;  %10310 = vmatprep.subr.bf16.mxu1 %v15037_v18  ;;  %v5320_v12 = vld [vmem:[#allocation8 + $0x11e0] sm:$0xff]  ;;  %v5061_v22 = vld [vmem:[#allocation8 + $0x9c8] sm:$0xff] }
 0x395   : > { %v4649_v19 = vmax.f32 %v15995_v27, 0.0  ;;  %9790 = vmatmul.mubr.bf16.gmra.mrb[104].mxu0 %v19888_v9  ;;  %v20119_v58 = vpack.c.bf16 %v4646_v47, %v4634_v16  ;;  %10242 = vmatmul.mubr.bf16.gmra.mrb[136].mxu1 %v19468_v23  ;;  %v15298_v2 = vcombine.low %v20103_v38, %v5304_v14  ;;  %v15044_v16 = vcombine.low %v5045_v7, %v5049_v34  ;;  %v5065_v25 = vld [vmem:[#allocation8 + $0x9e8] sm:$0xff]  ;;  %v5328_v14 = vld [vmem:[#allocation8 + $0x1220] sm:$0xff] }
 0x396   : > { %v20121_v5 = vpack.c.bf16 %v4648_v61, %v4636_v49  ;;  %9799 = vmatprep.mubr.bf16.mxu0 %v19947_v48  ;;  %v20125_v52 = vpack.c.bf16 %v4647_v8, %v4635_v44  ;;  %9859 = vmatpush1.bf16.msra.mxu0 %v15290_v10  ;;  %v15307_v49 = vcombine.high %v5308_v20, %v5312_v57  ;;  %v5069_v7 = vld [vmem:[#allocation8 + $0xa08] sm:$0xff]  ;;  %v5332_v50 = vld [vmem:[#allocation8 + $0x1240] sm:$0xff] }
 0x397   : > { %21226 = vst [vmem:[#allocation101_spill] sm:$0xff] %v20119_v58  ;;  %v20127_v37 = vpack.c.bf16 %v4649_v19, %v4637_v40  ;;  %10251 = vmatprep.mubr.bf16.mxu1 %v19510_v55  ;;  %10311 = vmatpush1.bf16.msra.mxu1 %v15036_v24  ;;  %v15053_v47 = vcombine.high %v5053_v29, %v5057_v15  ;;  %v5324_v24 = vld [vmem:[#allocation8 + $0x1200] sm:$0xff]  ;;  %v5073_v34 = vld [vmem:[#allocation8 + $0xa28] sm:$0xff] }
 0x398   : > { %21227 = vst [vmem:[#allocation102_spill] sm:$0xff] %v20121_v5  ;;  %21228 = vst [vmem:[#allocation103_spill] sm:$0xff] %v20125_v52  ;;  %9860 = vmatprep.subr.bf16.mxu0 %v15299_v30  ;;  %10312 = vmatprep.subr.bf16.mxu1 %v15045_v59  ;;  %v15306_v62 = vcombine.low %v5308_v20, %v5312_v57  ;;  %v15052_v19 = vcombine.low %v5053_v29, %v5057_v15  ;;  %v5336_v27 = vld [vmem:[#allocation8 + $0x1260] sm:$0xff]  ;;  %v5077_v30 = vld [vmem:[#allocation8 + $0xa48] sm:$0xff] }
 0x399   : > { %21229 = vst [vmem:[#allocation104_spill] sm:$0xff] %v20127_v37  ;;  %v15315_v10 = vcombine.high %v5316_v35, %v5320_v12  ;;  %v15061_v38 = vcombine.high %v5061_v22, %v5065_v25  ;;  %v15314_v18 = vcombine.low %v5316_v35, %v5320_v12  ;;  %v15060_v41 = vcombine.low %v5061_v22, %v5065_v25  ;;  %v5081_v59 = vld [vmem:[#allocation8 + $0xa68] sm:$0xff]  ;;  %v5340_v20 = vld [vmem:[#allocation8 + $0x1280] sm:$0xff] }
 0x39a   : > { %9861 = vmatpush1.bf16.msra.mxu0 %v15298_v2  ;;  %v15323_v1 = vcombine.high %v5324_v24, %v5328_v14  ;;  %v15069_v26 = vcombine.high %v5069_v7, %v5073_v34  ;;  %v15322_v61 = vcombine.low %v5324_v24, %v5328_v14  ;;  %v15068_v44 = vcombine.low %v5069_v7, %v5073_v34  ;;  %v5344_v57 = vld [vmem:[#allocation8 + $0x12a0] sm:$0xff]  ;;  %v5085_v29 = vld [vmem:[#allocation8 + $0xa88] sm:$0xff] }
 0x39b   : > { %10313 = vmatpush1.bf16.msra.mxu1 %v15044_v16  ;;  %9862 = vmatprep.subr.bf16.mxu0 %v15307_v49  ;;  %v15331_v40 = vcombine.high %v5332_v50, %v5336_v27  ;;  %v15077_v8 = vcombine.high %v5077_v30, %v5081_v59  ;;  %v5089_v15 = vld [vmem:[#allocation8 + $0xaa8] sm:$0xff]  ;;  %v15330_v2 = vcombine.low %v5332_v50, %v5336_v27  ;;  %v5348_v35 = vld [vmem:[#allocation8 + $0x12c0] sm:$0xff] }
 0x39c   : > { %10314 = vmatprep.subr.bf16.mxu1 %v15053_v47  ;;  %v15076_v16 = vcombine.low %v5077_v30, %v5081_v59  ;;  %v15339_v49 = vcombine.high %v5340_v20, %v5344_v57  ;;  %v15085_v47 = vcombine.high %v5085_v29, %v5089_v15  ;;  %v5352_v12 = vld [vmem:[#allocation8 + $0x12e0] sm:$0xff]  ;;  %v5093_v22 = vld [vmem:[#allocation8 + $0xac8] sm:$0xff] }
 0x39d   : > { %9800 = vmatmul.mubr.bf16.gmra.mrb[108].mxu0 %v19940_v43  ;;  %10252 = vmatmul.mubr.bf16.gmra.mrb[140].mxu1 %v19504_v6  ;;  %v5097_v25 = vld [vmem:[#allocation8 + $0xae8] sm:$0xff]  ;;  %v5356_v24 = vld [vmem:[#allocation8 + $0x1300] sm:$0xff] }
 0x39e   : > { %9809 = vmatprep.mubr.bf16.mxu0 %v19999_v45  ;;  %9863 = vmatpush1.bf16.msra.mxu0 %v15306_v62  ;;  %v15338_v62 = vcombine.low %v5340_v20, %v5344_v57  ;;  %v5360_v14 = vld [vmem:[#allocation8 + $0x1320] sm:$0xff]  ;;  %v5101_v7 = vld [vmem:[#allocation8 + $0xb08] sm:$0xff] }
 0x39f   : > { %10261 = vmatprep.mubr.bf16.mxu1 %v19556_v21  ;;  %10315 = vmatpush1.bf16.msra.mxu1 %v15052_v19  ;;  %v15084_v19 = vcombine.low %v5085_v29, %v5089_v15  ;;  %v5105_v34 = vld [vmem:[#allocation8 + $0xb28] sm:$0xff]  ;;  %v5364_v50 = vld [vmem:[#allocation8 + $0x1340] sm:$0xff] }
 0x3a0   : > { %9864 = vmatprep.subr.bf16.mxu0 %v15315_v10  ;;  %10316 = vmatprep.subr.bf16.mxu1 %v15061_v38  ;;  %v15347_v10 = vcombine.high %v5348_v35, %v5352_v12  ;;  %v15093_v38 = vcombine.high %v5093_v22, %v5097_v25  ;;  %v5368_v27 = vld [vmem:[#allocation8 + $0x1360] sm:$0xff]  ;;  %v5109_v30 = vld [vmem:[#allocation8 + $0xb48] sm:$0xff] }
 0x3a1   : > { %v5113_v59 = vld [vmem:[#allocation8 + $0xb68] sm:$0xff]  ;;  %v5372_v20 = vld [vmem:[#allocation8 + $0x1380] sm:$0xff] }
 0x3a2   : > { %9865 = vmatpush1.bf16.msra.mxu0 %v15314_v18  ;;  %v15346_v18 = vcombine.low %v5348_v35, %v5352_v12  ;;  %v5376_v57 = vld [vmem:[#allocation8 + $0x13a0] sm:$0xff]  ;;  %v5117_v29 = vld [vmem:[#allocation8 + $0xb88] sm:$0xff] }
 0x3a3   : > { %10317 = vmatpush1.bf16.msra.mxu1 %v15060_v41  ;;  %9866 = vmatprep.subr.bf16.mxu0 %v15323_v1  ;;  %v15092_v41 = vcombine.low %v5093_v22, %v5097_v25  ;;  %v15355_v1 = vcombine.high %v5356_v24, %v5360_v14  ;;  %v5121_v15 = vld [vmem:[#allocation8 + $0xba8] sm:$0xff]  ;;  %v5380_v35 = vld [vmem:[#allocation8 + $0x13c0] sm:$0xff] }
 0x3a4   : > { %10318 = vmatprep.subr.bf16.mxu1 %v15069_v26  ;;  %v15101_v26 = vcombine.high %v5101_v7, %v5105_v34  ;;  %v5384_v12 = vld [vmem:[#allocation8 + $0x13e0] sm:$0xff]  ;;  %v5125_v22 = vld [vmem:[#allocation8 + $0xbc8] sm:$0xff] }
 0x3a5   : > { %9810 = vmatmul.mubr.bf16.gmra.mrb[112].mxu0 %v19992_v4  ;;  %10262 = vmatmul.mubr.bf16.gmra.mrb[144].mxu1 %v19546_v39  ;;  %v5129_v25 = vld [vmem:[#allocation8 + $0xbe8] sm:$0xff]  ;;  %v5500_v6 = vld [vmem:[#allocation8 + $0x1780] sm:$0xff] }
 0x3a6   : > { %9819 = vmatprep.mubr.bf16.mxu0 %v20048_v17  ;;  %9867 = vmatpush1.bf16.msra.mxu0 %v15322_v61  ;;  %v15354_v61 = vcombine.low %v5356_v24, %v5360_v14  ;;  %v5388_v24 = vld [vmem:[#allocation8 + $0x1400] sm:$0xff]  ;;  %v5237_v39 = vld [vmem:[#allocation8 + $0xf48] sm:$0xff] }
 0x3a7   : > { %10271 = vmatprep.mubr.bf16.mxu1 %v19608_v42  ;;  %10319 = vmatpush1.bf16.msra.mxu1 %v15068_v44  ;;  %v15100_v44 = vcombine.low %v5101_v7, %v5105_v34  ;;  %v5392_v14 = vld [vmem:[#allocation8 + $0x1420] sm:$0xff]  ;;  %v5133_v7 = vld [vmem:[#allocation8 + $0xc08] sm:$0xff] }
 0x3a8   : > { %9868 = vmatprep.subr.bf16.mxu0 %v15331_v40  ;;  %10320 = vmatprep.subr.bf16.mxu1 %v15077_v8  ;;  %v15363_v40 = vcombine.high %v5364_v50, %v5368_v27  ;;  %v15109_v8 = vcombine.high %v5109_v30, %v5113_v59  ;;  %v5137_v34 = vld [vmem:[#allocation8 + $0xc28] sm:$0xff] }
 0x3aa   : > { %9869 = vmatpush1.bf16.msra.mxu0 %v15330_v2  ;;  %v15362_v2 = vcombine.low %v5364_v50, %v5368_v27  ;;  %v5396_v50 = vld [vmem:[#allocation8 + $0x1440] sm:$0xff] }
 0x3ab   : > { %10321 = vmatpush1.bf16.msra.mxu1 %v15076_v16  ;;  %9870 = vmatprep.subr.bf16.mxu0 %v15339_v49  ;;  %v15108_v16 = vcombine.low %v5109_v30, %v5113_v59  ;;  %v15371_v49 = vcombine.high %v5372_v20, %v5376_v57  ;;  %v5400_v27 = vld [vmem:[#allocation8 + $0x1460] sm:$0xff]  ;;  %v5141_v30 = vld [vmem:[#allocation8 + $0xc48] sm:$0xff] }
 0x3ac   : > { %10322 = vmatprep.subr.bf16.mxu1 %v15085_v47  ;;  %v15117_v47 = vcombine.high %v5117_v29, %v5121_v15  ;;  %v5145_v59 = vld [vmem:[#allocation8 + $0xc68] sm:$0xff] }
 0x3ad   : > { %9820 = vmatmul.mubr.bf16.gmra.mrb[116].mxu0 %v20036_v28  ;;  %10272 = vmatmul.mubr.bf16.gmra.mrb[148].mxu1 %v19597_v32  ;;  %v5484_v32 = vld [vmem:[#allocation8 + $0x1700] sm:$0xff] }
 0x3ae   : > { %9829 = vmatprep.mubr.bf16.mxu0 %v20096_v60  ;;  %9871 = vmatpush1.bf16.msra.mxu0 %v15338_v62  ;;  %v15370_v62 = vcombine.low %v5372_v20, %v5376_v57  ;;  %v5404_v20 = vld [vmem:[#allocation8 + $0x1480] sm:$0xff] }
 0x3af   : > { %10281 = vmatprep.mubr.bf16.mxu1 %v19660_v36  ;;  %10323 = vmatpush1.bf16.msra.mxu1 %v15084_v19  ;;  %v15116_v19 = vcombine.low %v5117_v29, %v5121_v15  ;;  %v5408_v57 = vld [vmem:[#allocation8 + $0x14a0] sm:$0xff]  ;;  %v5149_v29 = vld [vmem:[#allocation8 + $0xc88] sm:$0xff] }
 0x3b0   : > { %9872 = vmatprep.subr.bf16.mxu0 %v15347_v10  ;;  %10324 = vmatprep.subr.bf16.mxu1 %v15093_v38  ;;  %v15379_v10 = vcombine.high %v5380_v35, %v5384_v12  ;;  %v15125_v38 = vcombine.high %v5125_v22, %v5129_v25  ;;  %v5153_v15 = vld [vmem:[#allocation8 + $0xca8] sm:$0xff] }
 0x3b2   : > { %9873 = vmatpush1.bf16.msra.mxu0 %v15346_v18  ;;  %v15378_v18 = vcombine.low %v5380_v35, %v5384_v12  ;;  %v5412_v35 = vld [vmem:[#allocation8 + $0x14c0] sm:$0xff] }
 0x3b3   : > { %10325 = vmatpush1.bf16.msra.mxu1 %v15092_v41  ;;  %9874 = vmatprep.subr.bf16.mxu0 %v15355_v1  ;;  %v15124_v41 = vcombine.low %v5125_v22, %v5129_v25  ;;  %v15387_v1 = vcombine.high %v5388_v24, %v5392_v14  ;;  %v5416_v12 = vld [vmem:[#allocation8 + $0x14e0] sm:$0xff]  ;;  %v5157_v22 = vld [vmem:[#allocation8 + $0xcc8] sm:$0xff] }
 0x3b4   : > { %10326 = vmatprep.subr.bf16.mxu1 %v15101_v26  ;;  %v15133_v26 = vcombine.high %v5133_v7, %v5137_v34  ;;  %v5161_v25 = vld [vmem:[#allocation8 + $0xce8] sm:$0xff] }
 0x3b5   : > { %9830 = vmatmul.mubr.bf16.gmra.mrb[120].mxu0 %v20088_v51  ;;  %10282 = vmatmul.mubr.bf16.gmra.mrb[152].mxu1 %v19649_v54  ;;  %v5221_v54 = vld [vmem:[#allocation8 + $0xec8] sm:$0xff] }
 0x3b6   : > { %9839 = vmatprep.mubr.bf16.mxu0 %v20125_v52  ;;  %9875 = vmatpush1.bf16.msra.mxu0 %v15354_v61  ;;  %v15386_v61 = vcombine.low %v5388_v24, %v5392_v14  ;;  %v5420_v24 = vld [vmem:[#allocation8 + $0x1500] sm:$0xff] }
 0x3b7   : > { %10291 = vmatprep.mubr.bf16.mxu1 %v19690_v13  ;;  %10327 = vmatpush1.bf16.msra.mxu1 %v15100_v44  ;;  %v15132_v44 = vcombine.low %v5133_v7, %v5137_v34  ;;  %v5424_v14 = vld [vmem:[#allocation8 + $0x1520] sm:$0xff]  ;;  %v5165_v34 = vld [vmem:[#allocation8 + $0xd08] sm:$0xff] }
 0x3b8   : > { %9876 = vmatprep.subr.bf16.mxu0 %v15363_v40  ;;  %10328 = vmatprep.subr.bf16.mxu1 %v15109_v8  ;;  %v15395_v40 = vcombine.high %v5396_v50, %v5400_v27  ;;  %v15141_v8 = vcombine.high %v5141_v30, %v5145_v59  ;;  %v21230_v7 = vld [vmem:[#allocation92_spill] sm:$0xff] }
 0x3ba   : > { %9877 = vmatpush1.bf16.msra.mxu0 %v15362_v2  ;;  %v15394_v2 = vcombine.low %v5396_v50, %v5400_v27  ;;  %v15419_v50 = vcombine.high %v5420_v24, %v5424_v14 }
 0x3bb   : > { %10329 = vmatpush1.bf16.msra.mxu1 %v15108_v16  ;;  %9878 = vmatprep.subr.bf16.mxu0 %v15371_v49  ;;  %v15140_v16 = vcombine.low %v5141_v30, %v5145_v59  ;;  %v15403_v49 = vcombine.high %v5404_v20, %v5408_v57  ;;  %v5428_v30 = vld [vmem:[#allocation8 + $0x1540] sm:$0xff] }
 0x3bc   : > { %10330 = vmatprep.subr.bf16.mxu1 %v15117_v47  ;;  %v15149_v47 = vcombine.high %v5149_v29, %v5153_v15  ;;  %v5432_v59 = vld [vmem:[#allocation8 + $0x1560] sm:$0xff] }
 0x3bd   : > { %9840 = vmatmul.mubr.bf16.gmra.mrb[124].mxu0 %v20119_v58  ;;  %10292 = vmatmul.mubr.bf16.gmra.mrb[156].mxu1 %v19685_v3  ;;  %v5468_v3 = vld [vmem:[#allocation8 + $0x1680] sm:$0xff] }
 0x3be   : > { %9882 = vmatprep.mubr.bf16.mxu0 %v19793_v53  ;;  %9879 = vmatpush1.bf16.msra.mxu0 %v15370_v62  ;;  %v15402_v62 = vcombine.low %v5404_v20, %v5408_v57  ;;  %v21232_v20 = vld [vmem:[#allocation48_spill] sm:$0xff] }
 0x3bf   : > { %10334 = vmatprep.mubr.bf16.mxu1 %v19404_v46  ;;  %10331 = vmatpush1.bf16.msra.mxu1 %v15116_v19  ;;  %v15148_v19 = vcombine.low %v5149_v29, %v5153_v15  ;;  %v21233_v15 = vld [vmem:[#allocation49_spill] sm:$0xff] }
 0x3c0   : > { %9880 = vmatprep.subr.bf16.mxu0 %v15379_v10  ;;  %10332 = vmatprep.subr.bf16.mxu1 %v15125_v38  ;;  %v15411_v10 = vcombine.high %v5412_v35, %v5416_v12  ;;  %v15157_v38 = vcombine.high %v5157_v22, %v5161_v25 }
 0x3c2   : > { %9881 = vmatpush1.bf16.msra.mxu0 %v15378_v18  ;;  %v5169_v18 = vld [vmem:[#allocation8 + $0xd28] sm:$0xff] }
 0x3c3   : > { %10333 = vmatpush1.bf16.msra.mxu1 %v15124_v41  ;;  %9963 = vmatprep.subr.bf16.mxu0 %v15387_v1  ;;  %v21231_v41 = vld [vmem:[#allocation61_spill] sm:$0xff]  ;;  %v15410_v1 = vcombine.low %v5412_v35, %v5416_v12  ;;  %v15165_v27 = vcombine.high %v5165_v34, %v5169_v18  ;;  %v15164_v29 = vcombine.low %v5165_v34, %v5169_v18  ;;  %v5436_v35 = vld [vmem:[#allocation8 + $0x1580] sm:$0xff] }
 0x3c4   : > { %10415 = vmatprep.subr.bf16.mxu1 %v15133_v26  ;;  %v15156_v26 = vcombine.low %v5157_v22, %v5161_v25  ;;  %v5440_v12 = vld [vmem:[#allocation8 + $0x15a0] sm:$0xff]  ;;  %v21236_v25 = vld [vmem:[#allocation94_spill] sm:$0xff]  ;;  %v15426_v34 = vcombine.low %v5428_v30, %v5432_v59 }
 0x3c5   : > { %9883 = vmatmul.mubr.bf16.vlgmr.msra.gmra.mrb[96].mxu0 %v19786_v0  ;;  %v21235_v22 = vld [vmem:[#allocation59_spill] sm:$0xff] }
 0x3c6   : > { %10335 = vmatmul.mubr.bf16.vlgmr.msra.gmra.mrb[128].mxu1 %v19398_v11  ;;  %9892 = vmatprep.mubr.bf16.mxu0 %v19845_v56  ;;  %v5205_v11 = vld [vmem:[#allocation8 + $0xe48] sm:$0xff] }
 0x3c7   : > { %9964 = vmatpush1.bf16.msra.mxu0 %v15386_v61  ;;  %10344 = vmatprep.mubr.bf16.mxu1 %v19440_v33  ;;  %v5173_v61 = vld [vmem:[#allocation8 + $0xd48] sm:$0xff] }
 0x3c8   : > { %10416 = vmatpush1.bf16.msra.mxu1 %v15132_v44  ;;  %9965 = vmatprep.subr.bf16.mxu0 %v15395_v40  ;;  %v5177_v44 = vld [vmem:[#allocation8 + $0xd68] sm:$0xff]  ;;  %v15418_v40 = vcombine.low %v5420_v24, %v5424_v14 }
 0x3c9   : > { %10417 = vmatprep.subr.bf16.mxu1 %v15141_v8  ;;  %v18229_v8 = vld [vmem:[#allocation7 + $0x8] sm:$0xf] }
 0x3ca   : > { %v20160_v57 = vrot.slane %v18229_v8, %v21232_v20  ;;  %v5444_v20 = vld [vmem:[#allocation8 + $0x15c0] sm:$0xff] }
 0x3cb   : > { %9966 = vmatpush1.bf16.msra.mxu0 %v15394_v2  ;;  %v20163_v2 = vrot.slane %v18229_v8, %v21233_v15 }
 0x3cc   : > { %10418 = vmatpush1.bf16.msra.mxu1 %v15140_v16  ;;  %9967 = vmatprep.subr.bf16.mxu0 %v15403_v49  ;;  %v15427_v16 = vcombine.high %v5428_v30, %v5432_v59  ;;  %v21234_v49 = vld [vmem:[#allocation90_spill] sm:$0xff]  ;;  %v15434_v59 = vcombine.low %v5436_v35, %v5440_v12 }
 0x3cd   : > { %9893 = vmatmul.mubr.bf16.gmra.mrb[100].mxu0 %v19838_v63  ;;  %10419 = vmatprep.subr.bf16.mxu1 %v15149_v47  ;;  %v15173_v47 = vcombine.high %v5173_v61, %v5177_v44 }
 0x3ce   : > { %10345 = vmatmul.mubr.bf16.gmra.mrb[132].mxu1 %v19434_v31  ;;  %9902 = vmatprep.mubr.bf16.mxu0 %v21230_v7  ;;  %v5452_v31 = vld [vmem:[#allocation8 + $0x1600] sm:$0xff] }
 0x3cf   : > { %9968 = vmatpush1.bf16.msra.mxu0 %v15402_v62  ;;  %10354 = vmatprep.mubr.bf16.mxu1 %v21231_v41 }
 0x3d0   : > { %10420 = vmatpush1.bf16.msra.mxu1 %v15148_v19  ;;  %9969 = vmatprep.subr.bf16.mxu0 %v15411_v10  ;;  %v5181_v19 = vld [vmem:[#allocation8 + $0xd88] sm:$0xff] }
 0x3d1   : > { %10421 = vmatprep.subr.bf16.mxu1 %v15157_v38  ;;  %v5185_v10 = vld [vmem:[#allocation8 + $0xda8] sm:$0xff] }
 0x3d2   : > { %v21237_v38 = vld [vmem:[#allocation65_spill] sm:$0xff]  ;;  %v15181_v15 = vcombine.high %v5181_v19, %v5185_v10 }
 0x3d3   : > { %9970 = vmatpush1.bf16.msra.mxu0 %v15410_v1  ;;  %v15172_v1 = vcombine.low %v5173_v61, %v5177_v44  ;;  %v15180_v44 = vcombine.low %v5181_v19, %v5185_v10  ;;  %v21243_v19 = vld [vmem:[#allocation69_spill] sm:$0xff] }
 0x3d4   : > { %10422 = vmatpush1.bf16.msra.mxu1 %v15156_v26  ;;  %9971 = vmatprep.subr.bf16.mxu0 %v15419_v50  ;;  %v15435_v50 = vcombine.high %v5436_v35, %v5440_v12  ;;  %v5197_v12 = vld [vmem:[#allocation8 + $0xe08] sm:$0xff] }
 0x3d5   : > { %9903 = vmatmul.mubr.bf16.gmra.mrb[104].mxu0 %v21234_v49  ;;  %10423 = vmatprep.subr.bf16.mxu1 %v15165_v27 }
 0x3d6   : > { %10355 = vmatmul.mubr.bf16.gmra.mrb[136].mxu1 %v21235_v22  ;;  %9912 = vmatprep.mubr.bf16.mxu0 %v21236_v25  ;;  %v4381_v62 = vpop.f32.mrb[96].mxu1  ;;  %v5189_v22 = vld [vmem:[#allocation8 + $0xdc8] sm:$0xff] }
 0x3d7   : > { %9972 = vmatpush1.bf16.msra.mxu0 %v15418_v40  ;;  %10364 = vmatprep.mubr.bf16.mxu1 %v21237_v38  ;;  %v15996_v24 = vadd.f32 %v4381_v62, %v20160_v57  ;;  %v4383_v14 = vpop.f32.mrb[97].mxu1  ;;  %v5448_v40 = vld [vmem:[#allocation8 + $0x15e0] sm:$0xff]  ;;  %v5193_v62 = vld [vmem:[#allocation8 + $0xde8] sm:$0xff] }
 0x3d8   : > { %10424 = vmatpush1.bf16.msra.mxu1 %v15164_v29  ;;  %v15997_v18 = vadd.f32 %v4383_v14, %v20163_v2  ;;  %9973 = vmatprep.subr.bf16.mxu0 %v15427_v16  ;;  %v4385_v26 = vpop.f32.mrb[98].mxu1  ;;  %v15443_v16 = vcombine.high %v5444_v20, %v5448_v40  ;;  %v21239_v14 = vld [vmem:[#allocation93_spill] sm:$0xff] }
 0x3d9   : > { %10425 = vmatprep.subr.bf16.mxu1 %v15173_v47  ;;  %v15998_v27 = vadd.f32 %v4385_v26, %v20160_v57  ;;  %v4387_v8 = vpop.f32.mrb[99].mxu1  ;;  %v4470_v41 = vmax.f32 %v15996_v24, 0.0  ;;  %v15189_v26 = vcombine.high %v5189_v22, %v5193_v62  ;;  %v21241_v24 = vld [vmem:[#allocation63_spill] sm:$0xff] }
 0x3da   : > { %v15999_v38 = vadd.f32 %v4387_v8, %v20163_v2  ;;  %v4471_v29 = vmax.f32 %v15997_v18, 0.0  ;;  %v5456_v8 = vld [vmem:[#allocation8 + $0x1620] sm:$0xff]  ;;  %v15442_v18 = vcombine.low %v5444_v20, %v5448_v40 }
 0x3db   : > { %v4482_v30 = vmax.f32 %v15998_v27, 0.0  ;;  %9974 = vmatpush1.bf16.msra.mxu0 %v15426_v34  ;;  %v21242_v34 = vld [vmem:[#allocation96_spill] sm:$0xff]  ;;  %v15451_v27 = vcombine.high %v5452_v31, %v5456_v8  ;;  %v15450_v40 = vcombine.low %v5452_v31, %v5456_v8 }
 0x3dc   : > { %10426 = vmatpush1.bf16.msra.mxu1 %v15172_v1  ;;  %v4483_v61 = vmax.f32 %v15999_v38, 0.0  ;;  %9975 = vmatprep.subr.bf16.mxu0 %v15435_v50  ;;  %v5201_v38 = vld [vmem:[#allocation8 + $0xe28] sm:$0xff]  ;;  %v15188_v1 = vcombine.low %v5189_v22, %v5193_v62 }
 0x3dd   : > { %v20173_v47 = vpack.c.bf16 %v4482_v30, %v4470_v41  ;;  %9913 = vmatmul.mubr.bf16.gmra.mrb[108].mxu0 %v21239_v14  ;;  %10427 = vmatprep.subr.bf16.mxu1 %v15181_v15  ;;  %v15196_v62 = vcombine.low %v5197_v12, %v5201_v38  ;;  %v5213_v8 = vld [vmem:[#allocation8 + $0xe88] sm:$0xff] }
 0x3de   : > { %v20176_v33 = vpack.c.bf16 %v4483_v61, %v4471_v29  ;;  %10365 = vmatmul.mubr.bf16.gmra.mrb[140].mxu1 %v21241_v24  ;;  %9922 = vmatprep.mubr.bf16.mxu0 %v21242_v34  ;;  %v15197_v61 = vcombine.high %v5197_v12, %v5201_v38  ;;  %v5460_v24 = vld [vmem:[#allocation8 + $0x1640] sm:$0xff]  ;;  %v21249_v12 = vld [vmem:[#allocation73_spill] sm:$0xff] }
 0x3df   : > { %21238 = vst [vmem:[#allocation105_spill] sm:$0xff] %v20173_v47  ;;  %v4391_v35 = vpop.f32.mrb[100].mxu1  ;;  %9976 = vmatpush1.bf16.msra.mxu0 %v15434_v59  ;;  %10374 = vmatprep.mubr.bf16.mxu1 %v21243_v19  ;;  %v5464_v59 = vld [vmem:[#allocation8 + $0x1660] sm:$0xff] }
 0x3e0   : > { %21240 = vst [vmem:[#allocation106_spill] sm:$0xff] %v20176_v33  ;;  %v16000_v41 = vadd.f32 %v4391_v35, %v20160_v57  ;;  %v4393_v10 = vpop.f32.mrb[101].mxu1  ;;  %10428 = vmatpush1.bf16.msra.mxu1 %v15180_v44  ;;  %9977 = vmatprep.subr.bf16.mxu0 %v15443_v16  ;;  %v5209_v35 = vld [vmem:[#allocation8 + $0xe68] sm:$0xff]  ;;  %v15459_v16 = vcombine.high %v5460_v24, %v5464_v59 }
 0x3e1   : > { %v16001_v15 = vadd.f32 %v4393_v10, %v20163_v2  ;;  %v4395_v50 = vpop.f32.mrb[102].mxu1  ;;  %10429 = vmatprep.subr.bf16.mxu1 %v15189_v26  ;;  %v21245_v10 = vld [vmem:[#allocation95_spill] sm:$0xff] }
 0x3e2   : > { %v16002_v30 = vadd.f32 %v4395_v50, %v20160_v57  ;;  %v4397_v29 = vpop.f32.mrb[103].mxu1  ;;  %v4494_v46 = vmax.f32 %v16000_v41, 0.0  ;;  %v15205_v50 = vcombine.high %v5205_v11, %v5209_v35  ;;  %v21247_v41 = vld [vmem:[#allocation67_spill] sm:$0xff] }
 0x3e3   : > { %v16003_v19 = vadd.f32 %v4397_v29, %v20163_v2  ;;  %9978 = vmatpush1.bf16.msra.mxu0 %v15442_v18  ;;  %v4495_v44 = vmax.f32 %v16001_v15, 0.0  ;;  %v5472_v29 = vld [vmem:[#allocation8 + $0x16a0] sm:$0xff]  ;;  %v21248_v18 = vld [vmem:[#allocation98_spill] sm:$0xff]  ;;  %v15458_v15 = vcombine.low %v5460_v24, %v5464_v59 }
 0x3e4   : > { %v4506_v20 = vmax.f32 %v16002_v30, 0.0  ;;  %10430 = vmatpush1.bf16.msra.mxu1 %v15188_v1  ;;  %9979 = vmatprep.subr.bf16.mxu0 %v15451_v27  ;;  %v15204_v27 = vcombine.low %v5205_v11, %v5209_v35  ;;  %v15466_v59 = vcombine.low %v5468_v3, %v5472_v29 }
 0x3e5   : > { %v4507_v22 = vmax.f32 %v16003_v19, 0.0  ;;  %9923 = vmatmul.mubr.bf16.gmra.mrb[112].mxu0 %v21245_v10  ;;  %10431 = vmatprep.subr.bf16.mxu1 %v15197_v61  ;;  %v5217_v19 = vld [vmem:[#allocation8 + $0xea8] sm:$0xff]  ;;  %v15467_v61 = vcombine.high %v5468_v3, %v5472_v29 }
 0x3e6   : > { %v20185_v26 = vpack.c.bf16 %v4506_v20, %v4494_v46  ;;  %10375 = vmatmul.mubr.bf16.gmra.mrb[144].mxu1 %v21247_v41  ;;  %9932 = vmatprep.mubr.bf16.mxu0 %v21248_v18  ;;  %v5476_v41 = vld [vmem:[#allocation8 + $0x16c0] sm:$0xff]  ;;  %v15212_v35 = vcombine.low %v5213_v8, %v5217_v19  ;;  %v5229_v29 = vld [vmem:[#allocation8 + $0xf08] sm:$0xff] }
 0x3e7   : > { %v20188_v13 = vpack.c.bf16 %v4507_v22, %v4495_v44  ;;  %v4401_v31 = vpop.f32.mrb[104].mxu1  ;;  %9980 = vmatpush1.bf16.msra.mxu0 %v15450_v40  ;;  %10384 = vmatprep.mubr.bf16.mxu1 %v21249_v12  ;;  %v15213_v22 = vcombine.high %v5213_v8, %v5217_v19  ;;  %v5480_v40 = vld [vmem:[#allocation8 + $0x16e0] sm:$0xff]  ;;  %v21255_v8 = vld [vmem:[#allocation77_spill] sm:$0xff] }
 0x3e8   : > { %21244 = vst [vmem:[#allocation107_spill] sm:$0xff] %v20185_v26  ;;  %v16004_v46 = vadd.f32 %v4401_v31, %v20160_v57  ;;  %v4403_v38 = vpop.f32.mrb[105].mxu1  ;;  %10432 = vmatpush1.bf16.msra.mxu1 %v15196_v62  ;;  %9981 = vmatprep.subr.bf16.mxu0 %v15459_v16  ;;  %v5225_v31 = vld [vmem:[#allocation8 + $0xee8] sm:$0xff]  ;;  %v15475_v16 = vcombine.high %v5476_v41, %v5480_v40 }
 0x3e9   : > { %21246 = vst [vmem:[#allocation108_spill] sm:$0xff] %v20188_v13  ;;  %v16005_v1 = vadd.f32 %v4403_v38, %v20163_v2  ;;  %v4405_v30 = vpop.f32.mrb[106].mxu1  ;;  %10433 = vmatprep.subr.bf16.mxu1 %v15205_v50  ;;  %v21251_v38 = vld [vmem:[#allocation97_spill] sm:$0xff] }
 0x3ea   : > { %v16006_v20 = vadd.f32 %v4405_v30, %v20160_v57  ;;  %v4407_v44 = vpop.f32.mrb[107].mxu1  ;;  %v4518_v36 = vmax.f32 %v16004_v46, 0.0  ;;  %v15221_v30 = vcombine.high %v5221_v54, %v5225_v31  ;;  %v21253_v46 = vld [vmem:[#allocation71_spill] sm:$0xff] }
 0x3eb   : > { %v16007_v12 = vadd.f32 %v4407_v44, %v20163_v2  ;;  %9982 = vmatpush1.bf16.msra.mxu0 %v15458_v15  ;;  %v4519_v62 = vmax.f32 %v16005_v1, 0.0  ;;  %v5488_v44 = vld [vmem:[#allocation8 + $0x1720] sm:$0xff]  ;;  %v15474_v1 = vcombine.low %v5476_v41, %v5480_v40 }
 0x3ec   : > { %v4530_v24 = vmax.f32 %v16006_v20, 0.0  ;;  %10434 = vmatpush1.bf16.msra.mxu1 %v15204_v27  ;;  %9983 = vmatprep.subr.bf16.mxu0 %v15467_v61  ;;  %v21254_v15 = vld [vmem:[#allocation100_spill] sm:$0xff]  ;;  %v15220_v61 = vcombine.low %v5221_v54, %v5225_v31  ;;  %v15482_v40 = vcombine.low %v5484_v32, %v5488_v44 }
 0x3ed   : > { %v4531_v11 = vmax.f32 %v16007_v12, 0.0  ;;  %9933 = vmatmul.mubr.bf16.gmra.mrb[116].mxu0 %v21251_v38  ;;  %10435 = vmatprep.subr.bf16.mxu1 %v15213_v22  ;;  %v5233_v12 = vld [vmem:[#allocation8 + $0xf28] sm:$0xff]  ;;  %v15483_v22 = vcombine.high %v5484_v32, %v5488_v44 }
 0x3ee   : > { %v20197_v50 = vpack.c.bf16 %v4530_v24, %v4518_v36  ;;  %10385 = vmatmul.mubr.bf16.gmra.mrb[148].mxu1 %v21253_v46  ;;  %9942 = vmatprep.mubr.bf16.mxu0 %v21254_v15  ;;  %v5492_v46 = vld [vmem:[#allocation8 + $0x1740] sm:$0xff]  ;;  %v15228_v31 = vcombine.low %v5229_v29, %v5233_v12  ;;  %v5245_v44 = vld [vmem:[#allocation8 + $0xf88] sm:$0xff] }
 0x3ef   : > { %v20200_v42 = vpack.c.bf16 %v4531_v11, %v4519_v62  ;;  %v4411_v3 = vpop.f32.mrb[108].mxu1  ;;  %9984 = vmatpush1.bf16.msra.mxu0 %v15466_v59  ;;  %10394 = vmatprep.mubr.bf16.mxu1 %v21255_v8  ;;  %v15229_v11 = vcombine.high %v5229_v29, %v5233_v12  ;;  %v5496_v59 = vld [vmem:[#allocation8 + $0x1760] sm:$0xff]  ;;  %v21260_v29 = vld [vmem:[#allocation81_spill] sm:$0xff] }
 0x3f0   : > { %21250 = vst [vmem:[#allocation109_spill] sm:$0xff] %v20197_v50  ;;  %v16008_v36 = vadd.f32 %v4411_v3, %v20160_v57  ;;  %v4413_v19 = vpop.f32.mrb[109].mxu1  ;;  %10436 = vmatpush1.bf16.msra.mxu1 %v15212_v35  ;;  %9985 = vmatprep.subr.bf16.mxu0 %v15475_v16  ;;  %v5241_v3 = vld [vmem:[#allocation8 + $0xf68] sm:$0xff]  ;;  %v15491_v16 = vcombine.high %v5492_v46, %v5496_v59 }
 0x3f1   : > { %21252 = vst [vmem:[#allocation110_spill] sm:$0xff] %v20200_v42  ;;  %v16009_v27 = vadd.f32 %v4413_v19, %v20163_v2  ;;  %v4415_v20 = vpop.f32.mrb[110].mxu1  ;;  %10437 = vmatprep.subr.bf16.mxu1 %v15221_v30  ;;  %v21257_v19 = vld [vmem:[#allocation99_spill] sm:$0xff] }
 0x3f2   : > { %v16010_v24 = vadd.f32 %v4415_v20, %v20160_v57  ;;  %v4417_v62 = vpop.f32.mrb[111].mxu1  ;;  %v4542_v21 = vmax.f32 %v16008_v36, 0.0  ;;  %v15237_v20 = vcombine.high %v5237_v39, %v5241_v3  ;;  %v21259_v36 = vld [vmem:[#allocation75_spill] sm:$0xff] }
 0x3f3   : > { %v16011_v8 = vadd.f32 %v4417_v62, %v20163_v2  ;;  %9986 = vmatpush1.bf16.msra.mxu0 %v15474_v1  ;;  %v4543_v35 = vmax.f32 %v16009_v27, 0.0  ;;  %v5504_v62 = vld [vmem:[#allocation8 + $0x17a0] sm:$0xff]  ;;  %v15490_v1 = vcombine.low %v5492_v46, %v5496_v59 }
 0x3f4   : > { %v4554_v41 = vmax.f32 %v16010_v24, 0.0  ;;  %10438 = vmatpush1.bf16.msra.mxu1 %v15220_v61  ;;  %9987 = vmatprep.subr.bf16.mxu0 %v15483_v22  ;;  %v15236_v61 = vcombine.low %v5237_v39, %v5241_v3  ;;  %v15499_v24 = vcombine.high %v5500_v6, %v5504_v62  ;;  %v15498_v59 = vcombine.low %v5500_v6, %v5504_v62  ;;  %v5261_v62 = vld [vmem:[#allocation8 + $0x1008] sm:$0xff] }
 0x3f5   : > { %v4555_v54 = vmax.f32 %v16011_v8, 0.0  ;;  %9943 = vmatmul.mubr.bf16.gmra.mrb[120].mxu0 %v21257_v19  ;;  %10439 = vmatprep.subr.bf16.mxu1 %v15229_v11  ;;  %v5249_v8 = vld [vmem:[#allocation8 + $0xfa8] sm:$0xff] }
 0x3f6   : > { %v20209_v30 = vpack.c.bf16 %v4554_v41, %v4542_v21  ;;  %10395 = vmatmul.mubr.bf16.gmra.mrb[152].mxu1 %v21259_v36  ;;  %9952 = vmatprep.mubr.bf16.mxu0 %v20127_v37  ;;  %v5253_v36 = vld [vmem:[#allocation8 + $0xfc8] sm:$0xff]  ;;  %v15244_v3 = vcombine.low %v5245_v44, %v5249_v8 }
 0x3f7   : > { %v20212_v55 = vpack.c.bf16 %v4555_v54, %v4543_v35  ;;  %v4421_v32 = vpop.f32.mrb[112].mxu1  ;;  %9988 = vmatpush1.bf16.msra.mxu0 %v15482_v40  ;;  %10404 = vmatprep.mubr.bf16.mxu1 %v21260_v29  ;;  %v15245_v35 = vcombine.high %v5245_v44, %v5249_v8  ;;  %v5508_v54 = vld [vmem:[#allocation8 + $0x17c0] sm:$0xff] }
 0x3f8   : > { %21256 = vst [vmem:[#allocation111_spill] sm:$0xff] %v20209_v30  ;;  %v16012_v21 = vadd.f32 %v4421_v32, %v20160_v57  ;;  %v4423_v12 = vpop.f32.mrb[113].mxu1  ;;  %10440 = vmatpush1.bf16.msra.mxu1 %v15228_v31  ;;  %9989 = vmatprep.subr.bf16.mxu0 %v15491_v16  ;;  %v5512_v40 = vld [vmem:[#allocation8 + $0x17e0] sm:$0xff]  ;;  %v5257_v32 = vld [vmem:[#allocation8 + $0xfe8] sm:$0xff] }
 0x3f9   : > { %21258 = vst [vmem:[#allocation112_spill] sm:$0xff] %v20212_v55  ;;  %v16013_v27 = vadd.f32 %v4423_v12, %v20163_v2  ;;  %v4425_v22 = vpop.f32.mrb[114].mxu1  ;;  %10441 = vmatprep.subr.bf16.mxu1 %v15237_v20  ;;  %v15507_v16 = vcombine.high %v5508_v54, %v5512_v40  ;;  %v15253_v12 = vcombine.high %v5253_v36, %v5257_v32  ;;  %v21264_v44 = vld [vmem:[#allocation84_spill] sm:$0xff] }
 0x3fa   : > { %v16014_v11 = vadd.f32 %v4425_v22, %v20160_v57  ;;  %v4427_v41 = vpop.f32.mrb[115].mxu1  ;;  %v4566_v23 = vmax.f32 %v16012_v21, 0.0  ;;  %v4750_v22 = vld [vmem:[#allocation8 + $0x10] sm:$0xff]  ;;  %v21263_v21 = vld [vmem:[#allocation79_spill] sm:$0xff] }
 0x3fb   : > { %v16015_v29 = vadd.f32 %v4427_v41, %v20163_v2  ;;  %9990 = vmatpush1.bf16.msra.mxu0 %v15490_v1  ;;  %v4567_v31 = vmax.f32 %v16013_v27, 0.0  ;;  %v4754_v41 = vld [vmem:[#allocation8 + $0x30] sm:$0xff]  ;;  %v15506_v1 = vcombine.low %v5508_v54, %v5512_v40 }
 0x3fc   : > { %v4578_v46 = vmax.f32 %v16014_v11, 0.0  ;;  %10442 = vmatpush1.bf16.msra.mxu1 %v15236_v61  ;;  %9991 = vmatprep.subr.bf16.mxu0 %v15499_v24  ;;  %v15252_v61 = vcombine.low %v5253_v36, %v5257_v32  ;;  %v14751_v11 = vcombine.high %v4750_v22, %v4754_v41  ;;  %v4758_v54 = vld [vmem:[#allocation8 + $0x50] sm:$0xff] }
 0x3fd   : > { %v4579_v39 = vmax.f32 %v16015_v29, 0.0  ;;  %9953 = vmatmul.mubr.bf16.gmra.mrb[124].mxu0 %v20121_v5  ;;  %10443 = vmatprep.subr.bf16.mxu1 %v15245_v35  ;;  %v5265_v29 = vld [vmem:[#allocation8 + $0x1028] sm:$0xff]  ;;  %v4762_v40 = vld [vmem:[#allocation8 + $0x70] sm:$0xff] }
 0x3fe   : > { %v20221_v20 = vpack.c.bf16 %v4578_v46, %v4566_v23  ;;  %10405 = vmatmul.mubr.bf16.gmra.mrb[156].mxu1 %v21263_v21  ;;  %9995 = vmatprep.mubr.bf16.mxu0 %v20176_v33  ;;  %v15260_v36 = vcombine.low %v5261_v62, %v5265_v29  ;;  %v21267_v33 = vld [vmem:[#allocation82_spill] sm:$0xff] }
 0x3ff   : > { %v20224_v37 = vpack.c.bf16 %v4579_v39, %v4567_v31  ;;  %v4431_v6 = vpop.f32.mrb[116].mxu1  ;;  %9992 = vmatpush1.bf16.msra.mxu0 %v15498_v59  ;;  %10447 = vmatprep.mubr.bf16.mxu1 %v21264_v44  ;;  %v15261_v31 = vcombine.high %v5261_v62, %v5265_v29  ;;  %v5269_v39 = vld [vmem:[#allocation8 + $0x1048] sm:$0xff]  ;;  %v4778_v5 = vld [vmem:[#allocation8 + $0xf0] sm:$0xff] }
 0x400   : > { %21261 = vst [vmem:[#allocation113_spill] sm:$0xff] %v20221_v20  ;;  %v16016_v23 = vadd.f32 %v4431_v6, %v20160_v57  ;;  %v4433_v8 = vpop.f32.mrb[117].mxu1  ;;  %10444 = vmatpush1.bf16.msra.mxu1 %v15244_v3  ;;  %9993 = vmatprep.subr.bf16.mxu0 %v15507_v16  ;;  %v5273_v44 = vld [vmem:[#allocation8 + $0x1068] sm:$0xff] }
 0x401   : > { %21262 = vst [vmem:[#allocation114_spill] sm:$0xff] %v20224_v37  ;;  %v16017_v27 = vadd.f32 %v4433_v8, %v20163_v2  ;;  %v4435_v24 = vpop.f32.mrb[118].mxu1  ;;  %10445 = vmatprep.subr.bf16.mxu1 %v15253_v12  ;;  %v14750_v12 = vcombine.low %v4750_v22, %v4754_v41  ;;  %v15269_v8 = vcombine.high %v5269_v39, %v5273_v44 }
 0x402   : > { %v16018_v35 = vadd.f32 %v4435_v24, %v20160_v57  ;;  %v4437_v46 = vpop.f32.mrb[119].mxu1  ;;  %v4590_v21 = vmax.f32 %v16016_v23, 0.0  ;;  %v14759_v23 = vcombine.high %v4758_v54, %v4762_v40  ;;  %v15268_v41 = vcombine.low %v5269_v39, %v5273_v44 }
 0x403   : > { %v16019_v59 = vadd.f32 %v4437_v46, %v20163_v2  ;;  %9994 = vmatpush1.bf16.msra.mxu0 %v15506_v1  ;;  %v4591_v3 = vmax.f32 %v16017_v27, 0.0  ;;  %v5281_v1 = vld [vmem:[#allocation8 + $0x10a8] sm:$0xff]  ;;  %v4770_v27 = vld [vmem:[#allocation8 + $0xb0] sm:$0xff] }
 0x404   : > { %v4602_v6 = vmax.f32 %v16018_v35, 0.0  ;;  %10446 = vmatpush1.bf16.msra.mxu1 %v15252_v61  ;;  %10754 = vmatprep.subr.bf16.mxu0 %v14751_v11  ;;  %v5277_v35 = vld [vmem:[#allocation8 + $0x1088] sm:$0xff] }
 0x405   : > { %v4603_v16 = vmax.f32 %v16019_v59, 0.0  ;;  %10528 = vmatprep.subr.bf16.mxu1 %v15261_v31  ;;  %v21268_v61 = vld [vmem:[#allocation88_spill] sm:$0xff]  ;;  %v14758_v31 = vcombine.low %v4758_v54, %v4762_v40  ;;  %v15276_v39 = vcombine.low %v5277_v35, %v5281_v1 }
 0x406   : > { %v20233_v32 = vpack.c.bf16 %v4602_v6, %v4590_v21  ;;  %9996 = vmatmul.mubr.bf16.vlgmr.msra.gmra.mrb[96].mxu0 %v20173_v47  ;;  %v4766_v21 = vld [vmem:[#allocation8 + $0x90] sm:$0xff] }
 0x407   : > { %v20235_v24 = vpack.c.bf16 %v4603_v16, %v4591_v3  ;;  %v4441_v46 = vpop.f32.mrb[120].mxu1  ;;  %10448 = vmatmul.mubr.bf16.vlgmr.msra.gmra.mrb[128].mxu1 %v21267_v33  ;;  %10005 = vmatprep.mubr.bf16.mxu0 %v20188_v13  ;;  %v15277_v3 = vcombine.high %v5277_v35, %v5281_v1  ;;  %v5285_v33 = vld [vmem:[#allocation8 + $0x10c8] sm:$0xff]  ;;  %v14766_v54 = vcombine.low %v4766_v21, %v4770_v27  ;;  %v4782_v1 = vld [vmem:[#allocation8 + $0x110] sm:$0xff] }
 0x408   : > { %21265 = vst [vmem:[#allocation115_spill] sm:$0xff] %v20233_v32  ;;  %v16020_v62 = vadd.f32 %v4441_v46, %v20160_v57  ;;  %v4443_v29 = vpop.f32.mrb[121].mxu1  ;;  %10457 = vmatprep.mubr.bf16.mxu1 %v21268_v61  ;;  %10529 = vmatpush1.bf16.msra.mxu1 %v15260_v36  ;;  %v14767_v46 = vcombine.high %v4766_v21, %v4770_v27  ;;  %v5289_v13 = vld [vmem:[#allocation8 + $0x10e8] sm:$0xff]  ;;  %v4774_v36 = vld [vmem:[#allocation8 + $0xd0] sm:$0xff]  ;;  %v21272_v21 = vld [vmem:[#allocation91_spill] sm:$0xff] }
 0x409   : > { %21266 = vst [vmem:[#allocation116_spill] sm:$0xff] %v20235_v24  ;;  %v16021_v22 = vadd.f32 %v4443_v29, %v20163_v2  ;;  %v4445_v11 = vpop.f32.mrb[122].mxu1  ;;  %10755 = vmatpush1.bf16.msra.mxu0 %v14750_v12  ;;  %10530 = vmatprep.subr.bf16.mxu1 %v15269_v8  ;;  %v15285_v40 = vcombine.high %v5285_v33, %v5289_v13 }
 0x40a   : > { %v16022_v59 = vadd.f32 %v4445_v11, %v20160_v57  ;;  %v4447_v6 = vpop.f32.mrb[123].mxu1  ;;  %10756 = vmatprep.subr.bf16.mxu0 %v14759_v23  ;;  %v4614_v47 = vmax.f32 %v16020_v62, 0.0  ;;  %v14775_v62 = vcombine.high %v4774_v36, %v4778_v5  ;;  %v5293_v11 = vld [vmem:[#allocation8 + $0x1108] sm:$0xff] }
 0x40b   : > { %v16023_v16 = vadd.f32 %v4447_v6, %v20163_v2  ;;  %v4615_v29 = vmax.f32 %v16021_v22, 0.0  ;;  %v21271_v6 = vld [vmem:[#allocation86_spill] sm:$0xff]  ;;  %v15284_v22 = vcombine.low %v5285_v33, %v5289_v13 }
 0x40c   : > { %v4626_v61 = vmax.f32 %v16022_v59, 0.0  ;;  %10531 = vmatpush1.bf16.msra.mxu1 %v15268_v41  ;;  %v5297_v59 = vld [vmem:[#allocation8 + $0x1128] sm:$0xff] }
 0x40d   : > { %v4627_v44 = vmax.f32 %v16023_v16, 0.0  ;;  %10757 = vmatpush1.bf16.msra.mxu0 %v14758_v31  ;;  %10532 = vmatprep.subr.bf16.mxu1 %v15277_v3  ;;  %v14774_v31 = vcombine.low %v4774_v36, %v4778_v5  ;;  %v15292_v13 = vcombine.low %v5293_v11, %v5297_v59 }
 0x40e   : > { %v20245_v12 = vpack.c.bf16 %v4626_v61, %v4614_v47  ;;  %10006 = vmatmul.mubr.bf16.gmra.mrb[100].mxu0 %v20185_v26  ;;  %10758 = vmatprep.subr.bf16.mxu0 %v14767_v46  ;;  %v4786_v61 = vld [vmem:[#allocation8 + $0x130] sm:$0xff]  ;;  %v15293_v46 = vcombine.high %v5293_v11, %v5297_v59 }
 0x40f   : > { %v20247_v8 = vpack.c.bf16 %v4627_v44, %v4615_v29  ;;  %v4451_v23 = vpop.f32.mrb[124].mxu1  ;;  %10458 = vmatmul.mubr.bf16.gmra.mrb[132].mxu1 %v21271_v6  ;;  %10015 = vmatprep.mubr.bf16.mxu0 %v20200_v42  ;;  %v14783_v44 = vcombine.high %v4782_v1, %v4786_v61  ;;  %v5305_v6 = vld [vmem:[#allocation8 + $0x1168] sm:$0xff]  ;;  %v4794_v26 = vld [vmem:[#allocation8 + $0x170] sm:$0xff]  ;;  %v14782_v5 = vcombine.low %v4782_v1, %v4786_v61 }
 0x410   : > { %21269 = vst [vmem:[#allocation117_spill] sm:$0xff] %v20245_v12  ;;  %v16024_v47 = vadd.f32 %v4451_v23, %v20160_v57  ;;  %v4453_v35 = vpop.f32.mrb[125].mxu1  ;;  %10467 = vmatprep.mubr.bf16.mxu1 %v21272_v21  ;;  %10533 = vmatpush1.bf16.msra.mxu1 %v15276_v39  ;;  %v5301_v23 = vld [vmem:[#allocation8 + $0x1148] sm:$0xff]  ;;  %v4790_v39 = vld [vmem:[#allocation8 + $0x150] sm:$0xff] }
 0x411   : > { %21270 = vst [vmem:[#allocation118_spill] sm:$0xff] %v20247_v8  ;;  %v16025_v27 = vadd.f32 %v4453_v35, %v20163_v2  ;;  %v4455_v41 = vpop.f32.mrb[126].mxu1  ;;  %10759 = vmatpush1.bf16.msra.mxu0 %v14766_v54  ;;  %10534 = vmatprep.subr.bf16.mxu1 %v15285_v40  ;;  %v5309_v40 = vld [vmem:[#allocation8 + $0x1188] sm:$0xff]  ;;  %v4802_v11 = vld [vmem:[#allocation8 + $0x1b0] sm:$0xff]  ;;  %v14790_v59 = vcombine.low %v4790_v39, %v4794_v26 }
 0x412   : > { %v16026_v3 = vadd.f32 %v4455_v41, %v20160_v57  ;;  %v4457_v16 = vpop.f32.mrb[127].mxu1  ;;  %10760 = vmatprep.subr.bf16.mxu0 %v14775_v62  ;;  %v4638_v42 = vmax.f32 %v16024_v47, 0.0  ;;  %v15301_v57 = vcombine.high %v5301_v23, %v5305_v6  ;;  %v5313_v62 = vld [vmem:[#allocation8 + $0x11a8] sm:$0xff]  ;;  %v4798_v47 = vld [vmem:[#allocation8 + $0x190] sm:$0xff] }
 0x413   : > { %v16027_v29 = vadd.f32 %v4457_v16, %v20163_v2  ;;  %v4639_v35 = vmax.f32 %v16025_v27, 0.0  ;;  %v14791_v2 = vcombine.high %v4790_v39, %v4794_v26  ;;  %v15309_v1 = vcombine.high %v5309_v40, %v5313_v62  ;;  %v5321_v27 = vld [vmem:[#allocation8 + $0x11e8] sm:$0xff]  ;;  %v4810_v41 = vld [vmem:[#allocation8 + $0x1f0] sm:$0xff] }
 0x414   : > { %v4650_v21 = vmax.f32 %v16026_v3, 0.0  ;;  %10535 = vmatpush1.bf16.msra.mxu1 %v15284_v22  ;;  %v14799_v61 = vcombine.high %v4798_v47, %v4802_v11  ;;  %v4806_v22 = vld [vmem:[#allocation8 + $0x1d0] sm:$0xff]  ;;  %v14798_v3 = vcombine.low %v4798_v47, %v4802_v11 }
 0x415   : > { %v4651_v33 = vmax.f32 %v16027_v29, 0.0  ;;  %10761 = vmatpush1.bf16.msra.mxu0 %v14774_v31  ;;  %10536 = vmatprep.subr.bf16.mxu1 %v15293_v46  ;;  %v15308_v31 = vcombine.low %v5309_v40, %v5313_v62  ;;  %v5325_v46 = vld [vmem:[#allocation8 + $0x1208] sm:$0xff]  ;;  %v4814_v26 = vld [vmem:[#allocation8 + $0x210] sm:$0xff]  ;;  %v14806_v39 = vcombine.low %v4806_v22, %v4810_v41 }
 0x416   : > { %v20257_v54 = vpack.c.bf16 %v4650_v21, %v4638_v42  ;;  %10016 = vmatmul.mubr.bf16.gmra.mrb[104].mxu0 %v20197_v50  ;;  %10762 = vmatprep.subr.bf16.mxu0 %v14783_v44  ;;  %v15300_v42 = vcombine.low %v5301_v23, %v5305_v6  ;;  %v5317_v21 = vld [vmem:[#allocation8 + $0x11c8] sm:$0xff]  ;;  %v14807_v6 = vcombine.high %v4806_v22, %v4810_v41  ;;  %v4818_v44 = vld [vmem:[#allocation8 + $0x230] sm:$0xff] }
 0x417   : > { %v20259_v36 = vpack.c.bf16 %v4651_v33, %v4639_v35  ;;  %10468 = vmatmul.mubr.bf16.gmra.mrb[136].mxu1 %v19888_v9  ;;  %10025 = vmatprep.mubr.bf16.mxu0 %v20212_v55  ;;  %v15317_v16 = vcombine.high %v5317_v21, %v5321_v27  ;;  %v5329_v29 = vld [vmem:[#allocation8 + $0x1228] sm:$0xff]  ;;  %v15316_v23 = vcombine.low %v5317_v21, %v5321_v27 }
 0x418   : > { %21273 = vst [vmem:[#allocation119_spill] sm:$0xff] %v20257_v54  ;;  %10477 = vmatprep.mubr.bf16.mxu1 %v19947_v48  ;;  %10537 = vmatpush1.bf16.msra.mxu1 %v15292_v13  ;;  %v15325_v35 = vcombine.high %v5325_v46, %v5329_v29  ;;  %v14815_v33 = vcombine.high %v4814_v26, %v4818_v44  ;;  %v5333_v13 = vld [vmem:[#allocation8 + $0x1248] sm:$0xff] }
 0x419   : > { %21274 = vst [vmem:[#allocation120_spill] sm:$0xff] %v20259_v36  ;;  %10763 = vmatpush1.bf16.msra.mxu0 %v14782_v5  ;;  %10538 = vmatprep.subr.bf16.mxu1 %v15301_v57  ;;  %v5337_v5 = vld [vmem:[#allocation8 + $0x1268] sm:$0xff]  ;;  %v4822_v57 = vld [vmem:[#allocation8 + $0x250] sm:$0xff]  ;;  %v15324_v40 = vcombine.low %v5325_v46, %v5329_v29  ;;  %v14814_v62 = vcombine.low %v4814_v26, %v4818_v44 }
 0x41a   : > { %10764 = vmatprep.subr.bf16.mxu0 %v14791_v2  ;;  %v4826_v2 = vld [vmem:[#allocation8 + $0x270] sm:$0xff]  ;;  %v15333_v47 = vcombine.high %v5333_v13, %v5337_v5  ;;  %v15332_v21 = vcombine.low %v5333_v13, %v5337_v5 }
 0x41b   : > { %v14823_v11 = vcombine.high %v4822_v57, %v4826_v2  ;;  %v14822_v27 = vcombine.low %v4822_v57, %v4826_v2 }
 0x41c   : > { %10539 = vmatpush1.bf16.msra.mxu1 %v15300_v42  ;;  %v5341_v42 = vld [vmem:[#allocation8 + $0x1288] sm:$0xff] }
 0x41d   : > { %10765 = vmatpush1.bf16.msra.mxu0 %v14790_v59  ;;  %10540 = vmatprep.subr.bf16.mxu1 %v15309_v1  ;;  %v5345_v59 = vld [vmem:[#allocation8 + $0x12a8] sm:$0xff]  ;;  %v4830_v1 = vld [vmem:[#allocation8 + $0x290] sm:$0xff] }
 0x41e   : > { %10026 = vmatmul.mubr.bf16.gmra.mrb[108].mxu0 %v20209_v30  ;;  %10766 = vmatprep.subr.bf16.mxu0 %v14799_v61  ;;  %v4834_v61 = vld [vmem:[#allocation8 + $0x2b0] sm:$0xff]  ;;  %v15341_v22 = vcombine.high %v5341_v42, %v5345_v59  ;;  %v15340_v46 = vcombine.low %v5341_v42, %v5345_v59 }
 0x41f   : > { %10478 = vmatmul.mubr.bf16.gmra.mrb[140].mxu1 %v19940_v43  ;;  %10035 = vmatprep.mubr.bf16.mxu0 %v20224_v37  ;;  %v14831_v41 = vcombine.high %v4830_v1, %v4834_v61  ;;  %v14830_v29 = vcombine.low %v4830_v1, %v4834_v61 }
 0x420   : > { %10487 = vmatprep.mubr.bf16.mxu1 %v19999_v45  ;;  %10541 = vmatpush1.bf16.msra.mxu1 %v15308_v31  ;;  %v5349_v31 = vld [vmem:[#allocation8 + $0x12c8] sm:$0xff] }
 0x421   : > { %10767 = vmatpush1.bf16.msra.mxu0 %v14798_v3  ;;  %10542 = vmatprep.subr.bf16.mxu1 %v15317_v16  ;;  %v5353_v3 = vld [vmem:[#allocation8 + $0x12e8] sm:$0xff]  ;;  %v4838_v16 = vld [vmem:[#allocation8 + $0x2d0] sm:$0xff] }
 0x422   : > { %10768 = vmatprep.subr.bf16.mxu0 %v14807_v6  ;;  %v4842_v6 = vld [vmem:[#allocation8 + $0x2f0] sm:$0xff]  ;;  %v15349_v26 = vcombine.high %v5349_v31, %v5353_v3  ;;  %v15348_v13 = vcombine.low %v5349_v31, %v5353_v3 }
 0x423   : > { %v14839_v44 = vcombine.high %v4838_v16, %v4842_v6  ;;  %v14838_v5 = vcombine.low %v4838_v16, %v4842_v6 }
 0x424   : > { %10543 = vmatpush1.bf16.msra.mxu1 %v15316_v23  ;;  %v5357_v23 = vld [vmem:[#allocation8 + $0x1308] sm:$0xff] }
 0x425   : > { %10769 = vmatpush1.bf16.msra.mxu0 %v14806_v39  ;;  %10544 = vmatprep.subr.bf16.mxu1 %v15325_v35  ;;  %v5361_v39 = vld [vmem:[#allocation8 + $0x1328] sm:$0xff]  ;;  %v4846_v35 = vld [vmem:[#allocation8 + $0x310] sm:$0xff] }
 0x426   : > { %10036 = vmatmul.mubr.bf16.gmra.mrb[112].mxu0 %v20221_v20  ;;  %10770 = vmatprep.subr.bf16.mxu0 %v14815_v33  ;;  %v4850_v33 = vld [vmem:[#allocation8 + $0x330] sm:$0xff]  ;;  %v15357_v57 = vcombine.high %v5357_v23, %v5361_v39  ;;  %v15356_v42 = vcombine.low %v5357_v23, %v5361_v39 }
 0x427   : > { %10488 = vmatmul.mubr.bf16.gmra.mrb[144].mxu1 %v19992_v4  ;;  %10045 = vmatprep.mubr.bf16.mxu0 %v20235_v24  ;;  %v14847_v2 = vcombine.high %v4846_v35, %v4850_v33  ;;  %v14846_v59 = vcombine.low %v4846_v35, %v4850_v33 }
 0x428   : > { %10497 = vmatprep.mubr.bf16.mxu1 %v20048_v17  ;;  %10545 = vmatpush1.bf16.msra.mxu1 %v15324_v40  ;;  %v5365_v40 = vld [vmem:[#allocation8 + $0x1348] sm:$0xff] }
 0x429   : > { %10771 = vmatpush1.bf16.msra.mxu0 %v14814_v62  ;;  %10546 = vmatprep.subr.bf16.mxu1 %v15333_v47  ;;  %v5369_v62 = vld [vmem:[#allocation8 + $0x1368] sm:$0xff]  ;;  %v4854_v47 = vld [vmem:[#allocation8 + $0x350] sm:$0xff] }
 0x42a   : > { %10772 = vmatprep.subr.bf16.mxu0 %v14823_v11  ;;  %v4858_v11 = vld [vmem:[#allocation8 + $0x370] sm:$0xff]  ;;  %v15365_v1 = vcombine.high %v5365_v40, %v5369_v62  ;;  %v15364_v31 = vcombine.low %v5365_v40, %v5369_v62 }
 0x42b   : > { %v14855_v61 = vcombine.high %v4854_v47, %v4858_v11  ;;  %v14854_v3 = vcombine.low %v4854_v47, %v4858_v11  ;;  %v4882_v40 = vld [vmem:[#allocation8 + $0x430] sm:$0xff] }
 0x42c   : > { %10547 = vmatpush1.bf16.msra.mxu1 %v15332_v21  ;;  %v5373_v21 = vld [vmem:[#allocation8 + $0x1388] sm:$0xff] }
 0x42d   : > { %10773 = vmatpush1.bf16.msra.mxu0 %v14822_v27  ;;  %10548 = vmatprep.subr.bf16.mxu1 %v15341_v22  ;;  %v5377_v27 = vld [vmem:[#allocation8 + $0x13a8] sm:$0xff]  ;;  %v4862_v22 = vld [vmem:[#allocation8 + $0x390] sm:$0xff] }
 0x42e   : > { %10046 = vmatmul.mubr.bf16.gmra.mrb[116].mxu0 %v20233_v32  ;;  %10774 = vmatprep.subr.bf16.mxu0 %v14831_v41  ;;  %v4866_v41 = vld [vmem:[#allocation8 + $0x3b0] sm:$0xff]  ;;  %v15373_v16 = vcombine.high %v5373_v21, %v5377_v27  ;;  %v15372_v23 = vcombine.low %v5373_v21, %v5377_v27 }
 0x42f   : > { %10498 = vmatmul.mubr.bf16.gmra.mrb[148].mxu1 %v20036_v28  ;;  %10055 = vmatprep.mubr.bf16.mxu0 %v20247_v8  ;;  %v14863_v6 = vcombine.high %v4862_v22, %v4866_v41  ;;  %v14862_v39 = vcombine.low %v4862_v22, %v4866_v41  ;;  %v4890_v21 = vld [vmem:[#allocation8 + $0x470] sm:$0xff] }
 0x430   : > { %10507 = vmatprep.mubr.bf16.mxu1 %v20096_v60  ;;  %10549 = vmatpush1.bf16.msra.mxu1 %v15340_v46  ;;  %v5381_v46 = vld [vmem:[#allocation8 + $0x13c8] sm:$0xff] }
 0x431   : > { %10775 = vmatpush1.bf16.msra.mxu0 %v14830_v29  ;;  %10550 = vmatprep.subr.bf16.mxu1 %v15349_v26  ;;  %v5385_v29 = vld [vmem:[#allocation8 + $0x13e8] sm:$0xff]  ;;  %v4870_v26 = vld [vmem:[#allocation8 + $0x3d0] sm:$0xff] }
 0x432   : > { %10776 = vmatprep.subr.bf16.mxu0 %v14839_v44  ;;  %v4874_v44 = vld [vmem:[#allocation8 + $0x3f0] sm:$0xff]  ;;  %v15381_v35 = vcombine.high %v5381_v46, %v5385_v29  ;;  %v15380_v62 = vcombine.low %v5381_v46, %v5385_v29 }
 0x433   : > { %v14871_v33 = vcombine.high %v4870_v26, %v4874_v44  ;;  %v14870_v47 = vcombine.low %v4870_v26, %v4874_v44  ;;  %v4894_v46 = vld [vmem:[#allocation8 + $0x490] sm:$0xff]  ;;  %v21277_v26 = vld [vmem:[#allocation35_spill] sm:$0xff] }
 0x434   : > { %10551 = vmatpush1.bf16.msra.mxu1 %v15348_v13  ;;  %v5389_v13 = vld [vmem:[#allocation8 + $0x1408] sm:$0xff]  ;;  %v4898_v29 = vld [vmem:[#allocation8 + $0x4b0] sm:$0xff] }
 0x435   : > { %10777 = vmatpush1.bf16.msra.mxu0 %v14838_v5  ;;  %10552 = vmatprep.subr.bf16.mxu1 %v15357_v57  ;;  %v5393_v5 = vld [vmem:[#allocation8 + $0x1428] sm:$0xff] }
 0x436   : > { %10056 = vmatmul.mubr.bf16.gmra.mrb[120].mxu0 %v20245_v12  ;;  %10778 = vmatprep.subr.bf16.mxu0 %v14847_v2  ;;  %v21275_v57 = vld [vmem:[#allocation33_spill] sm:$0xff]  ;;  %v15389_v11 = vcombine.high %v5389_v13, %v5393_v5  ;;  %v15388_v27 = vcombine.low %v5389_v13, %v5393_v5 }
 0x437   : > { %10508 = vmatmul.mubr.bf16.gmra.mrb[152].mxu1 %v20088_v51  ;;  %10065 = vmatprep.mubr.bf16.mxu0 %v20259_v36  ;;  %v4878_v2 = vld [vmem:[#allocation8 + $0x410] sm:$0xff]  ;;  %v5417_v13 = vld [vmem:[#allocation8 + $0x14e8] sm:$0xff] }
 0x438   : > { %10517 = vmatprep.mubr.bf16.mxu1 %v20125_v52  ;;  %10553 = vmatpush1.bf16.msra.mxu1 %v15356_v42  ;;  %v14879_v42 = vcombine.high %v4878_v2, %v4882_v40  ;;  %v14878_v22 = vcombine.low %v4878_v2, %v4882_v40  ;;  %v4902_v5 = vld [vmem:[#allocation8 + $0x4d0] sm:$0xff] }
 0x439   : > { %10779 = vmatpush1.bf16.msra.mxu0 %v14846_v59  ;;  %10554 = vmatprep.subr.bf16.mxu1 %v15365_v1  ;;  %v5397_v59 = vld [vmem:[#allocation8 + $0x1448] sm:$0xff]  ;;  %v4906_v2 = vld [vmem:[#allocation8 + $0x4f0] sm:$0xff] }
 0x43a   : > { %10780 = vmatprep.subr.bf16.mxu0 %v14855_v61  ;;  %v5401_v1 = vld [vmem:[#allocation8 + $0x1468] sm:$0xff]  ;;  %v4886_v61 = vld [vmem:[#allocation8 + $0x450] sm:$0xff] }
 0x43b   : > { %v15397_v41 = vcombine.high %v5397_v59, %v5401_v1  ;;  %v15396_v44 = vcombine.low %v5397_v59, %v5401_v1  ;;  %v5425_v59 = vld [vmem:[#allocation8 + $0x1528] sm:$0xff]  ;;  %v21278_v1 = vld [vmem:[#allocation34_spill] sm:$0xff] }
 0x43c   : > { %10555 = vmatpush1.bf16.msra.mxu1 %v15364_v31  ;;  %v14887_v31 = vcombine.high %v4886_v61, %v4890_v21 }
 0x43d   : > { %10781 = vmatpush1.bf16.msra.mxu0 %v14854_v3  ;;  %10556 = vmatprep.subr.bf16.mxu1 %v15373_v16  ;;  %v5405_v3 = vld [vmem:[#allocation8 + $0x1488] sm:$0xff] }
 0x43e   : > { %10066 = vmatmul.mubr.bf16.gmra.mrb[124].mxu0 %v20257_v54  ;;  %10782 = vmatprep.subr.bf16.mxu0 %v14863_v6  ;;  %v5409_v16 = vld [vmem:[#allocation8 + $0x14a8] sm:$0xff] }
 0x43f   : > { %10518 = vmatmul.mubr.bf16.gmra.mrb[156].mxu1 %v20119_v58  ;;  %10786 = vmatprep.mubr.bf16.mxu0 %v21275_v57  ;;  %v21276_v6 = vld [vmem:[#allocation32_spill] sm:$0xff]  ;;  %v15404_v40 = vcombine.low %v5405_v3, %v5409_v16  ;;  %v21299_v58 = vld [vmem:[#allocation107_spill] sm:$0xff] }
 0x440   : > { %10557 = vmatpush1.bf16.msra.mxu1 %v15372_v23  ;;  %10560 = vmatprep.mubr.bf16.mxu1 %v19793_v53  ;;  %v14886_v23 = vcombine.low %v4886_v61, %v4890_v21  ;;  %v4910_v61 = vld [vmem:[#allocation8 + $0x510] sm:$0xff] }
 0x441   : > { %10783 = vmatpush1.bf16.msra.mxu0 %v14862_v39  ;;  %10558 = vmatprep.subr.bf16.mxu1 %v15381_v35  ;;  %v15405_v39 = vcombine.high %v5405_v3, %v5409_v16  ;;  %v14895_v35 = vcombine.high %v4894_v46, %v4898_v29  ;;  %v4914_v21 = vld [vmem:[#allocation8 + $0x530] sm:$0xff]  ;;  %v5429_v16 = vld [vmem:[#allocation8 + $0x1548] sm:$0xff] }
 0x442   : > { %10784 = vmatprep.subr.bf16.mxu0 %v14871_v33  ;;  %v5413_v33 = vld [vmem:[#allocation8 + $0x14c8] sm:$0xff]  ;;  %v14911_v3 = vcombine.high %v4910_v61, %v4914_v21 }
 0x444   : > { %10559 = vmatpush1.bf16.msra.mxu1 %v15380_v62  ;;  %v14894_v62 = vcombine.low %v4894_v46, %v4898_v29  ;;  %v5433_v46 = vld [vmem:[#allocation8 + $0x1568] sm:$0xff]  ;;  %v4918_v29 = vld [vmem:[#allocation8 + $0x550] sm:$0xff] }
 0x445   : > { %10785 = vmatpush1.bf16.msra.mxu0 %v14870_v47  ;;  %10641 = vmatprep.subr.bf16.mxu1 %v15389_v11  ;;  %v15413_v47 = vcombine.high %v5413_v33, %v5417_v13  ;;  %v14903_v11 = vcombine.high %v4902_v5, %v4906_v2 }
 0x446   : > { %10867 = vmatprep.subr.bf16.mxu0 %v14879_v42  ;;  %v5421_v42 = vld [vmem:[#allocation8 + $0x1508] sm:$0xff] }
 0x447   : > { %10561 = vmatmul.mubr.bf16.vlgmr.msra.gmra.mrb[128].mxu1 %v19786_v0 }
 0x448   : > { %10787 = vmatmul.mubr.bf16.vlgmr.msra.gmra.mrb[128].mxu0 %v21276_v6  ;;  %10570 = vmatprep.mubr.bf16.mxu1 %v19845_v56  ;;  %v21295_v56 = vld [vmem:[#allocation105_spill] sm:$0xff] }
 0x449   : > { %10642 = vmatpush1.bf16.msra.mxu1 %v15388_v27  ;;  %10796 = vmatprep.mubr.bf16.mxu0 %v21277_v26  ;;  %v21279_v27 = vld [vmem:[#allocation37_spill] sm:$0xff] }
 0x44a   : > { %10868 = vmatpush1.bf16.msra.mxu0 %v14878_v22  ;;  %10643 = vmatprep.subr.bf16.mxu1 %v15397_v41  ;;  %v15412_v22 = vcombine.low %v5413_v33, %v5417_v13  ;;  %v14902_v41 = vcombine.low %v4902_v5, %v4906_v2  ;;  %v5437_v13 = vld [vmem:[#allocation8 + $0x1588] sm:$0xff]  ;;  %v4926_v2 = vld [vmem:[#allocation8 + $0x590] sm:$0xff] }
 0x44b   : > { %10869 = vmatprep.subr.bf16.mxu0 %v14887_v31  ;;  %v15421_v31 = vcombine.high %v5421_v42, %v5425_v59  ;;  %v21280_v5 = vld [vmem:[#allocation36_spill] sm:$0xff] }
 0x44d   : > { %10644 = vmatpush1.bf16.msra.mxu1 %v15396_v44  ;;  %v4922_v44 = vld [vmem:[#allocation8 + $0x570] sm:$0xff] }
 0x44e   : > { %10870 = vmatpush1.bf16.msra.mxu0 %v14886_v23  ;;  %10645 = vmatprep.subr.bf16.mxu1 %v15405_v39  ;;  %v15420_v23 = vcombine.low %v5421_v42, %v5425_v59  ;;  %v14910_v39 = vcombine.low %v4910_v61, %v4914_v21  ;;  %v14919_v33 = vcombine.high %v4918_v29, %v4922_v44  ;;  %v5445_v21 = vld [vmem:[#allocation8 + $0x15c8] sm:$0xff] }
 0x44f   : > { %10571 = vmatmul.mubr.bf16.gmra.mrb[132].mxu1 %v19838_v63  ;;  %10871 = vmatprep.subr.bf16.mxu0 %v14895_v35  ;;  %v15429_v35 = vcombine.high %v5429_v16, %v5433_v46  ;;  %v14918_v42 = vcombine.low %v4918_v29, %v4922_v44  ;;  %v21282_v29 = vld [vmem:[#allocation38_spill] sm:$0xff]  ;;  %v21294_v63 = vld [vmem:[#allocation52_spill] sm:$0xff] }
 0x450   : > { %10797 = vmatmul.mubr.bf16.gmra.mrb[132].mxu0 %v21278_v1  ;;  %10580 = vmatprep.mubr.bf16.mxu1 %v21230_v7  ;;  %v4942_v44 = vld [vmem:[#allocation8 + $0x610] sm:$0xff] }
 0x451   : > { %10646 = vmatpush1.bf16.msra.mxu1 %v15404_v40  ;;  %10806 = vmatprep.mubr.bf16.mxu0 %v21279_v27  ;;  %v5441_v40 = vld [vmem:[#allocation8 + $0x15a8] sm:$0xff] }
 0x452   : > { %10872 = vmatpush1.bf16.msra.mxu0 %v14894_v62  ;;  %10647 = vmatprep.subr.bf16.mxu1 %v15413_v47  ;;  %v4930_v62 = vld [vmem:[#allocation8 + $0x5b0] sm:$0xff]  ;;  %v21281_v47 = vld [vmem:[#allocation39_spill] sm:$0xff]  ;;  %v15437_v59 = vcombine.high %v5437_v13, %v5441_v40 }
 0x453   : > { %10873 = vmatprep.subr.bf16.mxu0 %v14903_v11  ;;  %v15428_v11 = vcombine.low %v5429_v16, %v5433_v46  ;;  %v14927_v61 = vcombine.high %v4926_v2, %v4930_v62  ;;  %v5453_v46 = vld [vmem:[#allocation8 + $0x1608] sm:$0xff] }
 0x455   : > { %10648 = vmatpush1.bf16.msra.mxu1 %v15412_v22  ;;  %v5449_v22 = vld [vmem:[#allocation8 + $0x15e8] sm:$0xff] }
 0x456   : > { %10874 = vmatpush1.bf16.msra.mxu0 %v14902_v41  ;;  %10649 = vmatprep.subr.bf16.mxu1 %v15421_v31  ;;  %v4934_v41 = vld [vmem:[#allocation8 + $0x5d0] sm:$0xff] }
 0x457   : > { %10581 = vmatmul.mubr.bf16.gmra.mrb[136].mxu1 %v21234_v49  ;;  %10875 = vmatprep.subr.bf16.mxu0 %v14911_v3  ;;  %v4938_v31 = vld [vmem:[#allocation8 + $0x5f0] sm:$0xff]  ;;  %v15436_v3 = vcombine.low %v5437_v13, %v5441_v40  ;;  %v15445_v49 = vcombine.high %v5445_v21, %v5449_v22 }
 0x458   : > { %10807 = vmatmul.mubr.bf16.gmra.mrb[136].mxu0 %v21280_v5  ;;  %10590 = vmatprep.mubr.bf16.mxu1 %v21236_v25  ;;  %v14926_v25 = vcombine.low %v4926_v2, %v4930_v62  ;;  %v14935_v16 = vcombine.high %v4934_v41, %v4938_v31  ;;  %v14934_v13 = vcombine.low %v4934_v41, %v4938_v31  ;;  %v5461_v62 = vld [vmem:[#allocation8 + $0x1648] sm:$0xff]  ;;  %v4958_v41 = vld [vmem:[#allocation8 + $0x690] sm:$0xff] }
 0x459   : > { %10650 = vmatpush1.bf16.msra.mxu1 %v15420_v23  ;;  %10816 = vmatprep.mubr.bf16.mxu0 %v21281_v47  ;;  %v5457_v23 = vld [vmem:[#allocation8 + $0x1628] sm:$0xff]  ;;  %v4962_v31 = vld [vmem:[#allocation8 + $0x6b0] sm:$0xff] }
 0x45a   : > { %10876 = vmatpush1.bf16.msra.mxu0 %v14910_v39  ;;  %10651 = vmatprep.subr.bf16.mxu1 %v15429_v35  ;;  %v4946_v39 = vld [vmem:[#allocation8 + $0x630] sm:$0xff]  ;;  %v15453_v40 = vcombine.high %v5453_v46, %v5457_v23 }
 0x45b   : > { %10877 = vmatprep.subr.bf16.mxu0 %v14919_v33  ;;  %v21283_v35 = vld [vmem:[#allocation41_spill] sm:$0xff]  ;;  %v15444_v33 = vcombine.low %v5445_v21, %v5449_v22  ;;  %v14943_v2 = vcombine.high %v4942_v44, %v4946_v39  ;;  %v21284_v22 = vld [vmem:[#allocation40_spill] sm:$0xff] }
 0x45d   : > { %10652 = vmatpush1.bf16.msra.mxu1 %v15428_v11  ;;  %v5465_v11 = vld [vmem:[#allocation8 + $0x1668] sm:$0xff] }
 0x45e   : > { %10878 = vmatpush1.bf16.msra.mxu0 %v14918_v42  ;;  %10653 = vmatprep.subr.bf16.mxu1 %v15437_v59  ;;  %v4950_v42 = vld [vmem:[#allocation8 + $0x650] sm:$0xff] }
 0x45f   : > { %10591 = vmatmul.mubr.bf16.gmra.mrb[140].mxu1 %v21239_v14  ;;  %10879 = vmatprep.subr.bf16.mxu0 %v14927_v61  ;;  %v4954_v59 = vld [vmem:[#allocation8 + $0x670] sm:$0xff]  ;;  %v15452_v61 = vcombine.low %v5453_v46, %v5457_v23  ;;  %v15461_v14 = vcombine.high %v5461_v62, %v5465_v11 }
 0x460   : > { %10817 = vmatmul.mubr.bf16.gmra.mrb[140].mxu0 %v21282_v29  ;;  %10600 = vmatprep.mubr.bf16.mxu1 %v21242_v34  ;;  %v14942_v34 = vcombine.low %v4942_v44, %v4946_v39  ;;  %v14951_v21 = vcombine.high %v4950_v42, %v4954_v59  ;;  %v14950_v46 = vcombine.low %v4950_v42, %v4954_v59  ;;  %v5477_v39 = vld [vmem:[#allocation8 + $0x16c8] sm:$0xff]  ;;  %v4974_v42 = vld [vmem:[#allocation8 + $0x710] sm:$0xff] }
 0x461   : > { %10654 = vmatpush1.bf16.msra.mxu1 %v15436_v3  ;;  %10826 = vmatprep.mubr.bf16.mxu0 %v21283_v35  ;;  %v21285_v3 = vld [vmem:[#allocation43_spill] sm:$0xff]  ;;  %v14959_v44 = vcombine.high %v4958_v41, %v4962_v31  ;;  %v4978_v59 = vld [vmem:[#allocation8 + $0x730] sm:$0xff] }
 0x462   : > { %10880 = vmatpush1.bf16.msra.mxu0 %v14926_v25  ;;  %10655 = vmatprep.subr.bf16.mxu1 %v15445_v49  ;;  %v5469_v25 = vld [vmem:[#allocation8 + $0x1688] sm:$0xff] }
 0x463   : > { %10881 = vmatprep.subr.bf16.mxu0 %v14935_v16  ;;  %v5473_v49 = vld [vmem:[#allocation8 + $0x16a8] sm:$0xff]  ;;  %v15460_v16 = vcombine.low %v5461_v62, %v5465_v11  ;;  %v21286_v11 = vld [vmem:[#allocation42_spill] sm:$0xff] }
 0x464   : > { %v15469_v23 = vcombine.high %v5469_v25, %v5473_v49 }
 0x465   : > { %10656 = vmatpush1.bf16.msra.mxu1 %v15444_v33  ;;  %v5481_v33 = vld [vmem:[#allocation8 + $0x16e8] sm:$0xff] }
 0x466   : > { %10882 = vmatpush1.bf16.msra.mxu0 %v14934_v13  ;;  %10657 = vmatprep.subr.bf16.mxu1 %v15453_v40  ;;  %v4966_v13 = vld [vmem:[#allocation8 + $0x6d0] sm:$0xff] }
 0x467   : > { %10601 = vmatmul.mubr.bf16.gmra.mrb[144].mxu1 %v21245_v10  ;;  %10883 = vmatprep.subr.bf16.mxu0 %v14943_v2  ;;  %v4970_v40 = vld [vmem:[#allocation8 + $0x6f0] sm:$0xff]  ;;  %v15468_v2 = vcombine.low %v5469_v25, %v5473_v49  ;;  %v15477_v10 = vcombine.high %v5477_v39, %v5481_v33 }
 0x468   : > { %10827 = vmatmul.mubr.bf16.gmra.mrb[144].mxu0 %v21284_v22  ;;  %10610 = vmatprep.mubr.bf16.mxu1 %v21248_v18  ;;  %v14958_v18 = vcombine.low %v4958_v41, %v4962_v31  ;;  %v14967_v62 = vcombine.high %v4966_v13, %v4970_v40  ;;  %v14966_v25 = vcombine.low %v4966_v13, %v4970_v40  ;;  %v5493_v31 = vld [vmem:[#allocation8 + $0x1748] sm:$0xff]  ;;  %v4990_v40 = vld [vmem:[#allocation8 + $0x790] sm:$0xff] }
 0x469   : > { %10658 = vmatpush1.bf16.msra.mxu1 %v15452_v61  ;;  %10836 = vmatprep.mubr.bf16.mxu0 %v21285_v3  ;;  %v21287_v61 = vld [vmem:[#allocation45_spill] sm:$0xff]  ;;  %v14975_v41 = vcombine.high %v4974_v42, %v4978_v59  ;;  %v21289_v13 = vld [vmem:[#allocation104_spill] sm:$0xff] }
 0x46a   : > { %10884 = vmatpush1.bf16.msra.mxu0 %v14942_v34  ;;  %10659 = vmatprep.subr.bf16.mxu1 %v15461_v14  ;;  %v5485_v34 = vld [vmem:[#allocation8 + $0x1708] sm:$0xff] }
 0x46b   : > { %10885 = vmatprep.subr.bf16.mxu0 %v14951_v21  ;;  %v5489_v14 = vld [vmem:[#allocation8 + $0x1728] sm:$0xff]  ;;  %v15476_v21 = vcombine.low %v5477_v39, %v5481_v33 }
 0x46c   : > { %v15485_v49 = vcombine.high %v5485_v34, %v5489_v14  ;;  %v21288_v33 = vld [vmem:[#allocation44_spill] sm:$0xff] }
 0x46d   : > { %10660 = vmatpush1.bf16.msra.mxu1 %v15460_v16  ;;  %v5497_v16 = vld [vmem:[#allocation8 + $0x1768] sm:$0xff] }
 0x46e   : > { %10886 = vmatpush1.bf16.msra.mxu0 %v14950_v46  ;;  %10661 = vmatprep.subr.bf16.mxu1 %v15469_v23  ;;  %v4982_v46 = vld [vmem:[#allocation8 + $0x750] sm:$0xff] }
 0x46f   : > { %10611 = vmatmul.mubr.bf16.gmra.mrb[148].mxu1 %v21251_v38  ;;  %10887 = vmatprep.subr.bf16.mxu0 %v14959_v44  ;;  %v4986_v23 = vld [vmem:[#allocation8 + $0x770] sm:$0xff]  ;;  %v15484_v44 = vcombine.low %v5485_v34, %v5489_v14  ;;  %v15493_v38 = vcombine.high %v5493_v31, %v5497_v16  ;;  %v15492_v34 = vcombine.low %v5493_v31, %v5497_v16 }
 0x470   : > { %10837 = vmatmul.mubr.bf16.gmra.mrb[148].mxu0 %v21286_v11  ;;  %10620 = vmatprep.mubr.bf16.mxu1 %v21254_v15  ;;  %v14974_v15 = vcombine.low %v4974_v42, %v4978_v59  ;;  %v14983_v39 = vcombine.high %v4982_v46, %v4986_v23  ;;  %v14982_v14 = vcombine.low %v4982_v46, %v4986_v23  ;;  %v21292_v16 = vld [vmem:[#allocation46_spill] sm:$0xff] }
 0x471   : > { %10662 = vmatpush1.bf16.msra.mxu1 %v15468_v2  ;;  %10846 = vmatprep.mubr.bf16.mxu0 %v21287_v61  ;;  %v4994_v2 = vld [vmem:[#allocation8 + $0x7b0] sm:$0xff] }
 0x472   : > { %10888 = vmatpush1.bf16.msra.mxu0 %v14958_v18  ;;  %10663 = vmatprep.subr.bf16.mxu1 %v15477_v10  ;;  %v5501_v18 = vld [vmem:[#allocation8 + $0x1788] sm:$0xff]  ;;  %v14991_v59 = vcombine.high %v4990_v40, %v4994_v2  ;;  %v21293_v46 = vld [vmem:[#allocation106_spill] sm:$0xff] }
 0x473   : > { %10889 = vmatprep.subr.bf16.mxu0 %v14967_v62  ;;  %v5505_v10 = vld [vmem:[#allocation8 + $0x17a8] sm:$0xff]  ;;  %v21290_v62 = vld [vmem:[#allocation47_spill] sm:$0xff]  ;;  %v5006_v23 = vld [vmem:[#allocation8 + $0x810] sm:$0xff] }
 0x474   : > { %v15501_v42 = vcombine.high %v5501_v18, %v5505_v10 }
 0x475   : > { %10664 = vmatpush1.bf16.msra.mxu1 %v15476_v21  ;;  %v5509_v21 = vld [vmem:[#allocation8 + $0x17c8] sm:$0xff] }
 0x476   : > { %10890 = vmatpush1.bf16.msra.mxu0 %v14966_v25  ;;  %10665 = vmatprep.subr.bf16.mxu1 %v15485_v49  ;;  %v5513_v25 = vld [vmem:[#allocation8 + $0x17e8] sm:$0xff]  ;;  %v4998_v49 = vld [vmem:[#allocation8 + $0x7d0] sm:$0xff] }
 0x477   : > { %10621 = vmatmul.mubr.bf16.gmra.mrb[152].mxu1 %v21257_v19  ;;  %10891 = vmatprep.subr.bf16.mxu0 %v14975_v41  ;;  %v5002_v41 = vld [vmem:[#allocation8 + $0x7f0] sm:$0xff]  ;;  %v15500_v19 = vcombine.low %v5501_v18, %v5505_v10  ;;  %v15509_v7 = vcombine.high %v5509_v21, %v5513_v25  ;;  %v15508_v18 = vcombine.low %v5509_v21, %v5513_v25 }
 0x478   : > { %10847 = vmatmul.mubr.bf16.gmra.mrb[152].mxu0 %v21288_v33  ;;  %10630 = vmatprep.mubr.bf16.mxu1 %v21289_v13  ;;  %v14990_v13 = vcombine.low %v4990_v40, %v4994_v2  ;;  %v14999_v31 = vcombine.high %v4998_v49, %v5002_v41  ;;  %v14998_v10 = vcombine.low %v4998_v49, %v5002_v41  ;;  %v21296_v25 = vld [vmem:[#allocation50_spill] sm:$0xff]  ;;  %v21297_v49 = vld [vmem:[#allocation108_spill] sm:$0xff] }
 0x479   : > { %10666 = vmatpush1.bf16.msra.mxu1 %v15484_v44  ;;  %10856 = vmatprep.mubr.bf16.mxu0 %v21290_v62  ;;  %v21291_v44 = vld [vmem:[#allocation102_spill] sm:$0xff] }
 0x47a   : > { %10892 = vmatpush1.bf16.msra.mxu0 %v14974_v15  ;;  %10667 = vmatprep.subr.bf16.mxu1 %v15493_v38  ;;  %v4751_v15 = vld [vmem:[#allocation8 + $0x18] sm:$0xff] }
 0x47b   : > { %10893 = vmatprep.subr.bf16.mxu0 %v14983_v39  ;;  %v4755_v38 = vld [vmem:[#allocation8 + $0x38] sm:$0xff]  ;;  %v5010_v39 = vld [vmem:[#allocation8 + $0x830] sm:$0xff] }
 0x47c   : > { %v14753_v40 = vcombine.high %v4751_v15, %v4755_v38  ;;  %v15007_v2 = vcombine.high %v5006_v23, %v5010_v39  ;;  %v4767_v41 = vld [vmem:[#allocation8 + $0x98] sm:$0xff] }
 0x47d   : > { %10668 = vmatpush1.bf16.msra.mxu1 %v15492_v34  ;;  %v5014_v34 = vld [vmem:[#allocation8 + $0x850] sm:$0xff] }
 0x47e   : > { %10894 = vmatpush1.bf16.msra.mxu0 %v14982_v14  ;;  %10669 = vmatprep.subr.bf16.mxu1 %v15501_v42  ;;  %v5018_v14 = vld [vmem:[#allocation8 + $0x870] sm:$0xff]  ;;  %v4759_v42 = vld [vmem:[#allocation8 + $0x58] sm:$0xff] }
 0x47f   : > { %10631 = vmatmul.mubr.bf16.gmra.mrb[156].mxu1 %v21291_v44  ;;  %10895 = vmatprep.subr.bf16.mxu0 %v14991_v59  ;;  %v4763_v59 = vld [vmem:[#allocation8 + $0x78] sm:$0xff]  ;;  %v15006_v44 = vcombine.low %v5006_v23, %v5010_v39  ;;  %v5030_v39 = vld [vmem:[#allocation8 + $0x8d0] sm:$0xff] }
 0x480   : > { %10857 = vmatmul.mubr.bf16.gmra.mrb[156].mxu0 %v21292_v16  ;;  %10673 = vmatprep.mubr.bf16.mxu1 %v21293_v46  ;;  %v14752_v46 = vcombine.low %v4751_v15, %v4755_v38  ;;  %v14761_v21 = vcombine.high %v4759_v42, %v4763_v59  ;;  %v14760_v23 = vcombine.low %v4759_v42, %v4763_v59  ;;  %v21301_v42 = vld [vmem:[#allocation110_spill] sm:$0xff] }
 0x481   : > { %10670 = vmatpush1.bf16.msra.mxu1 %v15500_v19  ;;  %10899 = vmatprep.mubr.bf16.mxu0 %v21294_v63  ;;  %v15015_v19 = vcombine.high %v5014_v34, %v5018_v14  ;;  %v4783_v59 = vld [vmem:[#allocation8 + $0x118] sm:$0xff] }
 0x482   : > { %10896 = vmatpush1.bf16.msra.mxu0 %v14990_v13  ;;  %10671 = vmatprep.subr.bf16.mxu1 %v15509_v7  ;;  %v5022_v13 = vld [vmem:[#allocation8 + $0x890] sm:$0xff] }
 0x483   : > { %10897 = vmatprep.subr.bf16.mxu0 %v14999_v31  ;;  %v5026_v7 = vld [vmem:[#allocation8 + $0x8b0] sm:$0xff]  ;;  %v4771_v31 = vld [vmem:[#allocation8 + $0xb8] sm:$0xff] }
 0x484   : > { %v15023_v15 = vcombine.high %v5022_v13, %v5026_v7  ;;  %v14769_v38 = vcombine.high %v4767_v41, %v4771_v31  ;;  %v15022_v0 = vcombine.low %v5022_v13, %v5026_v7 }
 0x485   : > { %10672 = vmatpush1.bf16.msra.mxu1 %v15508_v18  ;;  %v21298_v18 = vld [vmem:[#allocation56_spill] sm:$0xff] }
 0x486   : > { %10898 = vmatpush1.bf16.msra.mxu0 %v14998_v10  ;;  %11432 = vmatprep.subr.bf16.mxu1 %v14753_v40  ;;  %v15014_v10 = vcombine.low %v5014_v34, %v5018_v14  ;;  %v5034_v40 = vld [vmem:[#allocation8 + $0x8f0] sm:$0xff] }
 0x487   : > { %10980 = vmatprep.subr.bf16.mxu0 %v15007_v2  ;;  %v4775_v2 = vld [vmem:[#allocation8 + $0xd8] sm:$0xff]  ;;  %v15031_v53 = vcombine.high %v5030_v39, %v5034_v40  ;;  %v5042_v34 = vld [vmem:[#allocation8 + $0x930] sm:$0xff]  ;;  %v15030_v13 = vcombine.low %v5030_v39, %v5034_v40 }
 0x488   : > { %10674 = vmatmul.mubr.bf16.vlgmr.msra.gmra.mrb[128].mxu1 %v21295_v56  ;;  %v4779_v56 = vld [vmem:[#allocation8 + $0xf8] sm:$0xff] }
 0x489   : > { %10900 = vmatmul.mubr.bf16.vlgmr.msra.gmra.mrb[128].mxu0 %v21296_v25  ;;  %10683 = vmatprep.mubr.bf16.mxu1 %v21297_v49  ;;  %v14768_v49 = vcombine.low %v4767_v41, %v4771_v31  ;;  %v21300_v14 = vld [vmem:[#allocation54_spill] sm:$0xff]  ;;  %v14776_v7 = vcombine.low %v4775_v2, %v4779_v56 }
 0x48a   : > { %10909 = vmatprep.mubr.bf16.mxu0 %v21298_v18  ;;  %10981 = vmatpush1.bf16.msra.mxu0 %v15006_v44  ;;  %v14777_v44 = vcombine.high %v4775_v2, %v4779_v56  ;;  %v21303_v56 = vld [vmem:[#allocation58_spill] sm:$0xff]  ;;  %v21304_v2 = vld [vmem:[#allocation64_spill] sm:$0xff] }
 0x48b   : > { %11433 = vmatpush1.bf16.msra.mxu1 %v14752_v46  ;;  %10982 = vmatprep.subr.bf16.mxu0 %v15015_v19  ;;  %v5038_v46 = vld [vmem:[#allocation8 + $0x910] sm:$0xff]  ;;  %v4787_v19 = vld [vmem:[#allocation8 + $0x138] sm:$0xff] }
 0x48c   : > { %11434 = vmatprep.subr.bf16.mxu1 %v14761_v21  ;;  %v21302_v21 = vld [vmem:[#allocation60_spill] sm:$0xff]  ;;  %v15039_v41 = vcombine.high %v5038_v46, %v5042_v34  ;;  %v14785_v31 = vcombine.high %v4783_v59, %v4787_v19  ;;  %v4799_v39 = vld [vmem:[#allocation8 + $0x198] sm:$0xff] }
 0x48d   : > { %v4803_v40 = vld [vmem:[#allocation8 + $0x1b8] sm:$0xff] }
 0x48e   : > { %10983 = vmatpush1.bf16.msra.mxu0 %v15014_v10  ;;  %v5046_v10 = vld [vmem:[#allocation8 + $0x950] sm:$0xff] }
 0x48f   : > { %11435 = vmatpush1.bf16.msra.mxu1 %v14760_v23  ;;  %10984 = vmatprep.subr.bf16.mxu0 %v15023_v15  ;;  %v5050_v23 = vld [vmem:[#allocation8 + $0x970] sm:$0xff]  ;;  %v4791_v15 = vld [vmem:[#allocation8 + $0x158] sm:$0xff] }
 0x490   : > { %10684 = vmatmul.mubr.bf16.gmra.mrb[132].mxu1 %v21299_v58  ;;  %11436 = vmatprep.subr.bf16.mxu1 %v14769_v38  ;;  %v4795_v38 = vld [vmem:[#allocation8 + $0x178] sm:$0xff]  ;;  %v15038_v58 = vcombine.low %v5038_v46, %v5042_v34  ;;  %v15047_v52 = vcombine.high %v5046_v10, %v5050_v23 }
 0x491   : > { %10910 = vmatmul.mubr.bf16.gmra.mrb[132].mxu0 %v21300_v14  ;;  %10693 = vmatprep.mubr.bf16.mxu1 %v21301_v42  ;;  %v14784_v42 = vcombine.low %v4783_v59, %v4787_v19  ;;  %v14792_v46 = vcombine.low %v4791_v15, %v4795_v38  ;;  %v14801_v59 = vcombine.high %v4799_v39, %v4803_v40  ;;  %v5062_v19 = vld [vmem:[#allocation8 + $0x9d0] sm:$0xff] }
 0x492   : > { %10919 = vmatprep.mubr.bf16.mxu0 %v21302_v21  ;;  %10985 = vmatpush1.bf16.msra.mxu0 %v15022_v0  ;;  %v14793_v0 = vcombine.high %v4791_v15, %v4795_v38  ;;  %v4819_v15 = vld [vmem:[#allocation8 + $0x238] sm:$0xff]  ;;  %v21306_v38 = vld [vmem:[#allocation68_spill] sm:$0xff] }
 0x493   : > { %11437 = vmatpush1.bf16.msra.mxu1 %v14768_v49  ;;  %10986 = vmatprep.subr.bf16.mxu0 %v15031_v53  ;;  %v5054_v49 = vld [vmem:[#allocation8 + $0x990] sm:$0xff] }
 0x494   : > { %11438 = vmatprep.subr.bf16.mxu1 %v14777_v44  ;;  %v5058_v53 = vld [vmem:[#allocation8 + $0x9b0] sm:$0xff]  ;;  %v15046_v44 = vcombine.low %v5046_v10, %v5050_v23  ;;  %v4815_v23 = vld [vmem:[#allocation8 + $0x218] sm:$0xff] }
 0x495   : > { %v15055_v34 = vcombine.high %v5054_v49, %v5058_v53  ;;  %v21305_v10 = vld [vmem:[#allocation62_spill] sm:$0xff] }
 0x496   : > { %10987 = vmatpush1.bf16.msra.mxu0 %v15030_v13  ;;  %v5066_v13 = vld [vmem:[#allocation8 + $0x9f0] sm:$0xff] }
 0x497   : > { %11439 = vmatpush1.bf16.msra.mxu1 %v14776_v7  ;;  %10988 = vmatprep.subr.bf16.mxu0 %v15039_v41  ;;  %v4807_v7 = vld [vmem:[#allocation8 + $0x1d8] sm:$0xff] }
 0x498   : > { %10694 = vmatmul.mubr.bf16.gmra.mrb[136].mxu1 %v20197_v50  ;;  %11440 = vmatprep.subr.bf16.mxu1 %v14785_v31  ;;  %v4811_v41 = vld [vmem:[#allocation8 + $0x1f8] sm:$0xff]  ;;  %v15054_v31 = vcombine.low %v5054_v49, %v5058_v53  ;;  %v15063_v50 = vcombine.high %v5062_v19, %v5066_v13 }
 0x499   : > { %10920 = vmatmul.mubr.bf16.gmra.mrb[136].mxu0 %v21303_v56  ;;  %10703 = vmatprep.mubr.bf16.mxu1 %v20212_v55  ;;  %v14800_v55 = vcombine.low %v4799_v39, %v4803_v40  ;;  %v14808_v49 = vcombine.low %v4807_v7, %v4811_v41  ;;  %v14817_v39 = vcombine.high %v4815_v23, %v4819_v15  ;;  %v5078_v40 = vld [vmem:[#allocation8 + $0xa50] sm:$0xff] }
 0x49a   : > { %10929 = vmatprep.mubr.bf16.mxu0 %v21304_v2  ;;  %10989 = vmatpush1.bf16.msra.mxu0 %v15038_v58  ;;  %v14809_v58 = vcombine.high %v4807_v7, %v4811_v41  ;;  %v4831_v7 = vld [vmem:[#allocation8 + $0x298] sm:$0xff] }
 0x49b   : > { %11441 = vmatpush1.bf16.msra.mxu1 %v14784_v42  ;;  %10990 = vmatprep.subr.bf16.mxu0 %v15047_v52  ;;  %v5070_v42 = vld [vmem:[#allocation8 + $0xa10] sm:$0xff]  ;;  %v4835_v41 = vld [vmem:[#allocation8 + $0x2b8] sm:$0xff] }
 0x49c   : > { %11442 = vmatprep.subr.bf16.mxu1 %v14793_v0  ;;  %v5074_v52 = vld [vmem:[#allocation8 + $0xa30] sm:$0xff]  ;;  %v15062_v0 = vcombine.low %v5062_v19, %v5066_v13 }
 0x49d   : > { %v15071_v53 = vcombine.high %v5070_v42, %v5074_v52  ;;  %v21307_v13 = vld [vmem:[#allocation66_spill] sm:$0xff] }
 0x49e   : > { %10991 = vmatpush1.bf16.msra.mxu0 %v15046_v44  ;;  %v5082_v44 = vld [vmem:[#allocation8 + $0xa70] sm:$0xff] }
 0x49f   : > { %11443 = vmatpush1.bf16.msra.mxu1 %v14792_v46  ;;  %10992 = vmatprep.subr.bf16.mxu0 %v15055_v34  ;;  %v4823_v46 = vld [vmem:[#allocation8 + $0x258] sm:$0xff] }
 0x4a0   : > { %10704 = vmatmul.mubr.bf16.gmra.mrb[140].mxu1 %v20209_v30  ;;  %11444 = vmatprep.subr.bf16.mxu1 %v14801_v59  ;;  %v4827_v34 = vld [vmem:[#allocation8 + $0x278] sm:$0xff]  ;;  %v15070_v59 = vcombine.low %v5070_v42, %v5074_v52  ;;  %v15079_v30 = vcombine.high %v5078_v40, %v5082_v44 }
 0x4a1   : > { %10930 = vmatmul.mubr.bf16.gmra.mrb[140].mxu0 %v21305_v10  ;;  %10713 = vmatprep.mubr.bf16.mxu1 %v20224_v37  ;;  %v14816_v37 = vcombine.low %v4815_v23, %v4819_v15  ;;  %v14825_v19 = vcombine.high %v4823_v46, %v4827_v34  ;;  %v14824_v42 = vcombine.low %v4823_v46, %v4827_v34  ;;  %v5094_v15 = vld [vmem:[#allocation8 + $0xad0] sm:$0xff]  ;;  %v4847_v46 = vld [vmem:[#allocation8 + $0x318] sm:$0xff] }
 0x4a2   : > { %10939 = vmatprep.mubr.bf16.mxu0 %v21306_v38  ;;  %10993 = vmatpush1.bf16.msra.mxu0 %v15054_v31  ;;  %v21308_v31 = vld [vmem:[#allocation72_spill] sm:$0xff]  ;;  %v14833_v23 = vcombine.high %v4831_v7, %v4835_v41  ;;  %v4851_v34 = vld [vmem:[#allocation8 + $0x338] sm:$0xff] }
 0x4a3   : > { %11445 = vmatpush1.bf16.msra.mxu1 %v14800_v55  ;;  %10994 = vmatprep.subr.bf16.mxu0 %v15063_v50  ;;  %v5086_v55 = vld [vmem:[#allocation8 + $0xa90] sm:$0xff] }
 0x4a4   : > { %11446 = vmatprep.subr.bf16.mxu1 %v14809_v58  ;;  %v5090_v50 = vld [vmem:[#allocation8 + $0xab0] sm:$0xff]  ;;  %v15078_v58 = vcombine.low %v5078_v40, %v5082_v44 }
 0x4a5   : > { %v15087_v52 = vcombine.high %v5086_v55, %v5090_v50  ;;  %v21309_v44 = vld [vmem:[#allocation70_spill] sm:$0xff] }
 0x4a6   : > { %10995 = vmatpush1.bf16.msra.mxu0 %v15062_v0  ;;  %v5098_v0 = vld [vmem:[#allocation8 + $0xaf0] sm:$0xff] }
 0x4a7   : > { %11447 = vmatpush1.bf16.msra.mxu1 %v14808_v49  ;;  %10996 = vmatprep.subr.bf16.mxu0 %v15071_v53  ;;  %v4839_v49 = vld [vmem:[#allocation8 + $0x2d8] sm:$0xff] }
 0x4a8   : > { %10714 = vmatmul.mubr.bf16.gmra.mrb[144].mxu1 %v20221_v20  ;;  %11448 = vmatprep.subr.bf16.mxu1 %v14817_v39  ;;  %v4843_v53 = vld [vmem:[#allocation8 + $0x2f8] sm:$0xff]  ;;  %v15086_v39 = vcombine.low %v5086_v55, %v5090_v50  ;;  %v15095_v20 = vcombine.high %v5094_v15, %v5098_v0 }
 0x4a9   : > { %10940 = vmatmul.mubr.bf16.gmra.mrb[144].mxu0 %v21307_v13  ;;  %10723 = vmatprep.mubr.bf16.mxu1 %v20235_v24  ;;  %v14832_v24 = vcombine.low %v4831_v7, %v4835_v41  ;;  %v14841_v40 = vcombine.high %v4839_v49, %v4843_v53  ;;  %v14840_v55 = vcombine.low %v4839_v49, %v4843_v53  ;;  %v5110_v41 = vld [vmem:[#allocation8 + $0xb50] sm:$0xff]  ;;  %v4863_v49 = vld [vmem:[#allocation8 + $0x398] sm:$0xff] }
 0x4aa   : > { %10949 = vmatprep.mubr.bf16.mxu0 %v21308_v31  ;;  %10997 = vmatpush1.bf16.msra.mxu0 %v15070_v59  ;;  %v21310_v59 = vld [vmem:[#allocation76_spill] sm:$0xff]  ;;  %v14849_v7 = vcombine.high %v4847_v46, %v4851_v34  ;;  %v4867_v53 = vld [vmem:[#allocation8 + $0x3b8] sm:$0xff] }
 0x4ab   : > { %11449 = vmatpush1.bf16.msra.mxu1 %v14816_v37  ;;  %10998 = vmatprep.subr.bf16.mxu0 %v15079_v30  ;;  %v5102_v37 = vld [vmem:[#allocation8 + $0xb10] sm:$0xff] }
 0x4ac   : > { %11450 = vmatprep.subr.bf16.mxu1 %v14825_v19  ;;  %v5106_v30 = vld [vmem:[#allocation8 + $0xb30] sm:$0xff]  ;;  %v15094_v19 = vcombine.low %v5094_v15, %v5098_v0 }
 0x4ad   : > { %v15103_v50 = vcombine.high %v5102_v37, %v5106_v30  ;;  %v21311_v0 = vld [vmem:[#allocation74_spill] sm:$0xff] }
 0x4ae   : > { %10999 = vmatpush1.bf16.msra.mxu0 %v15078_v58  ;;  %v5114_v58 = vld [vmem:[#allocation8 + $0xb70] sm:$0xff] }
 0x4af   : > { %11451 = vmatpush1.bf16.msra.mxu1 %v14824_v42  ;;  %11000 = vmatprep.subr.bf16.mxu0 %v15087_v52  ;;  %v4855_v42 = vld [vmem:[#allocation8 + $0x358] sm:$0xff] }
 0x4b0   : > { %10724 = vmatmul.mubr.bf16.gmra.mrb[148].mxu1 %v20233_v32  ;;  %11452 = vmatprep.subr.bf16.mxu1 %v14833_v23  ;;  %v4859_v52 = vld [vmem:[#allocation8 + $0x378] sm:$0xff]  ;;  %v15102_v23 = vcombine.low %v5102_v37, %v5106_v30  ;;  %v15111_v32 = vcombine.high %v5110_v41, %v5114_v58 }
 0x4b1   : > { %10950 = vmatmul.mubr.bf16.gmra.mrb[148].mxu0 %v21309_v44  ;;  %10733 = vmatprep.mubr.bf16.mxu1 %v20247_v8  ;;  %v14848_v8 = vcombine.low %v4847_v46, %v4851_v34  ;;  %v14857_v15 = vcombine.high %v4855_v42, %v4859_v52  ;;  %v14856_v37 = vcombine.low %v4855_v42, %v4859_v52  ;;  %v5126_v34 = vld [vmem:[#allocation8 + $0xbd0] sm:$0xff]  ;;  %v4879_v42 = vld [vmem:[#allocation8 + $0x418] sm:$0xff] }
 0x4b2   : > { %10959 = vmatprep.mubr.bf16.mxu0 %v21310_v59  ;;  %11001 = vmatpush1.bf16.msra.mxu0 %v15086_v39  ;;  %v21312_v39 = vld [vmem:[#allocation80_spill] sm:$0xff]  ;;  %v14865_v46 = vcombine.high %v4863_v49, %v4867_v53  ;;  %v4883_v52 = vld [vmem:[#allocation8 + $0x438] sm:$0xff] }
 0x4b3   : > { %11453 = vmatpush1.bf16.msra.mxu1 %v14832_v24  ;;  %11002 = vmatprep.subr.bf16.mxu0 %v15095_v20  ;;  %v5118_v24 = vld [vmem:[#allocation8 + $0xb90] sm:$0xff] }
 0x4b4   : > { %11454 = vmatprep.subr.bf16.mxu1 %v14841_v40  ;;  %v5122_v20 = vld [vmem:[#allocation8 + $0xbb0] sm:$0xff]  ;;  %v15110_v40 = vcombine.low %v5110_v41, %v5114_v58 }
 0x4b5   : > { %v15119_v30 = vcombine.high %v5118_v24, %v5122_v20  ;;  %v21313_v58 = vld [vmem:[#allocation78_spill] sm:$0xff] }
 0x4b6   : > { %11003 = vmatpush1.bf16.msra.mxu0 %v15094_v19  ;;  %v5130_v19 = vld [vmem:[#allocation8 + $0xbf0] sm:$0xff] }
 0x4b7   : > { %11455 = vmatpush1.bf16.msra.mxu1 %v14840_v55  ;;  %11004 = vmatprep.subr.bf16.mxu0 %v15103_v50  ;;  %v4871_v55 = vld [vmem:[#allocation8 + $0x3d8] sm:$0xff] }
 0x4b8   : > { %10734 = vmatmul.mubr.bf16.gmra.mrb[152].mxu1 %v20245_v12  ;;  %11456 = vmatprep.subr.bf16.mxu1 %v14849_v7  ;;  %v4875_v50 = vld [vmem:[#allocation8 + $0x3f8] sm:$0xff]  ;;  %v15118_v7 = vcombine.low %v5118_v24, %v5122_v20  ;;  %v15127_v12 = vcombine.high %v5126_v34, %v5130_v19 }
 0x4b9   : > { %10960 = vmatmul.mubr.bf16.gmra.mrb[152].mxu0 %v21311_v0  ;;  %10743 = vmatprep.mubr.bf16.mxu1 %v20259_v36  ;;  %v14864_v36 = vcombine.low %v4863_v49, %v4867_v53  ;;  %v14873_v41 = vcombine.high %v4871_v55, %v4875_v50  ;;  %v14872_v24 = vcombine.low %v4871_v55, %v4875_v50  ;;  %v5142_v53 = vld [vmem:[#allocation8 + $0xc50] sm:$0xff]  ;;  %v4895_v55 = vld [vmem:[#allocation8 + $0x498] sm:$0xff] }
 0x4ba   : > { %10969 = vmatprep.mubr.bf16.mxu0 %v21312_v39  ;;  %11005 = vmatpush1.bf16.msra.mxu0 %v15102_v23  ;;  %v21314_v23 = vld [vmem:[#allocation53_spill] sm:$0xff]  ;;  %v14881_v49 = vcombine.high %v4879_v42, %v4883_v52  ;;  %v4899_v50 = vld [vmem:[#allocation8 + $0x4b8] sm:$0xff] }
 0x4bb   : > { %11457 = vmatpush1.bf16.msra.mxu1 %v14848_v8  ;;  %11006 = vmatprep.subr.bf16.mxu0 %v15111_v32  ;;  %v5134_v8 = vld [vmem:[#allocation8 + $0xc10] sm:$0xff] }
 0x4bc   : > { %11458 = vmatprep.subr.bf16.mxu1 %v14857_v15  ;;  %v5138_v32 = vld [vmem:[#allocation8 + $0xc30] sm:$0xff]  ;;  %v15126_v15 = vcombine.low %v5126_v34, %v5130_v19 }
 0x4bd   : > { %v15135_v20 = vcombine.high %v5134_v8, %v5138_v32  ;;  %v21316_v19 = vld [vmem:[#allocation57_spill] sm:$0xff] }
 0x4be   : > { %11007 = vmatpush1.bf16.msra.mxu0 %v15110_v40  ;;  %v5146_v40 = vld [vmem:[#allocation8 + $0xc70] sm:$0xff] }
 0x4bf   : > { %11459 = vmatpush1.bf16.msra.mxu1 %v14856_v37  ;;  %11008 = vmatprep.subr.bf16.mxu0 %v15119_v30  ;;  %v4887_v37 = vld [vmem:[#allocation8 + $0x458] sm:$0xff] }
 0x4c0   : > { %10744 = vmatmul.mubr.bf16.gmra.mrb[156].mxu1 %v20257_v54  ;;  %11460 = vmatprep.subr.bf16.mxu1 %v14865_v46  ;;  %v4891_v30 = vld [vmem:[#allocation8 + $0x478] sm:$0xff]  ;;  %v15134_v46 = vcombine.low %v5134_v8, %v5138_v32 }
 0x4c1   : > { %10970 = vmatmul.mubr.bf16.gmra.mrb[156].mxu0 %v21313_v58  ;;  %11464 = vmatprep.mubr.bf16.mxu1 %v21275_v57  ;;  %v14880_v57 = vcombine.low %v4879_v42, %v4883_v52  ;;  %v21315_v54 = vld [vmem:[#allocation51_spill] sm:$0xff]  ;;  %v14889_v34 = vcombine.high %v4887_v37, %v4891_v30  ;;  %v14888_v8 = vcombine.low %v4887_v37, %v4891_v30  ;;  %v5158_v52 = vld [vmem:[#allocation8 + $0xcd0] sm:$0xff] }
 0x4c2   : > { %11009 = vmatpush1.bf16.msra.mxu0 %v15118_v7  ;;  %11012 = vmatprep.mubr.bf16.mxu0 %v21314_v23  ;;  %v15143_v7 = vcombine.high %v5142_v53, %v5146_v40  ;;  %v14897_v42 = vcombine.high %v4895_v55, %v4899_v50  ;;  %v21318_v37 = vld [vmem:[#allocation61_spill] sm:$0xff]  ;;  %v4911_v30 = vld [vmem:[#allocation8 + $0x518] sm:$0xff] }
 0x4c3   : > { %11461 = vmatpush1.bf16.msra.mxu1 %v14864_v36  ;;  %11010 = vmatprep.subr.bf16.mxu0 %v15127_v12  ;;  %v5150_v36 = vld [vmem:[#allocation8 + $0xc90] sm:$0xff]  ;;  %v4939_v23 = vld [vmem:[#allocation8 + $0x5f8] sm:$0xff] }
 0x4c4   : > { %11462 = vmatprep.subr.bf16.mxu1 %v14873_v41  ;;  %v5154_v12 = vld [vmem:[#allocation8 + $0xcb0] sm:$0xff]  ;;  %v15142_v41 = vcombine.low %v5142_v53, %v5146_v40 }
 0x4c5   : > { %v15151_v32 = vcombine.high %v5150_v36, %v5154_v12  ;;  %v5166_v53 = vld [vmem:[#allocation8 + $0xd10] sm:$0xff] }
 0x4c6   : > { %11011 = vmatpush1.bf16.msra.mxu0 %v15126_v15  ;;  %v5162_v15 = vld [vmem:[#allocation8 + $0xcf0] sm:$0xff] }
 0x4c7   : > { %11463 = vmatpush1.bf16.msra.mxu1 %v14872_v24  ;;  %11093 = vmatprep.subr.bf16.mxu0 %v15135_v20  ;;  %v4903_v24 = vld [vmem:[#allocation8 + $0x4d8] sm:$0xff]  ;;  %v5170_v40 = vld [vmem:[#allocation8 + $0xd30] sm:$0xff] }
 0x4c8   : > { %11545 = vmatprep.subr.bf16.mxu1 %v14881_v49  ;;  %v4907_v20 = vld [vmem:[#allocation8 + $0x4f8] sm:$0xff]  ;;  %v14896_v49 = vcombine.low %v4895_v55, %v4899_v50  ;;  %v5174_v50 = vld [vmem:[#allocation8 + $0xd50] sm:$0xff] }
 0x4c9   : > { %11013 = vmatmul.mubr.bf16.vlgmr.msra.gmra.mrb[128].mxu0 %v21315_v54 }
 0x4ca   : > { %11465 = vmatmul.mubr.bf16.vlgmr.msra.gmra.mrb[160].mxu1 %v21276_v6  ;;  %11022 = vmatprep.mubr.bf16.mxu0 %v21316_v19  ;;  %v15150_v6 = vcombine.low %v5150_v36, %v5154_v12  ;;  %v15159_v19 = vcombine.high %v5158_v52, %v5162_v15  ;;  %v14904_v36 = vcombine.low %v4903_v24, %v4907_v20 }
 0x4cb   : > { %11094 = vmatpush1.bf16.msra.mxu0 %v15134_v46  ;;  %11474 = vmatprep.mubr.bf16.mxu1 %v21277_v26  ;;  %v21317_v46 = vld [vmem:[#allocation55_spill] sm:$0xff]  ;;  %v14905_v26 = vcombine.high %v4903_v24, %v4907_v20  ;;  %v15167_v12 = vcombine.high %v5166_v53, %v5170_v40  ;;  %v5182_v20 = vld [vmem:[#allocation8 + $0xd90] sm:$0xff] }
 0x4cc   : > { %11546 = vmatpush1.bf16.msra.mxu1 %v14880_v57  ;;  %11095 = vmatprep.subr.bf16.mxu0 %v15143_v7  ;;  %v4915_v57 = vld [vmem:[#allocation8 + $0x538] sm:$0xff]  ;;  %v15158_v7 = vcombine.low %v5158_v52, %v5162_v15 }
 0x4cd   : > { %11547 = vmatprep.subr.bf16.mxu1 %v14889_v34  ;;  %v5516_v34 = vld [vmem:[#allocation10] sm:$0xff]  ;;  %v14913_v55 = vcombine.high %v4911_v30, %v4915_v57 }
 0x4ce   : > { %v21321_v52 = vld [vmem:[#allocation59_spill] sm:$0xff] }
 0x4cf   : > { %11096 = vmatpush1.bf16.msra.mxu0 %v15142_v41  ;;  %v5178_v41 = vld [vmem:[#allocation8 + $0xd70] sm:$0xff] }
 0x4d0   : > { %11548 = vmatpush1.bf16.msra.mxu1 %v14888_v8  ;;  %11097 = vmatprep.subr.bf16.mxu0 %v15151_v32  ;;  %v21319_v8 = vld [vmem:[#allocation30_spill] sm:$0xff] }
 0x4d1   : > { %11023 = vmatmul.mubr.bf16.gmra.mrb[132].mxu0 %v21317_v46  ;;  %11549 = vmatprep.subr.bf16.mxu1 %v14897_v42  ;;  %v20358_v32 = vrot.slane %v5516_v34, %v21319_v8  ;;  %v4923_v42 = vld [vmem:[#allocation8 + $0x578] sm:$0xff] }
 0x4d2   : > { %11475 = vmatmul.mubr.bf16.gmra.mrb[164].mxu1 %v21278_v1  ;;  %11032 = vmatprep.mubr.bf16.mxu0 %v21318_v37  ;;  %v4919_v1 = vld [vmem:[#allocation8 + $0x558] sm:$0xff]  ;;  %v15166_v37 = vcombine.low %v5166_v53, %v5170_v40 }
 0x4d3   : > { %11098 = vmatpush1.bf16.msra.mxu0 %v15150_v6  ;;  %11484 = vmatprep.mubr.bf16.mxu1 %v21279_v27  ;;  %v21320_v6 = vld [vmem:[#allocation31_spill] sm:$0xff]  ;;  %v14912_v27 = vcombine.low %v4911_v30, %v4915_v57  ;;  %v14921_v24 = vcombine.high %v4919_v1, %v4923_v42  ;;  %v15174_v57 = vcombine.low %v5174_v50, %v5178_v41 }
 0x4d4   : > { %11550 = vmatpush1.bf16.msra.mxu1 %v14896_v49  ;;  %11099 = vmatprep.subr.bf16.mxu0 %v15159_v19  ;;  %v20361_v46 = vrot.slane %v5516_v34, %v21320_v6  ;;  %v15175_v19 = vcombine.high %v5174_v50, %v5178_v41  ;;  %v5186_v49 = vld [vmem:[#allocation8 + $0xdb0] sm:$0xff]  ;;  %v4931_v34 = vld [vmem:[#allocation8 + $0x5b8] sm:$0xff] }
 0x4d5   : > { %11551 = vmatprep.subr.bf16.mxu1 %v14905_v26  ;;  %v21322_v26 = vld [vmem:[#allocation65_spill] sm:$0xff]  ;;  %v15183_v6 = vcombine.high %v5182_v20, %v5186_v49  ;;  %v15182_v41 = vcombine.low %v5182_v20, %v5186_v49  ;;  %v4943_v49 = vld [vmem:[#allocation8 + $0x618] sm:$0xff] }
 0x4d7   : > { %11100 = vmatpush1.bf16.msra.mxu0 %v15158_v7  ;;  %v4927_v7 = vld [vmem:[#allocation8 + $0x598] sm:$0xff] }
 0x4d8   : > { %11552 = vmatpush1.bf16.msra.mxu1 %v14904_v36  ;;  %11101 = vmatprep.subr.bf16.mxu0 %v15167_v12  ;;  %v14920_v12 = vcombine.low %v4919_v1, %v4923_v42  ;;  %v14929_v8 = vcombine.high %v4927_v7, %v4931_v34  ;;  %v14928_v1 = vcombine.low %v4927_v7, %v4931_v34 }
 0x4d9   : > { %11033 = vmatmul.mubr.bf16.gmra.mrb[136].mxu0 %v21321_v52  ;;  %11553 = vmatprep.subr.bf16.mxu1 %v14913_v55  ;;  %v9997_v15 = vpop.f32.mrb[96].mxu0  ;;  %v5194_v52 = vld [vmem:[#allocation8 + $0xdf0] sm:$0xff] }
 0x4da   : > { %11485 = vmatmul.mubr.bf16.gmra.mrb[168].mxu1 %v21280_v5  ;;  %11042 = vmatprep.mubr.bf16.mxu0 %v21322_v26  ;;  %v16028_v53 = vadd.f32 %v9997_v15, %v20358_v32  ;;  %v9999_v40 = vpop.f32.mrb[97].mxu0  ;;  %v5190_v26 = vld [vmem:[#allocation8 + $0xdd0] sm:$0xff] }
 0x4db   : > { %11102 = vmatpush1.bf16.msra.mxu0 %v15166_v37  ;;  %11494 = vmatprep.mubr.bf16.mxu1 %v21281_v47  ;;  %v16029_v30 = vadd.f32 %v9999_v40, %v20361_v46  ;;  %v10001_v36 = vpop.f32.mrb[98].mxu0  ;;  %v4935_v47 = vld [vmem:[#allocation8 + $0x5d8] sm:$0xff]  ;;  %v15191_v42 = vcombine.high %v5190_v26, %v5194_v52  ;;  %v15190_v34 = vcombine.low %v5190_v26, %v5194_v52 }
 0x4dc   : > { %11554 = vmatpush1.bf16.msra.mxu1 %v14912_v27  ;;  %11103 = vmatprep.subr.bf16.mxu0 %v15175_v19  ;;  %v16030_v55 = vadd.f32 %v10001_v36, %v20358_v32  ;;  %v10003_v5 = vpop.f32.mrb[99].mxu0  ;;  %v12110_v37 = vmax.f32 %v16028_v53, 0.0  ;;  %v14937_v53 = vcombine.high %v4935_v47, %v4939_v23 }
 0x4dd   : > { %11555 = vmatprep.subr.bf16.mxu1 %v14921_v24  ;;  %v16031_v15 = vadd.f32 %v10003_v5, %v20361_v46  ;;  %v12111_v40 = vmax.f32 %v16029_v30, 0.0  ;;  %v21325_v24 = vld [vmem:[#allocation63_spill] sm:$0xff]  ;;  %v5202_v5 = vld [vmem:[#allocation8 + $0xe30] sm:$0xff] }
 0x4de   : > { %v12118_v54 = vmax.f32 %v16030_v55, 0.0  ;;  %v5198_v55 = vld [vmem:[#allocation8 + $0xe10] sm:$0xff] }
 0x4df   : > { %11104 = vmatpush1.bf16.msra.mxu0 %v15174_v57  ;;  %v12119_v50 = vmax.f32 %v16031_v15, 0.0  ;;  %v21326_v30 = vld [vmem:[#allocation69_spill] sm:$0xff]  ;;  %v14936_v57 = vcombine.low %v4935_v47, %v4939_v23  ;;  %v15199_v15 = vcombine.high %v5198_v55, %v5202_v5  ;;  %v15198_v26 = vcombine.low %v5198_v55, %v5202_v5  ;;  %v4959_v5 = vld [vmem:[#allocation8 + $0x698] sm:$0xff] }
 0x4e0   : > { %v20371_v27 = vpack.c.bf16 %v12118_v54, %v12110_v37  ;;  %11556 = vmatpush1.bf16.msra.mxu1 %v14920_v12  ;;  %11105 = vmatprep.subr.bf16.mxu0 %v15183_v6  ;;  %v4947_v6 = vld [vmem:[#allocation8 + $0x638] sm:$0xff] }
 0x4e1   : > { %v20373_v19 = vpack.c.bf16 %v12119_v50, %v12111_v40  ;;  %11043 = vmatmul.mubr.bf16.gmra.mrb[140].mxu0 %v21325_v24  ;;  %11557 = vmatprep.subr.bf16.mxu1 %v14929_v8  ;;  %v10007_v36 = vpop.f32.mrb[100].mxu0  ;;  %v14945_v40 = vcombine.high %v4943_v49, %v4947_v6  ;;  %v5206_v50 = vld [vmem:[#allocation8 + $0xe50] sm:$0xff]  ;;  %v14944_v23 = vcombine.low %v4943_v49, %v4947_v6 }
 0x4e2   : > { %21323 = vst [vmem:[#allocation33_spill] sm:$0xff] %v20371_v27  ;;  %11495 = vmatmul.mubr.bf16.gmra.mrb[172].mxu1 %v21282_v29  ;;  %11052 = vmatprep.mubr.bf16.mxu0 %v21326_v30  ;;  %v16032_v54 = vadd.f32 %v10007_v36, %v20358_v32  ;;  %v10009_v20 = vpop.f32.mrb[101].mxu0  ;;  %v5210_v36 = vld [vmem:[#allocation8 + $0xe70] sm:$0xff] }
 0x4e3   : > { %21324 = vst [vmem:[#allocation32_spill] sm:$0xff] %v20373_v19  ;;  %11106 = vmatpush1.bf16.msra.mxu0 %v15182_v41  ;;  %11504 = vmatprep.mubr.bf16.mxu1 %v21283_v35  ;;  %v16033_v7 = vadd.f32 %v10009_v20, %v20361_v46  ;;  %v10011_v8 = vpop.f32.mrb[102].mxu0  ;;  %v4951_v35 = vld [vmem:[#allocation8 + $0x658] sm:$0xff]  ;;  %v15207_v47 = vcombine.high %v5206_v50, %v5210_v36 }
 0x4e4   : > { %11558 = vmatpush1.bf16.msra.mxu1 %v14928_v1  ;;  %11107 = vmatprep.subr.bf16.mxu0 %v15191_v42  ;;  %v16034_v12 = vadd.f32 %v10011_v8, %v20358_v32  ;;  %v10013_v29 = vpop.f32.mrb[103].mxu0  ;;  %v12126_v41 = vmax.f32 %v16032_v54, 0.0  ;;  %v4955_v19 = vld [vmem:[#allocation8 + $0x678] sm:$0xff]  ;;  %v15206_v6 = vcombine.low %v5206_v50, %v5210_v36 }
 0x4e5   : > { %11559 = vmatprep.subr.bf16.mxu1 %v14937_v53  ;;  %v16035_v37 = vadd.f32 %v10013_v29, %v20361_v46  ;;  %v12127_v20 = vmax.f32 %v16033_v7, 0.0  ;;  %v21329_v53 = vld [vmem:[#allocation67_spill] sm:$0xff]  ;;  %v14953_v54 = vcombine.high %v4951_v35, %v4955_v19  ;;  %v5218_v29 = vld [vmem:[#allocation8 + $0xeb0] sm:$0xff] }
 0x4e6   : > { %v12134_v27 = vmax.f32 %v16034_v12, 0.0  ;;  %v5214_v12 = vld [vmem:[#allocation8 + $0xe90] sm:$0xff] }
 0x4e7   : > { %11108 = vmatpush1.bf16.msra.mxu0 %v15190_v34  ;;  %v12135_v52 = vmax.f32 %v16035_v37, 0.0  ;;  %v21330_v7 = vld [vmem:[#allocation73_spill] sm:$0xff]  ;;  %v4963_v34 = vld [vmem:[#allocation8 + $0x6b8] sm:$0xff]  ;;  %v15214_v36 = vcombine.low %v5214_v12, %v5218_v29 }
 0x4e8   : > { %v20383_v1 = vpack.c.bf16 %v12134_v27, %v12126_v41  ;;  %11560 = vmatpush1.bf16.msra.mxu1 %v14936_v57  ;;  %11109 = vmatprep.subr.bf16.mxu0 %v15199_v15  ;;  %v14952_v15 = vcombine.low %v4951_v35, %v4955_v19  ;;  %v14960_v19 = vcombine.low %v4959_v5, %v4963_v34 }
 0x4e9   : > { %v20385_v42 = vpack.c.bf16 %v12135_v52, %v12127_v20  ;;  %11053 = vmatmul.mubr.bf16.gmra.mrb[144].mxu0 %v21329_v53  ;;  %11561 = vmatprep.subr.bf16.mxu1 %v14945_v40  ;;  %v10017_v8 = vpop.f32.mrb[104].mxu0  ;;  %v15215_v40 = vcombine.high %v5214_v12, %v5218_v29  ;;  %v14961_v20 = vcombine.high %v4959_v5, %v4963_v34  ;;  %v5222_v52 = vld [vmem:[#allocation8 + $0xed0] sm:$0xff]  ;;  %v4975_v29 = vld [vmem:[#allocation8 + $0x718] sm:$0xff] }
 0x4ea   : > { %21327 = vst [vmem:[#allocation35_spill] sm:$0xff] %v20383_v1  ;;  %11505 = vmatmul.mubr.bf16.gmra.mrb[176].mxu1 %v21284_v22  ;;  %11062 = vmatprep.mubr.bf16.mxu0 %v21330_v7  ;;  %v16036_v27 = vadd.f32 %v10017_v8, %v20358_v32  ;;  %v10019_v55 = vpop.f32.mrb[105].mxu0  ;;  %v5226_v8 = vld [vmem:[#allocation8 + $0xef0] sm:$0xff] }
 0x4eb   : > { %21328 = vst [vmem:[#allocation34_spill] sm:$0xff] %v20385_v42  ;;  %11110 = vmatpush1.bf16.msra.mxu0 %v15198_v26  ;;  %11514 = vmatprep.mubr.bf16.mxu1 %v21285_v3  ;;  %v16037_v49 = vadd.f32 %v10019_v55, %v20361_v46  ;;  %v10021_v57 = vpop.f32.mrb[106].mxu0  ;;  %v4967_v3 = vld [vmem:[#allocation8 + $0x6d8] sm:$0xff]  ;;  %v15223_v35 = vcombine.high %v5222_v52, %v5226_v8 }
 0x4ec   : > { %11562 = vmatpush1.bf16.msra.mxu1 %v14944_v23  ;;  %11111 = vmatprep.subr.bf16.mxu0 %v15207_v47  ;;  %v16038_v37 = vadd.f32 %v10021_v57, %v20358_v32  ;;  %v10023_v22 = vpop.f32.mrb[107].mxu0  ;;  %v12142_v26 = vmax.f32 %v16036_v27, 0.0  ;;  %v4971_v42 = vld [vmem:[#allocation8 + $0x6f8] sm:$0xff]  ;;  %v15222_v34 = vcombine.low %v5222_v52, %v5226_v8 }
 0x4ed   : > { %11563 = vmatprep.subr.bf16.mxu1 %v14953_v54  ;;  %v16039_v41 = vadd.f32 %v10023_v22, %v20361_v46  ;;  %v12143_v55 = vmax.f32 %v16037_v49, 0.0  ;;  %v21333_v54 = vld [vmem:[#allocation71_spill] sm:$0xff]  ;;  %v14969_v27 = vcombine.high %v4967_v3, %v4971_v42  ;;  %v5234_v22 = vld [vmem:[#allocation8 + $0xf30] sm:$0xff] }
 0x4ee   : > { %v12150_v1 = vmax.f32 %v16038_v37, 0.0  ;;  %v5230_v37 = vld [vmem:[#allocation8 + $0xf10] sm:$0xff] }
 0x4ef   : > { %11112 = vmatpush1.bf16.msra.mxu0 %v15206_v6  ;;  %v12151_v50 = vmax.f32 %v16039_v41, 0.0  ;;  %v21334_v49 = vld [vmem:[#allocation77_spill] sm:$0xff]  ;;  %v4979_v6 = vld [vmem:[#allocation8 + $0x738] sm:$0xff]  ;;  %v15230_v8 = vcombine.low %v5230_v37, %v5234_v22 }
 0x4f0   : > { %v20395_v23 = vpack.c.bf16 %v12150_v1, %v12142_v26  ;;  %11564 = vmatpush1.bf16.msra.mxu1 %v14952_v15  ;;  %11113 = vmatprep.subr.bf16.mxu0 %v15215_v40  ;;  %v14968_v40 = vcombine.low %v4967_v3, %v4971_v42  ;;  %v14976_v42 = vcombine.low %v4975_v29, %v4979_v6 }
 0x4f1   : > { %v20397_v47 = vpack.c.bf16 %v12151_v50, %v12143_v55  ;;  %11063 = vmatmul.mubr.bf16.gmra.mrb[148].mxu0 %v21333_v54  ;;  %11565 = vmatprep.subr.bf16.mxu1 %v14961_v20  ;;  %v10027_v57 = vpop.f32.mrb[108].mxu0  ;;  %v15231_v20 = vcombine.high %v5230_v37, %v5234_v22  ;;  %v14977_v55 = vcombine.high %v4975_v29, %v4979_v6  ;;  %v5238_v50 = vld [vmem:[#allocation8 + $0xf50] sm:$0xff]  ;;  %v4991_v22 = vld [vmem:[#allocation8 + $0x798] sm:$0xff] }
 0x4f2   : > { %21331 = vst [vmem:[#allocation37_spill] sm:$0xff] %v20395_v23  ;;  %11515 = vmatmul.mubr.bf16.gmra.mrb[180].mxu1 %v21286_v11  ;;  %11072 = vmatprep.mubr.bf16.mxu0 %v21334_v49  ;;  %v16040_v1 = vadd.f32 %v10027_v57, %v20358_v32  ;;  %v10029_v12 = vpop.f32.mrb[109].mxu0  ;;  %v5242_v57 = vld [vmem:[#allocation8 + $0xf70] sm:$0xff] }
 0x4f3   : > { %21332 = vst [vmem:[#allocation36_spill] sm:$0xff] %v20397_v47  ;;  %11114 = vmatpush1.bf16.msra.mxu0 %v15214_v36  ;;  %11524 = vmatprep.mubr.bf16.mxu1 %v21287_v61  ;;  %v16041_v5 = vadd.f32 %v10029_v12, %v20361_v46  ;;  %v10031_v15 = vpop.f32.mrb[110].mxu0  ;;  %v4983_v61 = vld [vmem:[#allocation8 + $0x758] sm:$0xff]  ;;  %v15239_v3 = vcombine.high %v5238_v50, %v5242_v57 }
 0x4f4   : > { %11566 = vmatpush1.bf16.msra.mxu1 %v14960_v19  ;;  %11115 = vmatprep.subr.bf16.mxu0 %v15223_v35  ;;  %v16042_v41 = vadd.f32 %v10031_v15, %v20358_v32  ;;  %v10033_v11 = vpop.f32.mrb[111].mxu0  ;;  %v12158_v36 = vmax.f32 %v16040_v1, 0.0  ;;  %v4987_v47 = vld [vmem:[#allocation8 + $0x778] sm:$0xff]  ;;  %v15238_v6 = vcombine.low %v5238_v50, %v5242_v57 }
 0x4f5   : > { %11567 = vmatprep.subr.bf16.mxu1 %v14969_v27  ;;  %v16043_v26 = vadd.f32 %v10033_v11, %v20361_v46  ;;  %v12159_v12 = vmax.f32 %v16041_v5, 0.0  ;;  %v21337_v27 = vld [vmem:[#allocation75_spill] sm:$0xff]  ;;  %v14985_v1 = vcombine.high %v4983_v61, %v4987_v47  ;;  %v5250_v11 = vld [vmem:[#allocation8 + $0xfb0] sm:$0xff] }
 0x4f6   : > { %v12166_v23 = vmax.f32 %v16042_v41, 0.0  ;;  %v5246_v41 = vld [vmem:[#allocation8 + $0xf90] sm:$0xff] }
 0x4f7   : > { %11116 = vmatpush1.bf16.msra.mxu0 %v15222_v34  ;;  %v12167_v52 = vmax.f32 %v16043_v26, 0.0  ;;  %v21338_v5 = vld [vmem:[#allocation81_spill] sm:$0xff]  ;;  %v4995_v34 = vld [vmem:[#allocation8 + $0x7b8] sm:$0xff]  ;;  %v15246_v57 = vcombine.low %v5246_v41, %v5250_v11 }
 0x4f8   : > { %v20407_v19 = vpack.c.bf16 %v12166_v23, %v12158_v36  ;;  %11568 = vmatpush1.bf16.msra.mxu1 %v14968_v40  ;;  %11117 = vmatprep.subr.bf16.mxu0 %v15231_v20  ;;  %v14984_v20 = vcombine.low %v4983_v61, %v4987_v47  ;;  %v14992_v47 = vcombine.low %v4991_v22, %v4995_v34 }
 0x4f9   : > { %v20409_v35 = vpack.c.bf16 %v12167_v52, %v12159_v12  ;;  %11073 = vmatmul.mubr.bf16.gmra.mrb[152].mxu0 %v21337_v27  ;;  %11569 = vmatprep.subr.bf16.mxu1 %v14977_v55  ;;  %v10037_v15 = vpop.f32.mrb[112].mxu0  ;;  %v15247_v55 = vcombine.high %v5246_v41, %v5250_v11  ;;  %v14993_v12 = vcombine.high %v4991_v22, %v4995_v34  ;;  %v5254_v52 = vld [vmem:[#allocation8 + $0xfd0] sm:$0xff]  ;;  %v5007_v11 = vld [vmem:[#allocation8 + $0x818] sm:$0xff] }
 0x4fa   : > { %21335 = vst [vmem:[#allocation39_spill] sm:$0xff] %v20407_v19  ;;  %11525 = vmatmul.mubr.bf16.gmra.mrb[184].mxu1 %v21288_v33  ;;  %11082 = vmatprep.mubr.bf16.mxu0 %v21338_v5  ;;  %v16044_v23 = vadd.f32 %v10037_v15, %v20358_v32  ;;  %v10039_v37 = vpop.f32.mrb[113].mxu0  ;;  %v5258_v15 = vld [vmem:[#allocation8 + $0xff0] sm:$0xff] }
 0x4fb   : > { %21336 = vst [vmem:[#allocation38_spill] sm:$0xff] %v20409_v35  ;;  %11118 = vmatpush1.bf16.msra.mxu0 %v15230_v8  ;;  %11534 = vmatprep.mubr.bf16.mxu1 %v21290_v62  ;;  %v16045_v29 = vadd.f32 %v10039_v37, %v20361_v46  ;;  %v10041_v40 = vpop.f32.mrb[114].mxu0  ;;  %v4999_v62 = vld [vmem:[#allocation8 + $0x7d8] sm:$0xff]  ;;  %v15255_v61 = vcombine.high %v5254_v52, %v5258_v15 }
 0x4fc   : > { %11570 = vmatpush1.bf16.msra.mxu1 %v14976_v42  ;;  %11119 = vmatprep.subr.bf16.mxu0 %v15239_v3  ;;  %v16046_v26 = vadd.f32 %v10041_v40, %v20358_v32  ;;  %v10043_v33 = vpop.f32.mrb[115].mxu0  ;;  %v12174_v8 = vmax.f32 %v16044_v23, 0.0  ;;  %v5003_v35 = vld [vmem:[#allocation8 + $0x7f8] sm:$0xff]  ;;  %v15254_v34 = vcombine.low %v5254_v52, %v5258_v15 }
 0x4fd   : > { %11571 = vmatprep.subr.bf16.mxu1 %v14985_v1  ;;  %v16047_v36 = vadd.f32 %v10043_v33, %v20361_v46  ;;  %v12175_v37 = vmax.f32 %v16045_v29, 0.0  ;;  %v21341_v1 = vld [vmem:[#allocation79_spill] sm:$0xff]  ;;  %v15001_v23 = vcombine.high %v4999_v62, %v5003_v35  ;;  %v5266_v33 = vld [vmem:[#allocation8 + $0x1030] sm:$0xff]  ;;  %v21342_v29 = vld [vmem:[#allocation84_spill] sm:$0xff] }
 0x4fe   : > { %v12182_v19 = vmax.f32 %v16046_v26, 0.0  ;;  %v5262_v26 = vld [vmem:[#allocation8 + $0x1010] sm:$0xff]  ;;  %v5015_v52 = vld [vmem:[#allocation8 + $0x858] sm:$0xff] }
 0x4ff   : > { %11120 = vmatpush1.bf16.msra.mxu0 %v15238_v6  ;;  %v12183_v50 = vmax.f32 %v16047_v36, 0.0  ;;  %v5011_v6 = vld [vmem:[#allocation8 + $0x838] sm:$0xff] }
 0x500   : > { %v20419_v42 = vpack.c.bf16 %v12182_v19, %v12174_v8  ;;  %11572 = vmatpush1.bf16.msra.mxu1 %v14984_v20  ;;  %11121 = vmatprep.subr.bf16.mxu0 %v15247_v55  ;;  %v15000_v55 = vcombine.low %v4999_v62, %v5003_v35  ;;  %v5019_v15 = vld [vmem:[#allocation8 + $0x878] sm:$0xff]  ;;  %v15262_v35 = vcombine.low %v5262_v26, %v5266_v33 }
 0x501   : > { %v20421_v3 = vpack.c.bf16 %v12183_v50, %v12175_v37  ;;  %11083 = vmatmul.mubr.bf16.gmra.mrb[156].mxu0 %v21341_v1  ;;  %11573 = vmatprep.subr.bf16.mxu1 %v14993_v12  ;;  %v10047_v40 = vpop.f32.mrb[116].mxu0  ;;  %v15263_v12 = vcombine.high %v5262_v26, %v5266_v33  ;;  %v15009_v37 = vcombine.high %v5007_v11, %v5011_v6 }
 0x502   : > { %21339 = vst [vmem:[#allocation41_spill] sm:$0xff] %v20419_v42  ;;  %11535 = vmatmul.mubr.bf16.gmra.mrb[188].mxu1 %v21292_v16  ;;  %11125 = vmatprep.mubr.bf16.mxu0 %v21342_v29  ;;  %v16048_v19 = vadd.f32 %v10047_v40, %v20358_v32  ;;  %v10049_v41 = vpop.f32.mrb[117].mxu0  ;;  %v5274_v42 = vld [vmem:[#allocation8 + $0x1070] sm:$0xff] }
 0x503   : > { %21340 = vst [vmem:[#allocation40_spill] sm:$0xff] %v20421_v3  ;;  %11122 = vmatpush1.bf16.msra.mxu0 %v15246_v57  ;;  %11577 = vmatprep.mubr.bf16.mxu1 %v21294_v63  ;;  %v16049_v22 = vadd.f32 %v10049_v41, %v20361_v46  ;;  %v10051_v20 = vpop.f32.mrb[118].mxu0  ;;  %v5270_v57 = vld [vmem:[#allocation8 + $0x1050] sm:$0xff] }
 0x504   : > { %11574 = vmatpush1.bf16.msra.mxu1 %v14992_v47  ;;  %11123 = vmatprep.subr.bf16.mxu0 %v15255_v61  ;;  %v16050_v36 = vadd.f32 %v10051_v20, %v20358_v32  ;;  %v10053_v16 = vpop.f32.mrb[119].mxu0  ;;  %v12190_v50 = vmax.f32 %v16048_v19, 0.0  ;;  %v15008_v61 = vcombine.low %v5007_v11, %v5011_v6  ;;  %v15271_v20 = vcombine.high %v5270_v57, %v5274_v42  ;;  %v21345_v19 = vld [vmem:[#allocation82_spill] sm:$0xff] }
 0x505   : > { %11575 = vmatprep.subr.bf16.mxu1 %v15001_v23  ;;  %v16051_v8 = vadd.f32 %v10053_v16, %v20361_v46  ;;  %v12191_v63 = vmax.f32 %v16049_v22, 0.0  ;;  %v5278_v16 = vld [vmem:[#allocation8 + $0x1090] sm:$0xff]  ;;  %v5027_v11 = vld [vmem:[#allocation8 + $0x8b8] sm:$0xff]  ;;  %v15270_v6 = vcombine.low %v5270_v57, %v5274_v42 }
 0x506   : > { %v12198_v40 = vmax.f32 %v16050_v36, 0.0 }
 0x507   : > { %11124 = vmatpush1.bf16.msra.mxu0 %v15254_v34  ;;  %v12199_v41 = vmax.f32 %v16051_v8, 0.0  ;;  %v15017_v34 = vcombine.high %v5015_v52, %v5019_v15  ;;  %v5282_v8 = vld [vmem:[#allocation8 + $0x10b0] sm:$0xff] }
 0x508   : > { %v20431_v47 = vpack.c.bf16 %v12198_v40, %v12190_v50  ;;  %11576 = vmatpush1.bf16.msra.mxu1 %v15000_v55  ;;  %11206 = vmatprep.subr.bf16.mxu0 %v15263_v12  ;;  %v21346_v50 = vld [vmem:[#allocation88_spill] sm:$0xff]  ;;  %v5023_v55 = vld [vmem:[#allocation8 + $0x898] sm:$0xff]  ;;  %v15016_v40 = vcombine.low %v5015_v52, %v5019_v15  ;;  %v15278_v57 = vcombine.low %v5278_v16, %v5282_v8 }
 0x509   : > { %v20433_v62 = vpack.c.bf16 %v12199_v41, %v12191_v63  ;;  %11658 = vmatprep.subr.bf16.mxu1 %v15009_v37  ;;  %v10057_v23 = vpop.f32.mrb[120].mxu0  ;;  %v15024_v52 = vcombine.low %v5023_v55, %v5027_v11 }
 0x50a   : > { %21343 = vst [vmem:[#allocation43_spill] sm:$0xff] %v20431_v47  ;;  %11126 = vmatmul.mubr.bf16.vlgmr.msra.gmra.mrb[128].mxu0 %v21345_v19  ;;  %v16052_v36 = vadd.f32 %v10057_v23, %v20358_v32  ;;  %v10059_v22 = vpop.f32.mrb[121].mxu0  ;;  %v5286_v47 = vld [vmem:[#allocation8 + $0x10d0] sm:$0xff] }
 0x50b   : > { %21344 = vst [vmem:[#allocation42_spill] sm:$0xff] %v20433_v62  ;;  %11578 = vmatmul.mubr.bf16.vlgmr.msra.gmra.mrb[160].mxu1 %v21296_v25  ;;  %11135 = vmatprep.mubr.bf16.mxu0 %v21346_v50  ;;  %v16053_v26 = vadd.f32 %v10059_v22, %v20361_v46  ;;  %v10061_v33 = vpop.f32.mrb[122].mxu0  ;;  %v15279_v25 = vcombine.high %v5278_v16, %v5282_v8  ;;  %v5290_v62 = vld [vmem:[#allocation8 + $0x10f0] sm:$0xff]  ;;  %v5031_v50 = vld [vmem:[#allocation8 + $0x8d8] sm:$0xff] }
 0x50c   : > { %11207 = vmatpush1.bf16.msra.mxu0 %v15262_v35  ;;  %11587 = vmatprep.mubr.bf16.mxu1 %v21298_v18  ;;  %v16054_v12 = vadd.f32 %v10061_v33, %v20358_v32  ;;  %v10063_v37 = vpop.f32.mrb[123].mxu0  ;;  %v12206_v41 = vmax.f32 %v16052_v36, 0.0  ;;  %v15025_v22 = vcombine.high %v5023_v55, %v5027_v11  ;;  %v5035_v18 = vld [vmem:[#allocation8 + $0x8f8] sm:$0xff]  ;;  %v15286_v11 = vcombine.low %v5286_v47, %v5290_v62 }
 0x50d   : > { %11659 = vmatpush1.bf16.msra.mxu1 %v15008_v61  ;;  %11208 = vmatprep.subr.bf16.mxu0 %v15271_v20  ;;  %v16055_v63 = vadd.f32 %v10063_v37, %v20361_v46  ;;  %v12207_v3 = vmax.f32 %v16053_v26, 0.0  ;;  %v15287_v20 = vcombine.high %v5286_v47, %v5290_v62  ;;  %v21349_v36 = vld [vmem:[#allocation86_spill] sm:$0xff]  ;;  %v15033_v33 = vcombine.high %v5031_v50, %v5035_v18 }
 0x50e   : > { %11660 = vmatprep.subr.bf16.mxu1 %v15017_v34  ;;  %v12214_v23 = vmax.f32 %v16054_v12, 0.0  ;;  %v5294_v12 = vld [vmem:[#allocation8 + $0x1110] sm:$0xff]  ;;  %v5039_v8 = vld [vmem:[#allocation8 + $0x918] sm:$0xff] }
 0x50f   : > { %v12215_v35 = vmax.f32 %v16055_v63, 0.0  ;;  %v5298_v37 = vld [vmem:[#allocation8 + $0x1130] sm:$0xff]  ;;  %v5043_v55 = vld [vmem:[#allocation8 + $0x938] sm:$0xff] }
 0x510   : > { %v20443_v42 = vpack.c.bf16 %v12214_v23, %v12206_v41  ;;  %11209 = vmatpush1.bf16.msra.mxu0 %v15270_v6  ;;  %v21350_v6 = vld [vmem:[#allocation91_spill] sm:$0xff] }
 0x511   : > { %11661 = vmatpush1.bf16.msra.mxu1 %v15016_v40  ;;  %v20445_v61 = vpack.c.bf16 %v12215_v35, %v12207_v3  ;;  %11210 = vmatprep.subr.bf16.mxu0 %v15279_v25  ;;  %v10067_v15 = vpop.f32.mrb[124].mxu0  ;;  %v15032_v25 = vcombine.low %v5031_v50, %v5035_v18  ;;  %v15041_v35 = vcombine.high %v5039_v8, %v5043_v55 }
 0x512   : > { %21347 = vst [vmem:[#allocation45_spill] sm:$0xff] %v20443_v42  ;;  %11136 = vmatmul.mubr.bf16.gmra.mrb[132].mxu0 %v21349_v36  ;;  %11662 = vmatprep.subr.bf16.mxu1 %v15025_v22  ;;  %v16056_v34 = vadd.f32 %v10067_v15, %v20358_v32  ;;  %v10069_v26 = vpop.f32.mrb[125].mxu0  ;;  %v5302_v15 = vld [vmem:[#allocation8 + $0x1150] sm:$0xff] }
 0x513   : > { %21348 = vst [vmem:[#allocation44_spill] sm:$0xff] %v20445_v61  ;;  %11588 = vmatmul.mubr.bf16.gmra.mrb[164].mxu1 %v21300_v14  ;;  %11145 = vmatprep.mubr.bf16.mxu0 %v21350_v6  ;;  %v16057_v3 = vadd.f32 %v10069_v26, %v20361_v46  ;;  %v10071_v16 = vpop.f32.mrb[126].mxu0  ;;  %v15295_v14 = vcombine.high %v5294_v12, %v5298_v37  ;;  %v5306_v26 = vld [vmem:[#allocation8 + $0x1170] sm:$0xff]  ;;  %v5047_v61 = vld [vmem:[#allocation8 + $0x958] sm:$0xff] }
 0x514   : > { %11211 = vmatpush1.bf16.msra.mxu0 %v15278_v57  ;;  %11597 = vmatprep.mubr.bf16.mxu1 %v21302_v21  ;;  %v16058_v40 = vadd.f32 %v10071_v16, %v20358_v32  ;;  %v10073_v63 = vpop.f32.mrb[127].mxu0  ;;  %v12222_v23 = vmax.f32 %v16056_v34, 0.0  ;;  %v5051_v21 = vld [vmem:[#allocation8 + $0x978] sm:$0xff]  ;;  %v15294_v32 = vcombine.low %v5294_v12, %v5298_v37  ;;  %v15303_v50 = vcombine.high %v5302_v15, %v5306_v26  ;;  %v5318_v16 = vld [vmem:[#allocation8 + $0x11d0] sm:$0xff] }
 0x515   : > { %11663 = vmatpush1.bf16.msra.mxu1 %v15024_v52  ;;  %11212 = vmatprep.subr.bf16.mxu0 %v15287_v20  ;;  %v16059_v41 = vadd.f32 %v10073_v63, %v20361_v46  ;;  %v12223_v42 = vmax.f32 %v16057_v3, 0.0  ;;  %v15040_v46 = vcombine.low %v5039_v8, %v5043_v55  ;;  %v15049_v18 = vcombine.high %v5047_v61, %v5051_v21  ;;  %v5310_v52 = vld [vmem:[#allocation8 + $0x1190] sm:$0xff]  ;;  %v5055_v34 = vld [vmem:[#allocation8 + $0x998] sm:$0xff] }
 0x516   : > { %11664 = vmatprep.subr.bf16.mxu1 %v15033_v33  ;;  %v12230_v22 = vmax.f32 %v16058_v40, 0.0  ;;  %v5314_v20 = vld [vmem:[#allocation8 + $0x11b0] sm:$0xff]  ;;  %v5059_v33 = vld [vmem:[#allocation8 + $0x9b8] sm:$0xff]  ;;  %v15048_v12 = vcombine.low %v5047_v61, %v5051_v21 }
 0x517   : > { %v12231_v57 = vmax.f32 %v16059_v41, 0.0  ;;  %v15311_v37 = vcombine.high %v5310_v52, %v5314_v20  ;;  %v15057_v3 = vcombine.high %v5055_v34, %v5059_v33  ;;  %v5322_v8 = vld [vmem:[#allocation8 + $0x11f0] sm:$0xff]  ;;  %v5063_v55 = vld [vmem:[#allocation8 + $0x9d8] sm:$0xff]  ;;  %v15056_v40 = vcombine.low %v5055_v34, %v5059_v33 }
 0x518   : > { %v20455_v47 = vpack.c.bf16 %v12230_v22, %v12222_v23  ;;  %11213 = vmatpush1.bf16.msra.mxu0 %v15286_v11  ;;  %v5067_v11 = vld [vmem:[#allocation8 + $0x9f8] sm:$0xff]  ;;  %v15319_v63 = vcombine.high %v5318_v16, %v5322_v8  ;;  %v5330_v41 = vld [vmem:[#allocation8 + $0x1230] sm:$0xff]  ;;  %v15318_v23 = vcombine.low %v5318_v16, %v5322_v8 }
 0x519   : > { %11665 = vmatpush1.bf16.msra.mxu1 %v15032_v25  ;;  %v20457_v62 = vpack.c.bf16 %v12231_v57, %v12223_v42  ;;  %11214 = vmatprep.subr.bf16.mxu0 %v15295_v14  ;;  %v15302_v42 = vcombine.low %v5302_v15, %v5306_v26  ;;  %v5326_v25 = vld [vmem:[#allocation8 + $0x1210] sm:$0xff]  ;;  %v5071_v61 = vld [vmem:[#allocation8 + $0xa18] sm:$0xff]  ;;  %v15064_v22 = vcombine.low %v5063_v55, %v5067_v11 }
 0x51a   : > { %11146 = vmatmul.mubr.bf16.gmra.mrb[136].mxu0 %v19888_v9  ;;  %11666 = vmatprep.subr.bf16.mxu1 %v15041_v35  ;;  %v5075_v14 = vld [vmem:[#allocation8 + $0xa38] sm:$0xff]  ;;  %v15327_v35 = vcombine.high %v5326_v25, %v5330_v41  ;;  %v5334_v26 = vld [vmem:[#allocation8 + $0x1250] sm:$0xff] }
 0x51b   : > { %11598 = vmatmul.mubr.bf16.gmra.mrb[168].mxu1 %v21303_v56  ;;  %11155 = vmatprep.mubr.bf16.mxu0 %v19947_v48  ;;  %v15310_v56 = vcombine.low %v5310_v52, %v5314_v20  ;;  %v15073_v15 = vcombine.high %v5071_v61, %v5075_v14  ;;  %v5338_v57 = vld [vmem:[#allocation8 + $0x1270] sm:$0xff]  ;;  %v5079_v21 = vld [vmem:[#allocation8 + $0xa58] sm:$0xff] }
 0x51c   : > { %11215 = vmatpush1.bf16.msra.mxu0 %v15294_v32  ;;  %11607 = vmatprep.mubr.bf16.mxu1 %v21304_v2  ;;  %v15065_v2 = vcombine.high %v5063_v55, %v5067_v11  ;;  %v5083_v32 = vld [vmem:[#allocation8 + $0xa78] sm:$0xff]  ;;  %v5346_v52 = vld [vmem:[#allocation8 + $0x12b0] sm:$0xff]  ;;  %v15334_v33 = vcombine.low %v5334_v26, %v5338_v57 }
 0x51d   : > { %11667 = vmatpush1.bf16.msra.mxu1 %v15040_v46  ;;  %11216 = vmatprep.subr.bf16.mxu0 %v15303_v50  ;;  %v15072_v46 = vcombine.low %v5071_v61, %v5075_v14  ;;  %v15335_v50 = vcombine.high %v5334_v26, %v5338_v57  ;;  %v5087_v20 = vld [vmem:[#allocation8 + $0xa98] sm:$0xff]  ;;  %v5354_v16 = vld [vmem:[#allocation8 + $0x12f0] sm:$0xff] }
 0x51e   : > { %11668 = vmatprep.subr.bf16.mxu1 %v15049_v18  ;;  %v5342_v18 = vld [vmem:[#allocation8 + $0x1290] sm:$0xff]  ;;  %v5091_v34 = vld [vmem:[#allocation8 + $0xab8] sm:$0xff] }
 0x51f   : > { %v5095_v8 = vld [vmem:[#allocation8 + $0xad8] sm:$0xff]  ;;  %v15088_v11 = vcombine.low %v5087_v20, %v5091_v34 }
 0x520   : > { %11217 = vmatpush1.bf16.msra.mxu0 %v15302_v42  ;;  %v15080_v42 = vcombine.low %v5079_v21, %v5083_v32  ;;  %v5099_v55 = vld [vmem:[#allocation8 + $0xaf8] sm:$0xff] }
 0x521   : > { %11669 = vmatpush1.bf16.msra.mxu1 %v15048_v12  ;;  %11218 = vmatprep.subr.bf16.mxu0 %v15311_v37  ;;  %v15343_v12 = vcombine.high %v5342_v18, %v5346_v52  ;;  %v15089_v37 = vcombine.high %v5087_v20, %v5091_v34  ;;  %v15096_v61 = vcombine.low %v5095_v8, %v5099_v55  ;;  %v5115_v26 = vld [vmem:[#allocation8 + $0xb78] sm:$0xff] }
 0x522   : > { %11156 = vmatmul.mubr.bf16.gmra.mrb[140].mxu0 %v19940_v43  ;;  %11670 = vmatprep.subr.bf16.mxu1 %v15057_v3  ;;  %v5350_v3 = vld [vmem:[#allocation8 + $0x12d0] sm:$0xff] }
 0x523   : > { %11608 = vmatmul.mubr.bf16.gmra.mrb[172].mxu1 %v21305_v10  ;;  %11165 = vmatprep.mubr.bf16.mxu0 %v19999_v45  ;;  %v15326_v10 = vcombine.low %v5326_v25, %v5330_v41  ;;  %v5107_v25 = vld [vmem:[#allocation8 + $0xb38] sm:$0xff]  ;;  %v15350_v41 = vcombine.low %v5350_v3, %v5354_v16 }
 0x524   : > { %11219 = vmatpush1.bf16.msra.mxu0 %v15310_v56  ;;  %11617 = vmatprep.mubr.bf16.mxu1 %v21306_v38  ;;  %v15081_v38 = vcombine.high %v5079_v21, %v5083_v32  ;;  %v15351_v56 = vcombine.high %v5350_v3, %v5354_v16  ;;  %v5374_v32 = vld [vmem:[#allocation8 + $0x1390] sm:$0xff] }
 0x525   : > { %11671 = vmatpush1.bf16.msra.mxu1 %v15056_v40  ;;  %11220 = vmatprep.subr.bf16.mxu0 %v15319_v63  ;;  %v5358_v40 = vld [vmem:[#allocation8 + $0x1310] sm:$0xff] }
 0x526   : > { %11672 = vmatprep.subr.bf16.mxu1 %v15065_v2  ;;  %v5362_v63 = vld [vmem:[#allocation8 + $0x1330] sm:$0xff]  ;;  %v5103_v2 = vld [vmem:[#allocation8 + $0xb18] sm:$0xff] }
 0x527   : > { %v15359_v14 = vcombine.high %v5358_v40, %v5362_v63  ;;  %v15104_v57 = vcombine.low %v5103_v2, %v5107_v25 }
 0x528   : > { %11221 = vmatpush1.bf16.msra.mxu0 %v15318_v23  ;;  %v15105_v23 = vcombine.high %v5103_v2, %v5107_v25 }
 0x529   : > { %11673 = vmatpush1.bf16.msra.mxu1 %v15064_v22  ;;  %11222 = vmatprep.subr.bf16.mxu0 %v15327_v35  ;;  %v5366_v22 = vld [vmem:[#allocation8 + $0x1350] sm:$0xff] }
 0x52a   : > { %11166 = vmatmul.mubr.bf16.gmra.mrb[144].mxu0 %v19992_v4  ;;  %11674 = vmatprep.subr.bf16.mxu1 %v15073_v15  ;;  %v5370_v35 = vld [vmem:[#allocation8 + $0x1370] sm:$0xff]  ;;  %v5111_v15 = vld [vmem:[#allocation8 + $0xb58] sm:$0xff] }
 0x52b   : > { %11618 = vmatmul.mubr.bf16.gmra.mrb[176].mxu1 %v21307_v13  ;;  %11175 = vmatprep.mubr.bf16.mxu0 %v20048_v17  ;;  %v15342_v13 = vcombine.low %v5342_v18, %v5346_v52  ;;  %v15367_v21 = vcombine.high %v5366_v22, %v5370_v35  ;;  %v15366_v18 = vcombine.low %v5366_v22, %v5370_v35  ;;  %v5147_v22 = vld [vmem:[#allocation8 + $0xc78] sm:$0xff] }
 0x52c   : > { %11223 = vmatpush1.bf16.msra.mxu0 %v15326_v10  ;;  %11627 = vmatprep.mubr.bf16.mxu1 %v21308_v31  ;;  %v15097_v31 = vcombine.high %v5095_v8, %v5099_v55  ;;  %v5378_v10 = vld [vmem:[#allocation8 + $0x13b0] sm:$0xff]  ;;  %v15112_v52 = vcombine.low %v5111_v15, %v5115_v26 }
 0x52d   : > { %11675 = vmatpush1.bf16.msra.mxu1 %v15072_v46  ;;  %11224 = vmatprep.subr.bf16.mxu0 %v15335_v50  ;;  %v21351_v46 = vld [vmem:[#allocation103_spill] sm:$0xff]  ;;  %v15375_v20 = vcombine.high %v5374_v32, %v5378_v10  ;;  %v21352_v8 = vld [vmem:[#allocation101_spill] sm:$0xff] }
 0x52e   : > { %11676 = vmatprep.subr.bf16.mxu1 %v15081_v38  ;;  %v5119_v50 = vld [vmem:[#allocation8 + $0xb98] sm:$0xff]  ;;  %v5390_v55 = vld [vmem:[#allocation8 + $0x1410] sm:$0xff] }
 0x52f   : > { %v5123_v38 = vld [vmem:[#allocation8 + $0xbb8] sm:$0xff] }
 0x530   : > { %11225 = vmatpush1.bf16.msra.mxu0 %v15334_v33  ;;  %v15121_v34 = vcombine.high %v5119_v50, %v5123_v38  ;;  %v5382_v33 = vld [vmem:[#allocation8 + $0x13d0] sm:$0xff]  ;;  %v15120_v3 = vcombine.low %v5119_v50, %v5123_v38  ;;  %v5155_v50 = vld [vmem:[#allocation8 + $0xcb8] sm:$0xff] }
 0x531   : > { %11677 = vmatpush1.bf16.msra.mxu1 %v15080_v42  ;;  %11226 = vmatprep.subr.bf16.mxu0 %v15343_v12  ;;  %v5386_v42 = vld [vmem:[#allocation8 + $0x13f0] sm:$0xff]  ;;  %v5127_v12 = vld [vmem:[#allocation8 + $0xbd8] sm:$0xff] }
 0x532   : > { %11176 = vmatmul.mubr.bf16.gmra.mrb[148].mxu0 %v20036_v28  ;;  %11678 = vmatprep.subr.bf16.mxu1 %v15089_v37  ;;  %v5131_v37 = vld [vmem:[#allocation8 + $0xbf8] sm:$0xff]  ;;  %v15383_v16 = vcombine.high %v5382_v33, %v5386_v42  ;;  %v21358_v38 = vld [vmem:[#allocation57_spill] sm:$0xff] }
 0x533   : > { %11628 = vmatmul.mubr.bf16.gmra.mrb[180].mxu1 %v21309_v44  ;;  %11185 = vmatprep.mubr.bf16.mxu0 %v20096_v60  ;;  %v15358_v44 = vcombine.low %v5358_v40, %v5362_v63  ;;  %v21354_v40 = vld [vmem:[#allocation53_spill] sm:$0xff]  ;;  %v15382_v63 = vcombine.low %v5382_v33, %v5386_v42  ;;  %v15128_v2 = vcombine.low %v5127_v12, %v5131_v37 }
 0x534   : > { %11227 = vmatpush1.bf16.msra.mxu0 %v15342_v13  ;;  %11637 = vmatprep.mubr.bf16.mxu1 %v21310_v59  ;;  %v15113_v59 = vcombine.high %v5111_v15, %v5115_v26  ;;  %v5394_v13 = vld [vmem:[#allocation8 + $0x1430] sm:$0xff]  ;;  %v21355_v26 = vld [vmem:[#allocation83_spill] sm:$0xff] }
 0x535   : > { %11679 = vmatpush1.bf16.msra.mxu1 %v15088_v11  ;;  %11228 = vmatprep.subr.bf16.mxu0 %v15351_v56  ;;  %v21353_v11 = vld [vmem:[#allocation85_spill] sm:$0xff]  ;;  %v5135_v56 = vld [vmem:[#allocation8 + $0xc18] sm:$0xff]  ;;  %v15391_v25 = vcombine.high %v5390_v55, %v5394_v13 }
 0x536   : > { %11680 = vmatprep.subr.bf16.mxu1 %v15097_v31  ;;  %v5139_v31 = vld [vmem:[#allocation8 + $0xc38] sm:$0xff]  ;;  %v5414_v33 = vld [vmem:[#allocation8 + $0x14d0] sm:$0xff] }
 0x537   : > { %v15136_v35 = vcombine.low %v5135_v56, %v5139_v31  ;;  %v5418_v42 = vld [vmem:[#allocation8 + $0x14f0] sm:$0xff] }
 0x538   : > { %11229 = vmatpush1.bf16.msra.mxu0 %v15350_v41  ;;  %v15137_v41 = vcombine.high %v5135_v56, %v5139_v31  ;;  %v5426_v56 = vld [vmem:[#allocation8 + $0x1530] sm:$0xff]  ;;  %v21360_v31 = vld [vmem:[#allocation55_spill] sm:$0xff] }
 0x539   : > { %11681 = vmatpush1.bf16.msra.mxu1 %v15096_v61  ;;  %11230 = vmatprep.subr.bf16.mxu0 %v15359_v14  ;;  %v5398_v61 = vld [vmem:[#allocation8 + $0x1450] sm:$0xff] }
 0x53a   : > { %11186 = vmatmul.mubr.bf16.gmra.mrb[152].mxu0 %v20088_v51  ;;  %11682 = vmatprep.subr.bf16.mxu1 %v15105_v23  ;;  %v5402_v14 = vld [vmem:[#allocation8 + $0x1470] sm:$0xff]  ;;  %v5143_v23 = vld [vmem:[#allocation8 + $0xc58] sm:$0xff] }
 0x53b   : > { %11638 = vmatmul.mubr.bf16.gmra.mrb[184].mxu1 %v21311_v0  ;;  %11195 = vmatprep.mubr.bf16.mxu0 %v21351_v46  ;;  %v15374_v0 = vcombine.low %v5374_v32, %v5378_v10  ;;  %v15399_v15 = vcombine.high %v5398_v61, %v5402_v14  ;;  %v21357_v32 = vld [vmem:[#allocation89_spill] sm:$0xff]  ;;  %v5151_v10 = vld [vmem:[#allocation8 + $0xc98] sm:$0xff] }
 0x53c   : > { %11231 = vmatpush1.bf16.msra.mxu0 %v15358_v44  ;;  %11647 = vmatprep.mubr.bf16.mxu1 %v21312_v39  ;;  %v15129_v39 = vcombine.high %v5127_v12, %v5131_v37  ;;  %v15145_v44 = vcombine.high %v5143_v23, %v5147_v22  ;;  %v5159_v12 = vld [vmem:[#allocation8 + $0xcd8] sm:$0xff] }
 0x53d   : > { %11683 = vmatpush1.bf16.msra.mxu1 %v15104_v57  ;;  %11232 = vmatprep.subr.bf16.mxu0 %v15367_v21  ;;  %v5406_v57 = vld [vmem:[#allocation8 + $0x1490] sm:$0xff]  ;;  %v5163_v37 = vld [vmem:[#allocation8 + $0xcf8] sm:$0xff] }
 0x53e   : > { %11684 = vmatprep.subr.bf16.mxu1 %v15113_v59  ;;  %v5410_v21 = vld [vmem:[#allocation8 + $0x14b0] sm:$0xff]  ;;  %v21356_v59 = vld [vmem:[#allocation51_spill] sm:$0xff] }
 0x540   : > { %11233 = vmatpush1.bf16.msra.mxu0 %v15366_v18  ;;  %v15398_v18 = vcombine.low %v5398_v61, %v5402_v14  ;;  %v15160_v61 = vcombine.low %v5159_v12, %v5163_v37 }
 0x541   : > { %11685 = vmatpush1.bf16.msra.mxu1 %v15112_v52  ;;  %11234 = vmatprep.subr.bf16.mxu0 %v15375_v20  ;;  %v15144_v52 = vcombine.low %v5143_v23, %v5147_v22  ;;  %v15407_v20 = vcombine.high %v5406_v57, %v5410_v21  ;;  %v5430_v22 = vld [vmem:[#allocation8 + $0x1550] sm:$0xff] }
 0x542   : > { %11196 = vmatmul.mubr.bf16.gmra.mrb[156].mxu0 %v21352_v8  ;;  %11686 = vmatprep.subr.bf16.mxu1 %v15121_v34  ;;  %v15153_v34 = vcombine.high %v5151_v10, %v5155_v50 }
 0x543   : > { %11648 = vmatmul.mubr.bf16.gmra.mrb[188].mxu1 %v21313_v58  ;;  %11238 = vmatprep.mubr.bf16.mxu0 %v21353_v11  ;;  %v15390_v58 = vcombine.low %v5390_v55, %v5394_v13  ;;  %v15161_v55 = vcombine.high %v5159_v12, %v5163_v37  ;;  %v5422_v13 = vld [vmem:[#allocation8 + $0x1510] sm:$0xff]  ;;  %v21366_v12 = vld [vmem:[#allocation59_spill] sm:$0xff] }
 0x544   : > { %11235 = vmatpush1.bf16.msra.mxu0 %v15374_v0  ;;  %11690 = vmatprep.mubr.bf16.mxu1 %v21354_v40  ;;  %v15406_v0 = vcombine.low %v5406_v57, %v5410_v21  ;;  %v21361_v40 = vld [vmem:[#allocation92_spill] sm:$0xff]  ;;  %v15423_v14 = vcombine.high %v5422_v13, %v5426_v56  ;;  %v5175_v57 = vld [vmem:[#allocation8 + $0xd58] sm:$0xff] }
 0x545   : > { %11687 = vmatpush1.bf16.msra.mxu1 %v15120_v3  ;;  %11236 = vmatprep.subr.bf16.mxu0 %v15383_v16  ;;  %v15152_v3 = vcombine.low %v5151_v10, %v5155_v50  ;;  %v15415_v16 = vcombine.high %v5414_v33, %v5418_v42  ;;  %v5179_v21 = vld [vmem:[#allocation8 + $0xd78] sm:$0xff]  ;;  %v21364_v10 = vld [vmem:[#allocation49_spill] sm:$0xff] }
 0x546   : > { %11688 = vmatprep.subr.bf16.mxu1 %v15129_v39  ;;  %v21359_v39 = vld [vmem:[#allocation87_spill] sm:$0xff]  ;;  %v21367_v37 = vld [vmem:[#allocation94_spill] sm:$0xff] }
 0x548   : > { %11237 = vmatpush1.bf16.msra.mxu0 %v15382_v63  ;;  %v5167_v63 = vld [vmem:[#allocation8 + $0xd18] sm:$0xff] }
 0x549   : > { %11689 = vmatpush1.bf16.msra.mxu1 %v15128_v2  ;;  %11319 = vmatprep.subr.bf16.mxu0 %v15391_v25  ;;  %v5171_v2 = vld [vmem:[#allocation8 + $0xd38] sm:$0xff]  ;;  %v21362_v25 = vld [vmem:[#allocation61_spill] sm:$0xff] }
 0x54a   : > { %11771 = vmatprep.subr.bf16.mxu1 %v15137_v41  ;;  %v15414_v41 = vcombine.low %v5414_v33, %v5418_v42  ;;  %v15169_v23 = vcombine.high %v5167_v63, %v5171_v2  ;;  %v5438_v33 = vld [vmem:[#allocation8 + $0x1590] sm:$0xff] }
 0x54b   : > { %11239 = vmatmul.mubr.bf16.vlgmr.msra.gmra.mrb[128].mxu0 %v21355_v26  ;;  %v5442_v42 = vld [vmem:[#allocation8 + $0x15b0] sm:$0xff] }
 0x54c   : > { %11691 = vmatmul.mubr.bf16.vlgmr.msra.gmra.mrb[160].mxu1 %v21356_v59  ;;  %11248 = vmatprep.mubr.bf16.mxu0 %v21357_v32  ;;  %v15422_v59 = vcombine.low %v5422_v13, %v5426_v56  ;;  %v21368_v13 = vld [vmem:[#allocation65_spill] sm:$0xff] }
 0x54d   : > { %11320 = vmatpush1.bf16.msra.mxu0 %v15390_v58  ;;  %11700 = vmatprep.mubr.bf16.mxu1 %v21358_v38  ;;  %v5434_v58 = vld [vmem:[#allocation8 + $0x1570] sm:$0xff]  ;;  %v15168_v38 = vcombine.low %v5167_v63, %v5171_v2  ;;  %v15176_v2 = vcombine.low %v5175_v57, %v5179_v21 }
 0x54e   : > { %11772 = vmatpush1.bf16.msra.mxu1 %v15136_v35  ;;  %11321 = vmatprep.subr.bf16.mxu0 %v15399_v15  ;;  %v18230_v35 = vld [vmem:[#allocation10] sm:$0xff] }
 0x54f   : > { %11773 = vmatprep.subr.bf16.mxu1 %v15145_v44  ;;  %v21363_v15 = vld [vmem:[#allocation48_spill] sm:$0xff]  ;;  %v20495_v50 = vrot.slane %v18230_v35, %v21364_v10 }
 0x550   : > { %v20492_v44 = vrot.slane %v18230_v35, %v21363_v15  ;;  %v5446_v35 = vld [vmem:[#allocation8 + $0x15d0] sm:$0xff] }
 0x551   : > { %11322 = vmatpush1.bf16.msra.mxu0 %v15398_v18  ;;  %v15431_v18 = vcombine.high %v5430_v22, %v5434_v58  ;;  %v5450_v15 = vld [vmem:[#allocation8 + $0x15f0] sm:$0xff] }
 0x552   : > { %11774 = vmatpush1.bf16.msra.mxu1 %v15144_v52  ;;  %11323 = vmatprep.subr.bf16.mxu0 %v15407_v20  ;;  %v21365_v52 = vld [vmem:[#allocation90_spill] sm:$0xff] }
 0x553   : > { %11249 = vmatmul.mubr.bf16.gmra.mrb[132].mxu0 %v21359_v39  ;;  %11775 = vmatprep.subr.bf16.mxu1 %v15153_v34  ;;  %v15177_v34 = vcombine.high %v5175_v57, %v5179_v21  ;;  %v15447_v21 = vcombine.high %v5446_v35, %v5450_v15 }
 0x554   : > { %11701 = vmatmul.mubr.bf16.gmra.mrb[164].mxu1 %v21360_v31  ;;  %11258 = vmatprep.mubr.bf16.mxu0 %v21361_v40  ;;  %v15430_v31 = vcombine.low %v5430_v22, %v5434_v58  ;;  %v15438_v58 = vcombine.low %v5438_v33, %v5442_v42 }
 0x555   : > { %11324 = vmatpush1.bf16.msra.mxu0 %v15406_v0  ;;  %11710 = vmatprep.mubr.bf16.mxu1 %v21362_v25 }
 0x556   : > { %11776 = vmatpush1.bf16.msra.mxu1 %v15152_v3  ;;  %11325 = vmatprep.subr.bf16.mxu0 %v15415_v16  ;;  %v5183_v16 = vld [vmem:[#allocation8 + $0xd98] sm:$0xff] }
 0x557   : > { %11777 = vmatprep.subr.bf16.mxu1 %v15161_v55  ;;  %v5187_v55 = vld [vmem:[#allocation8 + $0xdb8] sm:$0xff] }
 0x558   : > { %v15184_v57 = vcombine.low %v5183_v16, %v5187_v55 }
 0x559   : > { %11326 = vmatpush1.bf16.msra.mxu0 %v15414_v41 }
 0x55a   : > { %11778 = vmatpush1.bf16.msra.mxu1 %v15160_v61  ;;  %11327 = vmatprep.subr.bf16.mxu0 %v15423_v14  ;;  %v15439_v61 = vcombine.high %v5438_v33, %v5442_v42 }
 0x55b   : > { %11259 = vmatmul.mubr.bf16.gmra.mrb[136].mxu0 %v21365_v52  ;;  %11779 = vmatprep.subr.bf16.mxu1 %v15169_v23  ;;  %v10675_v20 = vpop.f32.mrb[128].mxu1  ;;  %v15185_v23 = vcombine.high %v5183_v16, %v5187_v55  ;;  %v15446_v55 = vcombine.low %v5446_v35, %v5450_v15 }
 0x55c   : > { %11711 = vmatmul.mubr.bf16.gmra.mrb[168].mxu1 %v21366_v12  ;;  %11268 = vmatprep.mubr.bf16.mxu0 %v21367_v37  ;;  %v16060_v0 = vadd.f32 %v10675_v20, %v20492_v44  ;;  %v10677_v3 = vpop.f32.mrb[129].mxu1  ;;  %v5191_v20 = vld [vmem:[#allocation8 + $0xdd8] sm:$0xff] }
 0x55d   : > { %11328 = vmatpush1.bf16.msra.mxu0 %v15422_v59  ;;  %11720 = vmatprep.mubr.bf16.mxu1 %v21368_v13  ;;  %v16061_v56 = vadd.f32 %v10677_v3, %v20495_v50  ;;  %v10679_v63 = vpop.f32.mrb[130].mxu1  ;;  %v5195_v12 = vld [vmem:[#allocation8 + $0xdf8] sm:$0xff] }
 0x55e   : > { %11780 = vmatpush1.bf16.msra.mxu1 %v15168_v38  ;;  %11329 = vmatprep.subr.bf16.mxu0 %v15431_v18  ;;  %v16062_v25 = vadd.f32 %v10679_v63, %v20492_v44  ;;  %v10681_v41 = vpop.f32.mrb[131].mxu1  ;;  %v12112_v59 = vmax.f32 %v16060_v0, 0.0  ;;  %v15193_v0 = vcombine.high %v5191_v20, %v5195_v12  ;;  %v5454_v63 = vld [vmem:[#allocation8 + $0x1610] sm:$0xff] }
 0x55f   : > { %11781 = vmatprep.subr.bf16.mxu1 %v15177_v34  ;;  %v16063_v14 = vadd.f32 %v10681_v41, %v20495_v50  ;;  %v12113_v3 = vmax.f32 %v16061_v56, 0.0  ;;  %v21370_v34 = vld [vmem:[#allocation93_spill] sm:$0xff]  ;;  %v21371_v56 = vld [vmem:[#allocation96_spill] sm:$0xff] }
 0x560   : > { %v12120_v10 = vmax.f32 %v16062_v25, 0.0  ;;  %v5458_v25 = vld [vmem:[#allocation8 + $0x1630] sm:$0xff] }
 0x561   : > { %11330 = vmatpush1.bf16.msra.mxu0 %v15430_v31  ;;  %v12121_v22 = vmax.f32 %v16063_v14, 0.0  ;;  %v5199_v31 = vld [vmem:[#allocation8 + $0xe18] sm:$0xff]  ;;  %v15454_v15 = vcombine.low %v5454_v63, %v5458_v25 }
 0x562   : > { %v20505_v38 = vpack.c.bf16 %v12120_v10, %v12112_v59  ;;  %11782 = vmatpush1.bf16.msra.mxu1 %v15176_v2  ;;  %11331 = vmatprep.subr.bf16.mxu0 %v15439_v61  ;;  %v5203_v2 = vld [vmem:[#allocation8 + $0xe38] sm:$0xff]  ;;  %v15192_v61 = vcombine.low %v5191_v20, %v5195_v12 }
 0x563   : > { %v20507_v18 = vpack.c.bf16 %v12121_v22, %v12113_v3  ;;  %11269 = vmatmul.mubr.bf16.gmra.mrb[140].mxu0 %v21370_v34  ;;  %11783 = vmatprep.subr.bf16.mxu1 %v15185_v23  ;;  %v10685_v13 = vpop.f32.mrb[132].mxu1  ;;  %v15455_v23 = vcombine.high %v5454_v63, %v5458_v25  ;;  %v15201_v10 = vcombine.high %v5199_v31, %v5203_v2  ;;  %v5462_v3 = vld [vmem:[#allocation8 + $0x1650] sm:$0xff] }
 0x564   : > { %21369 = vst [vmem:[#allocation47_spill] sm:$0xff] %v20505_v38  ;;  %11721 = vmatmul.mubr.bf16.gmra.mrb[172].mxu1 %v21325_v24  ;;  %11278 = vmatprep.mubr.bf16.mxu0 %v21371_v56  ;;  %v16064_v33 = vadd.f32 %v10685_v13, %v20492_v44  ;;  %v10687_v42 = vpop.f32.mrb[133].mxu1  ;;  %v5466_v22 = vld [vmem:[#allocation8 + $0x1670] sm:$0xff]  ;;  %v5211_v38 = vld [vmem:[#allocation8 + $0xe78] sm:$0xff]  ;;  %v15200_v20 = vcombine.low %v5199_v31, %v5203_v2 }
 0x565   : > { %11332 = vmatpush1.bf16.msra.mxu0 %v15438_v58  ;;  %11730 = vmatprep.mubr.bf16.mxu1 %v21326_v30  ;;  %v16065_v16 = vadd.f32 %v10687_v42, %v20495_v50  ;;  %v10689_v41 = vpop.f32.mrb[134].mxu1  ;;  %v5207_v30 = vld [vmem:[#allocation8 + $0xe58] sm:$0xff]  ;;  %v15463_v12 = vcombine.high %v5462_v3, %v5466_v22  ;;  %v15462_v2 = vcombine.low %v5462_v3, %v5466_v22 }
 0x566   : > { %11784 = vmatpush1.bf16.msra.mxu1 %v15184_v57  ;;  %11333 = vmatprep.subr.bf16.mxu0 %v15447_v21  ;;  %v16066_v14 = vadd.f32 %v10689_v41, %v20492_v44  ;;  %v10691_v24 = vpop.f32.mrb[135].mxu1  ;;  %v12128_v58 = vmax.f32 %v16064_v33, 0.0  ;;  %v15209_v33 = vcombine.high %v5207_v30, %v5211_v38 }
 0x567   : > { %11785 = vmatprep.subr.bf16.mxu1 %v15193_v0  ;;  %v16067_v59 = vadd.f32 %v10691_v24, %v20495_v50  ;;  %v12129_v42 = vmax.f32 %v16065_v16, 0.0  ;;  %v21374_v0 = vld [vmem:[#allocation95_spill] sm:$0xff]  ;;  %v5474_v24 = vld [vmem:[#allocation8 + $0x16b0] sm:$0xff] }
 0x568   : > { %v12136_v13 = vmax.f32 %v16066_v14, 0.0  ;;  %v5470_v14 = vld [vmem:[#allocation8 + $0x1690] sm:$0xff] }
 0x569   : > { %11334 = vmatpush1.bf16.msra.mxu0 %v15446_v55  ;;  %v12137_v35 = vmax.f32 %v16067_v59, 0.0  ;;  %v21375_v16 = vld [vmem:[#allocation98_spill] sm:$0xff]  ;;  %v15208_v59 = vcombine.low %v5207_v30, %v5211_v38  ;;  %v15470_v22 = vcombine.low %v5470_v14, %v5474_v24 }
 0x56a   : > { %v20517_v57 = vpack.c.bf16 %v12136_v13, %v12128_v58  ;;  %11786 = vmatpush1.bf16.msra.mxu1 %v15192_v61  ;;  %11335 = vmatprep.subr.bf16.mxu0 %v15455_v23  ;;  %v5215_v55 = vld [vmem:[#allocation8 + $0xe98] sm:$0xff]  ;;  %v15471_v58 = vcombine.high %v5470_v14, %v5474_v24 }
 0x56b   : > { %v20519_v21 = vpack.c.bf16 %v12137_v35, %v12129_v42  ;;  %11279 = vmatmul.mubr.bf16.gmra.mrb[144].mxu0 %v21374_v0  ;;  %11787 = vmatprep.subr.bf16.mxu1 %v15201_v10  ;;  %v10695_v41 = vpop.f32.mrb[136].mxu1  ;;  %v5219_v61 = vld [vmem:[#allocation8 + $0xeb8] sm:$0xff]  ;;  %v5478_v35 = vld [vmem:[#allocation8 + $0x16d0] sm:$0xff] }
 0x56c   : > { %21372 = vst [vmem:[#allocation46_spill] sm:$0xff] %v20517_v57  ;;  %11731 = vmatmul.mubr.bf16.gmra.mrb[176].mxu1 %v21329_v53  ;;  %11288 = vmatprep.mubr.bf16.mxu0 %v21375_v16  ;;  %v16068_v63 = vadd.f32 %v10695_v41, %v20492_v44  ;;  %v10697_v25 = vpop.f32.mrb[137].mxu1  ;;  %v15217_v42 = vcombine.high %v5215_v55, %v5219_v61  ;;  %v5482_v41 = vld [vmem:[#allocation8 + $0x16f0] sm:$0xff]  ;;  %v5231_v24 = vld [vmem:[#allocation8 + $0xf18] sm:$0xff] }
 0x56d   : > { %21373 = vst [vmem:[#allocation52_spill] sm:$0xff] %v20519_v21  ;;  %11336 = vmatpush1.bf16.msra.mxu0 %v15454_v15  ;;  %11740 = vmatprep.mubr.bf16.mxu1 %v21330_v7  ;;  %v16069_v31 = vadd.f32 %v10697_v25, %v20495_v50  ;;  %v10699_v23 = vpop.f32.mrb[138].mxu1  ;;  %v5223_v7 = vld [vmem:[#allocation8 + $0xed8] sm:$0xff]  ;;  %v15216_v38 = vcombine.low %v5215_v55, %v5219_v61 }
 0x56e   : > { %11788 = vmatpush1.bf16.msra.mxu1 %v15200_v20  ;;  %11337 = vmatprep.subr.bf16.mxu0 %v15463_v12  ;;  %v16070_v10 = vadd.f32 %v10699_v23, %v20492_v44  ;;  %v10701_v53 = vpop.f32.mrb[139].mxu1  ;;  %v12144_v15 = vmax.f32 %v16068_v63, 0.0  ;;  %v5227_v21 = vld [vmem:[#allocation8 + $0xef8] sm:$0xff]  ;;  %v15479_v30 = vcombine.high %v5478_v35, %v5482_v41  ;;  %v15478_v61 = vcombine.low %v5478_v35, %v5482_v41 }
 0x56f   : > { %11789 = vmatprep.subr.bf16.mxu1 %v15209_v33  ;;  %v16071_v13 = vadd.f32 %v10701_v53, %v20495_v50  ;;  %v12145_v25 = vmax.f32 %v16069_v31, 0.0  ;;  %v21378_v33 = vld [vmem:[#allocation97_spill] sm:$0xff]  ;;  %v15225_v63 = vcombine.high %v5223_v7, %v5227_v21  ;;  %v21379_v31 = vld [vmem:[#allocation100_spill] sm:$0xff] }
 0x570   : > { %v12152_v57 = vmax.f32 %v16070_v10, 0.0  ;;  %v5486_v10 = vld [vmem:[#allocation8 + $0x1710] sm:$0xff] }
 0x571   : > { %11338 = vmatpush1.bf16.msra.mxu0 %v15462_v2  ;;  %v12153_v3 = vmax.f32 %v16071_v13, 0.0  ;;  %v5490_v53 = vld [vmem:[#allocation8 + $0x1730] sm:$0xff]  ;;  %v5235_v2 = vld [vmem:[#allocation8 + $0xf38] sm:$0xff] }
 0x572   : > { %v20529_v20 = vpack.c.bf16 %v12152_v57, %v12144_v15  ;;  %11790 = vmatpush1.bf16.msra.mxu1 %v15208_v59  ;;  %11339 = vmatprep.subr.bf16.mxu0 %v15471_v58  ;;  %v15224_v58 = vcombine.low %v5223_v7, %v5227_v21  ;;  %v15486_v41 = vcombine.low %v5486_v10, %v5490_v53 }
 0x573   : > { %v20531_v12 = vpack.c.bf16 %v12153_v3, %v12145_v25  ;;  %11289 = vmatmul.mubr.bf16.gmra.mrb[148].mxu0 %v21378_v33  ;;  %11791 = vmatprep.subr.bf16.mxu1 %v15217_v42  ;;  %v10705_v23 = vpop.f32.mrb[140].mxu1  ;;  %v15487_v42 = vcombine.high %v5486_v10, %v5490_v53  ;;  %v15233_v25 = vcombine.high %v5231_v24, %v5235_v2  ;;  %v5494_v3 = vld [vmem:[#allocation8 + $0x1750] sm:$0xff]  ;;  %v5247_v53 = vld [vmem:[#allocation8 + $0xf98] sm:$0xff] }
 0x574   : > { %21376 = vst [vmem:[#allocation50_spill] sm:$0xff] %v20529_v20  ;;  %11741 = vmatmul.mubr.bf16.gmra.mrb[180].mxu1 %v21333_v54  ;;  %11298 = vmatprep.mubr.bf16.mxu0 %v21379_v31  ;;  %v16072_v57 = vadd.f32 %v10705_v23, %v20492_v44  ;;  %v10707_v14 = vpop.f32.mrb[141].mxu1  ;;  %v5498_v23 = vld [vmem:[#allocation8 + $0x1770] sm:$0xff]  ;;  %v15232_v21 = vcombine.low %v5231_v24, %v5235_v2 }
 0x575   : > { %21377 = vst [vmem:[#allocation56_spill] sm:$0xff] %v20531_v12  ;;  %11340 = vmatpush1.bf16.msra.mxu0 %v15470_v22  ;;  %11750 = vmatprep.mubr.bf16.mxu1 %v21334_v49  ;;  %v16073_v55 = vadd.f32 %v10707_v14, %v20495_v50  ;;  %v10709_v59 = vpop.f32.mrb[142].mxu1  ;;  %v5239_v49 = vld [vmem:[#allocation8 + $0xf58] sm:$0xff]  ;;  %v15495_v7 = vcombine.high %v5494_v3, %v5498_v23 }
 0x576   : > { %11792 = vmatpush1.bf16.msra.mxu1 %v15216_v38  ;;  %11341 = vmatprep.subr.bf16.mxu0 %v15479_v30  ;;  %v16074_v13 = vadd.f32 %v10709_v59, %v20492_v44  ;;  %v10711_v54 = vpop.f32.mrb[143].mxu1  ;;  %v12160_v22 = vmax.f32 %v16072_v57, 0.0  ;;  %v5243_v12 = vld [vmem:[#allocation8 + $0xf78] sm:$0xff]  ;;  %v15494_v2 = vcombine.low %v5494_v3, %v5498_v23 }
 0x577   : > { %11793 = vmatprep.subr.bf16.mxu1 %v15225_v63  ;;  %v16075_v15 = vadd.f32 %v10711_v54, %v20495_v50  ;;  %v12161_v14 = vmax.f32 %v16073_v55, 0.0  ;;  %v21382_v63 = vld [vmem:[#allocation99_spill] sm:$0xff]  ;;  %v15241_v57 = vcombine.high %v5239_v49, %v5243_v12  ;;  %v5506_v54 = vld [vmem:[#allocation8 + $0x17b0] sm:$0xff]  ;;  %v21383_v55 = vld [vmem:[#allocation104_spill] sm:$0xff] }
 0x578   : > { %v12168_v20 = vmax.f32 %v16074_v13, 0.0  ;;  %v5502_v13 = vld [vmem:[#allocation8 + $0x1790] sm:$0xff] }
 0x579   : > { %11342 = vmatpush1.bf16.msra.mxu0 %v15478_v61  ;;  %v12169_v35 = vmax.f32 %v16075_v15, 0.0  ;;  %v5251_v61 = vld [vmem:[#allocation8 + $0xfb8] sm:$0xff]  ;;  %v15502_v23 = vcombine.low %v5502_v13, %v5506_v54 }
 0x57a   : > { %v20541_v38 = vpack.c.bf16 %v12168_v20, %v12160_v22  ;;  %11794 = vmatpush1.bf16.msra.mxu1 %v15224_v58  ;;  %11343 = vmatprep.subr.bf16.mxu0 %v15487_v42  ;;  %v15240_v42 = vcombine.low %v5239_v49, %v5243_v12  ;;  %v15248_v12 = vcombine.low %v5247_v53, %v5251_v61 }
 0x57b   : > { %v20543_v30 = vpack.c.bf16 %v12169_v35, %v12161_v14  ;;  %11299 = vmatmul.mubr.bf16.gmra.mrb[152].mxu0 %v21382_v63  ;;  %11795 = vmatprep.subr.bf16.mxu1 %v15233_v25  ;;  %v10715_v59 = vpop.f32.mrb[144].mxu1  ;;  %v15503_v25 = vcombine.high %v5502_v13, %v5506_v54  ;;  %v15249_v14 = vcombine.high %v5247_v53, %v5251_v61  ;;  %v5510_v35 = vld [vmem:[#allocation8 + $0x17d0] sm:$0xff]  ;;  %v5267_v54 = vld [vmem:[#allocation8 + $0x1038] sm:$0xff] }
 0x57c   : > { %21380 = vst [vmem:[#allocation54_spill] sm:$0xff] %v20541_v38  ;;  %11751 = vmatmul.mubr.bf16.gmra.mrb[184].mxu1 %v21337_v27  ;;  %11308 = vmatprep.mubr.bf16.mxu0 %v21383_v55  ;;  %v16076_v20 = vadd.f32 %v10715_v59, %v20492_v44  ;;  %v10717_v10 = vpop.f32.mrb[145].mxu1  ;;  %v5514_v59 = vld [vmem:[#allocation8 + $0x17f0] sm:$0xff] }
 0x57d   : > { %21381 = vst [vmem:[#allocation60_spill] sm:$0xff] %v20543_v30  ;;  %11344 = vmatpush1.bf16.msra.mxu0 %v15486_v41  ;;  %11760 = vmatprep.mubr.bf16.mxu1 %v21338_v5  ;;  %v16077_v24 = vadd.f32 %v10717_v10, %v20495_v50  ;;  %v10719_v58 = vpop.f32.mrb[146].mxu1  ;;  %v5255_v5 = vld [vmem:[#allocation8 + $0xfd8] sm:$0xff]  ;;  %v15511_v49 = vcombine.high %v5510_v35, %v5514_v59 }
 0x57e   : > { %11796 = vmatpush1.bf16.msra.mxu1 %v15232_v21  ;;  %11345 = vmatprep.subr.bf16.mxu0 %v15495_v7  ;;  %v16078_v15 = vadd.f32 %v10719_v58, %v20492_v44  ;;  %v10721_v27 = vpop.f32.mrb[147].mxu1  ;;  %v12176_v41 = vmax.f32 %v16076_v20, 0.0  ;;  %v5259_v30 = vld [vmem:[#allocation8 + $0xff8] sm:$0xff]  ;;  %v15510_v61 = vcombine.low %v5510_v35, %v5514_v59 }
 0x57f   : > { %11797 = vmatprep.subr.bf16.mxu1 %v15241_v57  ;;  %v16079_v22 = vadd.f32 %v10721_v27, %v20495_v50  ;;  %v12177_v10 = vmax.f32 %v16077_v24, 0.0  ;;  %v21384_v57 = vld [vmem:[#allocation102_spill] sm:$0xff]  ;;  %v15257_v20 = vcombine.high %v5255_v5, %v5259_v30 }
 0x580   : > { %v12184_v38 = vmax.f32 %v16078_v15, 0.0  ;;  %v21385_v15 = vld [vmem:[#allocation106_spill] sm:$0xff] }
 0x581   : > { %11346 = vmatpush1.bf16.msra.mxu0 %v15494_v2  ;;  %v12185_v3 = vmax.f32 %v16079_v22, 0.0 }
 0x582   : > { %v20553_v21 = vpack.c.bf16 %v12184_v38, %v12176_v41  ;;  %11798 = vmatpush1.bf16.msra.mxu1 %v15240_v42  ;;  %11347 = vmatprep.subr.bf16.mxu0 %v15503_v25  ;;  %v5263_v38 = vld [vmem:[#allocation8 + $0x1018] sm:$0xff]  ;;  %v15256_v42 = vcombine.low %v5255_v5, %v5259_v30  ;;  %v17869_v25 = vld [vmem:[#allocation11 + $0x4] ss:$8 sps:$4 sm:$0xff]   ;;  %v17867_v5 = vld [vmem:[#allocation11] ss:$8 sps:$4 sm:$0xff]  }
 0x583   : > { %v20555_v7 = vpack.c.bf16 %v12185_v3, %v12177_v10  ;;  %11309 = vmatmul.mubr.bf16.gmra.mrb[156].mxu0 %v21384_v57  ;;  %11799 = vmatprep.subr.bf16.mxu1 %v15249_v14  ;;  %v10725_v58 = vpop.f32.mrb[148].mxu1  ;;  %v15265_v14 = vcombine.high %v5263_v38, %v5267_v54  ;;  %v5271_v3 = vld [vmem:[#allocation8 + $0x1058] sm:$0xff]  ;;  %v15264_v59 = vcombine.low %v5263_v38, %v5267_v54 }
 0x584   : > { %11761 = vmatmul.mubr.bf16.gmra.mrb[188].mxu1 %v21341_v1  ;;  %11351 = vmatprep.mubr.bf16.mxu0 %v21385_v15  ;;  %v16080_v24 = vadd.f32 %v10725_v58, %v20492_v44  ;;  %v10727_v13 = vpop.f32.mrb[149].mxu1 }
 0x585   : > { %11348 = vmatpush1.bf16.msra.mxu0 %v15502_v23  ;;  %11803 = vmatprep.mubr.bf16.mxu1 %v21342_v29  ;;  %v16081_v53 = vadd.f32 %v10727_v13, %v20495_v50  ;;  %v10729_v2 = vpop.f32.mrb[150].mxu1  ;;  %v5275_v23 = vld [vmem:[#allocation8 + $0x1078] sm:$0xff] }
 0x586   : > { %11800 = vmatpush1.bf16.msra.mxu1 %v15248_v12  ;;  %11349 = vmatprep.subr.bf16.mxu0 %v15511_v49  ;;  %v16082_v27 = vadd.f32 %v10729_v2, %v20492_v44  ;;  %v10731_v1 = vpop.f32.mrb[151].mxu1  ;;  %v12192_v41 = vmax.f32 %v16080_v24, 0.0  ;;  %v15273_v49 = vcombine.high %v5271_v3, %v5275_v23  ;;  %v17872_v2 = vld [vmem:[#allocation11 + $0x14] ss:$8 sps:$4 sm:$0xff]  }
 0x587   : > { %11801 = vmatprep.subr.bf16.mxu1 %v15257_v20  ;;  %v16083_v22 = vadd.f32 %v10731_v1, %v20495_v50  ;;  %v12193_v29 = vmax.f32 %v16081_v53, 0.0  ;;  %v21388_v20 = vld [vmem:[#allocation105_spill] sm:$0xff]  ;;  %v5279_v53 = vld [vmem:[#allocation8 + $0x1098] sm:$0xff]  ;;  %v15272_v1 = vcombine.low %v5271_v3, %v5275_v23 }
 0x588   : > { %v12200_v10 = vmax.f32 %v16082_v27, 0.0  ;;  %v21389_v27 = vld [vmem:[#allocation108_spill] sm:$0xff] }
 0x589   : > { %11350 = vmatpush1.bf16.msra.mxu0 %v15510_v61  ;;  %v12201_v58 = vmax.f32 %v16083_v22, 0.0  ;;  %v5283_v61 = vld [vmem:[#allocation8 + $0x10b8] sm:$0xff] }
 0x58a   : > { %v20565_v35 = vpack.c.bf16 %v12200_v10, %v12192_v41  ;;  %11802 = vmatpush1.bf16.msra.mxu1 %v15256_v42  ;;  %13082 = vmatprep.subr.bf16.mxu0 %v17869_v25  ;;  %v21390_v42 = vld [vmem:[#allocation88_spill] sm:$0xff]  ;;  %v15281_v10 = vcombine.high %v5279_v53, %v5283_v61  ;;  %v15280_v3 = vcombine.low %v5279_v53, %v5283_v61 }
 0x58b   : > { %v20567_v30 = vpack.c.bf16 %v12201_v58, %v12193_v29  ;;  %11884 = vmatprep.subr.bf16.mxu1 %v15265_v14  ;;  %v10735_v12 = vpop.f32.mrb[152].mxu1  ;;  %v17870_v14 = vld [vmem:[#allocation11 + $0x10] ss:$8 sps:$4 sm:$0xff]   ;;  %v17875_v58 = vld [vmem:[#allocation11 + $0x24] ss:$8 sps:$4 sm:$0xff]  }
 0x58c   : > { %21386 = vst [vmem:[#allocation58_spill] sm:$0xff] %v20565_v35  ;;  %11352 = vmatmul.mubr.bf16.vlgmr.msra.gmra.mrb[128].mxu0 %v21388_v20  ;;  %v16084_v24 = vadd.f32 %v10735_v12, %v20492_v44  ;;  %v10737_v13 = vpop.f32.mrb[153].mxu1  ;;  %v5287_v12 = vld [vmem:[#allocation8 + $0x10d8] sm:$0xff] }
 0x58d   : > { %21387 = vst [vmem:[#allocation64_spill] sm:$0xff] %v20567_v30  ;;  %11804 = vmatmul.mubr.bf16.vlgmr.msra.gmra.mrb[160].mxu1 %v21345_v19  ;;  %11361 = vmatprep.mubr.bf16.mxu0 %v21389_v27  ;;  %v16085_v38 = vadd.f32 %v10737_v13, %v20495_v50  ;;  %v10739_v54 = vpop.f32.mrb[154].mxu1  ;;  %v5291_v13 = vld [vmem:[#allocation8 + $0x10f8] sm:$0xff] }
 0x58e   : > { %11813 = vmatprep.mubr.bf16.mxu1 %v21390_v42  ;;  %11885 = vmatpush1.bf16.msra.mxu1 %v15264_v59  ;;  %v16086_v25 = vadd.f32 %v10739_v54, %v20492_v44  ;;  %v10741_v22 = vpop.f32.mrb[155].mxu1  ;;  %v12208_v29 = vmax.f32 %v16084_v24, 0.0  ;;  %v17873_v59 = vld [vmem:[#allocation11 + $0x20] ss:$8 sps:$4 sm:$0xff]   ;;  %v21393_v54 = vld [vmem:[#allocation107_spill] sm:$0xff]  ;;  %v15288_v53 = vcombine.low %v5287_v12, %v5291_v13 }
 0x58f   : > { %13083 = vmatpush1.bf16.msra.mxu0 %v17867_v5  ;;  %11886 = vmatprep.subr.bf16.mxu1 %v15273_v49  ;;  %v16087_v41 = vadd.f32 %v10741_v22, %v20495_v50  ;;  %v12209_v35 = vmax.f32 %v16085_v38, 0.0  ;;  %v15289_v49 = vcombine.high %v5287_v12, %v5291_v13  ;;  %v5295_v38 = vld [vmem:[#allocation8 + $0x1118] sm:$0xff]  ;;  %v17879_v13 = vld [vmem:[#allocation11 + $0x40] ss:$8 sps:$4 sm:$0xff]  }
 0x590   : > { %13084 = vmatprep.subr.bf16.mxu0 %v17872_v2  ;;  %v12216_v19 = vmax.f32 %v16086_v25, 0.0  ;;  %v17878_v25 = vld [vmem:[#allocation11 + $0x34] ss:$8 sps:$4 sm:$0xff]  }
 0x591   : > { %v12217_v30 = vmax.f32 %v16087_v41, 0.0  ;;  %v5299_v22 = vld [vmem:[#allocation8 + $0x1138] sm:$0xff] }
 0x592   : > { %v20577_v42 = vpack.c.bf16 %v12216_v19, %v12208_v29  ;;  %11887 = vmatpush1.bf16.msra.mxu1 %v15272_v1  ;;  %v21394_v1 = vld [vmem:[#allocation110_spill] sm:$0xff]  ;;  %v15297_v29 = vcombine.high %v5295_v38, %v5299_v22  ;;  %v15296_v12 = vcombine.low %v5295_v38, %v5299_v22 }
 0x593   : > { %13085 = vmatpush1.bf16.msra.mxu0 %v17870_v14  ;;  %v20579_v23 = vpack.c.bf16 %v12217_v30, %v12209_v35  ;;  %11888 = vmatprep.subr.bf16.mxu1 %v15281_v10  ;;  %v10745_v5 = vpop.f32.mrb[156].mxu1  ;;  %v17876_v41 = vld [vmem:[#allocation11 + $0x30] ss:$8 sps:$4 sm:$0xff]   ;;  %v17887_v22 = vld [vmem:[#allocation11 + $0x64] ss:$8 sps:$4 sm:$0xff]  }
 0x594   : > { %21391 = vst [vmem:[#allocation62_spill] sm:$0xff] %v20577_v42  ;;  %11362 = vmatmul.mubr.bf16.gmra.mrb[132].mxu0 %v21393_v54  ;;  %13086 = vmatprep.subr.bf16.mxu0 %v17875_v58  ;;  %v16088_v24 = vadd.f32 %v10745_v5, %v20492_v44  ;;  %v10747_v2 = vpop.f32.mrb[157].mxu1  ;;  %v17881_v58 = vld [vmem:[#allocation11 + $0x44] ss:$8 sps:$4 sm:$0xff]   ;;  %v5303_v5 = vld [vmem:[#allocation8 + $0x1158] sm:$0xff] }
 0x595   : > { %21392 = vst [vmem:[#allocation68_spill] sm:$0xff] %v20579_v23  ;;  %11814 = vmatmul.mubr.bf16.gmra.mrb[164].mxu1 %v21349_v36  ;;  %11371 = vmatprep.mubr.bf16.mxu0 %v21394_v1  ;;  %v16089_v35 = vadd.f32 %v10747_v2, %v20495_v50  ;;  %v10749_v30 = vpop.f32.mrb[158].mxu1  ;;  %v5307_v2 = vld [vmem:[#allocation8 + $0x1178] sm:$0xff] }
 0x596   : > { %11823 = vmatprep.mubr.bf16.mxu1 %v21350_v6  ;;  %11889 = vmatpush1.bf16.msra.mxu1 %v15280_v3  ;;  %v16090_v61 = vadd.f32 %v10749_v30, %v20492_v44  ;;  %v10751_v14 = vpop.f32.mrb[159].mxu1  ;;  %v12224_v19 = vmax.f32 %v16088_v24, 0.0  ;;  %v15305_v3 = vcombine.high %v5303_v5, %v5307_v2  ;;  %v5315_v24 = vld [vmem:[#allocation8 + $0x11b8] sm:$0xff]  ;;  %v15304_v38 = vcombine.low %v5303_v5, %v5307_v2  ;;  %v17893_v5 = vld [vmem:[#allocation11 + $0x84] ss:$8 sps:$4 sm:$0xff]  }
 0x597   : > { %13087 = vmatpush1.bf16.msra.mxu0 %v17873_v59  ;;  %11890 = vmatprep.subr.bf16.mxu1 %v15289_v49  ;;  %v16091_v10 = vadd.f32 %v10751_v14, %v20495_v50  ;;  %v12225_v42 = vmax.f32 %v16089_v35, 0.0  ;;  %v21395_v50 = vld [vmem:[#allocation109_spill] sm:$0xff]  ;;  %v17884_v59 = vld [vmem:[#allocation11 + $0x54] ss:$8 sps:$4 sm:$0xff]  }
 0x598   : > { %13088 = vmatprep.subr.bf16.mxu0 %v17878_v25  ;;  %v12232_v36 = vmax.f32 %v16090_v61, 0.0  ;;  %v5311_v49 = vld [vmem:[#allocation8 + $0x1198] sm:$0xff]  ;;  %v21396_v25 = vld [vmem:[#allocation112_spill] sm:$0xff] }
 0x599   : > { %v12233_v23 = vmax.f32 %v16091_v10, 0.0  ;;  %v5319_v35 = vld [vmem:[#allocation8 + $0x11d8] sm:$0xff]  ;;  %v17885_v61 = vld [vmem:[#allocation11 + $0x60] ss:$8 sps:$4 sm:$0xff]  }
 0x59a   : > { %v20589_v6 = vpack.c.bf16 %v12232_v36, %v12224_v19  ;;  %11891 = vmatpush1.bf16.msra.mxu1 %v15288_v53  ;;  %v5323_v30 = vld [vmem:[#allocation8 + $0x11f8] sm:$0xff]  ;;  %v15312_v53 = vcombine.low %v5311_v49, %v5315_v24 }
 0x59b   : > { %13089 = vmatpush1.bf16.msra.mxu0 %v17876_v41  ;;  %v20591_v44 = vpack.c.bf16 %v12233_v23, %v12225_v42  ;;  %11892 = vmatprep.subr.bf16.mxu1 %v15297_v29  ;;  %v17882_v42 = vld [vmem:[#allocation11 + $0x50] ss:$8 sps:$4 sm:$0xff]   ;;  %v15313_v23 = vcombine.high %v5311_v49, %v5315_v24  ;;  %v15320_v19 = vcombine.low %v5319_v35, %v5323_v30 }
 0x59c   : > { %11372 = vmatmul.mubr.bf16.gmra.mrb[136].mxu0 %v21395_v50  ;;  %13090 = vmatprep.subr.bf16.mxu0 %v17881_v58  ;;  %v21397_v14 = vld [vmem:[#allocation111_spill] sm:$0xff]  ;;  %v21398_v29 = vld [vmem:[#allocation114_spill] sm:$0xff] }
 0x59d   : > { %11824 = vmatmul.mubr.bf16.gmra.mrb[168].mxu1 %v19888_v9  ;;  %11381 = vmatprep.mubr.bf16.mxu0 %v21396_v25  ;;  %v15321_v9 = vcombine.high %v5319_v35, %v5323_v30  ;;  %v5327_v41 = vld [vmem:[#allocation8 + $0x1218] sm:$0xff]  ;;  %v17899_v35 = vld [vmem:[#allocation11 + $0xa4] ss:$8 sps:$4 sm:$0xff]  }
 0x59e   : > { %11833 = vmatprep.mubr.bf16.mxu1 %v19947_v48  ;;  %11893 = vmatpush1.bf16.msra.mxu1 %v15296_v12  ;;  %v17890_v48 = vld [vmem:[#allocation11 + $0x74] ss:$8 sps:$4 sm:$0xff]   ;;  %v17888_v36 = vld [vmem:[#allocation11 + $0x70] ss:$8 sps:$4 sm:$0xff]  }
 0x59f   : > { %13091 = vmatpush1.bf16.msra.mxu0 %v17879_v13  ;;  %11894 = vmatprep.subr.bf16.mxu1 %v15305_v3  ;;  %v5331_v10 = vld [vmem:[#allocation8 + $0x1238] sm:$0xff]  ;;  %v17891_v3 = vld [vmem:[#allocation11 + $0x80] ss:$8 sps:$4 sm:$0xff]  }
 0x5a0   : > { %13092 = vmatprep.subr.bf16.mxu0 %v17884_v59  ;;  %v15329_v58 = vcombine.high %v5327_v41, %v5331_v10  ;;  %v5335_v2 = vld [vmem:[#allocation8 + $0x1258] sm:$0xff]  ;;  %v15328_v13 = vcombine.low %v5327_v41, %v5331_v10  ;;  %v21399_v59 = vld [vmem:[#allocation113_spill] sm:$0xff] }
 0x5a1   : > { %v5339_v12 = vld [vmem:[#allocation8 + $0x1278] sm:$0xff] }
 0x5a2   : > { %11895 = vmatpush1.bf16.msra.mxu1 %v15304_v38  ;;  %v5343_v49 = vld [vmem:[#allocation8 + $0x1298] sm:$0xff]  ;;  %v21400_v38 = vld [vmem:[#allocation116_spill] sm:$0xff] }
 0x5a3   : > { %13093 = vmatpush1.bf16.msra.mxu0 %v17882_v42  ;;  %11896 = vmatprep.subr.bf16.mxu1 %v15313_v23  ;;  %v5347_v24 = vld [vmem:[#allocation8 + $0x12b8] sm:$0xff]  ;;  %v15336_v42 = vcombine.low %v5335_v2, %v5339_v12 }
 0x5a4   : > { %11382 = vmatmul.mubr.bf16.gmra.mrb[140].mxu0 %v21397_v14  ;;  %13094 = vmatprep.subr.bf16.mxu0 %v17887_v22  ;;  %v17894_v23 = vld [vmem:[#allocation11 + $0x90] ss:$8 sps:$4 sm:$0xff]   ;;  %v15345_v22 = vcombine.high %v5343_v49, %v5347_v24 }
 0x5a5   : > { %11834 = vmatmul.mubr.bf16.gmra.mrb[172].mxu1 %v19940_v43  ;;  %11391 = vmatprep.mubr.bf16.mxu0 %v21398_v29  ;;  %v15337_v43 = vcombine.high %v5335_v2, %v5339_v12  ;;  %v5351_v30 = vld [vmem:[#allocation8 + $0x12d8] sm:$0xff]  ;;  %v17905_v2 = vld [vmem:[#allocation11 + $0xc4] ss:$8 sps:$4 sm:$0xff]  }
 0x5a6   : > { %11843 = vmatprep.mubr.bf16.mxu1 %v19999_v45  ;;  %11897 = vmatpush1.bf16.msra.mxu1 %v15312_v53  ;;  %v17896_v45 = vld [vmem:[#allocation11 + $0x94] ss:$8 sps:$4 sm:$0xff]  }
 0x5a7   : > { %13095 = vmatpush1.bf16.msra.mxu0 %v17885_v61  ;;  %11898 = vmatprep.subr.bf16.mxu1 %v15321_v9  ;;  %v5355_v53 = vld [vmem:[#allocation8 + $0x12f8] sm:$0xff]  ;;  %v15344_v61 = vcombine.low %v5343_v49, %v5347_v24  ;;  %v17897_v9 = vld [vmem:[#allocation11 + $0xa0] ss:$8 sps:$4 sm:$0xff]  }
 0x5a8   : > { %13096 = vmatprep.subr.bf16.mxu0 %v17890_v48  ;;  %v21401_v48 = vld [vmem:[#allocation115_spill] sm:$0xff] }
 0x5a9   : > { %v5359_v41 = vld [vmem:[#allocation8 + $0x1318] sm:$0xff] }
 0x5aa   : > { %11899 = vmatpush1.bf16.msra.mxu1 %v15320_v19  ;;  %v5363_v10 = vld [vmem:[#allocation8 + $0x1338] sm:$0xff] }
 0x5ab   : > { %13097 = vmatpush1.bf16.msra.mxu0 %v17888_v36  ;;  %11900 = vmatprep.subr.bf16.mxu1 %v15329_v58  ;;  %v21402_v19 = vld [vmem:[#allocation118_spill] sm:$0xff]  ;;  %v15352_v36 = vcombine.low %v5351_v30, %v5355_v53 }
 0x5ac   : > { %11392 = vmatmul.mubr.bf16.gmra.mrb[144].mxu0 %v21399_v59  ;;  %13098 = vmatprep.subr.bf16.mxu0 %v17893_v5  ;;  %v17900_v58 = vld [vmem:[#allocation11 + $0xb0] ss:$8 sps:$4 sm:$0xff]   ;;  %v15361_v5 = vcombine.high %v5359_v41, %v5363_v10 }
 0x5ad   : > { %11844 = vmatmul.mubr.bf16.gmra.mrb[176].mxu1 %v19992_v4  ;;  %11401 = vmatprep.mubr.bf16.mxu0 %v21400_v38  ;;  %v15353_v4 = vcombine.high %v5351_v30, %v5355_v53  ;;  %v5367_v12 = vld [vmem:[#allocation8 + $0x1358] sm:$0xff]  ;;  %v17911_v30 = vld [vmem:[#allocation11 + $0xe4] ss:$8 sps:$4 sm:$0xff]  }
 0x5ae   : > { %11853 = vmatprep.mubr.bf16.mxu1 %v20048_v17  ;;  %11901 = vmatpush1.bf16.msra.mxu1 %v15328_v13  ;;  %v17902_v17 = vld [vmem:[#allocation11 + $0xb4] ss:$8 sps:$4 sm:$0xff]  }
 0x5af   : > { %13099 = vmatpush1.bf16.msra.mxu0 %v17891_v3  ;;  %11902 = vmatprep.subr.bf16.mxu1 %v15337_v43  ;;  %v5371_v13 = vld [vmem:[#allocation8 + $0x1378] sm:$0xff]  ;;  %v15360_v3 = vcombine.low %v5359_v41, %v5363_v10  ;;  %v17903_v43 = vld [vmem:[#allocation11 + $0xc0] ss:$8 sps:$4 sm:$0xff]  }
 0x5b0   : > { %13100 = vmatprep.subr.bf16.mxu0 %v17896_v45  ;;  %v21403_v45 = vld [vmem:[#allocation117_spill] sm:$0xff]  ;;  %v5375_v49 = vld [vmem:[#allocation8 + $0x1398] sm:$0xff] }
 0x5b1   : > { %v5379_v24 = vld [vmem:[#allocation8 + $0x13b8] sm:$0xff] }
 0x5b2   : > { %11903 = vmatpush1.bf16.msra.mxu1 %v15336_v42  ;;  %v21404_v42 = vld [vmem:[#allocation120_spill] sm:$0xff]  ;;  %v5383_v53 = vld [vmem:[#allocation8 + $0x13d8] sm:$0xff] }
 0x5b3   : > { %13101 = vmatpush1.bf16.msra.mxu0 %v17894_v23  ;;  %11904 = vmatprep.subr.bf16.mxu1 %v15345_v22  ;;  %v15368_v23 = vcombine.low %v5367_v12, %v5371_v13  ;;  %v17906_v22 = vld [vmem:[#allocation11 + $0xd0] ss:$8 sps:$4 sm:$0xff]  }
 0x5b4   : > { %11402 = vmatmul.mubr.bf16.gmra.mrb[148].mxu0 %v21401_v48  ;;  %13102 = vmatprep.subr.bf16.mxu0 %v17899_v35  ;;  %v15377_v35 = vcombine.high %v5375_v49, %v5379_v24  ;;  %v5391_v41 = vld [vmem:[#allocation8 + $0x1418] sm:$0xff] }
 0x5b5   : > { %11854 = vmatmul.mubr.bf16.gmra.mrb[180].mxu1 %v20036_v28  ;;  %11411 = vmatprep.mubr.bf16.mxu0 %v21402_v19  ;;  %v15369_v28 = vcombine.high %v5367_v12, %v5371_v13  ;;  %v5395_v10 = vld [vmem:[#allocation8 + $0x1438] sm:$0xff]  ;;  %v17917_v12 = vld [vmem:[#allocation11 + $0x104] ss:$8 sps:$4 sm:$0xff]  }
 0x5b6   : > { %11863 = vmatprep.mubr.bf16.mxu1 %v20096_v60  ;;  %11905 = vmatpush1.bf16.msra.mxu1 %v15344_v61  ;;  %v17908_v60 = vld [vmem:[#allocation11 + $0xd4] ss:$8 sps:$4 sm:$0xff]  }
 0x5b7   : > { %13103 = vmatpush1.bf16.msra.mxu0 %v17897_v9  ;;  %11906 = vmatprep.subr.bf16.mxu1 %v15353_v4  ;;  %v5387_v61 = vld [vmem:[#allocation8 + $0x13f8] sm:$0xff]  ;;  %v15376_v9 = vcombine.low %v5375_v49, %v5379_v24  ;;  %v17909_v4 = vld [vmem:[#allocation11 + $0xe0] ss:$8 sps:$4 sm:$0xff]  }
 0x5b8   : > { %13104 = vmatprep.subr.bf16.mxu0 %v17902_v17  ;;  %v21405_v17 = vld [vmem:[#allocation119_spill] sm:$0xff]  ;;  %v21407_v24 = vld [vmem:[#allocation33_spill] sm:$0xff] }
 0x5b9   : > { %v5399_v13 = vld [vmem:[#allocation8 + $0x1458] sm:$0xff] }
 0x5ba   : > { %11907 = vmatpush1.bf16.msra.mxu1 %v15352_v36  ;;  %v21406_v36 = vld [vmem:[#allocation32_spill] sm:$0xff]  ;;  %v5411_v49 = vld [vmem:[#allocation8 + $0x14b8] sm:$0xff] }
 0x5bb   : > { %13105 = vmatpush1.bf16.msra.mxu0 %v17900_v58  ;;  %11908 = vmatprep.subr.bf16.mxu1 %v15361_v5  ;;  %v15384_v58 = vcombine.low %v5383_v53, %v5387_v61  ;;  %v17912_v5 = vld [vmem:[#allocation11 + $0xf0] ss:$8 sps:$4 sm:$0xff]  }
 0x5bc   : > { %11412 = vmatmul.mubr.bf16.gmra.mrb[152].mxu0 %v21403_v45  ;;  %13106 = vmatprep.subr.bf16.mxu0 %v17905_v2  ;;  %v15393_v2 = vcombine.high %v5391_v41, %v5395_v10 }
 0x5bd   : > { %11864 = vmatmul.mubr.bf16.gmra.mrb[184].mxu1 %v20088_v51  ;;  %11421 = vmatprep.mubr.bf16.mxu0 %v21404_v42  ;;  %v15385_v51 = vcombine.high %v5383_v53, %v5387_v61  ;;  %v17923_v53 = vld [vmem:[#allocation11 + $0x124] ss:$8 sps:$4 sm:$0xff]   ;;  %v5415_v61 = vld [vmem:[#allocation8 + $0x14d8] sm:$0xff] }
 0x5be   : > { %11873 = vmatprep.mubr.bf16.mxu1 %v21351_v46  ;;  %11909 = vmatpush1.bf16.msra.mxu1 %v15360_v3  ;;  %v17914_v46 = vld [vmem:[#allocation11 + $0xf4] ss:$8 sps:$4 sm:$0xff]  }
 0x5bf   : > { %13107 = vmatpush1.bf16.msra.mxu0 %v17903_v43  ;;  %11910 = vmatprep.subr.bf16.mxu1 %v15369_v28  ;;  %v5403_v3 = vld [vmem:[#allocation8 + $0x1478] sm:$0xff]  ;;  %v15392_v43 = vcombine.low %v5391_v41, %v5395_v10  ;;  %v17915_v28 = vld [vmem:[#allocation11 + $0x100] ss:$8 sps:$4 sm:$0xff]  }
 0x5c0   : > { %13108 = vmatprep.subr.bf16.mxu0 %v17908_v60  ;;  %v17920_v60 = vld [vmem:[#allocation11 + $0x114] ss:$8 sps:$4 sm:$0xff]  }
 0x5c1   : > { %v5427_v41 = vld [vmem:[#allocation8 + $0x1538] sm:$0xff] }
 0x5c2   : > { %11911 = vmatpush1.bf16.msra.mxu1 %v15368_v23  ;;  %v21408_v23 = vld [vmem:[#allocation34_spill] sm:$0xff]  ;;  %v21409_v10 = vld [vmem:[#allocation35_spill] sm:$0xff] }
 0x5c3   : > { %13109 = vmatpush1.bf16.msra.mxu0 %v17906_v22  ;;  %11912 = vmatprep.subr.bf16.mxu1 %v15377_v35  ;;  %v15400_v22 = vcombine.low %v5399_v13, %v5403_v3  ;;  %v17918_v35 = vld [vmem:[#allocation11 + $0x110] ss:$8 sps:$4 sm:$0xff]  }
 0x5c4   : > { %11422 = vmatmul.mubr.bf16.gmra.mrb[156].mxu0 %v21405_v17  ;;  %13110 = vmatprep.subr.bf16.mxu0 %v17911_v30 }
 0x5c5   : > { %11874 = vmatmul.mubr.bf16.gmra.mrb[188].mxu1 %v21352_v8  ;;  %13114 = vmatprep.mubr.bf16.mxu0 %v21406_v36  ;;  %v15401_v8 = vcombine.high %v5399_v13, %v5403_v3  ;;  %v21410_v36 = vld [vmem:[#allocation36_spill] sm:$0xff]  ;;  %v5431_v13 = vld [vmem:[#allocation8 + $0x1558] sm:$0xff] }
 0x5c6   : > { %11913 = vmatpush1.bf16.msra.mxu1 %v15376_v9  ;;  %11916 = vmatprep.mubr.bf16.mxu1 %v21353_v11  ;;  %v5407_v11 = vld [vmem:[#allocation8 + $0x1498] sm:$0xff] }
 0x5c7   : > { %13111 = vmatpush1.bf16.msra.mxu0 %v17909_v4  ;;  %11914 = vmatprep.subr.bf16.mxu1 %v15385_v51  ;;  %v15409_v30 = vcombine.high %v5407_v11, %v5411_v49  ;;  %v5419_v9 = vld [vmem:[#allocation8 + $0x14f8] sm:$0xff]  ;;  %v17921_v4 = vld [vmem:[#allocation11 + $0x120] ss:$8 sps:$4 sm:$0xff]  }
 0x5c8   : > { %13112 = vmatprep.subr.bf16.mxu0 %v17914_v46  ;;  %v15417_v51 = vcombine.high %v5415_v61, %v5419_v9  ;;  %v5423_v46 = vld [vmem:[#allocation8 + $0x1518] sm:$0xff] }
 0x5c9   : > { %v15424_v3 = vcombine.low %v5423_v46, %v5427_v41 }
 0x5ca   : > { %11915 = vmatpush1.bf16.msra.mxu1 %v15384_v58  ;;  %v15416_v58 = vcombine.low %v5415_v61, %v5419_v9  ;;  %v17933_v61 = vld [vmem:[#allocation11 + $0x160] ss:$8 sps:$4 sm:$0xff]  }
 0x5cb   : > { %13113 = vmatpush1.bf16.msra.mxu0 %v17912_v5  ;;  %11997 = vmatprep.subr.bf16.mxu1 %v15393_v2  ;;  %v17924_v5 = vld [vmem:[#allocation11 + $0x130] ss:$8 sps:$4 sm:$0xff]   ;;  %v15425_v2 = vcombine.high %v5423_v46, %v5427_v41 }
 0x5cc   : > { %13195 = vmatprep.subr.bf16.mxu0 %v17917_v12  ;;  %v17929_v12 = vld [vmem:[#allocation11 + $0x144] ss:$8 sps:$4 sm:$0xff]   ;;  %v17936_v41 = vld [vmem:[#allocation11 + $0x170] ss:$8 sps:$4 sm:$0xff]  }
 0x5cd   : > { %11917 = vmatmul.mubr.bf16.vlgmr.msra.gmra.mrb[160].mxu1 %v21355_v26  ;;  %v15408_v26 = vcombine.low %v5407_v11, %v5411_v49  ;;  %v21411_v11 = vld [vmem:[#allocation37_spill] sm:$0xff]  ;;  %v21412_v49 = vld [vmem:[#allocation38_spill] sm:$0xff] }
 0x5ce   : > { %13115 = vmatmul.mubr.bf16.vlgmr.msra.gmra.mrb[160].mxu0 %v21407_v24  ;;  %11926 = vmatprep.mubr.bf16.mxu1 %v21357_v32  ;;  %v17926_v32 = vld [vmem:[#allocation11 + $0x134] ss:$8 sps:$4 sm:$0xff]  }
 0x5cf   : > { %11998 = vmatpush1.bf16.msra.mxu1 %v15392_v43  ;;  %13124 = vmatprep.mubr.bf16.mxu0 %v21408_v23  ;;  %v17927_v43 = vld [vmem:[#allocation11 + $0x140] ss:$8 sps:$4 sm:$0xff]   ;;  %v17930_v23 = vld [vmem:[#allocation11 + $0x150] ss:$8 sps:$4 sm:$0xff]  }
 0x5d0   : > { %13196 = vmatpush1.bf16.msra.mxu0 %v17915_v28  ;;  %11999 = vmatprep.subr.bf16.mxu1 %v15401_v8  ;;  %v5439_v8 = vld [vmem:[#allocation8 + $0x1598] sm:$0xff] }
 0x5d1   : > { %13197 = vmatprep.subr.bf16.mxu0 %v17920_v60  ;;  %v5443_v60 = vld [vmem:[#allocation8 + $0x15b8] sm:$0xff] }
 0x5d3   : > { %12000 = vmatpush1.bf16.msra.mxu1 %v15400_v22  ;;  %v15441_v22 = vcombine.high %v5439_v8, %v5443_v60 }
 0x5d4   : > { %13198 = vmatpush1.bf16.msra.mxu0 %v17918_v35  ;;  %12001 = vmatprep.subr.bf16.mxu1 %v15409_v30  ;;  %v17935_v35 = vld [vmem:[#allocation11 + $0x164] ss:$8 sps:$4 sm:$0xff]   ;;  %v5447_v30 = vld [vmem:[#allocation8 + $0x15d8] sm:$0xff] }
 0x5d5   : > { %11927 = vmatmul.mubr.bf16.gmra.mrb[164].mxu1 %v21359_v39  ;;  %13199 = vmatprep.subr.bf16.mxu0 %v17923_v53  ;;  %v5435_v39 = vld [vmem:[#allocation8 + $0x1578] sm:$0xff]  ;;  %v15440_v53 = vcombine.low %v5439_v8, %v5443_v60  ;;  %v17947_v60 = vld [vmem:[#allocation11 + $0x1a4] ss:$8 sps:$4 sm:$0xff]  }
 0x5d6   : > { %13125 = vmatmul.mubr.bf16.gmra.mrb[164].mxu0 %v21409_v10  ;;  %11936 = vmatprep.mubr.bf16.mxu1 %v21361_v40  ;;  %v15433_v28 = vcombine.high %v5431_v13, %v5435_v39  ;;  %v17932_v40 = vld [vmem:[#allocation11 + $0x154] ss:$8 sps:$4 sm:$0xff]   ;;  %v15432_v24 = vcombine.low %v5431_v13, %v5435_v39 }
 0x5d7   : > { %12002 = vmatpush1.bf16.msra.mxu1 %v15408_v26  ;;  %13134 = vmatprep.mubr.bf16.mxu0 %v21410_v36  ;;  %v5455_v26 = vld [vmem:[#allocation8 + $0x1618] sm:$0xff]  ;;  %v17941_v36 = vld [vmem:[#allocation11 + $0x184] ss:$8 sps:$4 sm:$0xff]  }
 0x5d8   : > { %13200 = vmatpush1.bf16.msra.mxu0 %v17921_v4  ;;  %12003 = vmatprep.subr.bf16.mxu1 %v15417_v51  ;;  %v5459_v4 = vld [vmem:[#allocation8 + $0x1638] sm:$0xff] }
 0x5d9   : > { %13201 = vmatprep.subr.bf16.mxu0 %v17926_v32  ;;  %v21413_v51 = vld [vmem:[#allocation39_spill] sm:$0xff]  ;;  %v21414_v32 = vld [vmem:[#allocation40_spill] sm:$0xff]  ;;  %v15457_v10 = vcombine.high %v5455_v26, %v5459_v4 }
 0x5da   : > { %v5471_v13 = vld [vmem:[#allocation8 + $0x1698] sm:$0xff] }
 0x5db   : > { %12004 = vmatpush1.bf16.msra.mxu1 %v15416_v58  ;;  %v5463_v58 = vld [vmem:[#allocation8 + $0x1658] sm:$0xff] }
 0x5dc   : > { %13202 = vmatpush1.bf16.msra.mxu0 %v17924_v5  ;;  %12005 = vmatprep.subr.bf16.mxu1 %v15425_v2  ;;  %v15456_v5 = vcombine.low %v5455_v26, %v5459_v4  ;;  %v17939_v2 = vld [vmem:[#allocation11 + $0x180] ss:$8 sps:$4 sm:$0xff]   ;;  %v5475_v39 = vld [vmem:[#allocation8 + $0x16b8] sm:$0xff] }
 0x5dd   : > { %11937 = vmatmul.mubr.bf16.gmra.mrb[168].mxu1 %v21365_v52  ;;  %13203 = vmatprep.subr.bf16.mxu0 %v17929_v12  ;;  %v5451_v52 = vld [vmem:[#allocation8 + $0x15f8] sm:$0xff]  ;;  %v15473_v8 = vcombine.high %v5471_v13, %v5475_v39 }
 0x5de   : > { %13135 = vmatmul.mubr.bf16.gmra.mrb[168].mxu0 %v21411_v11  ;;  %11946 = vmatprep.mubr.bf16.mxu1 %v21367_v37  ;;  %v15449_v9 = vcombine.high %v5447_v30, %v5451_v52  ;;  %v17938_v37 = vld [vmem:[#allocation11 + $0x174] ss:$8 sps:$4 sm:$0xff]   ;;  %v15448_v46 = vcombine.low %v5447_v30, %v5451_v52 }
 0x5df   : > { %12006 = vmatpush1.bf16.msra.mxu1 %v15424_v3  ;;  %13144 = vmatprep.mubr.bf16.mxu0 %v21412_v49  ;;  %v21415_v3 = vld [vmem:[#allocation41_spill] sm:$0xff]  ;;  %v5479_v11 = vld [vmem:[#allocation8 + $0x16d8] sm:$0xff]  ;;  %v15472_v49 = vcombine.low %v5471_v13, %v5475_v39  ;;  %v21418_v52 = vld [vmem:[#allocation44_spill] sm:$0xff] }
 0x5e0   : > { %13204 = vmatpush1.bf16.msra.mxu0 %v17927_v43  ;;  %12007 = vmatprep.subr.bf16.mxu1 %v15433_v28  ;;  %v21416_v43 = vld [vmem:[#allocation42_spill] sm:$0xff]  ;;  %v21417_v30 = vld [vmem:[#allocation43_spill] sm:$0xff] }
 0x5e1   : > { %13205 = vmatprep.subr.bf16.mxu0 %v17932_v40  ;;  %v17942_v40 = vld [vmem:[#allocation11 + $0x190] ss:$8 sps:$4 sm:$0xff]  }
 0x5e2   : > { %v5495_v26 = vld [vmem:[#allocation8 + $0x1758] sm:$0xff] }
 0x5e3   : > { %12008 = vmatpush1.bf16.msra.mxu1 %v15432_v24  ;;  %v17945_v24 = vld [vmem:[#allocation11 + $0x1a0] ss:$8 sps:$4 sm:$0xff]   ;;  %v17960_v39 = vld [vmem:[#allocation11 + $0x1f0] ss:$8 sps:$4 sm:$0xff]  }
 0x5e4   : > { %13206 = vmatpush1.bf16.msra.mxu0 %v17930_v23  ;;  %12009 = vmatprep.subr.bf16.mxu1 %v15441_v22  ;;  %v5487_v22 = vld [vmem:[#allocation8 + $0x1718] sm:$0xff] }
 0x5e5   : > { %11947 = vmatmul.mubr.bf16.gmra.mrb[172].mxu1 %v21370_v34  ;;  %13207 = vmatprep.subr.bf16.mxu0 %v17935_v35  ;;  %v5467_v34 = vld [vmem:[#allocation8 + $0x1678] sm:$0xff] }
 0x5e6   : > { %13145 = vmatmul.mubr.bf16.gmra.mrb[172].mxu0 %v21413_v51  ;;  %11956 = vmatprep.mubr.bf16.mxu1 %v21371_v56  ;;  %v15465_v12 = vcombine.high %v5463_v58, %v5467_v34  ;;  %v17944_v56 = vld [vmem:[#allocation11 + $0x194] ss:$8 sps:$4 sm:$0xff]   ;;  %v15464_v28 = vcombine.low %v5463_v58, %v5467_v34  ;;  %v17951_v51 = vld [vmem:[#allocation11 + $0x1c0] ss:$8 sps:$4 sm:$0xff]   ;;  %v17954_v58 = vld [vmem:[#allocation11 + $0x1d0] ss:$8 sps:$4 sm:$0xff]  }
 0x5e7   : > { %12010 = vmatpush1.bf16.msra.mxu1 %v15440_v53  ;;  %13154 = vmatprep.mubr.bf16.mxu0 %v21414_v32  ;;  %v5491_v35 = vld [vmem:[#allocation8 + $0x1738] sm:$0xff] }
 0x5e8   : > { %13208 = vmatpush1.bf16.msra.mxu0 %v17933_v61  ;;  %12011 = vmatprep.subr.bf16.mxu1 %v15449_v9  ;;  %v17948_v61 = vld [vmem:[#allocation11 + $0x1b0] ss:$8 sps:$4 sm:$0xff]   ;;  %v15489_v9 = vcombine.high %v5487_v22, %v5491_v35  ;;  %v15488_v4 = vcombine.low %v5487_v22, %v5491_v35  ;;  %v17986_v22 = vld [vmem:[#allocation11 + $0x274] ss:$8 sps:$4 sm:$0xff]  }
 0x5e9   : > { %13209 = vmatprep.subr.bf16.mxu0 %v17938_v37  ;;  %v17953_v37 = vld [vmem:[#allocation11 + $0x1c4] ss:$8 sps:$4 sm:$0xff]  }
 0x5ea   : > { %v21426_v35 = vld [vmem:[#allocation54_spill] sm:$0xff] }
 0x5eb   : > { %12012 = vmatpush1.bf16.msra.mxu1 %v15448_v46  ;;  %v5503_v46 = vld [vmem:[#allocation8 + $0x1798] sm:$0xff] }
 0x5ec   : > { %13210 = vmatpush1.bf16.msra.mxu0 %v17936_v41  ;;  %12013 = vmatprep.subr.bf16.mxu1 %v15457_v10  ;;  %v5507_v41 = vld [vmem:[#allocation8 + $0x17b8] sm:$0xff]  ;;  %v21419_v10 = vld [vmem:[#allocation45_spill] sm:$0xff] }
 0x5ed   : > { %11957 = vmatmul.mubr.bf16.gmra.mrb[176].mxu1 %v21374_v0  ;;  %13211 = vmatprep.subr.bf16.mxu0 %v17941_v36  ;;  %v5483_v0 = vld [vmem:[#allocation8 + $0x16f8] sm:$0xff]  ;;  %v15505_v34 = vcombine.high %v5503_v46, %v5507_v41 }
 0x5ee   : > { %13155 = vmatmul.mubr.bf16.gmra.mrb[176].mxu0 %v21415_v3  ;;  %11966 = vmatprep.mubr.bf16.mxu1 %v21375_v16  ;;  %v15481_v23 = vcombine.high %v5479_v11, %v5483_v0  ;;  %v17950_v16 = vld [vmem:[#allocation11 + $0x1b4] ss:$8 sps:$4 sm:$0xff]   ;;  %v15480_v53 = vcombine.low %v5479_v11, %v5483_v0  ;;  %v17965_v3 = vld [vmem:[#allocation11 + $0x204] ss:$8 sps:$4 sm:$0xff]   ;;  %v17975_v0 = vld [vmem:[#allocation11 + $0x240] ss:$8 sps:$4 sm:$0xff]  }
 0x5ef   : > { %12014 = vmatpush1.bf16.msra.mxu1 %v15456_v5  ;;  %13164 = vmatprep.mubr.bf16.mxu0 %v21416_v43  ;;  %v17959_v5 = vld [vmem:[#allocation11 + $0x1e4] ss:$8 sps:$4 sm:$0xff]   ;;  %v17963_v43 = vld [vmem:[#allocation11 + $0x200] ss:$8 sps:$4 sm:$0xff]  }
 0x5f0   : > { %13212 = vmatpush1.bf16.msra.mxu0 %v17939_v2  ;;  %12015 = vmatprep.subr.bf16.mxu1 %v15465_v12  ;;  %v5511_v2 = vld [vmem:[#allocation8 + $0x17d8] sm:$0xff]  ;;  %v15504_v12 = vcombine.low %v5503_v46, %v5507_v41  ;;  %v17977_v11 = vld [vmem:[#allocation11 + $0x244] ss:$8 sps:$4 sm:$0xff]  }
 0x5f1   : > { %13213 = vmatprep.subr.bf16.mxu0 %v17944_v56  ;;  %v17957_v56 = vld [vmem:[#allocation11 + $0x1e0] ss:$8 sps:$4 sm:$0xff]  }
 0x5f3   : > { %12016 = vmatpush1.bf16.msra.mxu1 %v15464_v28  ;;  %v21420_v28 = vld [vmem:[#allocation47_spill] sm:$0xff] }
 0x5f4   : > { %13214 = vmatpush1.bf16.msra.mxu0 %v17942_v40  ;;  %12017 = vmatprep.subr.bf16.mxu1 %v15473_v8  ;;  %v17969_v40 = vld [vmem:[#allocation11 + $0x220] ss:$8 sps:$4 sm:$0xff]   ;;  %v17974_v8 = vld [vmem:[#allocation11 + $0x234] ss:$8 sps:$4 sm:$0xff]  }
 0x5f5   : > { %11967 = vmatmul.mubr.bf16.gmra.mrb[180].mxu1 %v21378_v33  ;;  %13215 = vmatprep.subr.bf16.mxu0 %v17947_v60  ;;  %v5499_v33 = vld [vmem:[#allocation8 + $0x1778] sm:$0xff] }
 0x5f6   : > { %13165 = vmatmul.mubr.bf16.gmra.mrb[180].mxu0 %v21417_v30  ;;  %11976 = vmatprep.mubr.bf16.mxu1 %v21379_v31  ;;  %v15497_v32 = vcombine.high %v5495_v26, %v5499_v33  ;;  %v17956_v31 = vld [vmem:[#allocation11 + $0x1d4] ss:$8 sps:$4 sm:$0xff]   ;;  %v15496_v36 = vcombine.low %v5495_v26, %v5499_v33  ;;  %v17987_v30 = vld [vmem:[#allocation11 + $0x280] ss:$8 sps:$4 sm:$0xff]  }
 0x5f7   : > { %12018 = vmatpush1.bf16.msra.mxu1 %v15472_v49  ;;  %13174 = vmatprep.mubr.bf16.mxu0 %v21418_v52  ;;  %v21422_v60 = vld [vmem:[#allocation46_spill] sm:$0xff] }
 0x5f8   : > { %13216 = vmatpush1.bf16.msra.mxu0 %v17945_v24  ;;  %12019 = vmatprep.subr.bf16.mxu1 %v15481_v23  ;;  %v17980_v49 = vld [vmem:[#allocation11 + $0x254] ss:$8 sps:$4 sm:$0xff]   ;;  %v17983_v23 = vld [vmem:[#allocation11 + $0x264] ss:$8 sps:$4 sm:$0xff]  }
 0x5f9   : > { %13217 = vmatprep.subr.bf16.mxu0 %v17950_v16  ;;  %v21424_v24 = vld [vmem:[#allocation50_spill] sm:$0xff]  ;;  %v17981_v16 = vld [vmem:[#allocation11 + $0x260] ss:$8 sps:$4 sm:$0xff]  }
 0x5fa   : > { %v17992_v52 = vld [vmem:[#allocation11 + $0x294] ss:$8 sps:$4 sm:$0xff]  }
 0x5fb   : > { %12020 = vmatpush1.bf16.msra.mxu1 %v15480_v53  ;;  %v17993_v53 = vld [vmem:[#allocation11 + $0x2a0] ss:$8 sps:$4 sm:$0xff]   ;;  %v18004_v26 = vld [vmem:[#allocation11 + $0x2d4] ss:$8 sps:$4 sm:$0xff]  }
 0x5fc   : > { %13218 = vmatpush1.bf16.msra.mxu0 %v17948_v61  ;;  %12021 = vmatprep.subr.bf16.mxu1 %v15489_v9  ;;  %v17998_v61 = vld [vmem:[#allocation11 + $0x2b4] ss:$8 sps:$4 sm:$0xff]  }
 0x5fd   : > { %11977 = vmatmul.mubr.bf16.gmra.mrb[184].mxu1 %v21382_v63  ;;  %13219 = vmatprep.subr.bf16.mxu0 %v17953_v37  ;;  %v5515_v63 = vld [vmem:[#allocation8 + $0x17f8] sm:$0xff]  ;;  %v17999_v37 = vld [vmem:[#allocation11 + $0x2c0] ss:$8 sps:$4 sm:$0xff]  }
 0x5fe   : > { %13175 = vmatmul.mubr.bf16.gmra.mrb[184].mxu0 %v21419_v10  ;;  %11986 = vmatprep.mubr.bf16.mxu1 %v21383_v55  ;;  %v15513_v13 = vcombine.high %v5511_v2, %v5515_v63  ;;  %v17962_v55 = vld [vmem:[#allocation11 + $0x1f4] ss:$8 sps:$4 sm:$0xff]  }
 0x5ff   : > { %12022 = vmatpush1.bf16.msra.mxu1 %v15488_v4  ;;  %13184 = vmatprep.mubr.bf16.mxu0 %v20457_v62  ;;  %v15512_v62 = vcombine.low %v5511_v2, %v5515_v63  ;;  %v21428_v9 = vld [vmem:[#allocation58_spill] sm:$0xff]  ;;  %v18005_v4 = vld [vmem:[#allocation11 + $0x2e0] ss:$8 sps:$4 sm:$0xff]  }
 0x600   : > { %13220 = vmatpush1.bf16.msra.mxu0 %v17951_v51  ;;  %12023 = vmatprep.subr.bf16.mxu1 %v15497_v32  ;;  %v21430_v33 = vld [vmem:[#allocation62_spill] sm:$0xff] }
 0x601   : > { %13221 = vmatprep.subr.bf16.mxu0 %v17956_v31  ;;  %v18010_v51 = vld [vmem:[#allocation11 + $0x2f4] ss:$8 sps:$4 sm:$0xff]   ;;  %v18013_v32 = vld [vmem:[#allocation11 + $0x304] ss:$8 sps:$4 sm:$0xff]  }
 0x603   : > { %12024 = vmatpush1.bf16.msra.mxu1 %v15496_v36 }
 0x604   : > { %13222 = vmatpush1.bf16.msra.mxu0 %v17954_v58  ;;  %12025 = vmatprep.subr.bf16.mxu1 %v15505_v34 }
 0x605   : > { %11987 = vmatmul.mubr.bf16.gmra.mrb[188].mxu1 %v21384_v57  ;;  %13223 = vmatprep.subr.bf16.mxu0 %v17959_v5  ;;  %v17968_v57 = vld [vmem:[#allocation11 + $0x214] ss:$8 sps:$4 sm:$0xff]  }
 0x606   : > { %13185 = vmatmul.mubr.bf16.gmra.mrb[188].mxu0 %v20455_v47  ;;  %12029 = vmatprep.mubr.bf16.mxu1 %v21385_v15  ;;  %v21421_v47 = vld [vmem:[#allocation52_spill] sm:$0xff] }
 0x607   : > { %12026 = vmatpush1.bf16.msra.mxu1 %v15504_v12  ;;  %13227 = vmatprep.mubr.bf16.mxu0 %v20507_v18  ;;  %v17966_v18 = vld [vmem:[#allocation11 + $0x210] ss:$8 sps:$4 sm:$0xff]   ;;  %v17971_v15 = vld [vmem:[#allocation11 + $0x224] ss:$8 sps:$4 sm:$0xff]  }
 0x608   : > { %13224 = vmatpush1.bf16.msra.mxu0 %v17957_v56  ;;  %12027 = vmatprep.subr.bf16.mxu1 %v15513_v13 }
 0x609   : > { %13225 = vmatprep.subr.bf16.mxu0 %v17962_v55 }
 0x60b   : > { %12028 = vmatpush1.bf16.msra.mxu1 %v15512_v62 }
 0x60c   : > { %13226 = vmatpush1.bf16.msra.mxu0 %v17960_v39 }
 0x60d   : > { %13308 = vmatprep.subr.bf16.mxu0 %v17965_v3 }
 0x60e   : > { %12030 = vmatmul.mubr.bf16.vlgmr.msra.gmra.mrb[160].mxu1 %v21388_v20  ;;  %v21423_v20 = vld [vmem:[#allocation56_spill] sm:$0xff] }
 0x60f   : > { %13228 = vmatmul.mubr.bf16.vlgmr.msra.gmra.mrb[160].mxu0 %v21420_v28  ;;  %12039 = vmatprep.mubr.bf16.mxu1 %v21389_v27  ;;  %v17972_v27 = vld [vmem:[#allocation11 + $0x230] ss:$8 sps:$4 sm:$0xff]  }
 0x610   : > { %13237 = vmatprep.mubr.bf16.mxu0 %v21421_v47  ;;  %13309 = vmatpush1.bf16.msra.mxu0 %v17963_v43  ;;  %v18011_v43 = vld [vmem:[#allocation11 + $0x300] ss:$8 sps:$4 sm:$0xff]   ;;  %v18016_v47 = vld [vmem:[#allocation11 + $0x314] ss:$8 sps:$4 sm:$0xff]  }
 0x611   : > { %13310 = vmatprep.subr.bf16.mxu0 %v17968_v57 }
 0x614   : > { %13311 = vmatpush1.bf16.msra.mxu0 %v17966_v18 }
 0x615   : > { %13312 = vmatprep.subr.bf16.mxu0 %v17971_v15 }
 0x616   : > { %12040 = vmatmul.mubr.bf16.gmra.mrb[164].mxu1 %v21393_v54  ;;  %v21425_v54 = vld [vmem:[#allocation60_spill] sm:$0xff] }
 0x617   : > { %13238 = vmatmul.mubr.bf16.gmra.mrb[164].mxu0 %v21422_v60  ;;  %12049 = vmatprep.mubr.bf16.mxu1 %v21394_v1  ;;  %v17978_v1 = vld [vmem:[#allocation11 + $0x250] ss:$8 sps:$4 sm:$0xff]  }
 0x618   : > { %13247 = vmatprep.mubr.bf16.mxu0 %v21423_v20  ;;  %13313 = vmatpush1.bf16.msra.mxu0 %v17969_v40  ;;  %v18014_v20 = vld [vmem:[#allocation11 + $0x310] ss:$8 sps:$4 sm:$0xff]  }
 0x619   : > { %13314 = vmatprep.subr.bf16.mxu0 %v17974_v8 }
 0x61c   : > { %13315 = vmatpush1.bf16.msra.mxu0 %v17972_v27 }
 0x61d   : > { %13316 = vmatprep.subr.bf16.mxu0 %v17977_v11 }
 0x61e   : > { %12050 = vmatmul.mubr.bf16.gmra.mrb[168].mxu1 %v21395_v50  ;;  %v17984_v50 = vld [vmem:[#allocation11 + $0x270] ss:$8 sps:$4 sm:$0xff]  }
 0x61f   : > { %13248 = vmatmul.mubr.bf16.gmra.mrb[168].mxu0 %v21424_v24  ;;  %12059 = vmatprep.mubr.bf16.mxu1 %v21396_v25  ;;  %v17989_v25 = vld [vmem:[#allocation11 + $0x284] ss:$8 sps:$4 sm:$0xff]  }
 0x620   : > { %13257 = vmatprep.mubr.bf16.mxu0 %v21425_v54  ;;  %13317 = vmatpush1.bf16.msra.mxu0 %v17975_v0  ;;  %v18019_v0 = vld [vmem:[#allocation11 + $0x324] ss:$8 sps:$4 sm:$0xff]  }
 0x621   : > { %13318 = vmatprep.subr.bf16.mxu0 %v17980_v49 }
 0x624   : > { %13319 = vmatpush1.bf16.msra.mxu0 %v17978_v1 }
 0x625   : > { %13320 = vmatprep.subr.bf16.mxu0 %v17983_v23 }
 0x626   : > { %12060 = vmatmul.mubr.bf16.gmra.mrb[172].mxu1 %v21397_v14  ;;  %v21427_v14 = vld [vmem:[#allocation64_spill] sm:$0xff] }
 0x627   : > { %13258 = vmatmul.mubr.bf16.gmra.mrb[172].mxu0 %v21426_v35  ;;  %12069 = vmatprep.mubr.bf16.mxu1 %v21398_v29  ;;  %v17990_v29 = vld [vmem:[#allocation11 + $0x290] ss:$8 sps:$4 sm:$0xff]  }
 0x628   : > { %13267 = vmatprep.mubr.bf16.mxu0 %v20555_v7  ;;  %13321 = vmatpush1.bf16.msra.mxu0 %v17981_v16  ;;  %v17995_v7 = vld [vmem:[#allocation11 + $0x2a4] ss:$8 sps:$4 sm:$0xff]   ;;  %v18017_v16 = vld [vmem:[#allocation11 + $0x320] ss:$8 sps:$4 sm:$0xff]  }
 0x629   : > { %13322 = vmatprep.subr.bf16.mxu0 %v17986_v22 }
 0x62c   : > { %13323 = vmatpush1.bf16.msra.mxu0 %v17984_v50  ;;  %v18022_v50 = vld [vmem:[#allocation11 + $0x334] ss:$8 sps:$4 sm:$0xff]  }
 0x62d   : > { %13324 = vmatprep.subr.bf16.mxu0 %v17989_v25 }
 0x62e   : > { %12070 = vmatmul.mubr.bf16.gmra.mrb[176].mxu1 %v21399_v59  ;;  %v21429_v59 = vld [vmem:[#allocation68_spill] sm:$0xff] }
 0x62f   : > { %13268 = vmatmul.mubr.bf16.gmra.mrb[176].mxu0 %v20553_v21  ;;  %12079 = vmatprep.mubr.bf16.mxu1 %v21400_v38  ;;  %v17996_v21 = vld [vmem:[#allocation11 + $0x2b0] ss:$8 sps:$4 sm:$0xff]   ;;  %v18001_v38 = vld [vmem:[#allocation11 + $0x2c4] ss:$8 sps:$4 sm:$0xff]  }
 0x630   : > { %13277 = vmatprep.mubr.bf16.mxu0 %v21427_v14  ;;  %13325 = vmatpush1.bf16.msra.mxu0 %v17987_v30 }
 0x631   : > { %13326 = vmatprep.subr.bf16.mxu0 %v17992_v52 }
 0x634   : > { %13327 = vmatpush1.bf16.msra.mxu0 %v17990_v29 }
 0x635   : > { %13328 = vmatprep.subr.bf16.mxu0 %v17995_v7  ;;  %v18020_v7 = vld [vmem:[#allocation11 + $0x330] ss:$8 sps:$4 sm:$0xff]  }
 0x636   : > { %12080 = vmatmul.mubr.bf16.gmra.mrb[180].mxu1 %v21401_v48  ;;  %v18002_v48 = vld [vmem:[#allocation11 + $0x2d0] ss:$8 sps:$4 sm:$0xff]  }
 0x637   : > { %13278 = vmatmul.mubr.bf16.gmra.mrb[180].mxu0 %v21428_v9  ;;  %12089 = vmatprep.mubr.bf16.mxu1 %v21402_v19  ;;  %v18007_v19 = vld [vmem:[#allocation11 + $0x2e4] ss:$8 sps:$4 sm:$0xff]  }
 0x638   : > { %13287 = vmatprep.mubr.bf16.mxu0 %v21429_v59  ;;  %13329 = vmatpush1.bf16.msra.mxu0 %v17993_v53  ;;  %v18025_v9 = vld [vmem:[#allocation11 + $0x344] ss:$8 sps:$4 sm:$0xff]  }
 0x639   : > { %13330 = vmatprep.subr.bf16.mxu0 %v17998_v61 }
 0x63c   : > { %13331 = vmatpush1.bf16.msra.mxu0 %v17996_v21 }
 0x63d   : > { %13332 = vmatprep.subr.bf16.mxu0 %v18001_v38 }
 0x63e   : > { %12090 = vmatmul.mubr.bf16.gmra.mrb[184].mxu1 %v21403_v45  ;;  %v18008_v45 = vld [vmem:[#allocation11 + $0x2f0] ss:$8 sps:$4 sm:$0xff]  }
 0x63f   : > { %13288 = vmatmul.mubr.bf16.gmra.mrb[184].mxu0 %v21430_v33  ;;  %12099 = vmatprep.mubr.bf16.mxu1 %v21404_v42  ;;  %v20679_v42 = vld [vmem:[#allocation10] sm:$0xff]  ;;  %v18023_v33 = vld [vmem:[#allocation11 + $0x340] ss:$8 sps:$4 sm:$0xff]  }
 0x640   : > { %13297 = vmatprep.mubr.bf16.mxu0 %v20591_v44  ;;  %13333 = vmatpush1.bf16.msra.mxu0 %v17999_v37  ;;  %v21431_v44 = vld [vmem:[#allocation29_spill] sm:$0xff] }
 0x641   : > { %13334 = vmatprep.subr.bf16.mxu0 %v18004_v26  ;;  %v21432_v31 = vsub.s32 4, %v21431_v44  ;;  %v21433_v41 = vsub.s32 5, %v21431_v44 }
 0x643   : > { %v20684_v46 = vrot.slane %v20679_v42, %v21432_v31  ;;  %v20689_v10 = vrot.slane %v20679_v42, %v21433_v41 }
 0x644   : > { %13335 = vmatpush1.bf16.msra.mxu0 %v18002_v48 }
 0x645   : > { %13336 = vmatprep.subr.bf16.mxu0 %v18007_v19 }
 0x646   : > { %12100 = vmatmul.mubr.bf16.gmra.mrb[188].mxu1 %v21405_v17 }
 0x647   : > { %13298 = vmatmul.mubr.bf16.gmra.mrb[188].mxu0 %v20589_v6 }
 0x648   : > { %13337 = vmatpush1.bf16.msra.mxu0 %v18005_v4  ;;  %v18028_v4 = vld [vmem:[#allocation11 + $0x354] ss:$8 sps:$4 sm:$0xff]  }
 0x649   : > { %13338 = vmatprep.subr.bf16.mxu0 %v18010_v51 }
 0x64c   : > { %13339 = vmatpush1.bf16.msra.mxu0 %v18008_v45 }
 0x64d   : > { %13421 = vmatprep.subr.bf16.mxu0 %v18013_v32 }
 0x65f   : > { %v11353_v17 = vpop.f32.mrb[128].mxu0 }
 0x660   : > { %v16092_v6 = vadd.f32 %v11353_v17, %v20684_v46  ;;  %v11355_v36 = vpop.f32.mrb[129].mxu0  ;;  %v18026_v17 = vld [vmem:[#allocation11 + $0x350] ss:$8 sps:$4 sm:$0xff]  }
 0x661   : > { %v16093_v58 = vadd.f32 %v11355_v36, %v20689_v10  ;;  %v11357_v34 = vpop.f32.mrb[130].mxu0 }
 0x662   : > { %v16094_v5 = vadd.f32 %v11357_v34, %v20684_v46  ;;  %v11359_v2 = vpop.f32.mrb[131].mxu0  ;;  %v12114_v12 = vmax.f32 %v16092_v6, 0.0 }
 0x663   : > { %v16095_v63 = vadd.f32 %v11359_v2, %v20689_v10  ;;  %v12115_v13 = vmax.f32 %v16093_v58, 0.0  ;;  %v18031_v58 = vld [vmem:[#allocation11 + $0x364] ss:$8 sps:$4 sm:$0xff]  }
 0x664   : > { %v12122_v56 = vmax.f32 %v16094_v5, 0.0 }
 0x665   : > { %v12123_v55 = vmax.f32 %v16095_v63, 0.0 }
 0x666   : > { %v12242_v62 = vpack.c.bf16 %v12122_v56, %v12114_v12  ;;  %v18029_v56 = vld [vmem:[#allocation11 + $0x360] ss:$8 sps:$4 sm:$0xff]  }
 0x667   : > { %v12243_v39 = vpack.c.bf16 %v12123_v55, %v12115_v13  ;;  %v11363_v3 = vpop.f32.mrb[132].mxu0 }
 0x668   : > { %v16096_v57 = vadd.f32 %v11363_v3, %v20684_v46  ;;  %v11365_v28 = vpop.f32.mrb[133].mxu0 }
 0x669   : > { %v16097_v18 = vadd.f32 %v11365_v28, %v20689_v10  ;;  %v11367_v15 = vpop.f32.mrb[134].mxu0  ;;  %13340 = vmatprep.mubr.bf16.mxu0 %v12243_v39 }
 0x66a   : > { %v16098_v40 = vadd.f32 %v11367_v15, %v20684_v46  ;;  %v11369_v8 = vpop.f32.mrb[135].mxu0  ;;  %13341 = vmatmul.mubr.bf16.vlgmr.msra.gmra.mrb[160].mxu0 %v12242_v62  ;;  %v12130_v27 = vmax.f32 %v16096_v57, 0.0  ;;  %v18034_v62 = vld [vmem:[#allocation11 + $0x374] ss:$8 sps:$4 sm:$0xff]  }
 0x66b   : > { %v16099_v60 = vadd.f32 %v11369_v8, %v20689_v10  ;;  %13422 = vmatpush1.bf16.msra.mxu0 %v18011_v43  ;;  %v12131_v49 = vmax.f32 %v16097_v18, 0.0 }
 0x66c   : > { %v12138_v11 = vmax.f32 %v16098_v40, 0.0  ;;  %13423 = vmatprep.subr.bf16.mxu0 %v18016_v47  ;;  %v18032_v47 = vld [vmem:[#allocation11 + $0x370] ss:$8 sps:$4 sm:$0xff]   ;;  %v18037_v40 = vld [vmem:[#allocation11 + $0x384] ss:$8 sps:$4 sm:$0xff]  }
 0x66d   : > { %v12139_v24 = vmax.f32 %v16099_v60, 0.0 }
 0x66e   : > { %v12250_v54 = vpack.c.bf16 %v12138_v11, %v12130_v27 }
 0x66f   : > { %v12251_v1 = vpack.c.bf16 %v12139_v24, %v12131_v49  ;;  %v11373_v23 = vpop.f32.mrb[136].mxu0  ;;  %13424 = vmatpush1.bf16.msra.mxu0 %v18014_v20 }
 0x670   : > { %v16100_v22 = vadd.f32 %v11373_v23, %v20684_v46  ;;  %v11375_v35 = vpop.f32.mrb[137].mxu0  ;;  %13425 = vmatprep.subr.bf16.mxu0 %v18019_v0  ;;  %v18035_v0 = vld [vmem:[#allocation11 + $0x380] ss:$8 sps:$4 sm:$0xff]  }
 0x671   : > { %v16101_v25 = vadd.f32 %v11375_v35, %v20689_v10  ;;  %v11377_v30 = vpop.f32.mrb[138].mxu0  ;;  %13350 = vmatprep.mubr.bf16.mxu0 %v12251_v1 }
 0x672   : > { %v16102_v52 = vadd.f32 %v11377_v30, %v20684_v46  ;;  %v11379_v14 = vpop.f32.mrb[139].mxu0  ;;  %13351 = vmatmul.mubr.bf16.gmra.mrb[164].mxu0 %v12250_v54  ;;  %v12146_v53 = vmax.f32 %v16100_v22, 0.0  ;;  %v18040_v54 = vld [vmem:[#allocation11 + $0x394] ss:$8 sps:$4 sm:$0xff]  }
 0x673   : > { %v16103_v29 = vadd.f32 %v11379_v14, %v20689_v10  ;;  %13426 = vmatpush1.bf16.msra.mxu0 %v18017_v16  ;;  %v12147_v59 = vmax.f32 %v16101_v25, 0.0 }
 0x674   : > { %v12154_v61 = vmax.f32 %v16102_v52, 0.0  ;;  %13427 = vmatprep.subr.bf16.mxu0 %v18022_v50  ;;  %v18038_v50 = vld [vmem:[#allocation11 + $0x390] ss:$8 sps:$4 sm:$0xff]   ;;  %v18043_v52 = vld [vmem:[#allocation11 + $0x3a4] ss:$8 sps:$4 sm:$0xff]  }
 0x675   : > { %v12155_v21 = vmax.f32 %v16103_v29, 0.0 }
 0x676   : > { %v12258_v38 = vpack.c.bf16 %v12154_v61, %v12146_v53 }
 0x677   : > { %v12259_v37 = vpack.c.bf16 %v12155_v21, %v12147_v59  ;;  %v11383_v26 = vpop.f32.mrb[140].mxu0  ;;  %13428 = vmatpush1.bf16.msra.mxu0 %v18020_v7 }
 0x678   : > { %v16104_v48 = vadd.f32 %v11383_v26, %v20684_v46  ;;  %v11385_v19 = vpop.f32.mrb[141].mxu0  ;;  %13429 = vmatprep.subr.bf16.mxu0 %v18025_v9  ;;  %v18041_v9 = vld [vmem:[#allocation11 + $0x3a0] ss:$8 sps:$4 sm:$0xff]  }
 0x679   : > { %v16105_v51 = vadd.f32 %v11385_v19, %v20689_v10  ;;  %v11387_v45 = vpop.f32.mrb[142].mxu0  ;;  %13360 = vmatprep.mubr.bf16.mxu0 %v12259_v37 }
 0x67a   : > { %v16106_v32 = vadd.f32 %v11387_v45, %v20684_v46  ;;  %v11389_v31 = vpop.f32.mrb[143].mxu0  ;;  %13361 = vmatmul.mubr.bf16.gmra.mrb[168].mxu0 %v12258_v38  ;;  %v12162_v6 = vmax.f32 %v16104_v48, 0.0  ;;  %v18046_v38 = vld [vmem:[#allocation11 + $0x3b4] ss:$8 sps:$4 sm:$0xff]  }
 0x67b   : > { %v16107_v41 = vadd.f32 %v11389_v31, %v20689_v10  ;;  %13430 = vmatpush1.bf16.msra.mxu0 %v18023_v33  ;;  %v12163_v34 = vmax.f32 %v16105_v51, 0.0 }
 0x67c   : > { %v12170_v36 = vmax.f32 %v16106_v32, 0.0  ;;  %13431 = vmatprep.subr.bf16.mxu0 %v18028_v4  ;;  %v18044_v4 = vld [vmem:[#allocation11 + $0x3b0] ss:$8 sps:$4 sm:$0xff]   ;;  %v18049_v32 = vld [vmem:[#allocation11 + $0x3c4] ss:$8 sps:$4 sm:$0xff]  }
 0x67d   : > { %v12171_v5 = vmax.f32 %v16107_v41, 0.0 }
 0x67e   : > { %v12266_v2 = vpack.c.bf16 %v12170_v36, %v12162_v6 }
 0x67f   : > { %v12267_v63 = vpack.c.bf16 %v12171_v5, %v12163_v34  ;;  %v11393_v12 = vpop.f32.mrb[144].mxu0  ;;  %13432 = vmatpush1.bf16.msra.mxu0 %v18026_v17 }
 0x680   : > { %v16108_v13 = vadd.f32 %v11393_v12, %v20684_v46  ;;  %v11395_v55 = vpop.f32.mrb[145].mxu0  ;;  %13433 = vmatprep.subr.bf16.mxu0 %v18031_v58  ;;  %v18047_v58 = vld [vmem:[#allocation11 + $0x3c0] ss:$8 sps:$4 sm:$0xff]  }
 0x681   : > { %v16109_v39 = vadd.f32 %v11395_v55, %v20689_v10  ;;  %v11397_v3 = vpop.f32.mrb[146].mxu0  ;;  %13370 = vmatprep.mubr.bf16.mxu0 %v12267_v63 }
 0x682   : > { %v16110_v43 = vadd.f32 %v11397_v3, %v20684_v46  ;;  %v11399_v57 = vpop.f32.mrb[147].mxu0  ;;  %13371 = vmatmul.mubr.bf16.gmra.mrb[172].mxu0 %v12266_v2  ;;  %v12178_v18 = vmax.f32 %v16108_v13, 0.0  ;;  %v18052_v2 = vld [vmem:[#allocation11 + $0x3d4] ss:$8 sps:$4 sm:$0xff]  }
 0x683   : > { %v16111_v28 = vadd.f32 %v11399_v57, %v20689_v10  ;;  %13434 = vmatpush1.bf16.msra.mxu0 %v18029_v56  ;;  %v12179_v8 = vmax.f32 %v16109_v39, 0.0 }
 0x684   : > { %v12186_v15 = vmax.f32 %v16110_v43, 0.0  ;;  %13435 = vmatprep.subr.bf16.mxu0 %v18034_v62  ;;  %v18050_v62 = vld [vmem:[#allocation11 + $0x3d0] ss:$8 sps:$4 sm:$0xff]   ;;  %v18055_v43 = vld [vmem:[#allocation11 + $0x3e4] ss:$8 sps:$4 sm:$0xff]  }
 0x685   : > { %v12187_v60 = vmax.f32 %v16111_v28, 0.0 }
 0x686   : > { %v12274_v20 = vpack.c.bf16 %v12186_v15, %v12178_v18  ;;  %v18053_v15 = vld [vmem:[#allocation11 + $0x3e0] ss:$8 sps:$4 sm:$0xff]  }
 0x687   : > { %v12275_v27 = vpack.c.bf16 %v12187_v60, %v12179_v8  ;;  %v11403_v11 = vpop.f32.mrb[148].mxu0  ;;  %13436 = vmatpush1.bf16.msra.mxu0 %v18032_v47  ;;  %v18060_v8 = vld [vmem:[#allocation14] sm:$0xff]   ;;  %v18061_v60 = vld [vmem:[#allocation14 + $0x48] sm:$0xff]  }
 0x688   : > { %v16112_v49 = vadd.f32 %v11403_v11, %v20684_v46  ;;  %v11405_v24 = vpop.f32.mrb[149].mxu0  ;;  %13437 = vmatprep.subr.bf16.mxu0 %v18037_v40  ;;  %v18058_v40 = vld [vmem:[#allocation11 + $0x3f4] ss:$8 sps:$4 sm:$0xff]  }
 0x689   : > { %v16113_v1 = vadd.f32 %v11405_v24, %v20689_v10  ;;  %v11407_v23 = vpop.f32.mrb[150].mxu0  ;;  %13380 = vmatprep.mubr.bf16.mxu0 %v12275_v27  ;;  %v18063_v27 = vld [vmem:[#allocation14 + $0x50] sm:$0xff]   ;;  %v18067_v24 = vld [vmem:[#allocation14 + $0x60] sm:$0xff]  }
 0x68a   : > { %v16114_v16 = vadd.f32 %v11407_v23, %v20684_v46  ;;  %v11409_v22 = vpop.f32.mrb[151].mxu0  ;;  %13381 = vmatmul.mubr.bf16.gmra.mrb[176].mxu0 %v12274_v20  ;;  %v12194_v25 = vmax.f32 %v16112_v49, 0.0  ;;  %v18062_v20 = vld [vmem:[#allocation14 + $0x8] sm:$0xff]   ;;  %v18064_v11 = vld [vmem:[#allocation14 + $0x10] sm:$0xff]   ;;  %v18066_v49 = vld [vmem:[#allocation14 + $0x18] sm:$0xff]  }
 0x68b   : > { %v16115_v35 = vadd.f32 %v11409_v22, %v20689_v10  ;;  %13438 = vmatpush1.bf16.msra.mxu0 %v18035_v0  ;;  %v12195_v14 = vmax.f32 %v16113_v1, 0.0  ;;  %v18065_v0 = vld [vmem:[#allocation14 + $0x58] sm:$0xff]   ;;  %v18069_v1 = vld [vmem:[#allocation14 + $0x68] sm:$0xff]   ;;  %v18072_v22 = vld [vmem:[#allocation14 + $0x30] sm:$0xff]  }
 0x68c   : > { %v12202_v30 = vmax.f32 %v16114_v16, 0.0  ;;  %13439 = vmatprep.subr.bf16.mxu0 %v18040_v54  ;;  %v18068_v54 = vld [vmem:[#allocation14 + $0x20] sm:$0xff]   ;;  %v18070_v23 = vld [vmem:[#allocation14 + $0x28] sm:$0xff]   ;;  %v18071_v16 = vld [vmem:[#allocation14 + $0x70] sm:$0xff]  }
 0x68d   : > { %v12203_v29 = vmax.f32 %v16115_v35, 0.0  ;;  %v21434_v35 = vsub.s32 6, %v21431_v44 }
 0x68e   : > { %v12282_v7 = vpack.c.bf16 %v12202_v30, %v12194_v25  ;;  %v21435_v25 = vsub.s32 7, %v21431_v44 }
 0x68f   : > { %v12283_v53 = vpack.c.bf16 %v12203_v29, %v12195_v14  ;;  %v11413_v61 = vpop.f32.mrb[152].mxu0  ;;  %13440 = vmatpush1.bf16.msra.mxu0 %v18038_v50  ;;  %v20726_v50 = vrot.slane %v20679_v42, %v21434_v35 }
 0x690   : > { %v16116_v59 = vadd.f32 %v11413_v61, %v20684_v46  ;;  %v11415_v21 = vpop.f32.mrb[153].mxu0  ;;  %13441 = vmatprep.subr.bf16.mxu0 %v18043_v52  ;;  %v20731_v30 = vrot.slane %v20679_v42, %v21435_v25 }
 0x691   : > { %v16117_v37 = vadd.f32 %v11415_v21, %v20689_v10  ;;  %v11417_v26 = vpop.f32.mrb[154].mxu0  ;;  %13390 = vmatprep.mubr.bf16.mxu0 %v12283_v53 }
 0x692   : > { %v16118_v33 = vadd.f32 %v11417_v26, %v20684_v46  ;;  %v11419_v48 = vpop.f32.mrb[155].mxu0  ;;  %13391 = vmatmul.mubr.bf16.gmra.mrb[180].mxu0 %v12282_v7  ;;  %v12210_v51 = vmax.f32 %v16116_v59, 0.0 }
 0x693   : > { %v16119_v19 = vadd.f32 %v11419_v48, %v20689_v10  ;;  %13442 = vmatpush1.bf16.msra.mxu0 %v18041_v9  ;;  %v12211_v31 = vmax.f32 %v16117_v37, 0.0 }
 0x694   : > { %v12218_v45 = vmax.f32 %v16118_v33, 0.0  ;;  %13443 = vmatprep.subr.bf16.mxu0 %v18046_v38 }
 0x695   : > { %v12219_v41 = vmax.f32 %v16119_v19, 0.0 }
 0x696   : > { %v12290_v17 = vpack.c.bf16 %v12218_v45, %v12210_v51 }
 0x697   : > { %v12291_v6 = vpack.c.bf16 %v12219_v41, %v12211_v31  ;;  %v11423_v36 = vpop.f32.mrb[156].mxu0  ;;  %13444 = vmatpush1.bf16.msra.mxu0 %v18044_v4 }
 0x698   : > { %v16120_v34 = vadd.f32 %v11423_v36, %v20684_v46  ;;  %v11425_v5 = vpop.f32.mrb[157].mxu0  ;;  %13445 = vmatprep.subr.bf16.mxu0 %v18049_v32 }
 0x699   : > { %v16121_v63 = vadd.f32 %v11425_v5, %v20689_v10  ;;  %v11427_v12 = vpop.f32.mrb[158].mxu0  ;;  %13400 = vmatprep.mubr.bf16.mxu0 %v12291_v6 }
 0x69a   : > { %v16122_v56 = vadd.f32 %v11427_v12, %v20684_v46  ;;  %v11429_v13 = vpop.f32.mrb[159].mxu0  ;;  %13401 = vmatmul.mubr.bf16.gmra.mrb[184].mxu0 %v12290_v17  ;;  %v12226_v39 = vmax.f32 %v16120_v34, 0.0  ;;  %v18056_v46 = vld [vmem:[#allocation11 + $0x3f0] ss:$8 sps:$4 sm:$0xff]  }
 0x69b   : > { %v16123_v55 = vadd.f32 %v11429_v13, %v20689_v10  ;;  %13446 = vmatpush1.bf16.msra.mxu0 %v18047_v58  ;;  %v12227_v57 = vmax.f32 %v16121_v63, 0.0  ;;  %v18059_v10 = vld [vmem:[#allocation14 + $0x40] sm:$0xff]  }
 0x69c   : > { %v12234_v3 = vmax.f32 %v16122_v56, 0.0  ;;  %13447 = vmatprep.subr.bf16.mxu0 %v18052_v2  ;;  %15692 = vmatprep.subr.bf16.mxu1 %v18059_v10 }
 0x69d   : > { %v12235_v28 = vmax.f32 %v16123_v55, 0.0  ;;  %15693 = vmatpush3.bf16.msra.mxu1 %v18060_v8 }
 0x69e   : > { %v12298_v47 = vpack.c.bf16 %v12234_v3, %v12226_v39  ;;  %15694 = vmatprep.subr.bf16.mxu1 %v18061_v60 }
 0x69f   : > { %v12299_v18 = vpack.c.bf16 %v12235_v28, %v12227_v57  ;;  %13448 = vmatpush1.bf16.msra.mxu0 %v18050_v62 }
 0x6a0   : > { %13449 = vmatprep.subr.bf16.mxu0 %v18055_v43 }
 0x6a1   : > { %13410 = vmatprep.mubr.bf16.mxu0 %v12299_v18  ;;  %15695 = vmatpush3.bf16.msra.mxu1 %v18062_v20 }
 0x6a2   : > { %13411 = vmatmul.mubr.bf16.gmra.mrb[188].mxu0 %v12298_v47  ;;  %15696 = vmatprep.subr.bf16.mxu1 %v18063_v27 }
 0x6a3   : > { %13450 = vmatpush1.bf16.msra.mxu0 %v18053_v15 }
 0x6a4   : > { %13451 = vmatprep.subr.bf16.mxu0 %v18058_v40 }
 0x6a5   : > { %15697 = vmatpush3.bf16.msra.mxu1 %v18064_v11 }
 0x6a6   : > { %15698 = vmatprep.subr.bf16.mxu1 %v18065_v0 }
 0x6a7   : > { %13452 = vmatpush1.bf16.msra.mxu0 %v18056_v46 }
 0x6a9   : > { %15699 = vmatpush3.bf16.msra.mxu1 %v18066_v49 }
 0x6aa   : > { %15700 = vmatprep.subr.bf16.mxu1 %v18067_v24 }
 0x6ad   : > { %15701 = vmatpush3.bf16.msra.mxu1 %v18068_v54 }
 0x6ae   : > { %15702 = vmatprep.subr.bf16.mxu1 %v18069_v1 }
 0x6b1   : > { %15703 = vmatpush3.bf16.msra.mxu1 %v18070_v23 }
 0x6b2   : > { %15704 = vmatprep.subr.bf16.mxu1 %v18071_v16 }
 0x6b5   : > { %15705 = vmatpush3.bf16.msra.mxu1 %v18072_v22 }
 0x6e1   : > { %v12031_v52 = vpop.f32.mrb[160].mxu1 }
 0x6e2   : > { %v16124_v14 = vadd.f32 %v12031_v52, %v20726_v50  ;;  %v12033_v29 = vpop.f32.mrb[161].mxu1 }
 0x6e3   : > { %v16125_v7 = vadd.f32 %v12033_v29, %v20731_v30  ;;  %v12035_v53 = vpop.f32.mrb[162].mxu1 }
 0x6e4   : > { %v16126_v61 = vadd.f32 %v12035_v53, %v20726_v50  ;;  %v12037_v9 = vpop.f32.mrb[163].mxu1  ;;  %v12116_v21 = vmax.f32 %v16124_v14, 0.0 }
 0x6e5   : > { %v16127_v59 = vadd.f32 %v12037_v9, %v20731_v30  ;;  %v12117_v37 = vmax.f32 %v16125_v7, 0.0 }
 0x6e6   : > { %v12124_v38 = vmax.f32 %v16126_v61, 0.0 }
 0x6e7   : > { %v12125_v26 = vmax.f32 %v16127_v59, 0.0 }
 0x6e8   : > { %v12244_v44 = vpack.c.bf16 %v12124_v38, %v12116_v21 }
 0x6e9   : > { %v12245_v33 = vpack.c.bf16 %v12125_v26, %v12117_v37  ;;  %v12041_v42 = vpop.f32.mrb[164].mxu1 }
 0x6ea   : > { %v16128_v48 = vadd.f32 %v12041_v42, %v20726_v50  ;;  %v12043_v19 = vpop.f32.mrb[165].mxu1 }
 0x6eb   : > { %v16129_v4 = vadd.f32 %v12043_v19, %v20731_v30  ;;  %v12045_v51 = vpop.f32.mrb[166].mxu1  ;;  %13453 = vmatprep.mubr.bf16.mxu0 %v12245_v33 }
 0x6ec   : > { %v16130_v45 = vadd.f32 %v12045_v51, %v20726_v50  ;;  %v12047_v32 = vpop.f32.mrb[167].mxu1  ;;  %13454 = vmatmul.mubr.bf16.vlgmr.msra.gmra.mrb[160].mxu0 %v12244_v44  ;;  %v12132_v41 = vmax.f32 %v16128_v48, 0.0 }
 0x6ed   : > { %v16131_v31 = vadd.f32 %v12047_v32, %v20731_v30  ;;  %v12133_v6 = vmax.f32 %v16129_v4, 0.0 }
 0x6ee   : > { %v12140_v17 = vmax.f32 %v16130_v45, 0.0 }
 0x6ef   : > { %v12141_v36 = vmax.f32 %v16131_v31, 0.0 }
 0x6f0   : > { %v12252_v58 = vpack.c.bf16 %v12140_v17, %v12132_v41 }
 0x6f1   : > { %v12253_v34 = vpack.c.bf16 %v12141_v36, %v12133_v6  ;;  %v12051_v5 = vpop.f32.mrb[168].mxu1 }
 0x6f2   : > { %v16132_v2 = vadd.f32 %v12051_v5, %v20726_v50  ;;  %v12053_v63 = vpop.f32.mrb[169].mxu1 }
 0x6f3   : > { %v16133_v12 = vadd.f32 %v12053_v63, %v20731_v30  ;;  %v12055_v56 = vpop.f32.mrb[170].mxu1  ;;  %13463 = vmatprep.mubr.bf16.mxu0 %v12253_v34 }
 0x6f4   : > { %v16134_v13 = vadd.f32 %v12055_v56, %v20726_v50  ;;  %v12057_v55 = vpop.f32.mrb[171].mxu1  ;;  %13464 = vmatmul.mubr.bf16.gmra.mrb[164].mxu0 %v12252_v58  ;;  %v12148_v39 = vmax.f32 %v16132_v2, 0.0 }
 0x6f5   : > { %v16135_v62 = vadd.f32 %v12057_v55, %v20731_v30  ;;  %v12149_v43 = vmax.f32 %v16133_v12, 0.0 }
 0x6f6   : > { %v12156_v3 = vmax.f32 %v16134_v13, 0.0 }
 0x6f7   : > { %v12157_v57 = vmax.f32 %v16135_v62, 0.0 }
 0x6f8   : > { %v12260_v28 = vpack.c.bf16 %v12156_v3, %v12148_v39 }
 0x6f9   : > { %v12261_v47 = vpack.c.bf16 %v12157_v57, %v12149_v43  ;;  %v12061_v18 = vpop.f32.mrb[172].mxu1 }
 0x6fa   : > { %v16136_v15 = vadd.f32 %v12061_v18, %v20726_v50  ;;  %v12063_v40 = vpop.f32.mrb[173].mxu1 }
 0x6fb   : > { %v16137_v46 = vadd.f32 %v12063_v40, %v20731_v30  ;;  %v12065_v10 = vpop.f32.mrb[174].mxu1  ;;  %13473 = vmatprep.mubr.bf16.mxu0 %v12261_v47 }
 0x6fc   : > { %v16138_v8 = vadd.f32 %v12065_v10, %v20726_v50  ;;  %v12067_v60 = vpop.f32.mrb[175].mxu1  ;;  %13474 = vmatmul.mubr.bf16.gmra.mrb[168].mxu0 %v12260_v28  ;;  %v12164_v27 = vmax.f32 %v16136_v15, 0.0 }
 0x6fd   : > { %v16139_v20 = vadd.f32 %v12067_v60, %v20731_v30  ;;  %v12165_v0 = vmax.f32 %v16137_v46, 0.0 }
 0x6fe   : > { %v12172_v11 = vmax.f32 %v16138_v8, 0.0 }
 0x6ff   : > { %v12173_v49 = vmax.f32 %v16139_v20, 0.0 }
 0x700   : > { %v12268_v24 = vpack.c.bf16 %v12172_v11, %v12164_v27  ;;  %v18073_v27 = vld [vmem:[#allocation14 + $0x78] sm:$0xff]  }
 0x701   : > { %v12269_v54 = vpack.c.bf16 %v12173_v49, %v12165_v0  ;;  %v12071_v1 = vpop.f32.mrb[176].mxu1  ;;  %v18074_v11 = vld [vmem:[#allocation14 + $0x38] sm:$0xff]   ;;  %15706 = vmatprep.subr.bf16.mxu1 %v18073_v27  ;;  %v18075_v0 = vld [vmem:[#allocation17] sm:$0xff]  }
 0x702   : > { %v16140_v23 = vadd.f32 %v12071_v1, %v20726_v50  ;;  %v12073_v16 = vpop.f32.mrb[177].mxu1  ;;  %15707 = vmatpush3.bf16.msra.mxu1 %v18074_v11  ;;  %v12430_v49 = vld [vmem:[#allocation13] sm:$0x3] }
 0x703   : > { %v16141_v22 = vadd.f32 %v12073_v16, %v20731_v30  ;;  %v12075_v35 = vpop.f32.mrb[178].mxu1  ;;  %13483 = vmatprep.mubr.bf16.mxu0 %v12269_v54  ;;  %15772 = vmatprep.subr.bf16.mxu1 %v18075_v0  ;;  %v21437_v54 = vld [vmem:[#allocation31_spill] sm:$0xff] }
 0x704   : > { %v16142_v25 = vadd.f32 %v12075_v35, %v20726_v50  ;;  %v12077_v52 = vpop.f32.mrb[179].mxu1  ;;  %13484 = vmatmul.mubr.bf16.gmra.mrb[172].mxu0 %v12268_v24  ;;  %v12180_v29 = vmax.f32 %v16140_v23, 0.0 }
 0x705   : > { %v16143_v14 = vadd.f32 %v12077_v52, %v20731_v30  ;;  %v12181_v53 = vmax.f32 %v16141_v22, 0.0 }
 0x706   : > { %v12188_v7 = vmax.f32 %v16142_v25, 0.0 }
 0x707   : > { %v12189_v61 = vmax.f32 %v16143_v14, 0.0 }
 0x708   : > { %v12276_v9 = vpack.c.bf16 %v12188_v7, %v12180_v29 }
 0x709   : > { %v12277_v59 = vpack.c.bf16 %v12189_v61, %v12181_v53  ;;  %v12081_v21 = vpop.f32.mrb[180].mxu1 }
 0x70a   : > { %v16144_v38 = vadd.f32 %v12081_v21, %v20726_v50  ;;  %v12083_v37 = vpop.f32.mrb[181].mxu1 }
 0x70b   : > { %v16145_v26 = vadd.f32 %v12083_v37, %v20731_v30  ;;  %v12085_v44 = vpop.f32.mrb[182].mxu1  ;;  %13493 = vmatprep.mubr.bf16.mxu0 %v12277_v59 }
 0x70c   : > { %v16146_v33 = vadd.f32 %v12085_v44, %v20726_v50  ;;  %v12087_v42 = vpop.f32.mrb[183].mxu1  ;;  %13494 = vmatmul.mubr.bf16.gmra.mrb[176].mxu0 %v12276_v9  ;;  %v12196_v19 = vmax.f32 %v16144_v38, 0.0 }
 0x70d   : > { %v16147_v48 = vadd.f32 %v12087_v42, %v20731_v30  ;;  %v12197_v51 = vmax.f32 %v16145_v26, 0.0  ;;  %v18076_v26 = vld [vmem:[#allocation17 + $0x8] sm:$0xff]  }
 0x70e   : > { %v12204_v4 = vmax.f32 %v16146_v33, 0.0 }
 0x70f   : > { %v12205_v45 = vmax.f32 %v16147_v48, 0.0 }
 0x710   : > { %v12284_v32 = vpack.c.bf16 %v12204_v4, %v12196_v19 }
 0x711   : > { %v12285_v31 = vpack.c.bf16 %v12205_v45, %v12197_v51  ;;  %v12091_v41 = vpop.f32.mrb[184].mxu1  ;;  %v18077_v45 = vld [vmem:[#allocation17 + $0x10] sm:$0xff]  }
 0x712   : > { %v16148_v17 = vadd.f32 %v12091_v41, %v20726_v50  ;;  %v12093_v6 = vpop.f32.mrb[185].mxu1 }
 0x713   : > { %v16149_v36 = vadd.f32 %v12093_v6, %v20731_v30  ;;  %v12095_v58 = vpop.f32.mrb[186].mxu1  ;;  %13503 = vmatprep.mubr.bf16.mxu0 %v12285_v31 }
 0x714   : > { %v16150_v34 = vadd.f32 %v12095_v58, %v20726_v50  ;;  %v12097_v5 = vpop.f32.mrb[187].mxu1  ;;  %13504 = vmatmul.mubr.bf16.gmra.mrb[180].mxu0 %v12284_v32  ;;  %v12212_v63 = vmax.f32 %v16148_v17, 0.0 }
 0x715   : > { %v16151_v2 = vadd.f32 %v12097_v5, %v20731_v30  ;;  %v12213_v56 = vmax.f32 %v16149_v36, 0.0 }
 0x716   : > { %v12220_v12 = vmax.f32 %v16150_v34, 0.0 }
 0x717   : > { %v12221_v13 = vmax.f32 %v16151_v2, 0.0 }
 0x718   : > { %v12292_v55 = vpack.c.bf16 %v12220_v12, %v12212_v63 }
 0x719   : > { %v12293_v62 = vpack.c.bf16 %v12221_v13, %v12213_v56  ;;  %v12101_v39 = vpop.f32.mrb[188].mxu1 }
 0x71a   : > { %v16152_v3 = vadd.f32 %v12101_v39, %v20726_v50  ;;  %v12103_v43 = vpop.f32.mrb[189].mxu1 }
 0x71b   : > { %v16153_v57 = vadd.f32 %v12103_v43, %v20731_v30  ;;  %v12105_v28 = vpop.f32.mrb[190].mxu1  ;;  %13513 = vmatprep.mubr.bf16.mxu0 %v12293_v62 }
 0x71c   : > { %v16154_v47 = vadd.f32 %v12105_v28, %v20726_v50  ;;  %v12107_v18 = vpop.f32.mrb[191].mxu1  ;;  %13514 = vmatmul.mubr.bf16.gmra.mrb[184].mxu0 %v12292_v55  ;;  %v12228_v40 = vmax.f32 %v16152_v3, 0.0  ;;  %v21436_v50 = vld [vmem:[#allocation30_spill] sm:$0xff] }
 0x71d   : > { %v16155_v15 = vadd.f32 %v12107_v18, %v20731_v30  ;;  %v12229_v10 = vmax.f32 %v16153_v57, 0.0  ;;  %v20766_v24 = vrot.slane %v12430_v49, %v21436_v50  ;;  %v20769_v30 = vrot.slane %v12430_v49, %v21437_v54 }
 0x71e   : > { %v12236_v46 = vmax.f32 %v16154_v47, 0.0 }
 0x71f   : > { %v12237_v8 = vmax.f32 %v16155_v15, 0.0 }
 0x720   : > { %v12300_v60 = vpack.c.bf16 %v12236_v46, %v12228_v40 }
 0x721   : > { %v12301_v20 = vpack.c.bf16 %v12237_v8, %v12229_v10 }
 0x723   : > { %13523 = vmatprep.mubr.bf16.mxu0 %v12301_v20 }
 0x724   : > { %13524 = vmatmul.mubr.bf16.gmra.mrb[188].mxu0 %v12300_v60 }
 0x7bf   : > { %v13455_v1 = vpop.f32.mrb[160].mxu0 }
 0x7c0   : > { %v16156_v23 = vadd.f32 %v13455_v1, %v20766_v24  ;;  %v13457_v16 = vpop.f32.mrb[161].mxu0 }
 0x7c1   : > { %v16157_v22 = vadd.f32 %v13457_v16, %v20769_v30  ;;  %v13459_v35 = vpop.f32.mrb[162].mxu0 }
 0x7c2   : > { %v16158_v25 = vadd.f32 %v13459_v35, %v20766_v24  ;;  %v13461_v52 = vpop.f32.mrb[163].mxu0  ;;  %v13534_v29 = vmax.f32 %v16156_v23, 0.0 }
 0x7c3   : > { %v16159_v14 = vadd.f32 %v13461_v52, %v20769_v30  ;;  %v13535_v53 = vmax.f32 %v16157_v22, 0.0 }
 0x7c4   : > { %v13536_v7 = vmax.f32 %v16158_v25, 0.0 }
 0x7c5   : > { %v13537_v61 = vmax.f32 %v16159_v14, 0.0 }
 0x7c6   : > { %v13566_v9 = vpack.c.bf16 %v13536_v7, %v13534_v29 }
 0x7c7   : > { %v13567_v59 = vpack.c.bf16 %v13537_v61, %v13535_v53  ;;  %v13465_v21 = vpop.f32.mrb[164].mxu0 }
 0x7c8   : > { %v16160_v38 = vadd.f32 %v13465_v21, %v20766_v24  ;;  %v13467_v37 = vpop.f32.mrb[165].mxu0 }
 0x7c9   : > { %v16161_v44 = vadd.f32 %v13467_v37, %v20769_v30  ;;  %v13469_v33 = vpop.f32.mrb[166].mxu0  ;;  %13749 = vmatprep.mubr.bf16.mxu1 %v13567_v59 }
 0x7ca   : > { %v16162_v42 = vadd.f32 %v13469_v33, %v20766_v24  ;;  %v13471_v48 = vpop.f32.mrb[167].mxu0  ;;  %13750 = vmatmul.mubr.bf16.vlgmr.msra.gmra.mrb[192].mxu1 %v13566_v9  ;;  %v13538_v4 = vmax.f32 %v16160_v38, 0.0 }
 0x7cb   : > { %v16163_v19 = vadd.f32 %v13471_v48, %v20769_v30  ;;  %15773 = vmatpush3.bf16.msra.mxu1 %v18075_v0  ;;  %v13539_v32 = vmax.f32 %v16161_v44, 0.0 }
 0x7cc   : > { %v13540_v51 = vmax.f32 %v16162_v42, 0.0  ;;  %15774 = vmatprep.subr.bf16.mxu1 %v18076_v26 }
 0x7cd   : > { %v13541_v31 = vmax.f32 %v16163_v19, 0.0 }
 0x7ce   : > { %v13568_v41 = vpack.c.bf16 %v13540_v51, %v13538_v4 }
 0x7cf   : > { %v13569_v17 = vpack.c.bf16 %v13541_v31, %v13539_v32  ;;  %v13475_v6 = vpop.f32.mrb[168].mxu0  ;;  %15775 = vmatpush3.bf16.msra.mxu1 %v18076_v26 }
 0x7d0   : > { %v16164_v36 = vadd.f32 %v13475_v6, %v20766_v24  ;;  %v13477_v58 = vpop.f32.mrb[169].mxu0  ;;  %15776 = vmatprep.subr.bf16.mxu1 %v18077_v45 }
 0x7d1   : > { %v16165_v34 = vadd.f32 %v13477_v58, %v20769_v30  ;;  %v13479_v5 = vpop.f32.mrb[170].mxu0  ;;  %13757 = vmatprep.mubr.bf16.mxu1 %v13569_v17 }
 0x7d2   : > { %v16166_v2 = vadd.f32 %v13479_v5, %v20766_v24  ;;  %v13481_v63 = vpop.f32.mrb[171].mxu0  ;;  %13758 = vmatmul.mubr.bf16.gmra.mrb[196].mxu1 %v13568_v41  ;;  %v13542_v56 = vmax.f32 %v16164_v36, 0.0 }
 0x7d3   : > { %v16167_v12 = vadd.f32 %v13481_v63, %v20769_v30  ;;  %15777 = vmatpush3.bf16.msra.mxu1 %v18077_v45  ;;  %v13543_v55 = vmax.f32 %v16165_v34, 0.0 }
 0x7d4   : > { %v13544_v13 = vmax.f32 %v16166_v2, 0.0 }
 0x7d5   : > { %v13545_v62 = vmax.f32 %v16167_v12, 0.0 }
 0x7d6   : > { %v13570_v39 = vpack.c.bf16 %v13544_v13, %v13542_v56 }
 0x7d7   : > { %v13571_v3 = vpack.c.bf16 %v13545_v62, %v13543_v55  ;;  %v13485_v43 = vpop.f32.mrb[172].mxu0 }
 0x7d8   : > { %v16168_v57 = vadd.f32 %v13485_v43, %v20766_v24  ;;  %v13487_v28 = vpop.f32.mrb[173].mxu0 }
 0x7d9   : > { %v16169_v47 = vadd.f32 %v13487_v28, %v20769_v30  ;;  %v13489_v18 = vpop.f32.mrb[174].mxu0  ;;  %13765 = vmatprep.mubr.bf16.mxu1 %v13571_v3 }
 0x7da   : > { %v16170_v15 = vadd.f32 %v13489_v18, %v20766_v24  ;;  %v13491_v40 = vpop.f32.mrb[175].mxu0  ;;  %13766 = vmatmul.mubr.bf16.gmra.mrb[200].mxu1 %v13570_v39  ;;  %v13546_v10 = vmax.f32 %v16168_v57, 0.0 }
 0x7db   : > { %v16171_v46 = vadd.f32 %v13491_v40, %v20769_v30  ;;  %v13547_v60 = vmax.f32 %v16169_v47, 0.0 }
 0x7dc   : > { %v13548_v8 = vmax.f32 %v16170_v15, 0.0 }
 0x7dd   : > { %v13549_v20 = vmax.f32 %v16171_v46, 0.0 }
 0x7de   : > { %v13572_v27 = vpack.c.bf16 %v13548_v8, %v13546_v10  ;;  %v18078_v10 = vld [vmem:[#allocation17 + $0x18] sm:$0xff]   ;;  %v18079_v8 = vld [vmem:[#allocation17 + $0x20] sm:$0xff]  }
 0x7df   : > { %v13573_v11 = vpack.c.bf16 %v13549_v20, %v13547_v60  ;;  %v13495_v0 = vpop.f32.mrb[176].mxu0  ;;  %15778 = vmatprep.subr.bf16.mxu1 %v18078_v10  ;;  %v18080_v60 = vld [vmem:[#allocation17 + $0x28] sm:$0xff]  }
 0x7e0   : > { %v16172_v49 = vadd.f32 %v13495_v0, %v20766_v24  ;;  %v13497_v50 = vpop.f32.mrb[177].mxu0  ;;  %15779 = vmatpush3.bf16.msra.mxu1 %v18078_v10 }
 0x7e1   : > { %v16173_v54 = vadd.f32 %v13497_v50, %v20769_v30  ;;  %v13499_v1 = vpop.f32.mrb[178].mxu0  ;;  %13773 = vmatprep.mubr.bf16.mxu1 %v13573_v11  ;;  %15780 = vmatprep.subr.bf16.mxu1 %v18079_v8 }
 0x7e2   : > { %v16174_v23 = vadd.f32 %v13499_v1, %v20766_v24  ;;  %v13501_v16 = vpop.f32.mrb[179].mxu0  ;;  %13774 = vmatmul.mubr.bf16.gmra.mrb[204].mxu1 %v13572_v27  ;;  %v13550_v35 = vmax.f32 %v16172_v49, 0.0  ;;  %v20803_v27 = vld [vmem:[#allocation16] ss:$0 sm:$0xff] }
 0x7e3   : > { %v16175_v22 = vadd.f32 %v13501_v16, %v20769_v30  ;;  %v13551_v52 = vmax.f32 %v16173_v54, 0.0 }
 0x7e4   : > { %v13552_v25 = vmax.f32 %v16174_v23, 0.0  ;;  %15781 = vmatpush3.bf16.msra.mxu1 %v18079_v8 }
 0x7e5   : > { %v13553_v14 = vmax.f32 %v16175_v22, 0.0  ;;  %15782 = vmatprep.subr.bf16.mxu1 %v18080_v60 }
 0x7e6   : > { %v13574_v29 = vpack.c.bf16 %v13552_v25, %v13550_v35 }
 0x7e7   : > { %v13575_v7 = vpack.c.bf16 %v13553_v14, %v13551_v52  ;;  %v13505_v53 = vpop.f32.mrb[180].mxu0 }
 0x7e8   : > { %v16176_v61 = vadd.f32 %v13505_v53, %v20766_v24  ;;  %v13507_v9 = vpop.f32.mrb[181].mxu0  ;;  %15783 = vmatpush3.bf16.msra.mxu1 %v18080_v60 }
 0x7e9   : > { %v16177_v59 = vadd.f32 %v13507_v9, %v20769_v30  ;;  %v13509_v21 = vpop.f32.mrb[182].mxu0  ;;  %13781 = vmatprep.mubr.bf16.mxu1 %v13575_v7 }
 0x7ea   : > { %v16178_v38 = vadd.f32 %v13509_v21, %v20766_v24  ;;  %v13511_v37 = vpop.f32.mrb[183].mxu0  ;;  %13782 = vmatmul.mubr.bf16.gmra.mrb[208].mxu1 %v13574_v29  ;;  %v13554_v44 = vmax.f32 %v16176_v61, 0.0 }
 0x7eb   : > { %v16179_v26 = vadd.f32 %v13511_v37, %v20769_v30  ;;  %v13555_v42 = vmax.f32 %v16177_v59, 0.0 }
 0x7ec   : > { %v13556_v33 = vmax.f32 %v16178_v38, 0.0 }
 0x7ed   : > { %v13557_v48 = vmax.f32 %v16179_v26, 0.0 }
 0x7ee   : > { %v13576_v19 = vpack.c.bf16 %v13556_v33, %v13554_v44 }
 0x7ef   : > { %v13577_v4 = vpack.c.bf16 %v13557_v48, %v13555_v42  ;;  %v13515_v51 = vpop.f32.mrb[184].mxu0 }
 0x7f0   : > { %v16180_v45 = vadd.f32 %v13515_v51, %v20766_v24  ;;  %v13517_v32 = vpop.f32.mrb[185].mxu0 }
 0x7f1   : > { %v16181_v31 = vadd.f32 %v13517_v32, %v20769_v30  ;;  %v13519_v41 = vpop.f32.mrb[186].mxu0  ;;  %13789 = vmatprep.mubr.bf16.mxu1 %v13577_v4 }
 0x7f2   : > { %v16182_v17 = vadd.f32 %v13519_v41, %v20766_v24  ;;  %v13521_v6 = vpop.f32.mrb[187].mxu0  ;;  %13790 = vmatmul.mubr.bf16.gmra.mrb[212].mxu1 %v13576_v19  ;;  %v13558_v58 = vmax.f32 %v16180_v45, 0.0 }
 0x7f3   : > { %v16183_v36 = vadd.f32 %v13521_v6, %v20769_v30  ;;  %v13559_v5 = vmax.f32 %v16181_v31, 0.0 }
 0x7f4   : > { %v13560_v34 = vmax.f32 %v16182_v17, 0.0 }
 0x7f5   : > { %v13561_v2 = vmax.f32 %v16183_v36, 0.0 }
 0x7f6   : > { %v13578_v63 = vpack.c.bf16 %v13560_v34, %v13558_v58 }
 0x7f7   : > { %v13579_v12 = vpack.c.bf16 %v13561_v2, %v13559_v5  ;;  %v13525_v56 = vpop.f32.mrb[188].mxu0 }
 0x7f8   : > { %v16184_v13 = vadd.f32 %v13525_v56, %v20766_v24  ;;  %v13527_v55 = vpop.f32.mrb[189].mxu0 }
 0x7f9   : > { %v16185_v62 = vadd.f32 %v13527_v55, %v20769_v30  ;;  %v13529_v39 = vpop.f32.mrb[190].mxu0  ;;  %13797 = vmatprep.mubr.bf16.mxu1 %v13579_v12 }
 0x7fa   : > { %v16186_v3 = vadd.f32 %v13529_v39, %v20766_v24  ;;  %v13531_v43 = vpop.f32.mrb[191].mxu0  ;;  %13798 = vmatmul.mubr.bf16.gmra.mrb[216].mxu1 %v13578_v63  ;;  %v13562_v28 = vmax.f32 %v16184_v13, 0.0  ;;  %v18081_v24 = vld [vmem:[#allocation17 + $0x30] sm:$0xff]  }
 0x7fb   : > { %v16187_v57 = vadd.f32 %v13531_v43, %v20769_v30  ;;  %v13563_v18 = vmax.f32 %v16185_v62, 0.0  ;;  %15784 = vmatprep.subr.bf16.mxu1 %v18081_v24  ;;  %v18082_v30 = vld [vmem:[#allocation17 + $0x38] sm:$0xff]  }
 0x7fc   : > { %v13564_v47 = vmax.f32 %v16186_v3, 0.0  ;;  %15785 = vmatpush3.bf16.msra.mxu1 %v18081_v24 }
 0x7fd   : > { %v13565_v15 = vmax.f32 %v16187_v57, 0.0  ;;  %15786 = vmatprep.subr.bf16.mxu1 %v18082_v30 }
 0x7fe   : > { %v13580_v40 = vpack.c.bf16 %v13564_v47, %v13562_v28 }
 0x7ff   : > { %v13581_v46 = vpack.c.bf16 %v13565_v15, %v13563_v18 }
 0x800   : > { %15787 = vmatpush3.bf16.msra.mxu1 %v18082_v30 }
 0x801   : > { %13805 = vmatprep.mubr.bf16.mxu1 %v13581_v46 }
 0x802   : > { %13806 = vmatmul.mubr.bf16.gmra.mrb[220].mxu1 %v13580_v40 }
 0x89d   : > { %v15708_v20 = vpop.f32.mrb[192].mxu1 }
 0x89e   : > { %v15709_v11 = vpop.f32.mrb[193].mxu1 }
 0x89f   : > { %v15710_v0 = vadd.f32 %v15709_v11, %v15708_v20  ;;  %v15711_v49 = vpop.f32.mrb[194].mxu1 }
 0x8a0   : > { %v15712_v50 = vpop.f32.mrb[195].mxu1 }
 0x8a1   : > { %v13752_v54 = vadd.f32 %v15710_v0, %v20803_v27  ;;  %v15713_v1 = vadd.f32 %v15712_v50, %v15711_v49 }
 0x8a3   : > { %v13755_v23 = vadd.f32 %v15713_v1, %v20803_v27  ;;  %v13814_v16 = vmax.f32 %v13752_v54, 0.0 }
 0x8a5   : > { %v13815_v22 = vmax.f32 %v13755_v23, 0.0  ;;  %v15714_v35 = vpop.f32.mrb[196].mxu1 }
 0x8a6   : > { %v15715_v25 = vpop.f32.mrb[197].mxu1 }
 0x8a7   : > { %v15716_v52 = vadd.f32 %v15715_v25, %v15714_v35  ;;  %v15717_v14 = vpop.f32.mrb[198].mxu1  ;;  %v13830_v29 = vpack.c.bf16 %v13815_v22, %v13814_v16 }
 0x8a8   : > { %v15718_v7 = vpop.f32.mrb[199].mxu1 }
 0x8a9   : > { %v13760_v53 = vadd.f32 %v15716_v52, %v20803_v27  ;;  %v15719_v61 = vadd.f32 %v15718_v7, %v15717_v14  ;;  %15788 = vmatprep.mubr.bf16.mxu1 %v13830_v29 }
 0x8ab   : > { %v13763_v9 = vadd.f32 %v15719_v61, %v20803_v27  ;;  %v13816_v59 = vmax.f32 %v13760_v53, 0.0 }
 0x8ad   : > { %v13817_v21 = vmax.f32 %v13763_v9, 0.0  ;;  %v15720_v38 = vpop.f32.mrb[200].mxu1 }
 0x8ae   : > { %v15721_v37 = vpop.f32.mrb[201].mxu1 }
 0x8af   : > { %v13831_v26 = vpack.c.bf16 %v13817_v21, %v13816_v59  ;;  %v15722_v44 = vadd.f32 %v15721_v37, %v15720_v38  ;;  %v15723_v33 = vpop.f32.mrb[202].mxu1 }
 0x8b0   : > { %v15724_v42 = vpop.f32.mrb[203].mxu1 }
 0x8b1   : > { %v13768_v48 = vadd.f32 %v15722_v44, %v20803_v27  ;;  %v15725_v19 = vadd.f32 %v15724_v42, %v15723_v33  ;;  %15789 = vmatmul.mubr.bf16.vlgmr.msra.gmra.mrb[224].mxu1 %v13831_v26  ;;  %v20821_v33 = vld [vmem:[#allocation19] ss:$0 sm:$0xff] }
 0x8b3   : > { %v13771_v4 = vadd.f32 %v15725_v19, %v20803_v27  ;;  %v13818_v51 = vmax.f32 %v13768_v48, 0.0 }
 0x8b5   : > { %v13819_v45 = vmax.f32 %v13771_v4, 0.0  ;;  %v15726_v32 = vpop.f32.mrb[204].mxu1 }
 0x8b6   : > { %v15727_v31 = vpop.f32.mrb[205].mxu1 }
 0x8b7   : > { %v15728_v41 = vadd.f32 %v15727_v31, %v15726_v32  ;;  %v15729_v17 = vpop.f32.mrb[206].mxu1  ;;  %v13832_v6 = vpack.c.bf16 %v13819_v45, %v13818_v51 }
 0x8b8   : > { %v15730_v36 = vpop.f32.mrb[207].mxu1 }
 0x8b9   : > { %v13776_v58 = vadd.f32 %v15728_v41, %v20803_v27  ;;  %v15731_v34 = vadd.f32 %v15730_v36, %v15729_v17  ;;  %15792 = vmatprep.mubr.bf16.mxu1 %v13832_v6 }
 0x8bb   : > { %v13779_v5 = vadd.f32 %v15731_v34, %v20803_v27  ;;  %v13820_v2 = vmax.f32 %v13776_v58, 0.0 }
 0x8bd   : > { %v13821_v63 = vmax.f32 %v13779_v5, 0.0  ;;  %v15732_v12 = vpop.f32.mrb[208].mxu1 }
 0x8be   : > { %v15733_v56 = vpop.f32.mrb[209].mxu1 }
 0x8bf   : > { %v15734_v13 = vadd.f32 %v15733_v56, %v15732_v12  ;;  %v15735_v55 = vpop.f32.mrb[210].mxu1  ;;  %v13833_v62 = vpack.c.bf16 %v13821_v63, %v13820_v2 }
 0x8c0   : > { %v15736_v39 = vpop.f32.mrb[211].mxu1 }
 0x8c1   : > { %v13784_v3 = vadd.f32 %v15734_v13, %v20803_v27  ;;  %v15737_v43 = vadd.f32 %v15736_v39, %v15735_v55  ;;  %15793 = vmatmul.mubr.bf16.gmra.mrb[228].mxu1 %v13833_v62 }
 0x8c3   : > { %v13787_v57 = vadd.f32 %v15737_v43, %v20803_v27  ;;  %v13822_v28 = vmax.f32 %v13784_v3, 0.0 }
 0x8c5   : > { %v13823_v47 = vmax.f32 %v13787_v57, 0.0  ;;  %v15738_v18 = vpop.f32.mrb[212].mxu1 }
 0x8c6   : > { %v15739_v15 = vpop.f32.mrb[213].mxu1 }
 0x8c7   : > { %v15740_v40 = vadd.f32 %v15739_v15, %v15738_v18  ;;  %v15741_v46 = vpop.f32.mrb[214].mxu1  ;;  %v13834_v10 = vpack.c.bf16 %v13823_v47, %v13822_v28 }
 0x8c8   : > { %v15742_v8 = vpop.f32.mrb[215].mxu1 }
 0x8c9   : > { %v13792_v60 = vadd.f32 %v15740_v40, %v20803_v27  ;;  %v15743_v24 = vadd.f32 %v15742_v8, %v15741_v46  ;;  %15796 = vmatprep.mubr.bf16.mxu1 %v13834_v10 }
 0x8cb   : > { %v13795_v30 = vadd.f32 %v15743_v24, %v20803_v27  ;;  %v13824_v20 = vmax.f32 %v13792_v60, 0.0 }
 0x8cd   : > { %v13825_v11 = vmax.f32 %v13795_v30, 0.0  ;;  %v15744_v0 = vpop.f32.mrb[216].mxu1 }
 0x8ce   : > { %v15745_v49 = vpop.f32.mrb[217].mxu1 }
 0x8cf   : > { %v15746_v50 = vadd.f32 %v15745_v49, %v15744_v0  ;;  %v15747_v54 = vpop.f32.mrb[218].mxu1  ;;  %v13835_v1 = vpack.c.bf16 %v13825_v11, %v13824_v20 }
 0x8d0   : > { %v15748_v23 = vpop.f32.mrb[219].mxu1 }
 0x8d1   : > { %v13800_v16 = vadd.f32 %v15746_v50, %v20803_v27  ;;  %v15749_v22 = vadd.f32 %v15748_v23, %v15747_v54  ;;  %15797 = vmatmul.mubr.bf16.gmra.mrb[232].mxu1 %v13835_v1 }
 0x8d3   : > { %v13803_v35 = vadd.f32 %v15749_v22, %v20803_v27  ;;  %v13826_v25 = vmax.f32 %v13800_v16, 0.0 }
 0x8d5   : > { %v13827_v52 = vmax.f32 %v13803_v35, 0.0  ;;  %v15750_v14 = vpop.f32.mrb[220].mxu1 }
 0x8d6   : > { %v15751_v29 = vpop.f32.mrb[221].mxu1 }
 0x8d7   : > { %v15752_v7 = vadd.f32 %v15751_v29, %v15750_v14  ;;  %v15753_v53 = vpop.f32.mrb[222].mxu1  ;;  %v13836_v61 = vpack.c.bf16 %v13827_v52, %v13826_v25 }
 0x8d8   : > { %v15754_v9 = vpop.f32.mrb[223].mxu1 }
 0x8d9   : > { %v13808_v59 = vadd.f32 %v15752_v7, %v20803_v27  ;;  %v15755_v21 = vadd.f32 %v15754_v9, %v15753_v53  ;;  %15800 = vmatprep.mubr.bf16.mxu1 %v13836_v61 }
 0x8db   : > { %v13811_v38 = vadd.f32 %v15755_v21, %v20803_v27  ;;  %v13828_v37 = vmax.f32 %v13808_v59, 0.0 }
 0x8dd   : > { %v13829_v26 = vmax.f32 %v13811_v38, 0.0 }
 0x8df   : > { %v13837_v44 = vpack.c.bf16 %v13829_v26, %v13828_v37 }
 0x8e1   : > { %15801 = vmatmul.mubr.bf16.gmra.mrb[236].mxu1 %v13837_v44 }
 0x984   : > { %v15790_v42 = vpop.f32.mrb[224].mxu1 }
 0x985   : > { %v13952_v48 = vadd.f32 %v15790_v42, %v20821_v33  ;;  %v13943_v19 = vpop.f32.mrb[225].mxu1 }
 0x986   : > { %v13944_v4 = vadd.f32 %v20821_v33, %v13943_v19  ;;  %v15791_v51 = vpop.f32.mrb[226].mxu1 }
 0x987   : > { %v15670_v45 = vmul.f32 -1.442695, %v13952_v48  ;;  %v13955_v32 = vadd.f32 %v15791_v51, %v20821_v33  ;;  %v13946_v31 = vpop.f32.mrb[227].mxu1 }
 0x988   : > { %v15668_v41 = vmul.f32 -1.442695, %v13944_v4  ;;  %v13947_v27 = vadd.f32 %v20821_v33, %v13946_v31 }
 0x989   : > { %18083 = vpow2.f32 %v15670_v45  ;;  %v15671_v17 = vmul.f32 -1.442695, %v13955_v32 }
 0x98a   : > { %18085 = vpow2.f32 %v15668_v41  ;;  %v15669_v6 = vmul.f32 -1.442695, %v13947_v27 }
 0x98b   : > { %18087 = vpow2.f32 %v15671_v17 }
 0x98c   : > { %18089 = vpow2.f32 %v15669_v6 }
 0x993   : > { %v18084_v36 = vpop.eup %18083 }
 0x994   : > { %v18086_v58 = vpop.eup %18085  ;;  %v14056_v34 = vadd.f32 1.0, %v18084_v36  ;;  %v15794_v5 = vpop.f32.mrb[228].mxu1 }
 0x995   : > { %v18088_v2 = vpop.eup %18087  ;;  %v14054_v63 = vadd.f32 1.0, %v18086_v58  ;;  %v13968_v12 = vadd.f32 %v15794_v5, %v20821_v33  ;;  %v13959_v56 = vpop.f32.mrb[229].mxu1 }
 0x996   : > { %v18090_v13 = vpop.eup %18089  ;;  %18091 = vrcp.f32 %v14056_v34  ;;  %v14057_v55 = vadd.f32 1.0, %v18088_v2  ;;  %v13960_v62 = vadd.f32 %v20821_v33, %v13959_v56  ;;  %v15795_v39 = vpop.f32.mrb[230].mxu1 }
 0x997   : > { %18093 = vrcp.f32 %v14054_v63  ;;  %v14055_v3 = vadd.f32 1.0, %v18090_v13  ;;  %v15674_v43 = vmul.f32 -1.442695, %v13968_v12  ;;  %v13971_v57 = vadd.f32 %v15795_v39, %v20821_v33  ;;  %v13962_v28 = vpop.f32.mrb[231].mxu1 }
 0x998   : > { %18095 = vrcp.f32 %v14057_v55  ;;  %v15672_v47 = vmul.f32 -1.442695, %v13960_v62  ;;  %v13963_v18 = vadd.f32 %v20821_v33, %v13962_v28 }
 0x999   : > { %18097 = vrcp.f32 %v14055_v3  ;;  %v15675_v15 = vmul.f32 -1.442695, %v13971_v57 }
 0x99a   : > { %18099 = vpow2.f32 %v15674_v43  ;;  %v15673_v40 = vmul.f32 -1.442695, %v13963_v18 }
 0x99b   : > { %18101 = vpow2.f32 %v15672_v47 }
 0x99c   : > { %18103 = vpow2.f32 %v15675_v15 }
 0x99d   : > { %18105 = vpow2.f32 %v15673_v40 }
 0x9a0   : > { %v18092_v46 = vpop.eup %18091 }
 0x9a1   : > { %v18094_v10 = vpop.eup %18093  ;;  %14104 = vst [vmem:[%s20832_s24 + $0x10] sm:$0xff] %v18092_v46 }
 0x9a2   : > { %v18096_v8 = vpop.eup %18095  ;;  %14102 = vst [vmem:[%s20832_s24] sm:$0xff] %v18094_v10 }
 0x9a3   : > { %v18098_v60 = vpop.eup %18097  ;;  %14105 = vst [vmem:[%s20832_s24 + $0x18] sm:$0xff] %v18096_v8 }
 0x9a4   : > { %v18100_v24 = vpop.eup %18099  ;;  %14103 = vst [vmem:[%s20832_s24 + $0x8] sm:$0xff] %v18098_v60  ;;  %v15798_v30 = vpop.f32.mrb[232].mxu1 }
 0x9a5   : > { %v18102_v20 = vpop.eup %18101  ;;  %v14060_v11 = vadd.f32 1.0, %v18100_v24  ;;  %v13984_v0 = vadd.f32 %v15798_v30, %v20821_v33  ;;  %v13975_v49 = vpop.f32.mrb[233].mxu1 }
 0x9a6   : > { %v18104_v50 = vpop.eup %18103  ;;  %v14058_v54 = vadd.f32 1.0, %v18102_v20  ;;  %v13976_v1 = vadd.f32 %v20821_v33, %v13975_v49  ;;  %v15799_v23 = vpop.f32.mrb[234].mxu1 }
 0x9a7   : > { %v18106_v16 = vpop.eup %18105  ;;  %18107 = vrcp.f32 %v14060_v11  ;;  %v14061_v22 = vadd.f32 1.0, %v18104_v50  ;;  %v15678_v35 = vmul.f32 -1.442695, %v13984_v0  ;;  %v13987_v25 = vadd.f32 %v15799_v23, %v20821_v33  ;;  %v13978_v52 = vpop.f32.mrb[235].mxu1 }
 0x9a8   : > { %18109 = vrcp.f32 %v14058_v54  ;;  %v14059_v14 = vadd.f32 1.0, %v18106_v16  ;;  %v15676_v29 = vmul.f32 -1.442695, %v13976_v1  ;;  %v13979_v7 = vadd.f32 %v20821_v33, %v13978_v52 }
 0x9a9   : > { %18111 = vrcp.f32 %v14061_v22  ;;  %v15679_v53 = vmul.f32 -1.442695, %v13987_v25 }
 0x9aa   : > { %18113 = vrcp.f32 %v14059_v14  ;;  %v15677_v61 = vmul.f32 -1.442695, %v13979_v7 }
 0x9ab   : > { %18115 = vpow2.f32 %v15678_v35 }
 0x9ac   : > { %18117 = vpow2.f32 %v15676_v29 }
 0x9ad   : > { %18119 = vpow2.f32 %v15679_v53 }
 0x9ae   : > { %18121 = vpow2.f32 %v15677_v61 }
 0x9b1   : > { %v18108_v9 = vpop.eup %18107 }
 0x9b2   : > { %v18110_v59 = vpop.eup %18109  ;;  %14108 = vst [vmem:[%s20832_s24 + $0x30] sm:$0xff] %v18108_v9 }
 0x9b3   : > { %v18112_v21 = vpop.eup %18111  ;;  %14106 = vst [vmem:[%s20832_s24 + $0x20] sm:$0xff] %v18110_v59 }
 0x9b4   : > { %v18114_v38 = vpop.eup %18113  ;;  %14109 = vst [vmem:[%s20832_s24 + $0x38] sm:$0xff] %v18112_v21  ;;  %v15802_v37 = vpop.f32.mrb[236].mxu1 }
 0x9b5   : > { %v18116_v26 = vpop.eup %18115  ;;  %14107 = vst [vmem:[%s20832_s24 + $0x28] sm:$0xff] %v18114_v38  ;;  %v14000_v44 = vadd.f32 %v15802_v37, %v20821_v33  ;;  %v13991_v42 = vpop.f32.mrb[237].mxu1 }
 0x9b6   : > { %v18118_v48 = vpop.eup %18117  ;;  %v14064_v19 = vadd.f32 1.0, %v18116_v26  ;;  %v13992_v4 = vadd.f32 %v20821_v33, %v13991_v42  ;;  %v15803_v51 = vpop.f32.mrb[238].mxu1 }
 0x9b7   : > { %v18120_v45 = vpop.eup %18119  ;;  %v14062_v32 = vadd.f32 1.0, %v18118_v48  ;;  %v14003_v31 = vadd.f32 %v15803_v51, %v20821_v33  ;;  %v13994_v41 = vpop.f32.mrb[239].mxu1  ;;  %v15682_v6 = vmul.f32 -1.442695, %v14000_v44 }
 0x9b8   : > { %v18122_v27 = vpop.eup %18121  ;;  %18123 = vrcp.f32 %v14064_v19  ;;  %v14065_v17 = vadd.f32 1.0, %v18120_v45  ;;  %v13995_v36 = vadd.f32 %v20821_v33, %v13994_v41  ;;  %v15680_v34 = vmul.f32 -1.442695, %v13992_v4 }
 0x9b9   : > { %18125 = vrcp.f32 %v14062_v32  ;;  %v14063_v58 = vadd.f32 1.0, %v18122_v27  ;;  %v15683_v5 = vmul.f32 -1.442695, %v14003_v31 }
 0x9ba   : > { %18127 = vrcp.f32 %v14065_v17  ;;  %v15681_v2 = vmul.f32 -1.442695, %v13995_v36 }
 0x9bb   : > { %18129 = vrcp.f32 %v14063_v58 }
 0x9bc   : > { %18131 = vpow2.f32 %v15682_v6 }
 0x9bd   : > { %18133 = vpow2.f32 %v15680_v34 }
 0x9be   : > { %18135 = vpow2.f32 %v15683_v5 }
 0x9bf   : > { %18137 = vpow2.f32 %v15681_v2 }
 0x9c2   : > { %v18124_v63 = vpop.eup %18123 }
 0x9c3   : > { %v18126_v12 = vpop.eup %18125  ;;  %14112 = vst [vmem:[%s20832_s24 + $0x50] sm:$0xff] %v18124_v63 }
 0x9c4   : > { %v18128_v56 = vpop.eup %18127  ;;  %14110 = vst [vmem:[%s20832_s24 + $0x40] sm:$0xff] %v18126_v12 }
 0x9c5   : > { %v18130_v33 = vpop.eup %18129  ;;  %14113 = vst [vmem:[%s20832_s24 + $0x58] sm:$0xff] %v18128_v56 }
 0x9c6   : > { %v18132_v13 = vpop.eup %18131  ;;  %14111 = vst [vmem:[%s20832_s24 + $0x48] sm:$0xff] %v18130_v33 }
 0x9c7   : > { %v18134_v55 = vpop.eup %18133  ;;  %v14068_v62 = vadd.f32 1.0, %v18132_v13 }
 0x9c8   : > { %v18136_v39 = vpop.eup %18135  ;;  %v14066_v3 = vadd.f32 1.0, %v18134_v55 }
 0x9c9   : > { %v18138_v43 = vpop.eup %18137  ;;  %18139 = vrcp.f32 %v14068_v62  ;;  %v14069_v57 = vadd.f32 1.0, %v18136_v39 }
 0x9ca   : > { %18141 = vrcp.f32 %v14066_v3  ;;  %v14067_v28 = vadd.f32 1.0, %v18138_v43 }
 0x9cb   : > { %18143 = vrcp.f32 %v14069_v57 }
 0x9cc   : > { %18145 = vrcp.f32 %v14067_v28 }
 0x9d3   : > { %v18140_v47 = vpop.eup %18139 }
 0x9d4   : > { %v18142_v18 = vpop.eup %18141  ;;  %14116 = vst [vmem:[%s20832_s24 + $0x70] sm:$0xff] %v18140_v47 }
 0x9d5   : > { %v18144_v15 = vpop.eup %18143  ;;  %14114 = vst [vmem:[%s20832_s24 + $0x60] sm:$0xff] %v18142_v18 }
 0x9d6   : > { %v18146_v40 = vpop.eup %18145  ;;  %14117 = vst [vmem:[%s20832_s24 + $0x78] sm:$0xff] %v18144_v15 }
 0x9d7   : > { %14115 = vst [vmem:[%s20832_s24 + $0x68] sm:$0xff] %v18146_v40 }
 0x9d8   : > { %18555 = shalt.err (!%p18552_p3)
}
 0x9d9   : > { %s18556_s24 = scalar_lea.hbm %s20860_s27, 2048  ;;  %s18560_s11 = scalar_lea.hbm %s21438_s14, 4096 }
 0x9da   : > { %p18557_p0 = scmp.ne.s32.totalorder %s20860_s27, %s18556_s24  ;;  %p18561_p5 = scmp.lt.u32.totalorder %s20860_s27, %s21438_s14 }
 0x9db   : > { %p18562_p10 = scmp.lt.u32.totalorder %s18560_s11, %s18556_s24  ;;  %p18564_p11 = scmp.lt.u32.totalorder %s18556_s24, %s20860_s27 }
 0x9dc   : > { %p18558_p2 = pnand %p18557_p0, %p21439_p12 }
 0x9dd   : > { %p18563_p1 = por %p18562_p10, %p18561_p5 }
 0x9de   : > { %p18559_p6 = pneg %p18558_p2 }
 0x9df   : > { %p18565_p13 = por %p18564_p11, %p18563_p1 }
 0x9e1   : > { %p18566_p8 = pnand %p18565_p13, %p18559_p6 }
 0x9e3   : > { %18569 = shalt.err (!%p18566_p8)
}
 0x9e4   : > { %s18652_s25 = smov 128   ;;  %s18653_s1 = smov 8  }
 0x9e5   : > { %17126 = dma.vmem_to_hbm [thread:$0]  (%p21439_p12), %s20862_s15, 2048, %s20860_s27, %s14119_s23, %s18652_s25, %s18652_s25, %s18653_s1  }
 0x9e6 PF: > { %s14147_s12 = sand.u32 1, %s18616_s17   ;;  %p21440_p7 = scmp.ne.s32.totalorder %s21122_s22, 0 }
 0x9e7   : > { %p21441_p9 = scmp.ge.s32.totalorder %s18628_s20, 2  ;;  %s14148_s24 = scalar_lea.sflag [#allocation4], %s14147_s12 }
 0x9e9   : > { %p17164_p4 = pnand %p21441_p9, %p21440_p7 }
 0x9eb   : > { %18611 = dma.done.wait (!%p17164_p4), %s14148_s24, 2048  }
 0x9ec   : > { %18613 = vsyncadd (!%p17164_p4), %s14148_s24, 4294965248  ;;  %p29_p3 = scmp.ge.s32.totalorder %s18980_s16, 4   ;;  %s21442_s17 = smov %s18620_s18 }
 0x9ed   : > { %s21443_s18 = smov %s18624_s19  ;;  %s21444_s19 = smov %s18991_s13 }
 0x9ee   : > { %s21445_s20 = smov %s18980_s16  ;;  %31 = sbr.rel (!%p29_p3) target bundleno = 14 (0xe), region = 149 }
 0x9f5   :  { %14153 = vsyncpa [#allocation3], 1 }
 0x9f6   :  { %14155 = vsyncpa [#allocation3 + $0x1], 1 }
 0x9f7   :  { %14156 = vsyncpa [#allocation6], 1 }
 0x9f8   :  { %14157 = vsyncpa [#allocation9], 1 }
 0x9f9   :  { %14158 = vsyncpa [#allocation12], 1 }
 0x9fa   :  { %14159 = vsyncpa [#allocation15], 1 }
 0x9fb   :  { %14160 = vsyncpa [#allocation18], 1 }
 0x9fc   :  { %14161 = vsyncpa [#allocation4], 1 }
 0x9fd   :  { %14163 = vsyncpa [#allocation4 + $0x1], 1 }

</bundles_post_ra>
